<compile_context>
chip_gen: v7x
topology: tpu7x:2x2x1
jax: 0.10.0
libtpu: 0.0.40
codegen_flags: <defaults>
</compile_context>

<pallas_src>
import jax
import jax.numpy as jnp
from jax.experimental import pallas as pl
from jax.experimental.pallas import tpu as pltpu


def _round_up(x, m):
    return ((x + m - 1) // m) * m


def _patch_embed_kernel(x_ref, w_ref, b_ref, o_ref):
    # x_ref: (TM, D_in), w_ref: (D_in, D_out), b_ref: (1, D_out) f32, o_ref: (TM, D_out)
    acc = jnp.dot(x_ref[...], w_ref[...], preferred_element_type=jnp.float32)
    o_ref[...] = (acc + b_ref[...]).astype(o_ref.dtype)


def patch_embed(x, weight, bias, *, tile_m=512):
    """PatchEmbed.forward: x (B, L, D_in) -> (B, L, D_out).

    weight: (D_in, D_out) (= torch nn.Linear weight transposed), bias: (D_out,).
    norm_layer=None -> nn.Identity, so no normalization is applied.
    """
    B, L, D_in = x.shape
    assert weight.shape[0] == D_in
    D_out = weight.shape[1]
    M = B * L

    dtype = x.dtype
    itemsize = jnp.dtype(dtype).itemsize
    # Sublane granule: 8 rows for 32-bit, 16 for 16-bit (bf16/fp16) packing.
    sub = 8 if itemsize >= 4 else (16 if itemsize == 2 else 32)

    # --- choose the M tile: as large as requested, capped by M and VMEM ---
    tm = max(sub, min(_round_up(tile_m, sub), _round_up(M, sub)))

    def vmem_est(t):
        x_tile = t * D_in * itemsize
        o_tile = t * D_out * itemsize
        w_res = 2 * D_in * D_out * itemsize   # weight pipeline buffers (constant index)
        b_res = 2 * D_out * 4
        return 2 * x_tile + 2 * o_tile + w_res + b_res

    vmem_budget = 40 * 1024 * 1024  # conservative; fits v7x's 64 MiB physical VMEM
    while tm > sub and vmem_est(tm) > vmem_budget:
        tm = max(sub, _round_up(tm // 2, sub))

    # --- pad the row dimension so every grid step runs the full tile ---
    M_pad = _round_up(M, tm)
    grid_m = M_pad // tm

    x2d = x.reshape(M, D_in)
    if M_pad != M:
        x2d = jnp.pad(x2d, ((0, M_pad - M), (0, 0)))
    w2d = weight.astype(dtype)
    b2d = bias.reshape(1, D_out).astype(jnp.float32)  # bias added in f32 accumulator

    cost = pl.CostEstimate(
        flops=2 * M_pad * D_in * D_out,
        transcendentals=0,
        bytes_accessed=(M_pad * D_in + D_in * D_out + M_pad * D_out) * itemsize,
    )

    vmem_limit = int(min(64 * 1024 * 1024,
                         max(32 * 1024 * 1024, 2 * vmem_est(tm))))

    out2d = pl.pallas_call(
        _patch_embed_kernel,
        out_shape=jax.ShapeDtypeStruct((M_pad, D_out), dtype),
        grid_spec=pltpu.PrefetchScalarGridSpec(
            num_scalar_prefetch=0,
            grid=(grid_m,),
            in_specs=[
                # Activations: stream M tiles (double-buffered by the pipeline).
                pl.BlockSpec((tm, D_in), lambda i: (i, 0)),
                # Weight / bias: constant block index -> DMA'd once per core,
                # stays resident across all grid steps.
                pl.BlockSpec((D_in, D_out), lambda i: (0, 0)),
                pl.BlockSpec((1, D_out), lambda i: (0, 0)),
            ],
            out_specs=pl.BlockSpec((tm, D_out), lambda i: (i, 0)),
        ),
        compiler_params=pltpu.CompilerParams(
            dimension_semantics=("parallel",),   # megacore sharding on v7x
            vmem_limit_bytes=vmem_limit,
        ),
        cost_estimate=cost,
    )(x2d, w2d, b2d)

    out2d = out2d[:M]
    # norm_layer=None -> nn.Identity: nothing else to do.
    return out2d.reshape(B, L, D_out)


if __name__ == "__main__":
    # Shapes consistent with the module's forward (B, L, in_chans); feature
    # dims match the gigapath defaults so the output lane axis (768) is a
    # 128-multiple; B*L kept small.
    B, L, in_chans, embed_dim = 2, 168, 1536, 768

    key = jax.random.PRNGKey(0)
    kx, kw, kb = jax.random.split(key, 3)

    x = jax.random.normal(kx, (B, L, in_chans), dtype=jnp.float32)
    # nn.Linear(in_chans, embed_dim, bias=True) params, weight stored as
    # (in_chans, embed_dim) = torch weight.T for a plain x @ W matmul.
    weight = jax.random.normal(kw, (in_chans, embed_dim), dtype=jnp.float32) * 0.02
    bias = jax.random.normal(kb, (embed_dim,), dtype=jnp.float32) * 0.02

    # Full-precision reference (same math as torch.nn.Linear).
    ref = (jnp.einsum("bld,de->ble", x, weight,
                      precision=jax.lax.Precision.HIGHEST) + bias)

    # fp32 path: single large tile (M=336 fits in one block, no padding).
    out_f32 = jax.block_until_ready(patch_embed(x, weight, bias))
    assert out_f32.shape == (B, L, embed_dim)
    assert jnp.allclose(out_f32, ref, atol=2e-3, rtol=2e-3)

    # bf16 path (f32 accumulation): smaller tile to also exercise a multi-step
    # grid plus the ragged-tail zero-padding (M=336 -> padded to 384, 3 steps).
    out_bf16 = jax.block_until_ready(
        patch_embed(x.astype(jnp.bfloat16), weight.astype(jnp.bfloat16), bias,
                    tile_m=128))
    assert out_bf16.shape == (B, L, embed_dim)
    assert out_bf16.dtype == jnp.bfloat16
    max_err = jnp.max(jnp.abs(out_bf16.astype(jnp.float32) - ref))
    assert max_err < 8e-2, max_err

    print("KERNEL_OK")
</pallas_src>

<mosaic_0001>
module attributes {stable_mosaic.version = 11 : i64} {
  func.func @_patch_embed_kernel(%arg0: i32, %arg1: memref<336x1536xf32, #tpu.memory_space<vmem>>, %arg2: memref<1536x768xf32, #tpu.memory_space<vmem>>, %arg3: memref<1x768xf32, #tpu.memory_space<vmem>>, %arg4: memref<336x768xf32, #tpu.memory_space<vmem>>) attributes {dimension_semantics = [#tpu.dimension_semantics<parallel>], iteration_bounds = array<i64: 1>, scalar_prefetch = 0 : i64, scratch_operands = 0 : i64, tpu.core_type = #tpu.core_type<tc>, window_params = [{transform_indices = @transform_0, window_bounds = array<i64: 336, 1536>}, {pipeline_mode = #tpu.pipeline_mode<synchronous>, transform_indices = @transform_1, window_bounds = array<i64: 1536, 768>}, {pipeline_mode = #tpu.pipeline_mode<synchronous>, transform_indices = @transform_2, window_bounds = array<i64: 1, 768>}, {transform_indices = @transform_3, window_bounds = array<i64: 336, 768>}]} {
    %c0 = arith.constant 0 : index
    %c0_0 = arith.constant 0 : index
    %0 = vector.load %arg1[%c0, %c0_0] : memref<336x1536xf32, #tpu.memory_space<vmem>>, vector<336x1536xf32>
    %c0_1 = arith.constant 0 : index
    %c0_2 = arith.constant 0 : index
    %1 = vector.load %arg2[%c0_1, %c0_2] : memref<1536x768xf32, #tpu.memory_space<vmem>>, vector<1536x768xf32>
    %cst = arith.constant dense<0.000000e+00> : vector<336x768xf32>
    %2 = tpu.matmul %0, %1, %cst {dimension_numbers = #tpu.dot_dimension_numbers<[1], [0], [0], [1], [0, 0, 1, 1], [], []>} : vector<336x1536xf32>, vector<1536x768xf32>, vector<336x768xf32> -> vector<336x768xf32>
    %c0_3 = arith.constant 0 : index
    %c0_4 = arith.constant 0 : index
    %3 = vector.load %arg3[%c0_3, %c0_4] : memref<1x768xf32, #tpu.memory_space<vmem>>, vector<1x768xf32>
    %4 = vector.broadcast %3 : vector<1x768xf32> to vector<336x768xf32>
    %5 = arith.addf %2, %4 : vector<336x768xf32>
    %c0_5 = arith.constant 0 : index
    %c0_6 = arith.constant 0 : index
    %6 = vector.load %arg4[%c0_5, %c0_6] : memref<336x768xf32, #tpu.memory_space<vmem>>, vector<336x768xf32>
    tpu.vector_store %arg4[%c0_5, %c0_6], %5 {strides = array<i32>} : memref<336x768xf32, #tpu.memory_space<vmem>>, vector<336x768xf32>,
    return
  }
  func.func @transform_0(%arg0: i32) -> (i32, i32) {
    %c0_i32 = arith.constant 0 : i32
    %c0_i32_0 = arith.constant 0 : i32
    return %arg0, %c0_i32 : i32, i32
  }
  func.func @transform_1(%arg0: i32) -> (i32, i32) {
    %c0_i32 = arith.constant 0 : i32
    %c0_i32_0 = arith.constant 0 : i32
    %c0_i32_1 = arith.constant 0 : i32
    return %c0_i32, %c0_i32_0 : i32, i32
  }
  func.func @transform_2(%arg0: i32) -> (i32, i32) {
    %c0_i32 = arith.constant 0 : i32
    %c0_i32_0 = arith.constant 0 : i32
    %c0_i32_1 = arith.constant 0 : i32
    return %c0_i32, %c0_i32_0 : i32, i32
  }
  func.func @transform_3(%arg0: i32) -> (i32, i32) {
    %c0_i32 = arith.constant 0 : i32
    %c0_i32_0 = arith.constant 0 : i32
    return %arg0, %c0_i32 : i32, i32
  }
}

</mosaic_0001>

<bundles_post_ra>
// kernel: tpu_custom_call.1
= control target key start
LH: loop header
LB: loop body
LE: loop exit
PB: predicated region body
PF: predicated region fallthrough
CT: control target
= control target key end

     0   :  { %8 = vsyncpa [#allocation3], 0  ;;  %s11343_s0 = inlined_call_operand.hbm [shape: f32[336,1536], index: 0, kind: input, shape index: {}]   ;;  %s11344_s1 = inlined_call_operand.hbm [shape: f32[1536,768], index: 1, kind: input, shape index: {}]   ;;  %s11345_s2 = inlined_call_operand.hbm [shape: f32[1,768], index: 2, kind: input, shape index: {}]   ;;  %s11346_s3 = inlined_call_operand.hbm [shape: f32[336,768], index: 3, kind: output, shape index: {}]  }
   0x1   :  { %9 = vsyncpa [#allocation6], 0 }
   0x2   :  { %10 = vsyncpa [#allocation4], 0  ;;  %s10989_s12 = smov [#allocation5]   ;;  %s10895_s16 = scalar_lea.hbm %s11344_s1, 147456 }
   0x3   :  { %s28_s13 = sshll.u32 %s10989_s12, 4  ;;  %p10896_p0 = scmp.ne.s32.totalorder %s11344_s1, %s10895_s16  ;;  %s29_s13 = int_to_ptr.vmem [resolvable:$true] %s28_s13 }
   0x4   :  { %p10899_p1 = scmp.lt.u32.totalorder %s10895_s16, %s11344_s1 }
   0x6   :  { %p10901_p2 = pnand %p10899_p1, %p10896_p0 }
   0x8   :  { %10904 = shalt.err (!%p10901_p2)
}
   0x9   :  { %s10905_s21 = scalar_lea.vmem %s29_s13, 147456  ;;  %p10910_p4 = scmp.lt.s32.totalorder %s29_s13, %s29_s13 }
   0xa   :  { %p10906_p3 = scmp.ne.s32.totalorder %s29_s13, %s10905_s21  ;;  %p10911_p5 = scmp.lt.s32.totalorder %s10905_s21, %s10905_s21 }
   0xc   :  { %p10912_p6 = por %p10911_p5, %p10910_p4 }
   0xe   :  { %p10913_p7 = pnand %p10912_p6, %p10906_p3 }
  0x10   :  { %10916 = shalt.err (!%p10913_p7)
}
  0x11   :  { %s10990_s22 = smov 768   ;;  %s10991_s23 = smov 48  }
  0x12   :  { %34 = dma.hbm_to_vmem [thread:$0]  %s11344_s1, 147456, %s29_s13, [#allocation6], %s10990_s22, %s10990_s22, %s10991_s23  }
  0x13   :  { %s10992_s26 = smov [#allocation2]   ;;  %s10917_s30 = scalar_lea.hbm %s11343_s0, 64512 }
  0x14   :  { %s16_s27 = sshll.u32 %s10992_s26, 4  ;;  %p10918_p8 = scmp.ne.s32.totalorder %s11343_s0, %s10917_s30  ;;  %s17_s27 = int_to_ptr.vmem [resolvable:$true] %s16_s27 }
  0x15   :  { %p10921_p9 = scmp.lt.u32.totalorder %s10917_s30, %s11343_s0 }
  0x17   :  { %p10923_p10 = pnand %p10921_p9, %p10918_p8 }
  0x19   :  { %10926 = shalt.err (!%p10923_p10)
}
  0x1a   :  { %s10927_s8 = scalar_lea.vmem %s17_s27, 64512  ;;  %p10932_p12 = scmp.lt.s32.totalorder %s17_s27, %s17_s27 }
  0x1b   :  { %p10928_p11 = scmp.ne.s32.totalorder %s17_s27, %s10927_s8  ;;  %p10933_p13 = scmp.lt.s32.totalorder %s10927_s8, %s10927_s8 }
  0x1d   :  { %p10934_p0 = por %p10933_p13, %p10932_p12 }
  0x1f   :  { %p10935_p1 = pnand %p10934_p0, %p10928_p11 }
  0x21   :  { %10938 = shalt.err (!%p10935_p1)
}
  0x22   :  { %s10993_s1 = smov 1536   ;;  %s10994_s9 = smov 96  }
  0x23   :  { %22 = dma.hbm_to_vmem [thread:$0]  %s11343_s0, 64512, %s17_s27, [#allocation3], %s10993_s1, %s10993_s1, %s10994_s9  }
  0x24   :  { %s10995_s12 = smov [#allocation7]   ;;  %s10939_s16 = scalar_lea.hbm %s11345_s2, 96 }
  0x25   :  { %s41_s13 = sshll.u32 %s10995_s12, 4  ;;  %p10940_p2 = scmp.ne.s32.totalorder %s11345_s2, %s10939_s16  ;;  %s42_s13 = int_to_ptr.vmem [resolvable:$true] %s41_s13 }
  0x26   :  { %p10943_p3 = scmp.lt.u32.totalorder %s10939_s16, %s11345_s2 }
  0x28   :  { %p10945_p4 = pnand %p10943_p3, %p10940_p2 }
  0x2a   :  { %10948 = shalt.err (!%p10945_p4)
}
  0x2b   :  { %s10949_s21 = scalar_lea.vmem %s42_s13, 96  ;;  %p10954_p6 = scmp.lt.s32.totalorder %s42_s13, %s42_s13 }
  0x2c   :  { %p10950_p5 = scmp.ne.s32.totalorder %s42_s13, %s10949_s21  ;;  %p10955_p7 = scmp.lt.s32.totalorder %s10949_s21, %s10949_s21 }
  0x2e   :  { %p10956_p8 = por %p10955_p7, %p10954_p6 }
  0x30   :  { %p10957_p9 = pnand %p10956_p8, %p10950_p5 }
  0x32   :  { %10960 = shalt.err (!%p10957_p9)
}
  0x33   :  { %44 = dma.hbm_to_vmem [thread:$0]  %s11345_s2, 96, %s42_s13, [#allocation6]  }
  0x34   :  { %10983 = dma.done.wait [#allocation3], 64512  }
  0x35   :  { %10984 = vsyncadd [#allocation3], 4294902784 }
  0x36   :  { %10985 = dma.done.wait [#allocation6], 147552  }
  0x37   :  { %10986 = vsyncadd [#allocation6], 4294819744  ;;  %v559_v0 = vld [vmem:[#allocation5 + $0x8] sm:$0xff]  ;;  %v565_v1 = vld [vmem:[#allocation5 + $0x38] sm:$0xff]  ;;  %s10996_s2 = smov [#allocation8]  }
  0x38   :  { %v1135_v2 = vld [vmem:[#allocation5 + $0x1208] sm:$0xff]  ;;  %v7718_v3 = vpack.c.bf16 %v565_v1, %v559_v0  ;;  %v1141_v4 = vld [vmem:[#allocation5 + $0x1238] sm:$0xff]  ;;  %v558_v5 = vld [vmem:[#allocation5] sm:$0xff]  ;;  %s7705_s25 = sshll.u32 %s10996_s2, 4  ;;  %s7706_s25 = int_to_ptr.vmem [resolvable:$true] %s7705_s25 }
  0x39   :  { %v564_v6 = vld [vmem:[#allocation5 + $0x30] sm:$0xff]  ;;  %v7910_v7 = vpack.c.bf16 %v1141_v4, %v1135_v2  ;;  %v1134_v9 = vld [vmem:[#allocation5 + $0x1200] sm:$0xff]  ;;  %v571_v11 = vld [vmem:[#allocation5 + $0x68] sm:$0xff]  ;;  %s10961_s26 = scalar_lea.vmem %s7706_s25, 32256  ;;  %p10966_p11 = scmp.lt.s32.totalorder %s7706_s25, %s7706_s25 }
  0x3a   :  { %v7720_v8 = vpack.c.bf16 %v564_v6, %v558_v5  ;;  %v1140_v10 = vld [vmem:[#allocation5 + $0x1230] sm:$0xff]  ;;  %7719 = vmatprep.subr.bf16.mxu1 %v7718_v3  ;;  %v577_v13 = vld [vmem:[#allocation5 + $0x98] sm:$0xff]  ;;  %v1147_v14 = vld [vmem:[#allocation5 + $0x1268] sm:$0xff]  ;;  %p10962_p10 = scmp.ne.s32.totalorder %s7706_s25, %s10961_s26  ;;  %p10967_p12 = scmp.lt.s32.totalorder %s10961_s26, %s10961_s26 }
  0x3b   :  { %v7912_v12 = vpack.c.bf16 %v1140_v10, %v1134_v9  ;;  %v1153_v15 = vld [vmem:[#allocation5 + $0x1298] sm:$0xff]  ;;  %7911 = vmatprep.subr.bf16.mxu0 %v7910_v7  ;;  %v7722_v16 = vpack.c.bf16 %v577_v13, %v571_v11  ;;  %v570_v18 = vld [vmem:[#allocation5 + $0x60] sm:$0xff]  ;;  %v576_v19 = vld [vmem:[#allocation5 + $0x90] sm:$0xff] }
  0x3c   :  { %7721 = vmatpush1.bf16.msra.mxu1 %v7720_v8  ;;  %v7914_v17 = vpack.c.bf16 %v1153_v15, %v1147_v14  ;;  %v1146_v20 = vld [vmem:[#allocation5 + $0x1260] sm:$0xff]  ;;  %v7724_v21 = vpack.c.bf16 %v576_v19, %v570_v18  ;;  %v1152_v22 = vld [vmem:[#allocation5 + $0x1290] sm:$0xff]  ;;  %v583_v23 = vld [vmem:[#allocation5 + $0xc8] sm:$0xff]  ;;  %p10968_p13 = por %p10967_p12, %p10966_p11 }
  0x3d   :  { %7913 = vmatpush1.bf16.msra.mxu0 %v7912_v12  ;;  %v589_v24 = vld [vmem:[#allocation5 + $0xf8] sm:$0xff]  ;;  %7723 = vmatprep.subr.bf16.mxu1 %v7722_v16  ;;  %v7916_v25 = vpack.c.bf16 %v1152_v22, %v1146_v20  ;;  %v1159_v27 = vld [vmem:[#allocation5 + $0x12c8] sm:$0xff]  ;;  %v582_v29 = vld [vmem:[#allocation5 + $0xc0] sm:$0xff] }
  0x3e   :  { %7915 = vmatprep.subr.bf16.mxu0 %v7914_v17  ;;  %v7726_v26 = vpack.c.bf16 %v589_v24, %v583_v23  ;;  %v1165_v28 = vld [vmem:[#allocation5 + $0x12f8] sm:$0xff]  ;;  %v588_v31 = vld [vmem:[#allocation5 + $0xf0] sm:$0xff]  ;;  %v1158_v32 = vld [vmem:[#allocation5 + $0x12c0] sm:$0xff]  ;;  %p10969_p0 = pnand %p10968_p13, %p10962_p10 }
  0x3f   :  { %v7918_v30 = vpack.c.bf16 %v1165_v28, %v1159_v27  ;;  %v1164_v33 = vld [vmem:[#allocation5 + $0x12f0] sm:$0xff]  ;;  %v7728_v34 = vpack.c.bf16 %v588_v31, %v582_v29  ;;  %v595_v35 = vld [vmem:[#allocation5 + $0x128] sm:$0xff]  ;;  %v601_v36 = vld [vmem:[#allocation5 + $0x158] sm:$0xff] }
  0x40   :  { %7725 = vmatpush1.bf16.msra.mxu1 %v7724_v21  ;;  %v1171_v37 = vld [vmem:[#allocation5 + $0x1328] sm:$0xff]  ;;  %v7920_v38 = vpack.c.bf16 %v1164_v33, %v1158_v32  ;;  %v7730_v39 = vpack.c.bf16 %v601_v36, %v595_v35  ;;  %v1177_v40 = vld [vmem:[#allocation5 + $0x1358] sm:$0xff]  ;;  %v594_v41 = vld [vmem:[#allocation5 + $0x120] sm:$0xff] }
  0x41   :  { %7917 = vmatpush1.bf16.msra.mxu0 %v7916_v25  ;;  %7727 = vmatprep.subr.bf16.mxu1 %v7726_v26  ;;  %v600_v42 = vld [vmem:[#allocation5 + $0x150] sm:$0xff]  ;;  %v7922_v43 = vpack.c.bf16 %v1177_v40, %v1171_v37  ;;  %v1170_v44 = vld [vmem:[#allocation5 + $0x1320] sm:$0xff]  ;;  %v607_v46 = vld [vmem:[#allocation5 + $0x188] sm:$0xff] }
  0x42   :  { %7919 = vmatprep.subr.bf16.mxu0 %v7918_v30  ;;  %v1176_v45 = vld [vmem:[#allocation5 + $0x1350] sm:$0xff]  ;;  %v613_v47 = vld [vmem:[#allocation5 + $0x1b8] sm:$0xff]  ;;  %v1183_v48 = vld [vmem:[#allocation5 + $0x1388] sm:$0xff]  ;;  %v7732_v50 = vpack.c.bf16 %v600_v42, %v594_v41 }
  0x43   :  { %v1189_v49 = vld [vmem:[#allocation5 + $0x13b8] sm:$0xff]  ;;  %v7924_v51 = vpack.c.bf16 %v1176_v45, %v1170_v44  ;;  %v7734_v52 = vpack.c.bf16 %v613_v47, %v607_v46  ;;  %v606_v53 = vld [vmem:[#allocation5 + $0x180] sm:$0xff]  ;;  %v612_v54 = vld [vmem:[#allocation5 + $0x1b0] sm:$0xff] }
  0x44   :  { %7729 = vmatpush1.bf16.msra.mxu1 %v7728_v34  ;;  %v1182_v55 = vld [vmem:[#allocation5 + $0x1380] sm:$0xff]  ;;  %v7926_v56 = vpack.c.bf16 %v1189_v49, %v1183_v48  ;;  %v1188_v57 = vld [vmem:[#allocation5 + $0x13b0] sm:$0xff]  ;;  %v619_v58 = vld [vmem:[#allocation5 + $0x1e8] sm:$0xff]  ;;  %v7736_v62 = vpack.c.bf16 %v612_v54, %v606_v53 }
  0x45   :  { %7921 = vmatpush1.bf16.msra.mxu0 %v7920_v38  ;;  %7731 = vmatprep.subr.bf16.mxu1 %v7730_v39  ;;  %v625_v59 = vld [vmem:[#allocation5 + $0x218] sm:$0xff]  ;;  %v1195_v60 = vld [vmem:[#allocation5 + $0x13e8] sm:$0xff]  ;;  %v7928_v63 = vpack.c.bf16 %v1188_v57, %v1182_v55  ;;  %v618_v1 = vld [vmem:[#allocation5 + $0x1e0] sm:$0xff] }
  0x46   :  { %7923 = vmatprep.subr.bf16.mxu0 %v7922_v43  ;;  %v1201_v61 = vld [vmem:[#allocation5 + $0x1418] sm:$0xff]  ;;  %v7738_v0 = vpack.c.bf16 %v625_v59, %v619_v58  ;;  %v624_v2 = vld [vmem:[#allocation5 + $0x210] sm:$0xff]  ;;  %v1194_v3 = vld [vmem:[#allocation5 + $0x13e0] sm:$0xff] }
  0x47   :  { %v7930_v4 = vpack.c.bf16 %v1201_v61, %v1195_v60  ;;  %v1200_v5 = vld [vmem:[#allocation5 + $0x1410] sm:$0xff]  ;;  %v631_v6 = vld [vmem:[#allocation5 + $0x248] sm:$0xff]  ;;  %v637_v7 = vld [vmem:[#allocation5 + $0x278] sm:$0xff]  ;;  %v7740_v10 = vpack.c.bf16 %v624_v2, %v618_v1 }
  0x48   :  { %7733 = vmatpush1.bf16.msra.mxu1 %v7732_v50  ;;  %v1207_v8 = vld [vmem:[#allocation5 + $0x1448] sm:$0xff]  ;;  %v1213_v9 = vld [vmem:[#allocation5 + $0x1478] sm:$0xff]  ;;  %v7932_v11 = vpack.c.bf16 %v1200_v5, %v1194_v3  ;;  %v7742_v12 = vpack.c.bf16 %v637_v7, %v631_v6  ;;  %v630_v13 = vld [vmem:[#allocation5 + $0x240] sm:$0xff] }
  0x49   :  { %7925 = vmatpush1.bf16.msra.mxu0 %v7924_v51  ;;  %7735 = vmatprep.subr.bf16.mxu1 %v7734_v52  ;;  %v636_v14 = vld [vmem:[#allocation5 + $0x270] sm:$0xff]  ;;  %v1206_v15 = vld [vmem:[#allocation5 + $0x1440] sm:$0xff]  ;;  %v7934_v16 = vpack.c.bf16 %v1213_v9, %v1207_v8  ;;  %v643_v18 = vld [vmem:[#allocation5 + $0x2a8] sm:$0xff] }
  0x4a   :  { %7927 = vmatprep.subr.bf16.mxu0 %v7926_v56  ;;  %v1212_v17 = vld [vmem:[#allocation5 + $0x1470] sm:$0xff]  ;;  %v649_v19 = vld [vmem:[#allocation5 + $0x2d8] sm:$0xff]  ;;  %v1219_v20 = vld [vmem:[#allocation5 + $0x14a8] sm:$0xff]  ;;  %v7744_v22 = vpack.c.bf16 %v636_v14, %v630_v13 }
  0x4b   :  { %v1225_v21 = vld [vmem:[#allocation5 + $0x14d8] sm:$0xff]  ;;  %v7936_v23 = vpack.c.bf16 %v1212_v17, %v1206_v15  ;;  %v7746_v24 = vpack.c.bf16 %v649_v19, %v643_v18  ;;  %v642_v25 = vld [vmem:[#allocation5 + $0x2a0] sm:$0xff]  ;;  %v648_v26 = vld [vmem:[#allocation5 + $0x2d0] sm:$0xff] }
  0x4c   :  { %7737 = vmatpush1.bf16.msra.mxu1 %v7736_v62  ;;  %v1218_v27 = vld [vmem:[#allocation5 + $0x14a0] sm:$0xff]  ;;  %v7938_v28 = vpack.c.bf16 %v1225_v21, %v1219_v20  ;;  %v1224_v29 = vld [vmem:[#allocation5 + $0x14d0] sm:$0xff]  ;;  %v655_v30 = vld [vmem:[#allocation5 + $0x308] sm:$0xff]  ;;  %v7748_v34 = vpack.c.bf16 %v648_v26, %v642_v25 }
  0x4d   :  { %7929 = vmatpush1.bf16.msra.mxu0 %v7928_v63  ;;  %7739 = vmatprep.subr.bf16.mxu1 %v7738_v0  ;;  %v661_v31 = vld [vmem:[#allocation5 + $0x338] sm:$0xff]  ;;  %v1231_v32 = vld [vmem:[#allocation5 + $0x1508] sm:$0xff]  ;;  %v7940_v35 = vpack.c.bf16 %v1224_v29, %v1218_v27  ;;  %v654_v37 = vld [vmem:[#allocation5 + $0x300] sm:$0xff] }
  0x4e   :  { %7931 = vmatprep.subr.bf16.mxu0 %v7930_v4  ;;  %v1237_v33 = vld [vmem:[#allocation5 + $0x1538] sm:$0xff]  ;;  %v7750_v36 = vpack.c.bf16 %v661_v31, %v655_v30  ;;  %v660_v38 = vld [vmem:[#allocation5 + $0x330] sm:$0xff]  ;;  %v1230_v39 = vld [vmem:[#allocation5 + $0x1500] sm:$0xff] }
  0x4f   :  { %v7942_v40 = vpack.c.bf16 %v1237_v33, %v1231_v32  ;;  %v1236_v41 = vld [vmem:[#allocation5 + $0x1530] sm:$0xff]  ;;  %v667_v42 = vld [vmem:[#allocation5 + $0x368] sm:$0xff]  ;;  %v673_v43 = vld [vmem:[#allocation5 + $0x398] sm:$0xff]  ;;  %v7752_v46 = vpack.c.bf16 %v660_v38, %v654_v37 }
  0x50   :  { %7741 = vmatpush1.bf16.msra.mxu1 %v7740_v10  ;;  %v1243_v44 = vld [vmem:[#allocation5 + $0x1568] sm:$0xff]  ;;  %v1249_v45 = vld [vmem:[#allocation5 + $0x1598] sm:$0xff]  ;;  %v7944_v47 = vpack.c.bf16 %v1236_v41, %v1230_v39  ;;  %v7754_v48 = vpack.c.bf16 %v673_v43, %v667_v42  ;;  %v666_v49 = vld [vmem:[#allocation5 + $0x360] sm:$0xff] }
  0x51   :  { %7933 = vmatpush1.bf16.msra.mxu0 %v7932_v11  ;;  %7743 = vmatprep.subr.bf16.mxu1 %v7742_v12  ;;  %v672_v50 = vld [vmem:[#allocation5 + $0x390] sm:$0xff]  ;;  %v1242_v51 = vld [vmem:[#allocation5 + $0x1560] sm:$0xff]  ;;  %v7946_v52 = vpack.c.bf16 %v1249_v45, %v1243_v44  ;;  %v679_v54 = vld [vmem:[#allocation5 + $0x3c8] sm:$0xff] }
  0x52   :  { %7935 = vmatprep.subr.bf16.mxu0 %v7934_v16  ;;  %v1248_v53 = vld [vmem:[#allocation5 + $0x1590] sm:$0xff]  ;;  %v685_v55 = vld [vmem:[#allocation5 + $0x3f8] sm:$0xff]  ;;  %v1255_v56 = vld [vmem:[#allocation5 + $0x15c8] sm:$0xff]  ;;  %v7756_v58 = vpack.c.bf16 %v672_v50, %v666_v49 }
  0x53   :  { %v1261_v57 = vld [vmem:[#allocation5 + $0x15f8] sm:$0xff]  ;;  %v7948_v59 = vpack.c.bf16 %v1248_v53, %v1242_v51  ;;  %v7758_v60 = vpack.c.bf16 %v685_v55, %v679_v54  ;;  %v678_v61 = vld [vmem:[#allocation5 + $0x3c0] sm:$0xff]  ;;  %v684_v62 = vld [vmem:[#allocation5 + $0x3f0] sm:$0xff] }
  0x54   :  { %7745 = vmatpush1.bf16.msra.mxu1 %v7744_v22  ;;  %v1254_v63 = vld [vmem:[#allocation5 + $0x15c0] sm:$0xff]  ;;  %v7950_v0 = vpack.c.bf16 %v1261_v57, %v1255_v56  ;;  %v1260_v1 = vld [vmem:[#allocation5 + $0x15f0] sm:$0xff]  ;;  %v691_v2 = vld [vmem:[#allocation5 + $0x428] sm:$0xff]  ;;  %v7760_v6 = vpack.c.bf16 %v684_v62, %v678_v61 }
  0x55   :  { %7937 = vmatpush1.bf16.msra.mxu0 %v7936_v23  ;;  %7747 = vmatprep.subr.bf16.mxu1 %v7746_v24  ;;  %v697_v3 = vld [vmem:[#allocation5 + $0x458] sm:$0xff]  ;;  %v1267_v4 = vld [vmem:[#allocation5 + $0x1628] sm:$0xff]  ;;  %v690_v7 = vld [vmem:[#allocation5 + $0x420] sm:$0xff]  ;;  %v7952_v8 = vpack.c.bf16 %v1260_v1, %v1254_v63 }
  0x56   :  { %7939 = vmatprep.subr.bf16.mxu0 %v7938_v28  ;;  %v1273_v5 = vld [vmem:[#allocation5 + $0x1658] sm:$0xff]  ;;  %v7762_v9 = vpack.c.bf16 %v697_v3, %v691_v2  ;;  %v696_v10 = vld [vmem:[#allocation5 + $0x450] sm:$0xff]  ;;  %v1266_v11 = vld [vmem:[#allocation5 + $0x1620] sm:$0xff] }
  0x57   :  { %v1272_v12 = vld [vmem:[#allocation5 + $0x1650] sm:$0xff]  ;;  %v7954_v13 = vpack.c.bf16 %v1273_v5, %v1267_v4  ;;  %v703_v14 = vld [vmem:[#allocation5 + $0x488] sm:$0xff]  ;;  %v709_v15 = vld [vmem:[#allocation5 + $0x4b8] sm:$0xff]  ;;  %v7764_v20 = vpack.c.bf16 %v696_v10, %v690_v7 }
  0x58   :  { %7749 = vmatpush1.bf16.msra.mxu1 %v7748_v34  ;;  %v55_v16 = vld [vmem:[#allocation2 + $0x8] sm:$0xff]  ;;  %v1285_v18 = vld [vmem:[#allocation5 + $0x16b8] sm:$0xff]  ;;  %v7956_v21 = vpack.c.bf16 %v1272_v12, %v1266_v11  ;;  %v7766_v22 = vpack.c.bf16 %v709_v15, %v703_v14  ;;  %v702_v23 = vld [vmem:[#allocation5 + $0x480] sm:$0xff] }
  0x59   :  { %7941 = vmatpush1.bf16.msra.mxu0 %v7940_v35  ;;  %7751 = vmatprep.subr.bf16.mxu1 %v7750_v36  ;;  %v1279_v17 = vld [vmem:[#allocation5 + $0x1688] sm:$0xff]  ;;  %v61_v19 = vld [vmem:[#allocation2 + $0x38] sm:$0xff]  ;;  %v708_v24 = vld [vmem:[#allocation5 + $0x4b0] sm:$0xff] }
  0x5a   :  { %7943 = vmatprep.subr.bf16.mxu0 %v7942_v40  ;;  %1806 = vmatprep.mubr.f32.mxu1 %v55_v16  ;;  %v1278_v25 = vld [vmem:[#allocation5 + $0x1680] sm:$0xff]  ;;  %v7958_v26 = vpack.c.bf16 %v1285_v18, %v1279_v17  ;;  %v1284_v27 = vld [vmem:[#allocation5 + $0x16b0] sm:$0xff]  ;;  %v715_v28 = vld [vmem:[#allocation5 + $0x4e8] sm:$0xff]  ;;  %v7768_v32 = vpack.c.bf16 %v708_v24, %v702_v23 }
  0x5b   :  { %2757 = vmatprep.mubr.f32.mxu0 %v61_v19  ;;  %v721_v29 = vld [vmem:[#allocation5 + $0x518] sm:$0xff]  ;;  %v1291_v30 = vld [vmem:[#allocation5 + $0x16e8] sm:$0xff]  ;;  %v7960_v33 = vpack.c.bf16 %v1284_v27, %v1278_v25  ;;  %v714_v35 = vld [vmem:[#allocation5 + $0x4e0] sm:$0xff] }
  0x5c   :  { %7753 = vmatpush1.bf16.msra.mxu1 %v7752_v46  ;;  %v1297_v31 = vld [vmem:[#allocation5 + $0x1718] sm:$0xff]  ;;  %v7770_v34 = vpack.c.bf16 %v721_v29, %v715_v28  ;;  %v720_v36 = vld [vmem:[#allocation5 + $0x510] sm:$0xff]  ;;  %v1290_v37 = vld [vmem:[#allocation5 + $0x16e0] sm:$0xff] }
  0x5d   :  { %7945 = vmatpush1.bf16.msra.mxu0 %v7944_v47  ;;  %7755 = vmatprep.subr.bf16.mxu1 %v7754_v48  ;;  %v7962_v38 = vpack.c.bf16 %v1297_v31, %v1291_v30  ;;  %v1296_v39 = vld [vmem:[#allocation5 + $0x1710] sm:$0xff]  ;;  %v727_v40 = vld [vmem:[#allocation5 + $0x548] sm:$0xff]  ;;  %v733_v41 = vld [vmem:[#allocation5 + $0x578] sm:$0xff]  ;;  %v7772_v44 = vpack.c.bf16 %v720_v36, %v714_v35 }
  0x5e   :  { %7947 = vmatprep.subr.bf16.mxu0 %v7946_v52  ;;  %v1303_v42 = vld [vmem:[#allocation5 + $0x1748] sm:$0xff]  ;;  %v1309_v43 = vld [vmem:[#allocation5 + $0x1778] sm:$0xff]  ;;  %v7964_v45 = vpack.c.bf16 %v1296_v39, %v1290_v37  ;;  %v7774_v46 = vpack.c.bf16 %v733_v41, %v727_v40  ;;  %v726_v47 = vld [vmem:[#allocation5 + $0x540] sm:$0xff] }
  0x5f   :  { %v732_v48 = vld [vmem:[#allocation5 + $0x570] sm:$0xff]  ;;  %v1302_v49 = vld [vmem:[#allocation5 + $0x1740] sm:$0xff]  ;;  %v7966_v50 = vpack.c.bf16 %v1309_v43, %v1303_v42  ;;  %v739_v52 = vld [vmem:[#allocation5 + $0x5a8] sm:$0xff] }
  0x60   :  { %7757 = vmatpush1.bf16.msra.mxu1 %v7756_v58  ;;  %v1308_v51 = vld [vmem:[#allocation5 + $0x1770] sm:$0xff]  ;;  %v745_v53 = vld [vmem:[#allocation5 + $0x5d8] sm:$0xff]  ;;  %v1315_v54 = vld [vmem:[#allocation5 + $0x17a8] sm:$0xff]  ;;  %v7776_v56 = vpack.c.bf16 %v732_v48, %v726_v47 }
  0x61   :  { %7949 = vmatpush1.bf16.msra.mxu0 %v7948_v59  ;;  %7759 = vmatprep.subr.bf16.mxu1 %v7758_v60  ;;  %v1321_v55 = vld [vmem:[#allocation5 + $0x17d8] sm:$0xff]  ;;  %v7968_v57 = vpack.c.bf16 %v1308_v51, %v1302_v49  ;;  %v7778_v58 = vpack.c.bf16 %v745_v53, %v739_v52  ;;  %v738_v59 = vld [vmem:[#allocation5 + $0x5a0] sm:$0xff]  ;;  %v744_v60 = vld [vmem:[#allocation5 + $0x5d0] sm:$0xff] }
  0x62   :  { %7951 = vmatprep.subr.bf16.mxu0 %v7950_v0  ;;  %v1314_v61 = vld [vmem:[#allocation5 + $0x17a0] sm:$0xff]  ;;  %v7970_v62 = vpack.c.bf16 %v1321_v55, %v1315_v54  ;;  %v1320_v63 = vld [vmem:[#allocation5 + $0x17d0] sm:$0xff]  ;;  %v751_v0 = vld [vmem:[#allocation5 + $0x608] sm:$0xff]  ;;  %v7780_v4 = vpack.c.bf16 %v744_v60, %v738_v59 }
  0x63   :  { %v757_v1 = vld [vmem:[#allocation5 + $0x638] sm:$0xff]  ;;  %v1327_v2 = vld [vmem:[#allocation5 + $0x1808] sm:$0xff]  ;;  %v7972_v5 = vpack.c.bf16 %v1320_v63, %v1314_v61  ;;  %v750_v7 = vld [vmem:[#allocation5 + $0x600] sm:$0xff] }
  0x64   :  { %7761 = vmatpush1.bf16.msra.mxu1 %v7760_v6  ;;  %v1333_v3 = vld [vmem:[#allocation5 + $0x1838] sm:$0xff]  ;;  %v7782_v6 = vpack.c.bf16 %v757_v1, %v751_v0  ;;  %v1326_v10 = vld [vmem:[#allocation5 + $0x1800] sm:$0xff]  ;;  %v1332_v11 = vld [vmem:[#allocation5 + $0x1830] sm:$0xff] }
  0x65   :  { %7953 = vmatpush1.bf16.msra.mxu0 %v7952_v8  ;;  %7763 = vmatprep.subr.bf16.mxu1 %v7762_v9  ;;  %v756_v8 = vld [vmem:[#allocation5 + $0x630] sm:$0xff]  ;;  %v7974_v9 = vpack.c.bf16 %v1333_v3, %v1327_v2  ;;  %v763_v12 = vld [vmem:[#allocation5 + $0x668] sm:$0xff]  ;;  %v54_v14 = vld [vmem:[#allocation2] sm:$0xff]  ;;  %v7976_v19 = vpack.c.bf16 %v1332_v11, %v1326_v10 }
  0x66   :  { %7955 = vmatprep.subr.bf16.mxu0 %v7954_v13  ;;  %v769_v13 = vld [vmem:[#allocation5 + $0x698] sm:$0xff]  ;;  %v7784_v15 = vpack.c.bf16 %v756_v8, %v750_v7  ;;  %v1339_v16 = vld [vmem:[#allocation5 + $0x1868] sm:$0xff]  ;;  %v60_v18 = vld [vmem:[#allocation2 + $0x30] sm:$0xff] }
  0x67   :  { %v1345_v17 = vld [vmem:[#allocation5 + $0x1898] sm:$0xff]  ;;  %v762_v23 = vld [vmem:[#allocation5 + $0x660] sm:$0xff]  ;;  %v768_v24 = vld [vmem:[#allocation5 + $0x690] sm:$0xff] }
  0x68   :  { %7765 = vmatpush1.bf16.msra.mxu1 %v7764_v20  ;;  %v67_v20 = vld [vmem:[#allocation2 + $0x68] sm:$0xff]  ;;  %v1338_v25 = vld [vmem:[#allocation5 + $0x1860] sm:$0xff]  ;;  %v1344_v27 = vld [vmem:[#allocation5 + $0x1890] sm:$0xff]  ;;  %v7788_v36 = vpack.c.bf16 %v768_v24, %v762_v23 }
  0x69   :  { %7957 = vmatpush1.bf16.msra.mxu0 %v7956_v21  ;;  %7767 = vmatprep.subr.bf16.mxu1 %v7766_v22  ;;  %v73_v21 = vld [vmem:[#allocation2 + $0x98] sm:$0xff]  ;;  %v7786_v22 = vpack.c.bf16 %v769_v13, %v763_v12  ;;  %v775_v28 = vld [vmem:[#allocation5 + $0x6c8] sm:$0xff]  ;;  %v66_v30 = vld [vmem:[#allocation2 + $0x60] sm:$0xff]  ;;  %v7980_v37 = vpack.c.bf16 %v1344_v27, %v1338_v25 }
  0x6a   :  { %7959 = vmatprep.subr.bf16.mxu0 %v7958_v26  ;;  %v7978_v26 = vpack.c.bf16 %v1345_v17, %v1339_v16  ;;  %v781_v29 = vld [vmem:[#allocation5 + $0x6f8] sm:$0xff]  ;;  %v1351_v31 = vld [vmem:[#allocation5 + $0x18c8] sm:$0xff]  ;;  %v774_v39 = vld [vmem:[#allocation5 + $0x6c0] sm:$0xff] }
  0x6b   :  { %v85_v35 = vld [vmem:[#allocation2 + $0xf8] sm:$0xff]  ;;  %v780_v40 = vld [vmem:[#allocation5 + $0x6f0] sm:$0xff]  ;;  %v1350_v41 = vld [vmem:[#allocation5 + $0x18c0] sm:$0xff] }
  0x6c   :  { %7769 = vmatpush1.bf16.msra.mxu1 %v7768_v32  ;;  %v1357_v32 = vld [vmem:[#allocation5 + $0x18f8] sm:$0xff]  ;;  %v1356_v43 = vld [vmem:[#allocation5 + $0x18f0] sm:$0xff]  ;;  %v1363_v47 = vld [vmem:[#allocation5 + $0x1928] sm:$0xff]  ;;  %v7792_v52 = vpack.c.bf16 %v780_v40, %v774_v39 }
  0x6d   :  { %7961 = vmatpush1.bf16.msra.mxu0 %v7960_v33  ;;  %7771 = vmatprep.subr.bf16.mxu1 %v7770_v34  ;;  %v72_v33 = vld [vmem:[#allocation2 + $0x90] sm:$0xff]  ;;  %v79_v34 = vld [vmem:[#allocation2 + $0xc8] sm:$0xff]  ;;  %v7982_v42 = vpack.c.bf16 %v1357_v32, %v1351_v31  ;;  %v1369_v48 = vld [vmem:[#allocation5 + $0x1958] sm:$0xff]  ;;  %v7984_v53 = vpack.c.bf16 %v1356_v43, %v1350_v41 }
  0x6e   :  { %7963 = vmatprep.subr.bf16.mxu0 %v7962_v38  ;;  %v7790_v38 = vpack.c.bf16 %v781_v29, %v775_v28  ;;  %v84_v49 = vld [vmem:[#allocation2 + $0xf0] sm:$0xff]  ;;  %v97_v51 = vld [vmem:[#allocation2 + $0x158] sm:$0xff]  ;;  %v786_v55 = vld [vmem:[#allocation5 + $0x720] sm:$0xff] }
  0x6f   :  { %v1368_v59 = vld [vmem:[#allocation5 + $0x1950] sm:$0xff]  ;;  %v799_v60 = vld [vmem:[#allocation5 + $0x788] sm:$0xff]  ;;  %v805_v61 = vld [vmem:[#allocation5 + $0x7b8] sm:$0xff] }
  0x70   :  { %7773 = vmatpush1.bf16.msra.mxu1 %v7772_v44  ;;  %v787_v44 = vld [vmem:[#allocation5 + $0x728] sm:$0xff]  ;;  %v1381_v0 = vld [vmem:[#allocation5 + $0x19b8] sm:$0xff]  ;;  %v96_v1 = vld [vmem:[#allocation2 + $0x150] sm:$0xff] }
  0x71   :  { %7965 = vmatpush1.bf16.msra.mxu0 %v7964_v45  ;;  %7775 = vmatprep.subr.bf16.mxu1 %v7774_v46  ;;  %v793_v45 = vld [vmem:[#allocation5 + $0x758] sm:$0xff]  ;;  %v78_v46 = vld [vmem:[#allocation2 + $0xc0] sm:$0xff]  ;;  %v1375_v63 = vld [vmem:[#allocation5 + $0x1988] sm:$0xff] }
  0x72   :  { %7967 = vmatprep.subr.bf16.mxu0 %v7966_v50  ;;  %v91_v50 = vld [vmem:[#allocation2 + $0x128] sm:$0xff]  ;;  %v7794_v54 = vpack.c.bf16 %v793_v45, %v787_v44  ;;  %v109_v3 = vld [vmem:[#allocation2 + $0x1b8] sm:$0xff]  ;;  %v798_v7 = vld [vmem:[#allocation5 + $0x780] sm:$0xff]  ;;  %v7990_v10 = vpack.c.bf16 %v1381_v0, %v1375_v63 }
  0x73   :  { %v103_v2 = vld [vmem:[#allocation2 + $0x188] sm:$0xff]  ;;  %v804_v8 = vld [vmem:[#allocation5 + $0x7b0] sm:$0xff]  ;;  %v817_v13 = vld [vmem:[#allocation5 + $0x818] sm:$0xff] }
  0x74   :  { %7777 = vmatpush1.bf16.msra.mxu1 %v7776_v56  ;;  %v792_v56 = vld [vmem:[#allocation5 + $0x750] sm:$0xff]  ;;  %v811_v12 = vld [vmem:[#allocation5 + $0x7e8] sm:$0xff]  ;;  %v1393_v16 = vld [vmem:[#allocation5 + $0x1a18] sm:$0xff] }
  0x75   :  { %7969 = vmatpush1.bf16.msra.mxu0 %v7968_v57  ;;  %7779 = vmatprep.subr.bf16.mxu1 %v7778_v58  ;;  %v1362_v57 = vld [vmem:[#allocation5 + $0x1920] sm:$0xff]  ;;  %v7986_v58 = vpack.c.bf16 %v1369_v48, %v1363_v47  ;;  %v1380_v11 = vld [vmem:[#allocation5 + $0x19b0] sm:$0xff]  ;;  %v823_v28 = vld [vmem:[#allocation5 + $0x848] sm:$0xff] }
  0x76   :  { %7971 = vmatprep.subr.bf16.mxu0 %v7970_v62  ;;  %v90_v62 = vld [vmem:[#allocation2 + $0x120] sm:$0xff]  ;;  %v108_v17 = vld [vmem:[#allocation2 + $0x1b0] sm:$0xff]  ;;  %v829_v29 = vld [vmem:[#allocation5 + $0x878] sm:$0xff] }
  0x77   :  { %v810_v23 = vld [vmem:[#allocation5 + $0x7e0] sm:$0xff]  ;;  %v816_v24 = vld [vmem:[#allocation5 + $0x810] sm:$0xff]  ;;  %v1399_v31 = vld [vmem:[#allocation5 + $0x1a48] sm:$0xff] }
  0x78   :  { %7781 = vmatpush1.bf16.msra.mxu1 %v7780_v4  ;;  %v7796_v4 = vpack.c.bf16 %v792_v56, %v786_v55  ;;  %v1386_v25 = vld [vmem:[#allocation5 + $0x19e0] sm:$0xff]  ;;  %v1392_v27 = vld [vmem:[#allocation5 + $0x1a10] sm:$0xff]  ;;  %v1405_v32 = vld [vmem:[#allocation5 + $0x1a78] sm:$0xff] }
  0x79   :  { %7973 = vmatpush1.bf16.msra.mxu0 %v7972_v5  ;;  %7783 = vmatprep.subr.bf16.mxu1 %v7782_v6  ;;  %v7988_v5 = vpack.c.bf16 %v1368_v59, %v1362_v57  ;;  %v7798_v6 = vpack.c.bf16 %v805_v61, %v799_v60  ;;  %v822_v39 = vld [vmem:[#allocation5 + $0x840] sm:$0xff]  ;;  %v828_v40 = vld [vmem:[#allocation5 + $0x870] sm:$0xff]  ;;  %v835_v44 = vld [vmem:[#allocation5 + $0x8a8] sm:$0xff] }
  0x7a   :  { %7975 = vmatprep.subr.bf16.mxu0 %v7974_v9  ;;  %v1374_v9 = vld [vmem:[#allocation5 + $0x1980] sm:$0xff]  ;;  %v1404_v43 = vld [vmem:[#allocation5 + $0x1a70] sm:$0xff]  ;;  %v841_v45 = vld [vmem:[#allocation5 + $0x8d8] sm:$0xff] }
  0x7b   :  { %1807 = vmatmul.mubr.f32.vlgmr.msra.gmra.mrb[0].mxu1 %v54_v14  ;;  %v102_v14 = vld [vmem:[#allocation2 + $0x180] sm:$0xff]  ;;  %v1411_v47 = vld [vmem:[#allocation5 + $0x1aa8] sm:$0xff]  ;;  %v1417_v48 = vld [vmem:[#allocation5 + $0x1ad8] sm:$0xff] }
  0x7c   :  { %2758 = vmatmul.mubr.f32.vlgmr.msra.gmra.mrb[0].mxu0 %v60_v18  ;;  %7785 = vmatpush1.bf16.msra.mxu1 %v7784_v15  ;;  %v1387_v15 = vld [vmem:[#allocation5 + $0x19e8] sm:$0xff]  ;;  %v1398_v41 = vld [vmem:[#allocation5 + $0x1a40] sm:$0xff]  ;;  %v840_v56 = vld [vmem:[#allocation5 + $0x8d0] sm:$0xff]  ;;  %v8002_v57 = vpack.c.bf16 %v1417_v48, %v1411_v47 }
  0x7d   :  { %7977 = vmatpush1.bf16.msra.mxu0 %v7976_v19  ;;  %1812 = vmatprep.mubr.f32.mxu1 %v67_v20  ;;  %v115_v18 = vld [vmem:[#allocation2 + $0x1e8] sm:$0xff]  ;;  %v121_v19 = vld [vmem:[#allocation2 + $0x218] sm:$0xff]  ;;  %v7800_v20 = vpack.c.bf16 %v804_v8, %v798_v7  ;;  %v834_v55 = vld [vmem:[#allocation5 + $0x8a0] sm:$0xff] }
  0x7e   :  { %2763 = vmatprep.mubr.f32.mxu0 %v73_v21  ;;  %7787 = vmatprep.subr.bf16.mxu1 %v7786_v22  ;;  %v7992_v21 = vpack.c.bf16 %v1380_v11, %v1374_v9  ;;  %v7802_v22 = vpack.c.bf16 %v817_v13, %v811_v12  ;;  %v1416_v59 = vld [vmem:[#allocation5 + $0x1ad0] sm:$0xff]  ;;  %v138_v60 = vld [vmem:[#allocation2 + $0x2a0] sm:$0xff]  ;;  %v157_v63 = vld [vmem:[#allocation2 + $0x338] sm:$0xff]  ;;  %v7812_v0 = vpack.c.bf16 %v840_v56, %v834_v55 }
  0x7f   :  { %1813 = vmatmul.mubr.f32.gmra.mrb[2].mxu1 %v66_v30  ;;  %7979 = vmatprep.subr.bf16.mxu0 %v7978_v26  ;;  %v7994_v26 = vpack.c.bf16 %v1393_v16, %v1387_v15  ;;  %v114_v30 = vld [vmem:[#allocation2 + $0x1e0] sm:$0xff]  ;;  %v144_v61 = vld [vmem:[#allocation2 + $0x2d0] sm:$0xff]  ;;  %v169_v16 = vld [vmem:[#allocation2 + $0x398] sm:$0xff] }
  0x80   :  { %2764 = vmatmul.mubr.f32.gmra.mrb[2].mxu0 %v72_v33  ;;  %1818 = vmatprep.mubr.f32.mxu1 %v79_v34  ;;  %v120_v33 = vld [vmem:[#allocation2 + $0x210] sm:$0xff]  ;;  %v127_v34 = vld [vmem:[#allocation2 + $0x248] sm:$0xff]  ;;  %v846_v7 = vld [vmem:[#allocation5 + $0x900] sm:$0xff] }
  0x81   :  { %2769 = vmatprep.mubr.f32.mxu0 %v85_v35  ;;  %7789 = vmatpush1.bf16.msra.mxu1 %v7788_v36  ;;  %v133_v35 = vld [vmem:[#allocation2 + $0x278] sm:$0xff]  ;;  %v7804_v36 = vpack.c.bf16 %v816_v24, %v810_v23  ;;  %v852_v9 = vld [vmem:[#allocation5 + $0x930] sm:$0xff]  ;;  %v150_v12 = vld [vmem:[#allocation2 + $0x300] sm:$0xff] }
  0x82   :  { %7981 = vmatpush1.bf16.msra.mxu0 %v7980_v37  ;;  %7791 = vmatprep.subr.bf16.mxu1 %v7790_v38  ;;  %v7996_v37 = vpack.c.bf16 %v1392_v27, %v1386_v25  ;;  %v7806_v38 = vpack.c.bf16 %v829_v29, %v823_v28  ;;  %v1428_v11 = vld [vmem:[#allocation5 + $0x1b30] sm:$0xff]  ;;  %v7816_v15 = vpack.c.bf16 %v852_v9, %v846_v7  ;;  %v1435_v23 = vld [vmem:[#allocation5 + $0x1b68] sm:$0xff]  ;;  %v1441_v24 = vld [vmem:[#allocation5 + $0x1b98] sm:$0xff] }
  0x83   :  { %1819 = vmatmul.mubr.f32.gmra.mrb[4].mxu1 %v78_v46  ;;  %7983 = vmatprep.subr.bf16.mxu0 %v7982_v42  ;;  %v7998_v42 = vpack.c.bf16 %v1405_v32, %v1399_v31  ;;  %v126_v46 = vld [vmem:[#allocation2 + $0x240] sm:$0xff]  ;;  %v156_v13 = vld [vmem:[#allocation2 + $0x330] sm:$0xff]  ;;  %v175_v25 = vld [vmem:[#allocation2 + $0x3c8] sm:$0xff] }
  0x84   :  { %2770 = vmatmul.mubr.f32.gmra.mrb[4].mxu0 %v84_v49  ;;  %1824 = vmatprep.mubr.f32.mxu1 %v91_v50  ;;  %v132_v49 = vld [vmem:[#allocation2 + $0x270] sm:$0xff]  ;;  %v139_v50 = vld [vmem:[#allocation2 + $0x2a8] sm:$0xff]  ;;  %v858_v27 = vld [vmem:[#allocation5 + $0x960] sm:$0xff] }
  0x85   :  { %2775 = vmatprep.mubr.f32.mxu0 %v97_v51  ;;  %7793 = vmatpush1.bf16.msra.mxu1 %v7792_v52  ;;  %v7808_v51 = vpack.c.bf16 %v828_v40, %v822_v39  ;;  %v145_v52 = vld [vmem:[#allocation2 + $0x2d8] sm:$0xff]  ;;  %v864_v28 = vld [vmem:[#allocation5 + $0x990] sm:$0xff]  ;;  %v1434_v31 = vld [vmem:[#allocation5 + $0x1b60] sm:$0xff] }
  0x86   :  { %7985 = vmatpush1.bf16.msra.mxu0 %v7984_v53  ;;  %7795 = vmatprep.subr.bf16.mxu1 %v7794_v54  ;;  %v8000_v53 = vpack.c.bf16 %v1404_v43, %v1398_v41  ;;  %v7810_v54 = vpack.c.bf16 %v841_v45, %v835_v44  ;;  %v181_v29 = vld [vmem:[#allocation2 + $0x3f8] sm:$0xff]  ;;  %v1440_v32 = vld [vmem:[#allocation5 + $0x1b90] sm:$0xff]  ;;  %v1447_v41 = vld [vmem:[#allocation5 + $0x1bc8] sm:$0xff] }
  0x87   :  { %1825 = vmatmul.mubr.f32.gmra.mrb[6].mxu1 %v90_v62  ;;  %7987 = vmatprep.subr.bf16.mxu0 %v7986_v58  ;;  %v1410_v58 = vld [vmem:[#allocation5 + $0x1aa0] sm:$0xff]  ;;  %v151_v62 = vld [vmem:[#allocation2 + $0x308] sm:$0xff]  ;;  %v877_v39 = vld [vmem:[#allocation5 + $0x9f8] sm:$0xff] }
  0x88   :  { %2776 = vmatmul.mubr.f32.gmra.mrb[6].mxu0 %v96_v1  ;;  %1830 = vmatprep.mubr.f32.mxu1 %v103_v2  ;;  %v847_v1 = vld [vmem:[#allocation5 + $0x908] sm:$0xff]  ;;  %v853_v2 = vld [vmem:[#allocation5 + $0x938] sm:$0xff]  ;;  %v870_v43 = vld [vmem:[#allocation5 + $0x9c0] sm:$0xff] }
  0x89   :  { %2781 = vmatprep.mubr.f32.mxu0 %v109_v3  ;;  %7797 = vmatpush1.bf16.msra.mxu1 %v7796_v4  ;;  %v8004_v3 = vpack.c.bf16 %v1416_v59, %v1410_v58  ;;  %v7814_v4 = vpack.c.bf16 %v853_v2, %v847_v1  ;;  %v876_v45 = vld [vmem:[#allocation5 + $0x9f0] sm:$0xff]  ;;  %v186_v48 = vld [vmem:[#allocation2 + $0x420] sm:$0xff]  ;;  %v883_v56 = vld [vmem:[#allocation5 + $0xa28] sm:$0xff] }
  0x8a   :  { %7989 = vmatpush1.bf16.msra.mxu0 %v7988_v5  ;;  %7799 = vmatprep.subr.bf16.mxu1 %v7798_v6  ;;  %v1423_v5 = vld [vmem:[#allocation5 + $0x1b08] sm:$0xff]  ;;  %v1429_v6 = vld [vmem:[#allocation5 + $0x1b38] sm:$0xff]  ;;  %v1452_v47 = vld [vmem:[#allocation5 + $0x1bf0] sm:$0xff] }
  0x8b   :  { %1831 = vmatmul.mubr.f32.gmra.mrb[8].mxu1 %v102_v14  ;;  %7991 = vmatprep.subr.bf16.mxu0 %v7990_v10  ;;  %v8006_v8 = vpack.c.bf16 %v1429_v6, %v1423_v5  ;;  %v1422_v10 = vld [vmem:[#allocation5 + $0x1b00] sm:$0xff]  ;;  %v163_v14 = vld [vmem:[#allocation2 + $0x368] sm:$0xff]  ;;  %v204_v55 = vld [vmem:[#allocation2 + $0x4b0] sm:$0xff] }
  0x8c   :  { %2782 = vmatmul.mubr.f32.gmra.mrb[8].mxu0 %v108_v17  ;;  %1836 = vmatprep.mubr.f32.mxu1 %v115_v18  ;;  %v8008_v17 = vpack.c.bf16 %v1428_v11, %v1422_v10  ;;  %v162_v18 = vld [vmem:[#allocation2 + $0x360] sm:$0xff]  ;;  %v889_v58 = vld [vmem:[#allocation5 + $0xa58] sm:$0xff]  ;;  %v1459_v59 = vld [vmem:[#allocation5 + $0x1c28] sm:$0xff] }
  0x8d   :  { %2787 = vmatprep.mubr.f32.mxu0 %v121_v19  ;;  %7801 = vmatpush1.bf16.msra.mxu1 %v7800_v20  ;;  %v859_v19 = vld [vmem:[#allocation5 + $0x968] sm:$0xff]  ;;  %v865_v20 = vld [vmem:[#allocation5 + $0x998] sm:$0xff]  ;;  %v210_v6 = vld [vmem:[#allocation2 + $0x4e0] sm:$0xff] }
  0x8e   :  { %7993 = vmatpush1.bf16.msra.mxu0 %v7992_v21  ;;  %7803 = vmatprep.subr.bf16.mxu1 %v7802_v22  ;;  %v168_v21 = vld [vmem:[#allocation2 + $0x390] sm:$0xff]  ;;  %v7818_v22 = vpack.c.bf16 %v865_v20, %v859_v19  ;;  %v895_v9 = vld [vmem:[#allocation5 + $0xa88] sm:$0xff]  ;;  %v901_v10 = vld [vmem:[#allocation5 + $0xab8] sm:$0xff] }
  0x8f   :  { %1837 = vmatmul.mubr.f32.gmra.mrb[10].mxu1 %v114_v30  ;;  %7995 = vmatprep.subr.bf16.mxu0 %v7994_v26  ;;  %v8010_v26 = vpack.c.bf16 %v1441_v24, %v1435_v23  ;;  %v7820_v30 = vpack.c.bf16 %v864_v28, %v858_v27  ;;  %v216_v7 = vld [vmem:[#allocation2 + $0x510] sm:$0xff]  ;;  %v229_v11 = vld [vmem:[#allocation2 + $0x578] sm:$0xff]  ;;  %v1470_v20 = vld [vmem:[#allocation5 + $0x1c80] sm:$0xff] }
  0x90   :  { %2788 = vmatmul.mubr.f32.gmra.mrb[10].mxu0 %v120_v33  ;;  %1842 = vmatprep.mubr.f32.mxu1 %v127_v34  ;;  %v8012_v33 = vpack.c.bf16 %v1440_v32, %v1434_v31  ;;  %v174_v34 = vld [vmem:[#allocation2 + $0x3c0] sm:$0xff]  ;;  %v235_v23 = vld [vmem:[#allocation2 + $0x5a8] sm:$0xff]  ;;  %v240_v27 = vld [vmem:[#allocation2 + $0x5d0] sm:$0xff] }
  0x91   :  { %2793 = vmatprep.mubr.f32.mxu0 %v133_v35  ;;  %7805 = vmatpush1.bf16.msra.mxu1 %v7804_v36  ;;  %v180_v35 = vld [vmem:[#allocation2 + $0x3f0] sm:$0xff]  ;;  %v187_v36 = vld [vmem:[#allocation2 + $0x428] sm:$0xff] }
  0x92   :  { %7997 = vmatpush1.bf16.msra.mxu0 %v7996_v37  ;;  %7807 = vmatprep.subr.bf16.mxu1 %v7806_v38  ;;  %v193_v37 = vld [vmem:[#allocation2 + $0x458] sm:$0xff]  ;;  %v871_v38 = vld [vmem:[#allocation5 + $0x9c8] sm:$0xff] }
  0x93   :  { %1843 = vmatmul.mubr.f32.gmra.mrb[12].mxu1 %v126_v46  ;;  %7999 = vmatprep.subr.bf16.mxu0 %v7998_v42  ;;  %v7822_v40 = vpack.c.bf16 %v877_v39, %v871_v38  ;;  %v1453_v42 = vld [vmem:[#allocation5 + $0x1bf8] sm:$0xff]  ;;  %v1446_v46 = vld [vmem:[#allocation5 + $0x1bc0] sm:$0xff]  ;;  %v247_v28 = vld [vmem:[#allocation2 + $0x608] sm:$0xff] }
  0x94   :  { %2794 = vmatmul.mubr.f32.gmra.mrb[12].mxu0 %v132_v49  ;;  %1848 = vmatprep.mubr.f32.mxu1 %v139_v50  ;;  %v8014_v44 = vpack.c.bf16 %v1453_v42, %v1447_v41  ;;  %v7824_v49 = vpack.c.bf16 %v876_v45, %v870_v43  ;;  %v8016_v50 = vpack.c.bf16 %v1452_v47, %v1446_v46  ;;  %v1483_v31 = vld [vmem:[#allocation5 + $0x1ce8] sm:$0xff]  ;;  %v1482_v39 = vld [vmem:[#allocation5 + $0x1ce0] sm:$0xff]  ;;  %v252_v43 = vld [vmem:[#allocation2 + $0x630] sm:$0xff] }
  0x95   :  { %2799 = vmatprep.mubr.f32.mxu0 %v145_v52  ;;  %7809 = vmatpush1.bf16.msra.mxu1 %v7808_v51  ;;  %v192_v51 = vld [vmem:[#allocation2 + $0x450] sm:$0xff]  ;;  %v199_v52 = vld [vmem:[#allocation2 + $0x488] sm:$0xff]  ;;  %v246_v42 = vld [vmem:[#allocation2 + $0x600] sm:$0xff] }
  0x96   :  { %8001 = vmatpush1.bf16.msra.mxu0 %v8000_v53  ;;  %7811 = vmatprep.subr.bf16.mxu1 %v7810_v54  ;;  %v205_v53 = vld [vmem:[#allocation2 + $0x4b8] sm:$0xff]  ;;  %v198_v54 = vld [vmem:[#allocation2 + $0x480] sm:$0xff]  ;;  %v919_v45 = vld [vmem:[#allocation5 + $0xb48] sm:$0xff] }
  0x97   :  { %1849 = vmatmul.mubr.f32.gmra.mrb[14].mxu1 %v138_v60  ;;  %8003 = vmatprep.subr.bf16.mxu0 %v8002_v57  ;;  %v211_v57 = vld [vmem:[#allocation2 + $0x4e8] sm:$0xff]  ;;  %v7826_v60 = vpack.c.bf16 %v889_v58, %v883_v56  ;;  %v265_v46 = vld [vmem:[#allocation2 + $0x698] sm:$0xff]  ;;  %v264_v56 = vld [vmem:[#allocation2 + $0x690] sm:$0xff] }
  0x98   :  { %2800 = vmatmul.mubr.f32.gmra.mrb[14].mxu0 %v144_v61  ;;  %1854 = vmatprep.mubr.f32.mxu1 %v151_v62  ;;  %v1465_v61 = vld [vmem:[#allocation5 + $0x1c58] sm:$0xff]  ;;  %v882_v62 = vld [vmem:[#allocation5 + $0xa20] sm:$0xff] }
  0x99   :  { %2805 = vmatprep.mubr.f32.mxu0 %v157_v63  ;;  %7813 = vmatpush1.bf16.msra.mxu1 %v7812_v0  ;;  %v888_v63 = vld [vmem:[#allocation5 + $0xa50] sm:$0xff]  ;;  %v217_v0 = vld [vmem:[#allocation2 + $0x518] sm:$0xff]  ;;  %v8018_v1 = vpack.c.bf16 %v1465_v61, %v1459_v59 }
  0x9a   :  { %8005 = vmatpush1.bf16.msra.mxu0 %v8004_v3  ;;  %7815 = vmatprep.subr.bf16.mxu1 %v7814_v4  ;;  %v7828_v2 = vpack.c.bf16 %v888_v63, %v882_v62  ;;  %v1458_v3 = vld [vmem:[#allocation5 + $0x1c20] sm:$0xff]  ;;  %v1464_v4 = vld [vmem:[#allocation5 + $0x1c50] sm:$0xff]  ;;  %v925_v47 = vld [vmem:[#allocation5 + $0xb78] sm:$0xff] }
  0x9b   :  { %1855 = vmatmul.mubr.f32.gmra.mrb[16].mxu1 %v150_v12  ;;  %8007 = vmatprep.subr.bf16.mxu0 %v8006_v8  ;;  %v8020_v5 = vpack.c.bf16 %v1464_v4, %v1458_v3  ;;  %v223_v8 = vld [vmem:[#allocation2 + $0x548] sm:$0xff]  ;;  %v7830_v12 = vpack.c.bf16 %v901_v10, %v895_v9  ;;  %v1500_v59 = vld [vmem:[#allocation5 + $0x1d70] sm:$0xff]  ;;  %v270_v62 = vld [vmem:[#allocation2 + $0x6c0] sm:$0xff] }
  0x9c   :  { %2806 = vmatmul.mubr.f32.gmra.mrb[16].mxu0 %v156_v13  ;;  %1860 = vmatprep.mubr.f32.mxu1 %v163_v14  ;;  %v1471_v13 = vld [vmem:[#allocation5 + $0x1c88] sm:$0xff]  ;;  %v1477_v14 = vld [vmem:[#allocation5 + $0x1cb8] sm:$0xff]  ;;  %v276_v63 = vld [vmem:[#allocation2 + $0x6f0] sm:$0xff] }
  0x9d   :  { %2811 = vmatprep.mubr.f32.mxu0 %v169_v16  ;;  %7817 = vmatpush1.bf16.msra.mxu1 %v7816_v15  ;;  %v8022_v15 = vpack.c.bf16 %v1477_v14, %v1471_v13  ;;  %v894_v16 = vld [vmem:[#allocation5 + $0xa80] sm:$0xff]  ;;  %v283_v3 = vld [vmem:[#allocation2 + $0x728] sm:$0xff]  ;;  %v936_v9 = vld [vmem:[#allocation5 + $0xbd0] sm:$0xff] }
  0x9e   :  { %8009 = vmatpush1.bf16.msra.mxu0 %v8008_v17  ;;  %7819 = vmatprep.subr.bf16.mxu1 %v7818_v22  ;;  %v900_v17 = vld [vmem:[#allocation5 + $0xab0] sm:$0xff]  ;;  %v1506_v10 = vld [vmem:[#allocation5 + $0x1da0] sm:$0xff] }
  0x9f   :  { %1861 = vmatmul.mubr.f32.gmra.mrb[18].mxu1 %v162_v18  ;;  %8011 = vmatprep.subr.bf16.mxu0 %v8010_v26  ;;  %v222_v18 = vld [vmem:[#allocation2 + $0x540] sm:$0xff]  ;;  %v7832_v19 = vpack.c.bf16 %v900_v17, %v894_v16  ;;  %v228_v22 = vld [vmem:[#allocation2 + $0x570] sm:$0xff]  ;;  %v295_v16 = vld [vmem:[#allocation2 + $0x788] sm:$0xff] }
  0xa0   :  { %2812 = vmatmul.mubr.f32.gmra.mrb[18].mxu0 %v168_v21  ;;  %1866 = vmatprep.mubr.f32.mxu1 %v175_v25  ;;  %v1476_v21 = vld [vmem:[#allocation5 + $0x1cb0] sm:$0xff]  ;;  %v241_v25 = vld [vmem:[#allocation2 + $0x5d8] sm:$0xff]  ;;  %v234_v26 = vld [vmem:[#allocation2 + $0x5a0] sm:$0xff] }
  0xa1   :  { %2817 = vmatprep.mubr.f32.mxu0 %v181_v29  ;;  %7821 = vmatpush1.bf16.msra.mxu1 %v7820_v30  ;;  %v8024_v24 = vpack.c.bf16 %v1476_v21, %v1470_v20  ;;  %v907_v29 = vld [vmem:[#allocation5 + $0xae8] sm:$0xff]  ;;  %v913_v30 = vld [vmem:[#allocation5 + $0xb18] sm:$0xff]  ;;  %v282_v13 = vld [vmem:[#allocation2 + $0x720] sm:$0xff] }
  0xa2   :  { %8013 = vmatpush1.bf16.msra.mxu0 %v8012_v33  ;;  %7823 = vmatprep.subr.bf16.mxu1 %v7822_v40  ;;  %v7834_v32 = vpack.c.bf16 %v913_v30, %v907_v29  ;;  %v1489_v33 = vld [vmem:[#allocation5 + $0x1d18] sm:$0xff]  ;;  %v1488_v40 = vld [vmem:[#allocation5 + $0x1d10] sm:$0xff]  ;;  %v1519_v21 = vld [vmem:[#allocation5 + $0x1e08] sm:$0xff] }
  0xa3   :  { %1867 = vmatmul.mubr.f32.gmra.mrb[20].mxu1 %v174_v34  ;;  %8015 = vmatprep.subr.bf16.mxu0 %v8014_v44  ;;  %v906_v34 = vld [vmem:[#allocation5 + $0xae0] sm:$0xff]  ;;  %v8028_v41 = vpack.c.bf16 %v1488_v40, %v1482_v39  ;;  %v259_v44 = vld [vmem:[#allocation2 + $0x668] sm:$0xff]  ;;  %v301_v17 = vld [vmem:[#allocation2 + $0x7b8] sm:$0xff] }
  0xa4   :  { %2818 = vmatmul.mubr.f32.gmra.mrb[20].mxu0 %v180_v35  ;;  %1872 = vmatprep.mubr.f32.mxu1 %v187_v36  ;;  %v912_v35 = vld [vmem:[#allocation5 + $0xb10] sm:$0xff]  ;;  %v253_v36 = vld [vmem:[#allocation2 + $0x638] sm:$0xff]  ;;  %v319_v30 = vld [vmem:[#allocation2 + $0x848] sm:$0xff] }
  0xa5   :  { %2823 = vmatprep.mubr.f32.mxu0 %v193_v37  ;;  %7825 = vmatpush1.bf16.msra.mxu1 %v7824_v49  ;;  %v8026_v37 = vpack.c.bf16 %v1489_v33, %v1483_v31  ;;  %v7836_v38 = vpack.c.bf16 %v912_v35, %v906_v34  ;;  %v7838_v49 = vpack.c.bf16 %v925_v47, %v919_v45  ;;  %v312_v29 = vld [vmem:[#allocation2 + $0x810] sm:$0xff]  ;;  %v325_v31 = vld [vmem:[#allocation2 + $0x878] sm:$0xff]  ;;  %v331_v34 = vld [vmem:[#allocation2 + $0x8a8] sm:$0xff] }
  0xa6   :  { %8017 = vmatpush1.bf16.msra.mxu0 %v8016_v50  ;;  %7827 = vmatprep.subr.bf16.mxu1 %v7826_v60  ;;  %v1501_v50 = vld [vmem:[#allocation5 + $0x1d78] sm:$0xff]  ;;  %v324_v33 = vld [vmem:[#allocation2 + $0x870] sm:$0xff]  ;;  %v342_v40 = vld [vmem:[#allocation2 + $0x900] sm:$0xff] }
  0xa7   :  { %1873 = vmatmul.mubr.f32.gmra.mrb[22].mxu1 %v186_v48  ;;  %8019 = vmatprep.subr.bf16.mxu0 %v8018_v1  ;;  %v1495_v48 = vld [vmem:[#allocation5 + $0x1d48] sm:$0xff]  ;;  %v277_v60 = vld [vmem:[#allocation2 + $0x6f8] sm:$0xff]  ;;  %v360_v45 = vld [vmem:[#allocation2 + $0x990] sm:$0xff] }
  0xa8   :  { %2824 = vmatmul.mubr.f32.gmra.mrb[22].mxu0 %v192_v51  ;;  %1878 = vmatprep.mubr.f32.mxu1 %v199_v52  ;;  %v918_v51 = vld [vmem:[#allocation5 + $0xb40] sm:$0xff]  ;;  %v937_v1 = vld [vmem:[#allocation5 + $0xbd8] sm:$0xff] }
  0xa9   :  { %2829 = vmatprep.mubr.f32.mxu0 %v205_v53  ;;  %7829 = vmatpush1.bf16.msra.mxu1 %v7828_v2  ;;  %v258_v52 = vld [vmem:[#allocation2 + $0x660] sm:$0xff]  ;;  %v8030_v53 = vpack.c.bf16 %v1501_v50, %v1495_v48  ;;  %v1507_v2 = vld [vmem:[#allocation5 + $0x1da8] sm:$0xff]  ;;  %v337_v35 = vld [vmem:[#allocation2 + $0x8d8] sm:$0xff] }
  0xaa   :  { %8021 = vmatpush1.bf16.msra.mxu0 %v8020_v5  ;;  %7831 = vmatprep.subr.bf16.mxu1 %v7830_v12  ;;  %v1513_v5 = vld [vmem:[#allocation5 + $0x1dd8] sm:$0xff]  ;;  %v1512_v12 = vld [vmem:[#allocation5 + $0x1dd0] sm:$0xff]  ;;  %v366_v48 = vld [vmem:[#allocation2 + $0x9c0] sm:$0xff] }
  0xab   :  { %1879 = vmatmul.mubr.f32.gmra.mrb[24].mxu1 %v198_v54  ;;  %8023 = vmatprep.subr.bf16.mxu0 %v8022_v15  ;;  %v924_v54 = vld [vmem:[#allocation5 + $0xb70] sm:$0xff]  ;;  %v8036_v14 = vpack.c.bf16 %v1512_v12, %v1506_v10  ;;  %v349_v39 = vld [vmem:[#allocation2 + $0x938] sm:$0xff]  ;;  %v379_v50 = vld [vmem:[#allocation2 + $0xa28] sm:$0xff] }
  0xac   :  { %2830 = vmatmul.mubr.f32.gmra.mrb[24].mxu0 %v204_v55  ;;  %1884 = vmatprep.mubr.f32.mxu1 %v211_v57  ;;  %v1494_v55 = vld [vmem:[#allocation5 + $0x1d40] sm:$0xff]  ;;  %v271_v57 = vld [vmem:[#allocation2 + $0x6c8] sm:$0xff]  ;;  %v7840_v58 = vpack.c.bf16 %v924_v54, %v918_v51  ;;  %v288_v15 = vld [vmem:[#allocation2 + $0x750] sm:$0xff] }
  0xad   :  { %2835 = vmatprep.mubr.f32.mxu0 %v217_v0  ;;  %7833 = vmatpush1.bf16.msra.mxu1 %v7832_v19  ;;  %v8032_v61 = vpack.c.bf16 %v1500_v59, %v1494_v55  ;;  %v931_v0 = vld [vmem:[#allocation5 + $0xba8] sm:$0xff]  ;;  %v949_v19 = vld [vmem:[#allocation5 + $0xc38] sm:$0xff]  ;;  %v450_v12 = vld [vmem:[#allocation2 + $0xc60] sm:$0xff] }
  0xae   :  { %8025 = vmatpush1.bf16.msra.mxu0 %v8024_v24  ;;  %7835 = vmatprep.subr.bf16.mxu1 %v7834_v32  ;;  %v7842_v4 = vpack.c.bf16 %v937_v1, %v931_v0  ;;  %v318_v32 = vld [vmem:[#allocation2 + $0x840] sm:$0xff]  ;;  %v373_v47 = vld [vmem:[#allocation2 + $0x9f8] sm:$0xff]  ;;  %v391_v54 = vld [vmem:[#allocation2 + $0xa88] sm:$0xff] }
  0xaf   :  { %1885 = vmatmul.mubr.f32.gmra.mrb[26].mxu1 %v210_v6  ;;  %8027 = vmatprep.subr.bf16.mxu0 %v8026_v37  ;;  %v930_v6 = vld [vmem:[#allocation5 + $0xba0] sm:$0xff]  ;;  %v336_v37 = vld [vmem:[#allocation2 + $0x8d0] sm:$0xff]  ;;  %v385_v51 = vld [vmem:[#allocation2 + $0xa58] sm:$0xff] }
  0xb0   :  { %2836 = vmatmul.mubr.f32.gmra.mrb[26].mxu0 %v216_v7  ;;  %1890 = vmatprep.mubr.f32.mxu1 %v223_v8  ;;  %v289_v7 = vld [vmem:[#allocation2 + $0x758] sm:$0xff]  ;;  %v8034_v8 = vpack.c.bf16 %v1513_v5, %v1507_v2  ;;  %v414_v0 = vld [vmem:[#allocation2 + $0xb40] sm:$0xff]  ;;  %v420_v1 = vld [vmem:[#allocation2 + $0xb70] sm:$0xff] }
  0xb1   :  { %2841 = vmatprep.mubr.f32.mxu0 %v229_v11  ;;  %7837 = vmatpush1.bf16.msra.mxu1 %v7836_v38  ;;  %v7844_v11 = vpack.c.bf16 %v936_v9, %v930_v6  ;;  %v343_v38 = vld [vmem:[#allocation2 + $0x908] sm:$0xff]  ;;  %v397_v55 = vld [vmem:[#allocation2 + $0xab8] sm:$0xff]  ;;  %v432_v5 = vld [vmem:[#allocation2 + $0xbd0] sm:$0xff] }
  0xb2   :  { %8029 = vmatpush1.bf16.msra.mxu0 %v8028_v41  ;;  %7839 = vmatprep.subr.bf16.mxu1 %v7838_v49  ;;  %v348_v41 = vld [vmem:[#allocation2 + $0x930] sm:$0xff]  ;;  %v409_v59 = vld [vmem:[#allocation2 + $0xb18] sm:$0xff]  ;;  %v427_v2 = vld [vmem:[#allocation2 + $0xba8] sm:$0xff] }
  0xb3   :  { %1891 = vmatmul.mubr.f32.gmra.mrb[28].mxu1 %v222_v18  ;;  %8031 = vmatprep.subr.bf16.mxu0 %v8030_v53  ;;  %v943_v18 = vld [vmem:[#allocation5 + $0xc08] sm:$0xff]  ;;  %v372_v49 = vld [vmem:[#allocation2 + $0x9f0] sm:$0xff] }
  0xb4   :  { %2842 = vmatmul.mubr.f32.gmra.mrb[28].mxu0 %v228_v22  ;;  %1896 = vmatprep.mubr.f32.mxu1 %v235_v23  ;;  %v7846_v20 = vpack.c.bf16 %v949_v19, %v943_v18  ;;  %v1525_v22 = vld [vmem:[#allocation5 + $0x1e38] sm:$0xff]  ;;  %v294_v23 = vld [vmem:[#allocation2 + $0x780] sm:$0xff]  ;;  %v384_v53 = vld [vmem:[#allocation2 + $0xa50] sm:$0xff] }
  0xb5   :  { %2847 = vmatprep.mubr.f32.mxu0 %v241_v25  ;;  %7841 = vmatpush1.bf16.msra.mxu1 %v7840_v58  ;;  %v8038_v24 = vpack.c.bf16 %v1525_v22, %v1519_v21  ;;  %v300_v25 = vld [vmem:[#allocation2 + $0x7b0] sm:$0xff]  ;;  %v403_v58 = vld [vmem:[#allocation2 + $0xae8] sm:$0xff]  ;;  %v481_v19 = vld [vmem:[#allocation2 + $0xd58] sm:$0xff] }
  0xb6   :  { %8033 = vmatpush1.bf16.msra.mxu0 %v8032_v61  ;;  %7843 = vmatprep.subr.bf16.mxu1 %v7842_v4  ;;  %v408_v61 = vld [vmem:[#allocation2 + $0xb10] sm:$0xff]  ;;  %v426_v4 = vld [vmem:[#allocation2 + $0xba0] sm:$0xff]  ;;  %v439_v6 = vld [vmem:[#allocation2 + $0xc08] sm:$0xff] }
  0xb7   :  { %1897 = vmatmul.mubr.f32.gmra.mrb[30].mxu1 %v234_v26  ;;  %8035 = vmatprep.subr.bf16.mxu0 %v8034_v8  ;;  %v307_v26 = vld [vmem:[#allocation2 + $0x7e8] sm:$0xff]  ;;  %v438_v8 = vld [vmem:[#allocation2 + $0xc00] sm:$0xff]  ;;  %v444_v9 = vld [vmem:[#allocation2 + $0xc30] sm:$0xff] }
  0xb8   :  { %2848 = vmatmul.mubr.f32.gmra.mrb[30].mxu0 %v240_v27  ;;  %1902 = vmatprep.mubr.f32.mxu1 %v247_v28  ;;  %v313_v27 = vld [vmem:[#allocation2 + $0x818] sm:$0xff]  ;;  %v306_v28 = vld [vmem:[#allocation2 + $0x7e0] sm:$0xff]  ;;  %v451_v10 = vld [vmem:[#allocation2 + $0xc68] sm:$0xff] }
  0xb9   :  { %2853 = vmatprep.mubr.f32.mxu0 %v253_v36  ;;  %7845 = vmatpush1.bf16.msra.mxu1 %v7844_v11  ;;  %v330_v36 = vld [vmem:[#allocation2 + $0x8a0] sm:$0xff]  ;;  %v457_v11 = vld [vmem:[#allocation2 + $0xc98] sm:$0xff]  ;;  %v475_v18 = vld [vmem:[#allocation2 + $0xd28] sm:$0xff] }
  0xba   :  { %8037 = vmatpush1.bf16.msra.mxu0 %v8036_v14  ;;  %7847 = vmatprep.subr.bf16.mxu1 %v7846_v20  ;;  %v463_v14 = vld [vmem:[#allocation2 + $0xcc8] sm:$0xff]  ;;  %v474_v20 = vld [vmem:[#allocation2 + $0xd20] sm:$0xff]  ;;  %v480_v21 = vld [vmem:[#allocation2 + $0xd50] sm:$0xff] }
  0xbb   :  { %1903 = vmatmul.mubr.f32.gmra.mrb[32].mxu1 %v246_v42  ;;  %8039 = vmatprep.subr.bf16.mxu0 %v8038_v24  ;;  %v355_v42 = vld [vmem:[#allocation2 + $0x968] sm:$0xff]  ;;  %v486_v24 = vld [vmem:[#allocation2 + $0xd80] sm:$0xff] }
  0xbc   :  { %2854 = vmatmul.mubr.f32.gmra.mrb[32].mxu0 %v252_v43  ;;  %1908 = vmatprep.mubr.f32.mxu1 %v259_v44  ;;  %v361_v43 = vld [vmem:[#allocation2 + $0x998] sm:$0xff]  ;;  %v354_v44 = vld [vmem:[#allocation2 + $0x960] sm:$0xff]  ;;  %v487_v22 = vld [vmem:[#allocation2 + $0xd88] sm:$0xff] }
  0xbd   :  { %2859 = vmatprep.mubr.f32.mxu0 %v265_v46  ;;  %v367_v46 = vld [vmem:[#allocation2 + $0x9c8] sm:$0xff] }
  0xbf   :  { %1909 = vmatmul.mubr.f32.gmra.mrb[34].mxu1 %v258_v52  ;;  %v378_v52 = vld [vmem:[#allocation2 + $0xa20] sm:$0xff] }
  0xc0   :  { %2860 = vmatmul.mubr.f32.gmra.mrb[34].mxu0 %v264_v56  ;;  %1914 = vmatprep.mubr.f32.mxu1 %v271_v57  ;;  %v390_v56 = vld [vmem:[#allocation2 + $0xa80] sm:$0xff]  ;;  %v396_v57 = vld [vmem:[#allocation2 + $0xab0] sm:$0xff] }
  0xc1   :  { %2865 = vmatprep.mubr.f32.mxu0 %v277_v60  ;;  %v402_v60 = vld [vmem:[#allocation2 + $0xae0] sm:$0xff] }
  0xc3   :  { %1915 = vmatmul.mubr.f32.gmra.mrb[36].mxu1 %v270_v62  ;;  %v415_v62 = vld [vmem:[#allocation2 + $0xb48] sm:$0xff] }
  0xc4   :  { %2866 = vmatmul.mubr.f32.gmra.mrb[36].mxu0 %v276_v63  ;;  %1920 = vmatprep.mubr.f32.mxu1 %v283_v3  ;;  %v421_v63 = vld [vmem:[#allocation2 + $0xb78] sm:$0xff] }
  0xc5   :  { %2871 = vmatprep.mubr.f32.mxu0 %v289_v7  ;;  %v433_v3 = vld [vmem:[#allocation2 + $0xbd8] sm:$0xff] }
  0xc6   :  { %v445_v7 = vld [vmem:[#allocation2 + $0xc38] sm:$0xff] }
  0xc7   :  { %1921 = vmatmul.mubr.f32.gmra.mrb[38].mxu1 %v282_v13  ;;  %v456_v13 = vld [vmem:[#allocation2 + $0xc90] sm:$0xff] }
  0xc8   :  { %2872 = vmatmul.mubr.f32.gmra.mrb[38].mxu0 %v288_v15  ;;  %1926 = vmatprep.mubr.f32.mxu1 %v295_v16  ;;  %v469_v15 = vld [vmem:[#allocation2 + $0xcf8] sm:$0xff]  ;;  %v462_v16 = vld [vmem:[#allocation2 + $0xcc0] sm:$0xff] }
  0xc9   :  { %2877 = vmatprep.mubr.f32.mxu0 %v301_v17  ;;  %v468_v17 = vld [vmem:[#allocation2 + $0xcf0] sm:$0xff] }
  0xcb   :  { %1927 = vmatmul.mubr.f32.gmra.mrb[40].mxu1 %v294_v23  ;;  %v493_v23 = vld [vmem:[#allocation2 + $0xdb8] sm:$0xff] }
  0xcc   :  { %2878 = vmatmul.mubr.f32.gmra.mrb[40].mxu0 %v300_v25  ;;  %1932 = vmatprep.mubr.f32.mxu1 %v307_v26  ;;  %v492_v25 = vld [vmem:[#allocation2 + $0xdb0] sm:$0xff]  ;;  %v499_v26 = vld [vmem:[#allocation2 + $0xde8] sm:$0xff] }
  0xcd   :  { %2883 = vmatprep.mubr.f32.mxu0 %v313_v27  ;;  %v505_v27 = vld [vmem:[#allocation2 + $0xe18] sm:$0xff] }
  0xcf   :  { %1933 = vmatmul.mubr.f32.gmra.mrb[42].mxu1 %v306_v28  ;;  %v498_v28 = vld [vmem:[#allocation2 + $0xde0] sm:$0xff] }
  0xd0   :  { %2884 = vmatmul.mubr.f32.gmra.mrb[42].mxu0 %v312_v29  ;;  %1938 = vmatprep.mubr.f32.mxu1 %v319_v30  ;;  %v504_v29 = vld [vmem:[#allocation2 + $0xe10] sm:$0xff]  ;;  %v511_v30 = vld [vmem:[#allocation2 + $0xe48] sm:$0xff] }
  0xd1   :  { %2889 = vmatprep.mubr.f32.mxu0 %v325_v31  ;;  %v517_v31 = vld [vmem:[#allocation2 + $0xe78] sm:$0xff] }
  0xd3   :  { %1939 = vmatmul.mubr.f32.gmra.mrb[44].mxu1 %v318_v32  ;;  %v510_v32 = vld [vmem:[#allocation2 + $0xe40] sm:$0xff] }
  0xd4   :  { %2890 = vmatmul.mubr.f32.gmra.mrb[44].mxu0 %v324_v33  ;;  %1944 = vmatprep.mubr.f32.mxu1 %v331_v34  ;;  %v516_v33 = vld [vmem:[#allocation2 + $0xe70] sm:$0xff]  ;;  %v523_v34 = vld [vmem:[#allocation2 + $0xea8] sm:$0xff] }
  0xd5   :  { %2895 = vmatprep.mubr.f32.mxu0 %v337_v35  ;;  %v529_v35 = vld [vmem:[#allocation2 + $0xed8] sm:$0xff] }
  0xd7   :  { %1945 = vmatmul.mubr.f32.gmra.mrb[46].mxu1 %v330_v36  ;;  %v522_v36 = vld [vmem:[#allocation2 + $0xea0] sm:$0xff] }
  0xd8   :  { %2896 = vmatmul.mubr.f32.gmra.mrb[46].mxu0 %v336_v37  ;;  %1950 = vmatprep.mubr.f32.mxu1 %v343_v38  ;;  %v528_v37 = vld [vmem:[#allocation2 + $0xed0] sm:$0xff]  ;;  %v535_v38 = vld [vmem:[#allocation2 + $0xf08] sm:$0xff] }
  0xd9   :  { %2901 = vmatprep.mubr.f32.mxu0 %v349_v39  ;;  %v541_v39 = vld [vmem:[#allocation2 + $0xf38] sm:$0xff] }
  0xdb   :  { %1951 = vmatmul.mubr.f32.gmra.mrb[48].mxu1 %v342_v40  ;;  %v534_v40 = vld [vmem:[#allocation2 + $0xf00] sm:$0xff] }
  0xdc   :  { %2902 = vmatmul.mubr.f32.gmra.mrb[48].mxu0 %v348_v41  ;;  %1956 = vmatprep.mubr.f32.mxu1 %v355_v42  ;;  %v540_v41 = vld [vmem:[#allocation2 + $0xf30] sm:$0xff]  ;;  %v547_v42 = vld [vmem:[#allocation2 + $0xf68] sm:$0xff] }
  0xdd   :  { %2907 = vmatprep.mubr.f32.mxu0 %v361_v43  ;;  %v553_v43 = vld [vmem:[#allocation2 + $0xf98] sm:$0xff] }
  0xdf   :  { %1957 = vmatmul.mubr.f32.gmra.mrb[50].mxu1 %v354_v44  ;;  %v546_v44 = vld [vmem:[#allocation2 + $0xf60] sm:$0xff] }
  0xe0   :  { %2908 = vmatmul.mubr.f32.gmra.mrb[50].mxu0 %v360_v45  ;;  %1962 = vmatprep.mubr.f32.mxu1 %v367_v46  ;;  %v552_v45 = vld [vmem:[#allocation2 + $0xf90] sm:$0xff]  ;;  %v57_v46 = vld [vmem:[#allocation2 + $0x18] sm:$0xff] }
  0xe1   :  { %2913 = vmatprep.mubr.f32.mxu0 %v373_v47  ;;  %v942_v47 = vld [vmem:[#allocation5 + $0xc00] sm:$0xff] }
  0xe3   :  { %1963 = vmatmul.mubr.f32.gmra.mrb[52].mxu1 %v366_v48  ;;  %v948_v48 = vld [vmem:[#allocation5 + $0xc30] sm:$0xff] }
  0xe4   :  { %2914 = vmatmul.mubr.f32.gmra.mrb[52].mxu0 %v372_v49  ;;  %1968 = vmatprep.mubr.f32.mxu1 %v379_v50  ;;  %v63_v49 = vld [vmem:[#allocation2 + $0x48] sm:$0xff]  ;;  %v1518_v50 = vld [vmem:[#allocation5 + $0x1e00] sm:$0xff] }
  0xe5   :  { %2919 = vmatprep.mubr.f32.mxu0 %v385_v51  ;;  %v1524_v51 = vld [vmem:[#allocation5 + $0x1e30] sm:$0xff] }
  0xe7   :  { %1969 = vmatmul.mubr.f32.gmra.mrb[54].mxu1 %v378_v52  ;;  %v955_v52 = vld [vmem:[#allocation5 + $0xc68] sm:$0xff] }
  0xe8   :  { %2920 = vmatmul.mubr.f32.gmra.mrb[54].mxu0 %v384_v53  ;;  %1974 = vmatprep.mubr.f32.mxu1 %v391_v54  ;;  %v961_v53 = vld [vmem:[#allocation5 + $0xc98] sm:$0xff]  ;;  %v56_v54 = vld [vmem:[#allocation2 + $0x10] sm:$0xff] }
  0xe9   :  { %2925 = vmatprep.mubr.f32.mxu0 %v397_v55  ;;  %v7848_v55 = vpack.c.bf16 %v948_v48, %v942_v47  ;;  %v990_v47 = vld [vmem:[#allocation5 + $0xd80] sm:$0xff]  ;;  %v996_v48 = vld [vmem:[#allocation5 + $0xdb0] sm:$0xff] }
  0xeb   :  { %1975 = vmatmul.mubr.f32.gmra.mrb[56].mxu1 %v390_v56  ;;  %v1531_v56 = vld [vmem:[#allocation5 + $0x1e68] sm:$0xff] }
  0xec   :  { %2926 = vmatmul.mubr.f32.gmra.mrb[56].mxu0 %v396_v57  ;;  %1980 = vmatprep.mubr.f32.mxu1 %v403_v58  ;;  %v1537_v57 = vld [vmem:[#allocation5 + $0x1e98] sm:$0xff]  ;;  %v62_v58 = vld [vmem:[#allocation2 + $0x40] sm:$0xff] }
  0xed   :  { %2931 = vmatprep.mubr.f32.mxu0 %v409_v59  ;;  %v8040_v59 = vpack.c.bf16 %v1524_v51, %v1518_v50  ;;  %v1572_v51 = vld [vmem:[#allocation5 + $0x1fb0] sm:$0xff] }
  0xef   :  { %1981 = vmatmul.mubr.f32.gmra.mrb[58].mxu1 %v402_v60  ;;  %v69_v60 = vld [vmem:[#allocation2 + $0x78] sm:$0xff] }
  0xf0   :  { %2932 = vmatmul.mubr.f32.gmra.mrb[58].mxu0 %v408_v61  ;;  %1986 = vmatprep.mubr.f32.mxu1 %v415_v62  ;;  %v75_v61 = vld [vmem:[#allocation2 + $0xa8] sm:$0xff]  ;;  %v7850_v62 = vpack.c.bf16 %v961_v53, %v955_v52  ;;  %v1009_v53 = vld [vmem:[#allocation5 + $0xe18] sm:$0xff] }
  0xf1   :  { %2937 = vmatprep.mubr.f32.mxu0 %v421_v63  ;;  %v954_v63 = vld [vmem:[#allocation5 + $0xc60] sm:$0xff]  ;;  %v1003_v52 = vld [vmem:[#allocation5 + $0xde8] sm:$0xff] }
  0xf3   :  { %1987 = vmatmul.mubr.f32.gmra.mrb[60].mxu1 %v414_v0  ;;  %v960_v0 = vld [vmem:[#allocation5 + $0xc90] sm:$0xff] }
  0xf4   :  { %2938 = vmatmul.mubr.f32.gmra.mrb[60].mxu0 %v420_v1  ;;  %1992 = vmatprep.mubr.f32.mxu1 %v427_v2  ;;  %v1530_v1 = vld [vmem:[#allocation5 + $0x1e60] sm:$0xff]  ;;  %v8042_v2 = vpack.c.bf16 %v1537_v57, %v1531_v56  ;;  %v1585_v56 = vld [vmem:[#allocation5 + $0x2018] sm:$0xff] }
  0xf5   :  { %2943 = vmatprep.mubr.f32.mxu0 %v433_v3  ;;  %v1536_v3 = vld [vmem:[#allocation5 + $0x1e90] sm:$0xff]  ;;  %v110_v57 = vld [vmem:[#allocation2 + $0x1c0] sm:$0xff] }
  0xf7   :  { %1993 = vmatmul.mubr.f32.gmra.mrb[62].mxu1 %v426_v4  ;;  %v967_v4 = vld [vmem:[#allocation5 + $0xcc8] sm:$0xff] }
  0xf8   :  { %2944 = vmatmul.mubr.f32.gmra.mrb[62].mxu0 %v432_v5  ;;  %1998 = vmatprep.mubr.f32.mxu1 %v439_v6  ;;  %v973_v5 = vld [vmem:[#allocation5 + $0xcf8] sm:$0xff]  ;;  %v68_v6 = vld [vmem:[#allocation2 + $0x70] sm:$0xff] }
  0xf9   :  { %2949 = vmatprep.mubr.f32.mxu0 %v445_v7  ;;  %v1543_v7 = vld [vmem:[#allocation5 + $0x1ec8] sm:$0xff] }
  0xfb   :  { %1999 = vmatmul.mubr.f32.gmra.mrb[64].mxu1 %v438_v8  ;;  %v1549_v8 = vld [vmem:[#allocation5 + $0x1ef8] sm:$0xff] }
  0xfc   :  { %2950 = vmatmul.mubr.f32.gmra.mrb[64].mxu0 %v444_v9  ;;  %2004 = vmatprep.mubr.f32.mxu1 %v451_v10  ;;  %v74_v9 = vld [vmem:[#allocation2 + $0xa0] sm:$0xff]  ;;  %v81_v10 = vld [vmem:[#allocation2 + $0xd8] sm:$0xff] }
  0xfd   :  { %2955 = vmatprep.mubr.f32.mxu0 %v457_v11  ;;  %v87_v11 = vld [vmem:[#allocation2 + $0x108] sm:$0xff] }
  0xff   :  { %2005 = vmatmul.mubr.f32.gmra.mrb[66].mxu1 %v450_v12  ;;  %v7852_v12 = vpack.c.bf16 %v960_v0, %v954_v63  ;;  %v1002_v63 = vld [vmem:[#allocation5 + $0xde0] sm:$0xff]  ;;  %v1008_v0 = vld [vmem:[#allocation5 + $0xe10] sm:$0xff] }
 0x100   :  { %2956 = vmatmul.mubr.f32.gmra.mrb[66].mxu0 %v456_v13  ;;  %2010 = vmatprep.mubr.f32.mxu1 %v463_v14  ;;  %v8044_v13 = vpack.c.bf16 %v1536_v3, %v1530_v1  ;;  %v7854_v14 = vpack.c.bf16 %v973_v5, %v967_v4  ;;  %v1578_v1 = vld [vmem:[#allocation5 + $0x1fe0] sm:$0xff]  ;;  %v1584_v3 = vld [vmem:[#allocation5 + $0x2010] sm:$0xff]  ;;  %v1015_v4 = vld [vmem:[#allocation5 + $0xe48] sm:$0xff] }
 0x101   :  { %2961 = vmatprep.mubr.f32.mxu0 %v469_v15  ;;  %v966_v15 = vld [vmem:[#allocation5 + $0xcc0] sm:$0xff]  ;;  %v1021_v5 = vld [vmem:[#allocation5 + $0xe78] sm:$0xff] }
 0x103   :  { %2011 = vmatmul.mubr.f32.gmra.mrb[68].mxu1 %v462_v16  ;;  %v972_v16 = vld [vmem:[#allocation5 + $0xcf0] sm:$0xff] }
 0x104   :  { %2962 = vmatmul.mubr.f32.gmra.mrb[68].mxu0 %v468_v17  ;;  %2016 = vmatprep.mubr.f32.mxu1 %v475_v18  ;;  %v1542_v17 = vld [vmem:[#allocation5 + $0x1ec0] sm:$0xff]  ;;  %v8046_v18 = vpack.c.bf16 %v1549_v8, %v1543_v7  ;;  %v1591_v7 = vld [vmem:[#allocation5 + $0x2048] sm:$0xff]  ;;  %v1597_v8 = vld [vmem:[#allocation5 + $0x2078] sm:$0xff] }
 0x105   :  { %2967 = vmatprep.mubr.f32.mxu0 %v481_v19  ;;  %v1548_v19 = vld [vmem:[#allocation5 + $0x1ef0] sm:$0xff] }
 0x107   :  { %2017 = vmatmul.mubr.f32.gmra.mrb[70].mxu1 %v474_v20  ;;  %v979_v20 = vld [vmem:[#allocation5 + $0xd28] sm:$0xff] }
 0x108   :  { %2968 = vmatmul.mubr.f32.gmra.mrb[70].mxu0 %v480_v21  ;;  %2022 = vmatprep.mubr.f32.mxu1 %v487_v22  ;;  %v985_v21 = vld [vmem:[#allocation5 + $0xd58] sm:$0xff]  ;;  %v80_v22 = vld [vmem:[#allocation2 + $0xd0] sm:$0xff] }
 0x109   :  { %2973 = vmatprep.mubr.f32.mxu0 %v493_v23  ;;  %v1555_v23 = vld [vmem:[#allocation5 + $0x1f28] sm:$0xff] }
 0x10b   :  { %2023 = vmatmul.mubr.f32.gmra.mrb[72].mxu1 %v486_v24  ;;  %v1561_v24 = vld [vmem:[#allocation5 + $0x1f58] sm:$0xff] }
 0x10c   :  { %2974 = vmatmul.mubr.f32.gmra.mrb[72].mxu0 %v492_v25  ;;  %2028 = vmatprep.mubr.f32.mxu1 %v499_v26  ;;  %v86_v25 = vld [vmem:[#allocation2 + $0x100] sm:$0xff]  ;;  %v93_v26 = vld [vmem:[#allocation2 + $0x138] sm:$0xff] }
 0x10d   :  { %2979 = vmatprep.mubr.f32.mxu0 %v505_v27  ;;  %v99_v27 = vld [vmem:[#allocation2 + $0x168] sm:$0xff] }
 0x10f   :  { %2029 = vmatmul.mubr.f32.gmra.mrb[74].mxu1 %v498_v28  ;;  %v7856_v28 = vpack.c.bf16 %v972_v16, %v966_v15  ;;  %v1014_v15 = vld [vmem:[#allocation5 + $0xe40] sm:$0xff]  ;;  %v1020_v16 = vld [vmem:[#allocation5 + $0xe70] sm:$0xff] }
 0x110   :  { %2980 = vmatmul.mubr.f32.gmra.mrb[74].mxu0 %v504_v29  ;;  %2034 = vmatprep.mubr.f32.mxu1 %v511_v30  ;;  %v8048_v29 = vpack.c.bf16 %v1548_v19, %v1542_v17  ;;  %v7858_v30 = vpack.c.bf16 %v985_v21, %v979_v20  ;;  %v1590_v17 = vld [vmem:[#allocation5 + $0x2040] sm:$0xff]  ;;  %v1596_v19 = vld [vmem:[#allocation5 + $0x2070] sm:$0xff]  ;;  %v1027_v20 = vld [vmem:[#allocation5 + $0xea8] sm:$0xff] }
 0x111   :  { %2985 = vmatprep.mubr.f32.mxu0 %v517_v31  ;;  %v978_v31 = vld [vmem:[#allocation5 + $0xd20] sm:$0xff]  ;;  %v1033_v21 = vld [vmem:[#allocation5 + $0xed8] sm:$0xff] }
 0x113   :  { %2035 = vmatmul.mubr.f32.gmra.mrb[76].mxu1 %v510_v32  ;;  %v984_v32 = vld [vmem:[#allocation5 + $0xd50] sm:$0xff] }
 0x114   :  { %2986 = vmatmul.mubr.f32.gmra.mrb[76].mxu0 %v516_v33  ;;  %2040 = vmatprep.mubr.f32.mxu1 %v523_v34  ;;  %v1554_v33 = vld [vmem:[#allocation5 + $0x1f20] sm:$0xff]  ;;  %v8050_v34 = vpack.c.bf16 %v1561_v24, %v1555_v23  ;;  %v1603_v23 = vld [vmem:[#allocation5 + $0x20a8] sm:$0xff]  ;;  %v1609_v24 = vld [vmem:[#allocation5 + $0x20d8] sm:$0xff] }
 0x115   :  { %2991 = vmatprep.mubr.f32.mxu0 %v529_v35  ;;  %v1560_v35 = vld [vmem:[#allocation5 + $0x1f50] sm:$0xff] }
 0x117   :  { %2041 = vmatmul.mubr.f32.gmra.mrb[78].mxu1 %v522_v36  ;;  %v991_v36 = vld [vmem:[#allocation5 + $0xd88] sm:$0xff] }
 0x118   :  { %2992 = vmatmul.mubr.f32.gmra.mrb[78].mxu0 %v528_v37  ;;  %2046 = vmatprep.mubr.f32.mxu1 %v535_v38  ;;  %v997_v37 = vld [vmem:[#allocation5 + $0xdb8] sm:$0xff]  ;;  %v92_v38 = vld [vmem:[#allocation2 + $0x130] sm:$0xff] }
 0x119   :  { %2997 = vmatprep.mubr.f32.mxu0 %v541_v39  ;;  %v1567_v39 = vld [vmem:[#allocation5 + $0x1f88] sm:$0xff] }
 0x11b   :  { %2047 = vmatmul.mubr.f32.gmra.mrb[80].mxu1 %v534_v40  ;;  %v1573_v40 = vld [vmem:[#allocation5 + $0x1fb8] sm:$0xff] }
 0x11c   :  { %2998 = vmatmul.mubr.f32.gmra.mrb[80].mxu0 %v540_v41  ;;  %2052 = vmatprep.mubr.f32.mxu1 %v547_v42  ;;  %v98_v41 = vld [vmem:[#allocation2 + $0x160] sm:$0xff]  ;;  %v105_v42 = vld [vmem:[#allocation2 + $0x198] sm:$0xff]  ;;  %v8054_v50 = vpack.c.bf16 %v1573_v40, %v1567_v39  ;;  %v1615_v39 = vld [vmem:[#allocation5 + $0x2108] sm:$0xff] }
 0x11d   :  { %3003 = vmatprep.mubr.f32.mxu0 %v553_v43  ;;  %v111_v43 = vld [vmem:[#allocation2 + $0x1c8] sm:$0xff]  ;;  %v1621_v40 = vld [vmem:[#allocation5 + $0x2138] sm:$0xff] }
 0x11f   :  { %2053 = vmatmul.mubr.f32.gmra.mrb[82].mxu1 %v546_v44  ;;  %v7860_v44 = vpack.c.bf16 %v984_v32, %v978_v31  ;;  %v1026_v31 = vld [vmem:[#allocation5 + $0xea0] sm:$0xff]  ;;  %v1032_v32 = vld [vmem:[#allocation5 + $0xed0] sm:$0xff] }
 0x120   :  { %3004 = vmatmul.mubr.f32.gmra.mrb[82].mxu0 %v552_v45  ;;  %2123 = vmatprep.mubr.f32.mxu1 %v57_v46  ;;  %v8052_v45 = vpack.c.bf16 %v1560_v35, %v1554_v33  ;;  %v7862_v46 = vpack.c.bf16 %v997_v37, %v991_v36  ;;  %v1602_v33 = vld [vmem:[#allocation5 + $0x20a0] sm:$0xff]  ;;  %v1608_v35 = vld [vmem:[#allocation5 + $0x20d0] sm:$0xff]  ;;  %v1039_v36 = vld [vmem:[#allocation5 + $0xf08] sm:$0xff] }
 0x121   :  { %3074 = vmatprep.mubr.f32.mxu0 %v63_v49  ;;  %v1566_v49 = vld [vmem:[#allocation5 + $0x1f80] sm:$0xff]  ;;  %v1045_v37 = vld [vmem:[#allocation5 + $0xf38] sm:$0xff] }
 0x123   :  { %2124 = vmatmul.mubr.f32.vlgmr.msra.gmra.mrb[0].mxu1 %v56_v54  ;;  %v104_v54 = vld [vmem:[#allocation2 + $0x190] sm:$0xff] }
 0x124   :  { %3075 = vmatmul.mubr.f32.vlgmr.msra.gmra.mrb[0].mxu0 %v62_v58  ;;  %7849 = vmatpush1.bf16.msra.mxu1 %v7848_v55  ;;  %v1579_v55 = vld [vmem:[#allocation5 + $0x1fe8] sm:$0xff]  ;;  %v117_v58 = vld [vmem:[#allocation2 + $0x1f8] sm:$0xff] }
 0x125   :  { %8041 = vmatpush1.bf16.msra.mxu0 %v8040_v59  ;;  %2129 = vmatprep.mubr.f32.mxu1 %v69_v60  ;;  %v123_v59 = vld [vmem:[#allocation2 + $0x228] sm:$0xff]  ;;  %v7864_v60 = vpack.c.bf16 %v996_v48, %v990_v47  ;;  %v1038_v47 = vld [vmem:[#allocation5 + $0xf00] sm:$0xff]  ;;  %v1044_v48 = vld [vmem:[#allocation5 + $0xf30] sm:$0xff] }
 0x126   :  { %3080 = vmatprep.mubr.f32.mxu0 %v75_v61  ;;  %7851 = vmatprep.subr.bf16.mxu1 %v7850_v62  ;;  %v8056_v61 = vpack.c.bf16 %v1572_v51, %v1566_v49  ;;  %v7866_v62 = vpack.c.bf16 %v1009_v53, %v1003_v52  ;;  %v1614_v49 = vld [vmem:[#allocation5 + $0x2100] sm:$0xff]  ;;  %v1620_v51 = vld [vmem:[#allocation5 + $0x2130] sm:$0xff]  ;;  %v1051_v52 = vld [vmem:[#allocation5 + $0xf68] sm:$0xff] }
 0x127   :  { %2130 = vmatmul.mubr.f32.gmra.mrb[2].mxu1 %v68_v6  ;;  %8043 = vmatprep.subr.bf16.mxu0 %v8042_v2  ;;  %v8058_v2 = vpack.c.bf16 %v1585_v56, %v1579_v55  ;;  %v116_v6 = vld [vmem:[#allocation2 + $0x1f0] sm:$0xff]  ;;  %v1057_v53 = vld [vmem:[#allocation5 + $0xf98] sm:$0xff]  ;;  %v1627_v55 = vld [vmem:[#allocation5 + $0x2168] sm:$0xff] }
 0x128   :  { %3081 = vmatmul.mubr.f32.gmra.mrb[2].mxu0 %v74_v9  ;;  %2135 = vmatprep.mubr.f32.mxu1 %v81_v10  ;;  %v122_v9 = vld [vmem:[#allocation2 + $0x220] sm:$0xff]  ;;  %v129_v10 = vld [vmem:[#allocation2 + $0x258] sm:$0xff] }
 0x129   :  { %3086 = vmatprep.mubr.f32.mxu0 %v87_v11  ;;  %7853 = vmatpush1.bf16.msra.mxu1 %v7852_v12  ;;  %v135_v11 = vld [vmem:[#allocation2 + $0x288] sm:$0xff]  ;;  %v7868_v12 = vpack.c.bf16 %v1008_v0, %v1002_v63  ;;  %v1633_v56 = vld [vmem:[#allocation5 + $0x2198] sm:$0xff]  ;;  %v1050_v63 = vld [vmem:[#allocation5 + $0xf60] sm:$0xff] }
 0x12a   :  { %8045 = vmatpush1.bf16.msra.mxu0 %v8044_v13  ;;  %7855 = vmatprep.subr.bf16.mxu1 %v7854_v14  ;;  %v8060_v13 = vpack.c.bf16 %v1584_v3, %v1578_v1  ;;  %v7870_v14 = vpack.c.bf16 %v1021_v5, %v1015_v4  ;;  %v1056_v0 = vld [vmem:[#allocation5 + $0xf90] sm:$0xff]  ;;  %v1626_v1 = vld [vmem:[#allocation5 + $0x2160] sm:$0xff]  ;;  %v1063_v4 = vld [vmem:[#allocation5 + $0xfc8] sm:$0xff] }
 0x12b   :  { %2136 = vmatmul.mubr.f32.gmra.mrb[4].mxu1 %v80_v22  ;;  %8047 = vmatprep.subr.bf16.mxu0 %v8046_v18  ;;  %v8062_v18 = vpack.c.bf16 %v1597_v8, %v1591_v7  ;;  %v128_v22 = vld [vmem:[#allocation2 + $0x250] sm:$0xff]  ;;  %v1069_v5 = vld [vmem:[#allocation5 + $0xff8] sm:$0xff]  ;;  %v1639_v7 = vld [vmem:[#allocation5 + $0x21c8] sm:$0xff] }
 0x12c   :  { %3087 = vmatmul.mubr.f32.gmra.mrb[4].mxu0 %v86_v25  ;;  %2141 = vmatprep.mubr.f32.mxu1 %v93_v26  ;;  %v134_v25 = vld [vmem:[#allocation2 + $0x280] sm:$0xff]  ;;  %v141_v26 = vld [vmem:[#allocation2 + $0x2b8] sm:$0xff]  ;;  %v1632_v3 = vld [vmem:[#allocation5 + $0x2190] sm:$0xff] }
 0x12d   :  { %3092 = vmatprep.mubr.f32.mxu0 %v99_v27  ;;  %7857 = vmatpush1.bf16.msra.mxu1 %v7856_v28  ;;  %v147_v27 = vld [vmem:[#allocation2 + $0x2e8] sm:$0xff]  ;;  %v7872_v28 = vpack.c.bf16 %v1020_v16, %v1014_v15  ;;  %v1645_v8 = vld [vmem:[#allocation5 + $0x21f8] sm:$0xff]  ;;  %v1062_v15 = vld [vmem:[#allocation5 + $0xfc0] sm:$0xff] }
 0x12e   :  { %8049 = vmatpush1.bf16.msra.mxu0 %v8048_v29  ;;  %7859 = vmatprep.subr.bf16.mxu1 %v7858_v30  ;;  %v8064_v29 = vpack.c.bf16 %v1596_v19, %v1590_v17  ;;  %v7874_v30 = vpack.c.bf16 %v1033_v21, %v1027_v20  ;;  %v1068_v16 = vld [vmem:[#allocation5 + $0xff0] sm:$0xff]  ;;  %v1638_v17 = vld [vmem:[#allocation5 + $0x21c0] sm:$0xff]  ;;  %v1075_v20 = vld [vmem:[#allocation5 + $0x1028] sm:$0xff] }
 0x12f   :  { %2142 = vmatmul.mubr.f32.gmra.mrb[6].mxu1 %v92_v38  ;;  %8051 = vmatprep.subr.bf16.mxu0 %v8050_v34  ;;  %v8066_v34 = vpack.c.bf16 %v1609_v24, %v1603_v23  ;;  %v140_v38 = vld [vmem:[#allocation2 + $0x2b0] sm:$0xff]  ;;  %v1081_v21 = vld [vmem:[#allocation5 + $0x1058] sm:$0xff]  ;;  %v1651_v23 = vld [vmem:[#allocation5 + $0x2228] sm:$0xff] }
 0x130   :  { %3093 = vmatmul.mubr.f32.gmra.mrb[6].mxu0 %v98_v41  ;;  %2147 = vmatprep.mubr.f32.mxu1 %v105_v42  ;;  %v146_v41 = vld [vmem:[#allocation2 + $0x2e0] sm:$0xff]  ;;  %v153_v42 = vld [vmem:[#allocation2 + $0x318] sm:$0xff]  ;;  %v1644_v19 = vld [vmem:[#allocation5 + $0x21f0] sm:$0xff] }
 0x131   :  { %3098 = vmatprep.mubr.f32.mxu0 %v111_v43  ;;  %7861 = vmatpush1.bf16.msra.mxu1 %v7860_v44  ;;  %v159_v43 = vld [vmem:[#allocation2 + $0x348] sm:$0xff]  ;;  %v7876_v44 = vpack.c.bf16 %v1032_v32, %v1026_v31  ;;  %v1657_v24 = vld [vmem:[#allocation5 + $0x2258] sm:$0xff]  ;;  %v1074_v31 = vld [vmem:[#allocation5 + $0x1020] sm:$0xff] }
 0x132   :  { %8053 = vmatpush1.bf16.msra.mxu0 %v8052_v45  ;;  %7863 = vmatprep.subr.bf16.mxu1 %v7862_v46  ;;  %v8068_v45 = vpack.c.bf16 %v1608_v35, %v1602_v33  ;;  %v7878_v46 = vpack.c.bf16 %v1045_v37, %v1039_v36  ;;  %v1080_v32 = vld [vmem:[#allocation5 + $0x1050] sm:$0xff]  ;;  %v1650_v33 = vld [vmem:[#allocation5 + $0x2220] sm:$0xff]  ;;  %v1087_v36 = vld [vmem:[#allocation5 + $0x1088] sm:$0xff] }
 0x133   :  { %2148 = vmatmul.mubr.f32.gmra.mrb[8].mxu1 %v104_v54  ;;  %8055 = vmatprep.subr.bf16.mxu0 %v8054_v50  ;;  %v8070_v50 = vpack.c.bf16 %v1621_v40, %v1615_v39  ;;  %v152_v54 = vld [vmem:[#allocation2 + $0x310] sm:$0xff]  ;;  %v1093_v37 = vld [vmem:[#allocation5 + $0x10b8] sm:$0xff]  ;;  %v1663_v39 = vld [vmem:[#allocation5 + $0x2288] sm:$0xff] }
 0x134   :  { %3099 = vmatmul.mubr.f32.gmra.mrb[8].mxu0 %v110_v57  ;;  %2153 = vmatprep.mubr.f32.mxu1 %v117_v58  ;;  %v158_v57 = vld [vmem:[#allocation2 + $0x340] sm:$0xff]  ;;  %v165_v58 = vld [vmem:[#allocation2 + $0x378] sm:$0xff]  ;;  %v1656_v35 = vld [vmem:[#allocation5 + $0x2250] sm:$0xff] }
 0x135   :  { %3104 = vmatprep.mubr.f32.mxu0 %v123_v59  ;;  %7865 = vmatpush1.bf16.msra.mxu1 %v7864_v60  ;;  %v171_v59 = vld [vmem:[#allocation2 + $0x3a8] sm:$0xff]  ;;  %v7880_v60 = vpack.c.bf16 %v1044_v48, %v1038_v47  ;;  %v1669_v40 = vld [vmem:[#allocation5 + $0x22b8] sm:$0xff]  ;;  %v1086_v47 = vld [vmem:[#allocation5 + $0x1080] sm:$0xff] }
 0x136   :  { %8057 = vmatpush1.bf16.msra.mxu0 %v8056_v61  ;;  %7867 = vmatprep.subr.bf16.mxu1 %v7866_v62  ;;  %v8072_v61 = vpack.c.bf16 %v1620_v51, %v1614_v49  ;;  %v7882_v62 = vpack.c.bf16 %v1057_v53, %v1051_v52  ;;  %v1092_v48 = vld [vmem:[#allocation5 + $0x10b0] sm:$0xff]  ;;  %v1662_v49 = vld [vmem:[#allocation5 + $0x2280] sm:$0xff]  ;;  %v1099_v52 = vld [vmem:[#allocation5 + $0x10e8] sm:$0xff] }
 0x137   :  { %2154 = vmatmul.mubr.f32.gmra.mrb[10].mxu1 %v116_v6  ;;  %8059 = vmatprep.subr.bf16.mxu0 %v8058_v2  ;;  %v8074_v2 = vpack.c.bf16 %v1633_v56, %v1627_v55  ;;  %v164_v6 = vld [vmem:[#allocation2 + $0x370] sm:$0xff]  ;;  %v1105_v53 = vld [vmem:[#allocation5 + $0x1118] sm:$0xff]  ;;  %v1675_v55 = vld [vmem:[#allocation5 + $0x22e8] sm:$0xff] }
 0x138   :  { %3105 = vmatmul.mubr.f32.gmra.mrb[10].mxu0 %v122_v9  ;;  %2159 = vmatprep.mubr.f32.mxu1 %v129_v10  ;;  %v170_v9 = vld [vmem:[#allocation2 + $0x3a0] sm:$0xff]  ;;  %v177_v10 = vld [vmem:[#allocation2 + $0x3d8] sm:$0xff]  ;;  %v1668_v51 = vld [vmem:[#allocation5 + $0x22b0] sm:$0xff] }
 0x139   :  { %3110 = vmatprep.mubr.f32.mxu0 %v135_v11  ;;  %7869 = vmatpush1.bf16.msra.mxu1 %v7868_v12  ;;  %v183_v11 = vld [vmem:[#allocation2 + $0x408] sm:$0xff]  ;;  %v7884_v12 = vpack.c.bf16 %v1056_v0, %v1050_v63  ;;  %v1681_v56 = vld [vmem:[#allocation5 + $0x2318] sm:$0xff]  ;;  %v1098_v63 = vld [vmem:[#allocation5 + $0x10e0] sm:$0xff] }
 0x13a   :  { %8061 = vmatpush1.bf16.msra.mxu0 %v8060_v13  ;;  %7871 = vmatprep.subr.bf16.mxu1 %v7870_v14  ;;  %v8076_v13 = vpack.c.bf16 %v1632_v3, %v1626_v1  ;;  %v7886_v14 = vpack.c.bf16 %v1069_v5, %v1063_v4  ;;  %v1104_v0 = vld [vmem:[#allocation5 + $0x1110] sm:$0xff]  ;;  %v1674_v1 = vld [vmem:[#allocation5 + $0x22e0] sm:$0xff]  ;;  %v1111_v4 = vld [vmem:[#allocation5 + $0x1148] sm:$0xff] }
 0x13b   :  { %2160 = vmatmul.mubr.f32.gmra.mrb[12].mxu1 %v128_v22  ;;  %8063 = vmatprep.subr.bf16.mxu0 %v8062_v18  ;;  %v8078_v18 = vpack.c.bf16 %v1645_v8, %v1639_v7  ;;  %v176_v22 = vld [vmem:[#allocation2 + $0x3d0] sm:$0xff]  ;;  %v1117_v5 = vld [vmem:[#allocation5 + $0x1178] sm:$0xff]  ;;  %v1687_v7 = vld [vmem:[#allocation5 + $0x2348] sm:$0xff] }
 0x13c   :  { %3111 = vmatmul.mubr.f32.gmra.mrb[12].mxu0 %v134_v25  ;;  %2165 = vmatprep.mubr.f32.mxu1 %v141_v26  ;;  %v182_v25 = vld [vmem:[#allocation2 + $0x400] sm:$0xff]  ;;  %v189_v26 = vld [vmem:[#allocation2 + $0x438] sm:$0xff]  ;;  %v1680_v3 = vld [vmem:[#allocation5 + $0x2310] sm:$0xff] }
 0x13d   :  { %3116 = vmatprep.mubr.f32.mxu0 %v147_v27  ;;  %7873 = vmatpush1.bf16.msra.mxu1 %v7872_v28  ;;  %v195_v27 = vld [vmem:[#allocation2 + $0x468] sm:$0xff]  ;;  %v7888_v28 = vpack.c.bf16 %v1068_v16, %v1062_v15  ;;  %v1693_v8 = vld [vmem:[#allocation5 + $0x2378] sm:$0xff]  ;;  %v1110_v15 = vld [vmem:[#allocation5 + $0x1140] sm:$0xff] }
 0x13e   :  { %8065 = vmatpush1.bf16.msra.mxu0 %v8064_v29  ;;  %7875 = vmatprep.subr.bf16.mxu1 %v7874_v30  ;;  %v8080_v29 = vpack.c.bf16 %v1644_v19, %v1638_v17  ;;  %v7890_v30 = vpack.c.bf16 %v1081_v21, %v1075_v20  ;;  %v1116_v16 = vld [vmem:[#allocation5 + $0x1170] sm:$0xff]  ;;  %v1686_v17 = vld [vmem:[#allocation5 + $0x2340] sm:$0xff]  ;;  %v1123_v20 = vld [vmem:[#allocation5 + $0x11a8] sm:$0xff] }
 0x13f   :  { %2166 = vmatmul.mubr.f32.gmra.mrb[14].mxu1 %v140_v38  ;;  %8067 = vmatprep.subr.bf16.mxu0 %v8066_v34  ;;  %v8082_v34 = vpack.c.bf16 %v1657_v24, %v1651_v23  ;;  %v188_v38 = vld [vmem:[#allocation2 + $0x430] sm:$0xff]  ;;  %v1129_v21 = vld [vmem:[#allocation5 + $0x11d8] sm:$0xff]  ;;  %v1699_v23 = vld [vmem:[#allocation5 + $0x23a8] sm:$0xff] }
 0x140   :  { %3117 = vmatmul.mubr.f32.gmra.mrb[14].mxu0 %v146_v41  ;;  %2171 = vmatprep.mubr.f32.mxu1 %v153_v42  ;;  %v194_v41 = vld [vmem:[#allocation2 + $0x460] sm:$0xff]  ;;  %v201_v42 = vld [vmem:[#allocation2 + $0x498] sm:$0xff]  ;;  %v1692_v19 = vld [vmem:[#allocation5 + $0x2370] sm:$0xff] }
 0x141   :  { %3122 = vmatprep.mubr.f32.mxu0 %v159_v43  ;;  %7877 = vmatpush1.bf16.msra.mxu1 %v7876_v44  ;;  %v207_v43 = vld [vmem:[#allocation2 + $0x4c8] sm:$0xff]  ;;  %v7892_v44 = vpack.c.bf16 %v1080_v32, %v1074_v31  ;;  %v1705_v24 = vld [vmem:[#allocation5 + $0x23d8] sm:$0xff]  ;;  %v1122_v31 = vld [vmem:[#allocation5 + $0x11a0] sm:$0xff] }
 0x142   :  { %8069 = vmatpush1.bf16.msra.mxu0 %v8068_v45  ;;  %7879 = vmatprep.subr.bf16.mxu1 %v7878_v46  ;;  %v8084_v45 = vpack.c.bf16 %v1656_v35, %v1650_v33  ;;  %v7894_v46 = vpack.c.bf16 %v1093_v37, %v1087_v36  ;;  %v1128_v32 = vld [vmem:[#allocation5 + $0x11d0] sm:$0xff]  ;;  %v1698_v33 = vld [vmem:[#allocation5 + $0x23a0] sm:$0xff]  ;;  %v561_v36 = vld [vmem:[#allocation5 + $0x18] sm:$0xff] }
 0x143   :  { %2172 = vmatmul.mubr.f32.gmra.mrb[16].mxu1 %v152_v54  ;;  %8071 = vmatprep.subr.bf16.mxu0 %v8070_v50  ;;  %v8086_v50 = vpack.c.bf16 %v1669_v40, %v1663_v39  ;;  %v200_v54 = vld [vmem:[#allocation2 + $0x490] sm:$0xff]  ;;  %v567_v37 = vld [vmem:[#allocation5 + $0x48] sm:$0xff]  ;;  %v569_v40 = vld [vmem:[#allocation5 + $0x58] sm:$0xff] }
 0x144   :  { %3123 = vmatmul.mubr.f32.gmra.mrb[16].mxu0 %v158_v57  ;;  %2177 = vmatprep.mubr.f32.mxu1 %v165_v58  ;;  %v206_v57 = vld [vmem:[#allocation2 + $0x4c0] sm:$0xff]  ;;  %v213_v58 = vld [vmem:[#allocation2 + $0x4f8] sm:$0xff]  ;;  %v1704_v35 = vld [vmem:[#allocation5 + $0x23d0] sm:$0xff] }
 0x145   :  { %3128 = vmatprep.mubr.f32.mxu0 %v171_v59  ;;  %7881 = vmatpush1.bf16.msra.mxu1 %v7880_v60  ;;  %v219_v59 = vld [vmem:[#allocation2 + $0x528] sm:$0xff]  ;;  %v7896_v60 = vpack.c.bf16 %v1092_v48, %v1086_v47  ;;  %v248_v48 = vld [vmem:[#allocation2 + $0x610] sm:$0xff] }
 0x146   :  { %8073 = vmatpush1.bf16.msra.mxu0 %v8072_v61  ;;  %7883 = vmatprep.subr.bf16.mxu1 %v7882_v62  ;;  %v8088_v61 = vpack.c.bf16 %v1668_v51, %v1662_v49  ;;  %v7898_v62 = vpack.c.bf16 %v1105_v53, %v1099_v52  ;;  %v563_v39 = vld [vmem:[#allocation5 + $0x28] sm:$0xff]  ;;  %v254_v49 = vld [vmem:[#allocation2 + $0x640] sm:$0xff]  ;;  %v260_v52 = vld [vmem:[#allocation2 + $0x670] sm:$0xff] }
 0x147   :  { %2178 = vmatmul.mubr.f32.gmra.mrb[18].mxu1 %v164_v6  ;;  %8075 = vmatprep.subr.bf16.mxu0 %v8074_v2  ;;  %v8090_v2 = vpack.c.bf16 %v1681_v56, %v1675_v55  ;;  %v212_v6 = vld [vmem:[#allocation2 + $0x4f0] sm:$0xff]  ;;  %v8486_v47 = vpack.c.bf16 %v569_v40, %v563_v39  ;;  %v267_v51 = vld [vmem:[#allocation2 + $0x6a8] sm:$0xff]  ;;  %v266_v53 = vld [vmem:[#allocation2 + $0x6a0] sm:$0xff] }
 0x148   :  { %3129 = vmatmul.mubr.f32.gmra.mrb[18].mxu0 %v170_v9  ;;  %2183 = vmatprep.mubr.f32.mxu1 %v177_v10  ;;  %v218_v9 = vld [vmem:[#allocation2 + $0x520] sm:$0xff]  ;;  %v225_v10 = vld [vmem:[#allocation2 + $0x558] sm:$0xff]  ;;  %v279_v55 = vld [vmem:[#allocation2 + $0x708] sm:$0xff] }
 0x149   :  { %3134 = vmatprep.mubr.f32.mxu0 %v183_v11  ;;  %7885 = vmatpush1.bf16.msra.mxu1 %v7884_v12  ;;  %v231_v11 = vld [vmem:[#allocation2 + $0x588] sm:$0xff]  ;;  %v7900_v12 = vpack.c.bf16 %v1104_v0, %v1098_v63  ;;  %v272_v56 = vld [vmem:[#allocation2 + $0x6d0] sm:$0xff] }
 0x14a   :  { %8077 = vmatpush1.bf16.msra.mxu0 %v8076_v13  ;;  %7887 = vmatprep.subr.bf16.mxu1 %v7886_v14  ;;  %v8092_v13 = vpack.c.bf16 %v1680_v3, %v1674_v1  ;;  %v7902_v14 = vpack.c.bf16 %v1117_v5, %v1111_v4  ;;  %v303_v63 = vld [vmem:[#allocation2 + $0x7c8] sm:$0xff]  ;;  %v296_v0 = vld [vmem:[#allocation2 + $0x790] sm:$0xff]  ;;  %v302_v1 = vld [vmem:[#allocation2 + $0x7c0] sm:$0xff] }
 0x14b   :  { %2184 = vmatmul.mubr.f32.gmra.mrb[20].mxu1 %v176_v22  ;;  %8079 = vmatprep.subr.bf16.mxu0 %v8078_v18  ;;  %v8094_v18 = vpack.c.bf16 %v1693_v8, %v1687_v7  ;;  %v224_v22 = vld [vmem:[#allocation2 + $0x550] sm:$0xff]  ;;  %v315_v3 = vld [vmem:[#allocation2 + $0x828] sm:$0xff]  ;;  %v314_v5 = vld [vmem:[#allocation2 + $0x820] sm:$0xff] }
 0x14c   :  { %3135 = vmatmul.mubr.f32.gmra.mrb[20].mxu0 %v182_v25  ;;  %2189 = vmatprep.mubr.f32.mxu1 %v189_v26  ;;  %v230_v25 = vld [vmem:[#allocation2 + $0x580] sm:$0xff]  ;;  %v237_v26 = vld [vmem:[#allocation2 + $0x5b8] sm:$0xff]  ;;  %v308_v4 = vld [vmem:[#allocation2 + $0x7f0] sm:$0xff] }
 0x14d   :  { %3140 = vmatprep.mubr.f32.mxu0 %v195_v27  ;;  %7889 = vmatpush1.bf16.msra.mxu1 %v7888_v28  ;;  %v243_v27 = vld [vmem:[#allocation2 + $0x5e8] sm:$0xff]  ;;  %v7904_v28 = vpack.c.bf16 %v1116_v16, %v1110_v15  ;;  %v320_v8 = vld [vmem:[#allocation2 + $0x850] sm:$0xff] }
 0x14e   :  { %8081 = vmatpush1.bf16.msra.mxu0 %v8080_v29  ;;  %7891 = vmatprep.subr.bf16.mxu1 %v7890_v30  ;;  %v8096_v29 = vpack.c.bf16 %v1692_v19, %v1686_v17  ;;  %v7906_v30 = vpack.c.bf16 %v1129_v21, %v1123_v20  ;;  %v327_v7 = vld [vmem:[#allocation2 + $0x888] sm:$0xff]  ;;  %v344_v16 = vld [vmem:[#allocation2 + $0x910] sm:$0xff]  ;;  %v350_v17 = vld [vmem:[#allocation2 + $0x940] sm:$0xff] }
 0x14f   :  { %2190 = vmatmul.mubr.f32.gmra.mrb[22].mxu1 %v188_v38  ;;  %8083 = vmatprep.subr.bf16.mxu0 %v8082_v34  ;;  %v8098_v34 = vpack.c.bf16 %v1705_v24, %v1699_v23  ;;  %v236_v38 = vld [vmem:[#allocation2 + $0x5b0] sm:$0xff]  ;;  %v351_v15 = vld [vmem:[#allocation2 + $0x948] sm:$0xff]  ;;  %v362_v21 = vld [vmem:[#allocation2 + $0x9a0] sm:$0xff] }
 0x150   :  { %3141 = vmatmul.mubr.f32.gmra.mrb[22].mxu0 %v194_v41  ;;  %2195 = vmatprep.mubr.f32.mxu1 %v201_v42  ;;  %v242_v41 = vld [vmem:[#allocation2 + $0x5e0] sm:$0xff]  ;;  %v249_v42 = vld [vmem:[#allocation2 + $0x618] sm:$0xff]  ;;  %v363_v19 = vld [vmem:[#allocation2 + $0x9a8] sm:$0xff] }
 0x151   :  { %3146 = vmatprep.mubr.f32.mxu0 %v207_v43  ;;  %7893 = vmatpush1.bf16.msra.mxu1 %v7892_v44  ;;  %v7908_v43 = vpack.c.bf16 %v1128_v32, %v1122_v31  ;;  %v255_v44 = vld [vmem:[#allocation2 + $0x648] sm:$0xff]  ;;  %v356_v20 = vld [vmem:[#allocation2 + $0x970] sm:$0xff] }
 0x152   :  { %8085 = vmatpush1.bf16.msra.mxu0 %v8084_v45  ;;  %7895 = vmatprep.subr.bf16.mxu1 %v7894_v46  ;;  %v8100_v45 = vpack.c.bf16 %v1704_v35, %v1698_v33  ;;  %v8102_v46 = vpack.c.bf16 %v567_v37, %v561_v36  ;;  %v375_v23 = vld [vmem:[#allocation2 + $0xa08] sm:$0xff]  ;;  %v368_v24 = vld [vmem:[#allocation2 + $0x9d0] sm:$0xff]  ;;  %v398_v33 = vld [vmem:[#allocation2 + $0xac0] sm:$0xff] }
 0x153   :  { %2196 = vmatmul.mubr.f32.gmra.mrb[24].mxu1 %v200_v54  ;;  %8087 = vmatprep.subr.bf16.mxu0 %v8086_v50  ;;  %v261_v50 = vld [vmem:[#allocation2 + $0x678] sm:$0xff]  ;;  %v399_v31 = vld [vmem:[#allocation2 + $0xac8] sm:$0xff]  ;;  %v392_v32 = vld [vmem:[#allocation2 + $0xa90] sm:$0xff] }
 0x154   :  { %3147 = vmatmul.mubr.f32.gmra.mrb[24].mxu0 %v206_v57  ;;  %2201 = vmatprep.mubr.f32.mxu1 %v213_v58  ;;  %v273_v54 = vld [vmem:[#allocation2 + $0x6d8] sm:$0xff]  ;;  %v278_v57 = vld [vmem:[#allocation2 + $0x700] sm:$0xff]  ;;  %v411_v35 = vld [vmem:[#allocation2 + $0xb28] sm:$0xff] }
 0x155   :  { %3152 = vmatprep.mubr.f32.mxu0 %v219_v59  ;;  %7897 = vmatpush1.bf16.msra.mxu1 %v7896_v60  ;;  %v285_v58 = vld [vmem:[#allocation2 + $0x738] sm:$0xff]  ;;  %v291_v59 = vld [vmem:[#allocation2 + $0x768] sm:$0xff]  ;;  %v284_v60 = vld [vmem:[#allocation2 + $0x730] sm:$0xff] }
 0x156   :  { %8089 = vmatpush1.bf16.msra.mxu0 %v8088_v61  ;;  %7899 = vmatprep.subr.bf16.mxu1 %v7898_v62  ;;  %v290_v61 = vld [vmem:[#allocation2 + $0x760] sm:$0xff]  ;;  %v297_v62 = vld [vmem:[#allocation2 + $0x798] sm:$0xff]  ;;  %v404_v36 = vld [vmem:[#allocation2 + $0xaf0] sm:$0xff] }
 0x157   :  { %2202 = vmatmul.mubr.f32.gmra.mrb[26].mxu1 %v212_v6  ;;  %8091 = vmatprep.subr.bf16.mxu0 %v8090_v2  ;;  %v309_v2 = vld [vmem:[#allocation2 + $0x7f8] sm:$0xff]  ;;  %v410_v37 = vld [vmem:[#allocation2 + $0xb20] sm:$0xff]  ;;  %v423_v39 = vld [vmem:[#allocation2 + $0xb88] sm:$0xff] }
 0x158   :  { %3153 = vmatmul.mubr.f32.gmra.mrb[26].mxu0 %v218_v9  ;;  %2207 = vmatprep.mubr.f32.mxu1 %v225_v10  ;;  %v321_v6 = vld [vmem:[#allocation2 + $0x858] sm:$0xff]  ;;  %v326_v9 = vld [vmem:[#allocation2 + $0x880] sm:$0xff]  ;;  %v416_v40 = vld [vmem:[#allocation2 + $0xb50] sm:$0xff] }
 0x159   :  { %3158 = vmatprep.mubr.f32.mxu0 %v231_v11  ;;  %7901 = vmatpush1.bf16.msra.mxu1 %v7900_v12  ;;  %v333_v10 = vld [vmem:[#allocation2 + $0x8b8] sm:$0xff]  ;;  %v339_v11 = vld [vmem:[#allocation2 + $0x8e8] sm:$0xff]  ;;  %v332_v12 = vld [vmem:[#allocation2 + $0x8b0] sm:$0xff] }
 0x15a   :  { %8093 = vmatpush1.bf16.msra.mxu0 %v8092_v13  ;;  %7903 = vmatprep.subr.bf16.mxu1 %v7902_v14  ;;  %v338_v13 = vld [vmem:[#allocation2 + $0x8e0] sm:$0xff]  ;;  %v345_v14 = vld [vmem:[#allocation2 + $0x918] sm:$0xff] }
 0x15b   :  { %2208 = vmatmul.mubr.f32.gmra.mrb[28].mxu1 %v224_v22  ;;  %8095 = vmatprep.subr.bf16.mxu0 %v8094_v18  ;;  %v357_v18 = vld [vmem:[#allocation2 + $0x978] sm:$0xff] }
 0x15c   :  { %3159 = vmatmul.mubr.f32.gmra.mrb[28].mxu0 %v230_v25  ;;  %2213 = vmatprep.mubr.f32.mxu1 %v237_v26  ;;  %v369_v22 = vld [vmem:[#allocation2 + $0x9d8] sm:$0xff]  ;;  %v374_v25 = vld [vmem:[#allocation2 + $0xa00] sm:$0xff] }
 0x15d   :  { %3164 = vmatprep.mubr.f32.mxu0 %v243_v27  ;;  %7905 = vmatpush1.bf16.msra.mxu1 %v7904_v28  ;;  %v381_v26 = vld [vmem:[#allocation2 + $0xa38] sm:$0xff]  ;;  %v387_v27 = vld [vmem:[#allocation2 + $0xa68] sm:$0xff]  ;;  %v380_v28 = vld [vmem:[#allocation2 + $0xa30] sm:$0xff] }
 0x15e   :  { %8097 = vmatpush1.bf16.msra.mxu0 %v8096_v29  ;;  %7907 = vmatprep.subr.bf16.mxu1 %v7906_v30  ;;  %v386_v29 = vld [vmem:[#allocation2 + $0xa60] sm:$0xff]  ;;  %v393_v30 = vld [vmem:[#allocation2 + $0xa98] sm:$0xff] }
 0x15f   :  { %2214 = vmatmul.mubr.f32.gmra.mrb[30].mxu1 %v236_v38  ;;  %8099 = vmatprep.subr.bf16.mxu0 %v8098_v34  ;;  %v405_v34 = vld [vmem:[#allocation2 + $0xaf8] sm:$0xff] }
 0x160   :  { %3165 = vmatmul.mubr.f32.gmra.mrb[30].mxu0 %v242_v41  ;;  %2219 = vmatprep.mubr.f32.mxu1 %v249_v42  ;;  %v417_v38 = vld [vmem:[#allocation2 + $0xb58] sm:$0xff]  ;;  %v422_v41 = vld [vmem:[#allocation2 + $0xb80] sm:$0xff] }
 0x161   :  { %3170 = vmatprep.mubr.f32.mxu0 %v255_v44  ;;  %7909 = vmatpush1.bf16.msra.mxu1 %v7908_v43  ;;  %v429_v42 = vld [vmem:[#allocation2 + $0xbb8] sm:$0xff]  ;;  %v435_v43 = vld [vmem:[#allocation2 + $0xbe8] sm:$0xff]  ;;  %v428_v44 = vld [vmem:[#allocation2 + $0xbb0] sm:$0xff] }
 0x162   :  { %8101 = vmatpush1.bf16.msra.mxu0 %v8100_v45  ;;  %8103 = vmatprep.subr.bf16.mxu1 %v8102_v46  ;;  %v434_v45 = vld [vmem:[#allocation2 + $0xbe0] sm:$0xff]  ;;  %v441_v46 = vld [vmem:[#allocation2 + $0xc18] sm:$0xff] }
 0x163   :  { %2220 = vmatmul.mubr.f32.gmra.mrb[32].mxu1 %v248_v48  ;;  %8487 = vmatprep.subr.bf16.mxu0 %v8486_v47  ;;  %v447_v47 = vld [vmem:[#allocation2 + $0xc48] sm:$0xff]  ;;  %v440_v48 = vld [vmem:[#allocation2 + $0xc10] sm:$0xff] }
 0x164   :  { %3171 = vmatmul.mubr.f32.gmra.mrb[32].mxu0 %v254_v49  ;;  %2225 = vmatprep.mubr.f32.mxu1 %v261_v50  ;;  %v446_v49 = vld [vmem:[#allocation2 + $0xc40] sm:$0xff]  ;;  %v453_v50 = vld [vmem:[#allocation2 + $0xc78] sm:$0xff] }
 0x165   :  { %3176 = vmatprep.mubr.f32.mxu0 %v267_v51  ;;  %v459_v51 = vld [vmem:[#allocation2 + $0xca8] sm:$0xff] }
 0x167   :  { %2226 = vmatmul.mubr.f32.gmra.mrb[34].mxu1 %v260_v52  ;;  %v452_v52 = vld [vmem:[#allocation2 + $0xc70] sm:$0xff] }
 0x168   :  { %3177 = vmatmul.mubr.f32.gmra.mrb[34].mxu0 %v266_v53  ;;  %2231 = vmatprep.mubr.f32.mxu1 %v273_v54  ;;  %v458_v53 = vld [vmem:[#allocation2 + $0xca0] sm:$0xff]  ;;  %v465_v54 = vld [vmem:[#allocation2 + $0xcd8] sm:$0xff] }
 0x169   :  { %3182 = vmatprep.mubr.f32.mxu0 %v279_v55  ;;  %v471_v55 = vld [vmem:[#allocation2 + $0xd08] sm:$0xff] }
 0x16b   :  { %2232 = vmatmul.mubr.f32.gmra.mrb[36].mxu1 %v272_v56  ;;  %v464_v56 = vld [vmem:[#allocation2 + $0xcd0] sm:$0xff] }
 0x16c   :  { %3183 = vmatmul.mubr.f32.gmra.mrb[36].mxu0 %v278_v57  ;;  %2237 = vmatprep.mubr.f32.mxu1 %v285_v58  ;;  %v470_v57 = vld [vmem:[#allocation2 + $0xd00] sm:$0xff]  ;;  %v477_v58 = vld [vmem:[#allocation2 + $0xd38] sm:$0xff] }
 0x16d   :  { %3188 = vmatprep.mubr.f32.mxu0 %v291_v59  ;;  %v483_v59 = vld [vmem:[#allocation2 + $0xd68] sm:$0xff] }
 0x16f   :  { %2238 = vmatmul.mubr.f32.gmra.mrb[38].mxu1 %v284_v60  ;;  %v476_v60 = vld [vmem:[#allocation2 + $0xd30] sm:$0xff] }
 0x170   :  { %3189 = vmatmul.mubr.f32.gmra.mrb[38].mxu0 %v290_v61  ;;  %2243 = vmatprep.mubr.f32.mxu1 %v297_v62  ;;  %v482_v61 = vld [vmem:[#allocation2 + $0xd60] sm:$0xff]  ;;  %v489_v62 = vld [vmem:[#allocation2 + $0xd98] sm:$0xff] }
 0x171   :  { %3194 = vmatprep.mubr.f32.mxu0 %v303_v63  ;;  %v495_v63 = vld [vmem:[#allocation2 + $0xdc8] sm:$0xff] }
 0x173   :  { %2244 = vmatmul.mubr.f32.gmra.mrb[40].mxu1 %v296_v0  ;;  %v488_v0 = vld [vmem:[#allocation2 + $0xd90] sm:$0xff] }
 0x174   :  { %3195 = vmatmul.mubr.f32.gmra.mrb[40].mxu0 %v302_v1  ;;  %2249 = vmatprep.mubr.f32.mxu1 %v309_v2  ;;  %v494_v1 = vld [vmem:[#allocation2 + $0xdc0] sm:$0xff]  ;;  %v501_v2 = vld [vmem:[#allocation2 + $0xdf8] sm:$0xff] }
 0x175   :  { %3200 = vmatprep.mubr.f32.mxu0 %v315_v3  ;;  %v507_v3 = vld [vmem:[#allocation2 + $0xe28] sm:$0xff] }
 0x177   :  { %2250 = vmatmul.mubr.f32.gmra.mrb[42].mxu1 %v308_v4  ;;  %v500_v4 = vld [vmem:[#allocation2 + $0xdf0] sm:$0xff] }
 0x178   :  { %3201 = vmatmul.mubr.f32.gmra.mrb[42].mxu0 %v314_v5  ;;  %2255 = vmatprep.mubr.f32.mxu1 %v321_v6  ;;  %v506_v5 = vld [vmem:[#allocation2 + $0xe20] sm:$0xff]  ;;  %v513_v6 = vld [vmem:[#allocation2 + $0xe58] sm:$0xff] }
 0x179   :  { %3206 = vmatprep.mubr.f32.mxu0 %v327_v7  ;;  %v519_v7 = vld [vmem:[#allocation2 + $0xe88] sm:$0xff] }
 0x17b   :  { %2256 = vmatmul.mubr.f32.gmra.mrb[44].mxu1 %v320_v8  ;;  %v512_v8 = vld [vmem:[#allocation2 + $0xe50] sm:$0xff] }
 0x17c   :  { %3207 = vmatmul.mubr.f32.gmra.mrb[44].mxu0 %v326_v9  ;;  %2261 = vmatprep.mubr.f32.mxu1 %v333_v10  ;;  %v518_v9 = vld [vmem:[#allocation2 + $0xe80] sm:$0xff]  ;;  %v525_v10 = vld [vmem:[#allocation2 + $0xeb8] sm:$0xff] }
 0x17d   :  { %3212 = vmatprep.mubr.f32.mxu0 %v339_v11  ;;  %v531_v11 = vld [vmem:[#allocation2 + $0xee8] sm:$0xff] }
 0x17f   :  { %2262 = vmatmul.mubr.f32.gmra.mrb[46].mxu1 %v332_v12  ;;  %v524_v12 = vld [vmem:[#allocation2 + $0xeb0] sm:$0xff] }
 0x180   :  { %3213 = vmatmul.mubr.f32.gmra.mrb[46].mxu0 %v338_v13  ;;  %2267 = vmatprep.mubr.f32.mxu1 %v345_v14  ;;  %v530_v13 = vld [vmem:[#allocation2 + $0xee0] sm:$0xff]  ;;  %v537_v14 = vld [vmem:[#allocation2 + $0xf18] sm:$0xff] }
 0x181   :  { %3218 = vmatprep.mubr.f32.mxu0 %v351_v15  ;;  %v543_v15 = vld [vmem:[#allocation2 + $0xf48] sm:$0xff] }
 0x183   :  { %2268 = vmatmul.mubr.f32.gmra.mrb[48].mxu1 %v344_v16  ;;  %v536_v16 = vld [vmem:[#allocation2 + $0xf10] sm:$0xff] }
 0x184   :  { %3219 = vmatmul.mubr.f32.gmra.mrb[48].mxu0 %v350_v17  ;;  %2273 = vmatprep.mubr.f32.mxu1 %v357_v18  ;;  %v542_v17 = vld [vmem:[#allocation2 + $0xf40] sm:$0xff]  ;;  %v549_v18 = vld [vmem:[#allocation2 + $0xf78] sm:$0xff] }
 0x185   :  { %3224 = vmatprep.mubr.f32.mxu0 %v363_v19  ;;  %v555_v19 = vld [vmem:[#allocation2 + $0xfa8] sm:$0xff] }
 0x187   :  { %2274 = vmatmul.mubr.f32.gmra.mrb[50].mxu1 %v356_v20  ;;  %v548_v20 = vld [vmem:[#allocation2 + $0xf70] sm:$0xff] }
 0x188   :  { %3225 = vmatmul.mubr.f32.gmra.mrb[50].mxu0 %v362_v21  ;;  %2279 = vmatprep.mubr.f32.mxu1 %v369_v22  ;;  %v554_v21 = vld [vmem:[#allocation2 + $0xfa0] sm:$0xff]  ;;  %v59_v22 = vld [vmem:[#allocation2 + $0x28] sm:$0xff] }
 0x189   :  { %3230 = vmatprep.mubr.f32.mxu0 %v375_v23  ;;  %v560_v23 = vld [vmem:[#allocation5 + $0x10] sm:$0xff] }
 0x18b   :  { %2280 = vmatmul.mubr.f32.gmra.mrb[52].mxu1 %v368_v24  ;;  %v566_v24 = vld [vmem:[#allocation5 + $0x40] sm:$0xff] }
 0x18c   :  { %3231 = vmatmul.mubr.f32.gmra.mrb[52].mxu0 %v374_v25  ;;  %2285 = vmatprep.mubr.f32.mxu1 %v381_v26  ;;  %v65_v25 = vld [vmem:[#allocation2 + $0x58] sm:$0xff]  ;;  %v562_v26 = vld [vmem:[#allocation5 + $0x20] sm:$0xff] }
 0x18d   :  { %3236 = vmatprep.mubr.f32.mxu0 %v387_v27  ;;  %v568_v27 = vld [vmem:[#allocation5 + $0x50] sm:$0xff] }
 0x18f   :  { %2286 = vmatmul.mubr.f32.gmra.mrb[54].mxu1 %v380_v28  ;;  %v573_v28 = vld [vmem:[#allocation5 + $0x78] sm:$0xff] }
 0x190   :  { %3237 = vmatmul.mubr.f32.gmra.mrb[54].mxu0 %v386_v29  ;;  %2291 = vmatprep.mubr.f32.mxu1 %v393_v30  ;;  %v579_v29 = vld [vmem:[#allocation5 + $0xa8] sm:$0xff]  ;;  %v58_v30 = vld [vmem:[#allocation2 + $0x20] sm:$0xff] }
 0x191   :  { %3242 = vmatprep.mubr.f32.mxu0 %v399_v31  ;;  %v8104_v31 = vpack.c.bf16 %v566_v24, %v560_v23  ;;  %v608_v23 = vld [vmem:[#allocation5 + $0x190] sm:$0xff]  ;;  %v614_v24 = vld [vmem:[#allocation5 + $0x1c0] sm:$0xff] }
 0x193   :  { %2292 = vmatmul.mubr.f32.gmra.mrb[56].mxu1 %v392_v32  ;;  %v575_v32 = vld [vmem:[#allocation5 + $0x88] sm:$0xff] }
 0x194   :  { %3243 = vmatmul.mubr.f32.gmra.mrb[56].mxu0 %v398_v33  ;;  %2297 = vmatprep.mubr.f32.mxu1 %v405_v34  ;;  %v581_v33 = vld [vmem:[#allocation5 + $0xb8] sm:$0xff]  ;;  %v64_v34 = vld [vmem:[#allocation2 + $0x50] sm:$0xff] }
 0x195   :  { %3248 = vmatprep.mubr.f32.mxu0 %v411_v35  ;;  %v8488_v35 = vpack.c.bf16 %v568_v27, %v562_v26  ;;  %v616_v27 = vld [vmem:[#allocation5 + $0x1d0] sm:$0xff] }
 0x197   :  { %2298 = vmatmul.mubr.f32.gmra.mrb[58].mxu1 %v404_v36  ;;  %v71_v36 = vld [vmem:[#allocation2 + $0x88] sm:$0xff] }
 0x198   :  { %3249 = vmatmul.mubr.f32.gmra.mrb[58].mxu0 %v410_v37  ;;  %2303 = vmatprep.mubr.f32.mxu1 %v417_v38  ;;  %v77_v37 = vld [vmem:[#allocation2 + $0xb8] sm:$0xff]  ;;  %v8106_v38 = vpack.c.bf16 %v579_v29, %v573_v28  ;;  %v627_v29 = vld [vmem:[#allocation5 + $0x228] sm:$0xff] }
 0x199   :  { %3254 = vmatprep.mubr.f32.mxu0 %v423_v39  ;;  %v572_v39 = vld [vmem:[#allocation5 + $0x70] sm:$0xff]  ;;  %v621_v28 = vld [vmem:[#allocation5 + $0x1f8] sm:$0xff] }
 0x19b   :  { %2304 = vmatmul.mubr.f32.gmra.mrb[60].mxu1 %v416_v40  ;;  %v578_v40 = vld [vmem:[#allocation5 + $0xa0] sm:$0xff] }
 0x19c   :  { %3255 = vmatmul.mubr.f32.gmra.mrb[60].mxu0 %v422_v41  ;;  %2309 = vmatprep.mubr.f32.mxu1 %v429_v42  ;;  %v574_v41 = vld [vmem:[#allocation5 + $0x80] sm:$0xff]  ;;  %v8490_v42 = vpack.c.bf16 %v581_v33, %v575_v32  ;;  %v629_v32 = vld [vmem:[#allocation5 + $0x238] sm:$0xff]  ;;  %v112_v33 = vld [vmem:[#allocation2 + $0x1d0] sm:$0xff] }
 0x19d   :  { %3260 = vmatprep.mubr.f32.mxu0 %v435_v43  ;;  %v580_v43 = vld [vmem:[#allocation5 + $0xb0] sm:$0xff] }
 0x19f   :  { %2310 = vmatmul.mubr.f32.gmra.mrb[62].mxu1 %v428_v44  ;;  %v585_v44 = vld [vmem:[#allocation5 + $0xd8] sm:$0xff] }
 0x1a0   :  { %3261 = vmatmul.mubr.f32.gmra.mrb[62].mxu0 %v434_v45  ;;  %2315 = vmatprep.mubr.f32.mxu1 %v441_v46  ;;  %v591_v45 = vld [vmem:[#allocation5 + $0x108] sm:$0xff]  ;;  %v70_v46 = vld [vmem:[#allocation2 + $0x80] sm:$0xff] }
 0x1a1   :  { %3266 = vmatprep.mubr.f32.mxu0 %v447_v47  ;;  %v587_v47 = vld [vmem:[#allocation5 + $0xe8] sm:$0xff] }
 0x1a3   :  { %2316 = vmatmul.mubr.f32.gmra.mrb[64].mxu1 %v440_v48  ;;  %v593_v48 = vld [vmem:[#allocation5 + $0x118] sm:$0xff] }
 0x1a4   :  { %3267 = vmatmul.mubr.f32.gmra.mrb[64].mxu0 %v446_v49  ;;  %2321 = vmatprep.mubr.f32.mxu1 %v453_v50  ;;  %v76_v49 = vld [vmem:[#allocation2 + $0xb0] sm:$0xff]  ;;  %v83_v50 = vld [vmem:[#allocation2 + $0xe8] sm:$0xff] }
 0x1a5   :  { %3272 = vmatprep.mubr.f32.mxu0 %v459_v51  ;;  %v89_v51 = vld [vmem:[#allocation2 + $0x118] sm:$0xff] }
 0x1a7   :  { %2322 = vmatmul.mubr.f32.gmra.mrb[66].mxu1 %v452_v52  ;;  %v8108_v52 = vpack.c.bf16 %v578_v40, %v572_v39  ;;  %v620_v39 = vld [vmem:[#allocation5 + $0x1f0] sm:$0xff]  ;;  %v626_v40 = vld [vmem:[#allocation5 + $0x220] sm:$0xff] }
 0x1a8   :  { %3273 = vmatmul.mubr.f32.gmra.mrb[66].mxu0 %v458_v53  ;;  %2327 = vmatprep.mubr.f32.mxu1 %v465_v54  ;;  %v8492_v53 = vpack.c.bf16 %v580_v43, %v574_v41  ;;  %v8110_v54 = vpack.c.bf16 %v591_v45, %v585_v44  ;;  %v622_v41 = vld [vmem:[#allocation5 + $0x200] sm:$0xff]  ;;  %v628_v43 = vld [vmem:[#allocation5 + $0x230] sm:$0xff]  ;;  %v633_v44 = vld [vmem:[#allocation5 + $0x258] sm:$0xff] }
 0x1a9   :  { %3278 = vmatprep.mubr.f32.mxu0 %v471_v55  ;;  %v584_v55 = vld [vmem:[#allocation5 + $0xd0] sm:$0xff]  ;;  %v639_v45 = vld [vmem:[#allocation5 + $0x288] sm:$0xff] }
 0x1ab   :  { %2328 = vmatmul.mubr.f32.gmra.mrb[68].mxu1 %v464_v56  ;;  %v590_v56 = vld [vmem:[#allocation5 + $0x100] sm:$0xff] }
 0x1ac   :  { %3279 = vmatmul.mubr.f32.gmra.mrb[68].mxu0 %v470_v57  ;;  %2333 = vmatprep.mubr.f32.mxu1 %v477_v58  ;;  %v586_v57 = vld [vmem:[#allocation5 + $0xe0] sm:$0xff]  ;;  %v8494_v58 = vpack.c.bf16 %v593_v48, %v587_v47  ;;  %v635_v47 = vld [vmem:[#allocation5 + $0x268] sm:$0xff]  ;;  %v641_v48 = vld [vmem:[#allocation5 + $0x298] sm:$0xff] }
 0x1ad   :  { %3284 = vmatprep.mubr.f32.mxu0 %v483_v59  ;;  %v592_v59 = vld [vmem:[#allocation5 + $0x110] sm:$0xff] }
 0x1af   :  { %2334 = vmatmul.mubr.f32.gmra.mrb[70].mxu1 %v476_v60  ;;  %v597_v60 = vld [vmem:[#allocation5 + $0x138] sm:$0xff] }
 0x1b0   :  { %3285 = vmatmul.mubr.f32.gmra.mrb[70].mxu0 %v482_v61  ;;  %2339 = vmatprep.mubr.f32.mxu1 %v489_v62  ;;  %v603_v61 = vld [vmem:[#allocation5 + $0x168] sm:$0xff]  ;;  %v82_v62 = vld [vmem:[#allocation2 + $0xe0] sm:$0xff] }
 0x1b1   :  { %3290 = vmatprep.mubr.f32.mxu0 %v495_v63  ;;  %v599_v63 = vld [vmem:[#allocation5 + $0x148] sm:$0xff] }
 0x1b3   :  { %2340 = vmatmul.mubr.f32.gmra.mrb[72].mxu1 %v488_v0  ;;  %v605_v0 = vld [vmem:[#allocation5 + $0x178] sm:$0xff] }
 0x1b4   :  { %3291 = vmatmul.mubr.f32.gmra.mrb[72].mxu0 %v494_v1  ;;  %2345 = vmatprep.mubr.f32.mxu1 %v501_v2  ;;  %v88_v1 = vld [vmem:[#allocation2 + $0x110] sm:$0xff]  ;;  %v95_v2 = vld [vmem:[#allocation2 + $0x148] sm:$0xff] }
 0x1b5   :  { %3296 = vmatprep.mubr.f32.mxu0 %v507_v3  ;;  %v101_v3 = vld [vmem:[#allocation2 + $0x178] sm:$0xff] }
 0x1b7   :  { %2346 = vmatmul.mubr.f32.gmra.mrb[74].mxu1 %v500_v4  ;;  %v8112_v4 = vpack.c.bf16 %v590_v56, %v584_v55  ;;  %v632_v55 = vld [vmem:[#allocation5 + $0x250] sm:$0xff]  ;;  %v638_v56 = vld [vmem:[#allocation5 + $0x280] sm:$0xff] }
 0x1b8   :  { %3297 = vmatmul.mubr.f32.gmra.mrb[74].mxu0 %v506_v5  ;;  %2351 = vmatprep.mubr.f32.mxu1 %v513_v6  ;;  %v8496_v5 = vpack.c.bf16 %v592_v59, %v586_v57  ;;  %v8114_v6 = vpack.c.bf16 %v603_v61, %v597_v60  ;;  %v634_v57 = vld [vmem:[#allocation5 + $0x260] sm:$0xff]  ;;  %v640_v59 = vld [vmem:[#allocation5 + $0x290] sm:$0xff]  ;;  %v645_v60 = vld [vmem:[#allocation5 + $0x2b8] sm:$0xff] }
 0x1b9   :  { %3302 = vmatprep.mubr.f32.mxu0 %v519_v7  ;;  %v596_v7 = vld [vmem:[#allocation5 + $0x130] sm:$0xff]  ;;  %v651_v61 = vld [vmem:[#allocation5 + $0x2e8] sm:$0xff] }
 0x1bb   :  { %2352 = vmatmul.mubr.f32.gmra.mrb[76].mxu1 %v512_v8  ;;  %v602_v8 = vld [vmem:[#allocation5 + $0x160] sm:$0xff] }
 0x1bc   :  { %3303 = vmatmul.mubr.f32.gmra.mrb[76].mxu0 %v518_v9  ;;  %2357 = vmatprep.mubr.f32.mxu1 %v525_v10  ;;  %v598_v9 = vld [vmem:[#allocation5 + $0x140] sm:$0xff]  ;;  %v8498_v10 = vpack.c.bf16 %v605_v0, %v599_v63  ;;  %v647_v63 = vld [vmem:[#allocation5 + $0x2c8] sm:$0xff]  ;;  %v653_v0 = vld [vmem:[#allocation5 + $0x2f8] sm:$0xff] }
 0x1bd   :  { %3308 = vmatprep.mubr.f32.mxu0 %v531_v11  ;;  %v604_v11 = vld [vmem:[#allocation5 + $0x170] sm:$0xff] }
 0x1bf   :  { %2358 = vmatmul.mubr.f32.gmra.mrb[78].mxu1 %v524_v12  ;;  %v609_v12 = vld [vmem:[#allocation5 + $0x198] sm:$0xff] }
 0x1c0   :  { %3309 = vmatmul.mubr.f32.gmra.mrb[78].mxu0 %v530_v13  ;;  %2363 = vmatprep.mubr.f32.mxu1 %v537_v14  ;;  %v615_v13 = vld [vmem:[#allocation5 + $0x1c8] sm:$0xff]  ;;  %v94_v14 = vld [vmem:[#allocation2 + $0x140] sm:$0xff] }
 0x1c1   :  { %3314 = vmatprep.mubr.f32.mxu0 %v543_v15  ;;  %v611_v15 = vld [vmem:[#allocation5 + $0x1a8] sm:$0xff] }
 0x1c3   :  { %2364 = vmatmul.mubr.f32.gmra.mrb[80].mxu1 %v536_v16  ;;  %v617_v16 = vld [vmem:[#allocation5 + $0x1d8] sm:$0xff] }
 0x1c4   :  { %3315 = vmatmul.mubr.f32.gmra.mrb[80].mxu0 %v542_v17  ;;  %2369 = vmatprep.mubr.f32.mxu1 %v549_v18  ;;  %v100_v17 = vld [vmem:[#allocation2 + $0x170] sm:$0xff]  ;;  %v107_v18 = vld [vmem:[#allocation2 + $0x1a8] sm:$0xff]  ;;  %v8502_v26 = vpack.c.bf16 %v617_v16, %v611_v15  ;;  %v665_v16 = vld [vmem:[#allocation5 + $0x358] sm:$0xff] }
 0x1c5   :  { %3320 = vmatprep.mubr.f32.mxu0 %v555_v19  ;;  %v113_v19 = vld [vmem:[#allocation2 + $0x1d8] sm:$0xff]  ;;  %v659_v15 = vld [vmem:[#allocation5 + $0x328] sm:$0xff] }
 0x1c7   :  { %2370 = vmatmul.mubr.f32.gmra.mrb[82].mxu1 %v548_v20  ;;  %v8116_v20 = vpack.c.bf16 %v602_v8, %v596_v7  ;;  %v644_v7 = vld [vmem:[#allocation5 + $0x2b0] sm:$0xff]  ;;  %v650_v8 = vld [vmem:[#allocation5 + $0x2e0] sm:$0xff] }
 0x1c8   :  { %3321 = vmatmul.mubr.f32.gmra.mrb[82].mxu0 %v554_v21  ;;  %2440 = vmatprep.mubr.f32.mxu1 %v59_v22  ;;  %v8500_v21 = vpack.c.bf16 %v604_v11, %v598_v9  ;;  %v8118_v22 = vpack.c.bf16 %v615_v13, %v609_v12  ;;  %v646_v9 = vld [vmem:[#allocation5 + $0x2c0] sm:$0xff]  ;;  %v652_v11 = vld [vmem:[#allocation5 + $0x2f0] sm:$0xff]  ;;  %v657_v12 = vld [vmem:[#allocation5 + $0x318] sm:$0xff] }
 0x1c9   :  { %3391 = vmatprep.mubr.f32.mxu0 %v65_v25  ;;  %v610_v25 = vld [vmem:[#allocation5 + $0x1a0] sm:$0xff]  ;;  %v663_v13 = vld [vmem:[#allocation5 + $0x348] sm:$0xff] }
 0x1cb   :  { %2441 = vmatmul.mubr.f32.vlgmr.msra.gmra.mrb[0].mxu1 %v58_v30  ;;  %v106_v30 = vld [vmem:[#allocation2 + $0x1a0] sm:$0xff] }
 0x1cc   :  { %3392 = vmatmul.mubr.f32.vlgmr.msra.gmra.mrb[0].mxu0 %v64_v34  ;;  %8105 = vmatpush1.bf16.msra.mxu1 %v8104_v31  ;;  %v623_v31 = vld [vmem:[#allocation5 + $0x208] sm:$0xff] }
 0x1cd   :  { %8489 = vmatpush1.bf16.msra.mxu0 %v8488_v35  ;;  %2446 = vmatprep.mubr.f32.mxu1 %v71_v36  ;;  %v119_v34 = vld [vmem:[#allocation2 + $0x208] sm:$0xff]  ;;  %v125_v35 = vld [vmem:[#allocation2 + $0x238] sm:$0xff]  ;;  %v8120_v36 = vpack.c.bf16 %v614_v24, %v608_v23  ;;  %v656_v23 = vld [vmem:[#allocation5 + $0x310] sm:$0xff] }
 0x1ce   :  { %3397 = vmatprep.mubr.f32.mxu0 %v77_v37  ;;  %8107 = vmatprep.subr.bf16.mxu1 %v8106_v38  ;;  %v8504_v37 = vpack.c.bf16 %v616_v27, %v610_v25  ;;  %v8122_v38 = vpack.c.bf16 %v627_v29, %v621_v28  ;;  %v662_v24 = vld [vmem:[#allocation5 + $0x340] sm:$0xff]  ;;  %v664_v27 = vld [vmem:[#allocation5 + $0x350] sm:$0xff]  ;;  %v669_v28 = vld [vmem:[#allocation5 + $0x378] sm:$0xff] }
 0x1cf   :  { %2447 = vmatmul.mubr.f32.gmra.mrb[2].mxu1 %v70_v46  ;;  %8491 = vmatprep.subr.bf16.mxu0 %v8490_v42  ;;  %v8506_v42 = vpack.c.bf16 %v629_v32, %v623_v31  ;;  %v118_v46 = vld [vmem:[#allocation2 + $0x200] sm:$0xff]  ;;  %v675_v29 = vld [vmem:[#allocation5 + $0x3a8] sm:$0xff]  ;;  %v677_v32 = vld [vmem:[#allocation5 + $0x3b8] sm:$0xff] }
 0x1d0   :  { %3398 = vmatmul.mubr.f32.gmra.mrb[2].mxu0 %v76_v49  ;;  %2452 = vmatprep.mubr.f32.mxu1 %v83_v50  ;;  %v124_v49 = vld [vmem:[#allocation2 + $0x230] sm:$0xff]  ;;  %v131_v50 = vld [vmem:[#allocation2 + $0x268] sm:$0xff]  ;;  %v658_v25 = vld [vmem:[#allocation5 + $0x320] sm:$0xff] }
 0x1d1   :  { %3403 = vmatprep.mubr.f32.mxu0 %v89_v51  ;;  %8109 = vmatpush1.bf16.msra.mxu1 %v8108_v52  ;;  %v137_v51 = vld [vmem:[#allocation2 + $0x298] sm:$0xff]  ;;  %v8124_v52 = vpack.c.bf16 %v626_v40, %v620_v39  ;;  %v671_v31 = vld [vmem:[#allocation5 + $0x388] sm:$0xff]  ;;  %v668_v39 = vld [vmem:[#allocation5 + $0x370] sm:$0xff] }
 0x1d2   :  { %8493 = vmatpush1.bf16.msra.mxu0 %v8492_v53  ;;  %8111 = vmatprep.subr.bf16.mxu1 %v8110_v54  ;;  %v8508_v53 = vpack.c.bf16 %v628_v43, %v622_v41  ;;  %v8126_v54 = vpack.c.bf16 %v639_v45, %v633_v44  ;;  %v674_v40 = vld [vmem:[#allocation5 + $0x3a0] sm:$0xff]  ;;  %v676_v43 = vld [vmem:[#allocation5 + $0x3b0] sm:$0xff]  ;;  %v681_v44 = vld [vmem:[#allocation5 + $0x3d8] sm:$0xff] }
 0x1d3   :  { %2453 = vmatmul.mubr.f32.gmra.mrb[4].mxu1 %v82_v62  ;;  %8495 = vmatprep.subr.bf16.mxu0 %v8494_v58  ;;  %v8510_v58 = vpack.c.bf16 %v641_v48, %v635_v47  ;;  %v130_v62 = vld [vmem:[#allocation2 + $0x260] sm:$0xff]  ;;  %v687_v45 = vld [vmem:[#allocation5 + $0x408] sm:$0xff]  ;;  %v689_v48 = vld [vmem:[#allocation5 + $0x418] sm:$0xff] }
 0x1d4   :  { %3404 = vmatmul.mubr.f32.gmra.mrb[4].mxu0 %v88_v1  ;;  %2458 = vmatprep.mubr.f32.mxu1 %v95_v2  ;;  %v136_v1 = vld [vmem:[#allocation2 + $0x290] sm:$0xff]  ;;  %v143_v2 = vld [vmem:[#allocation2 + $0x2c8] sm:$0xff]  ;;  %v670_v41 = vld [vmem:[#allocation5 + $0x380] sm:$0xff] }
 0x1d5   :  { %3409 = vmatprep.mubr.f32.mxu0 %v101_v3  ;;  %8113 = vmatpush1.bf16.msra.mxu1 %v8112_v4  ;;  %v149_v3 = vld [vmem:[#allocation2 + $0x2f8] sm:$0xff]  ;;  %v8128_v4 = vpack.c.bf16 %v638_v56, %v632_v55  ;;  %v683_v47 = vld [vmem:[#allocation5 + $0x3e8] sm:$0xff]  ;;  %v680_v55 = vld [vmem:[#allocation5 + $0x3d0] sm:$0xff] }
 0x1d6   :  { %8497 = vmatpush1.bf16.msra.mxu0 %v8496_v5  ;;  %8115 = vmatprep.subr.bf16.mxu1 %v8114_v6  ;;  %v8512_v5 = vpack.c.bf16 %v640_v59, %v634_v57  ;;  %v8130_v6 = vpack.c.bf16 %v651_v61, %v645_v60  ;;  %v686_v56 = vld [vmem:[#allocation5 + $0x400] sm:$0xff]  ;;  %v688_v59 = vld [vmem:[#allocation5 + $0x410] sm:$0xff]  ;;  %v693_v60 = vld [vmem:[#allocation5 + $0x438] sm:$0xff] }
 0x1d7   :  { %2459 = vmatmul.mubr.f32.gmra.mrb[6].mxu1 %v94_v14  ;;  %8499 = vmatprep.subr.bf16.mxu0 %v8498_v10  ;;  %v8514_v10 = vpack.c.bf16 %v653_v0, %v647_v63  ;;  %v142_v14 = vld [vmem:[#allocation2 + $0x2c0] sm:$0xff]  ;;  %v699_v61 = vld [vmem:[#allocation5 + $0x468] sm:$0xff]  ;;  %v701_v0 = vld [vmem:[#allocation5 + $0x478] sm:$0xff] }
 0x1d8   :  { %3410 = vmatmul.mubr.f32.gmra.mrb[6].mxu0 %v100_v17  ;;  %2464 = vmatprep.mubr.f32.mxu1 %v107_v18  ;;  %v148_v17 = vld [vmem:[#allocation2 + $0x2f0] sm:$0xff]  ;;  %v155_v18 = vld [vmem:[#allocation2 + $0x328] sm:$0xff]  ;;  %v682_v57 = vld [vmem:[#allocation5 + $0x3e0] sm:$0xff] }
 0x1d9   :  { %3415 = vmatprep.mubr.f32.mxu0 %v113_v19  ;;  %8117 = vmatpush1.bf16.msra.mxu1 %v8116_v20  ;;  %v161_v19 = vld [vmem:[#allocation2 + $0x358] sm:$0xff]  ;;  %v8132_v20 = vpack.c.bf16 %v650_v8, %v644_v7  ;;  %v695_v63 = vld [vmem:[#allocation5 + $0x448] sm:$0xff]  ;;  %v692_v7 = vld [vmem:[#allocation5 + $0x430] sm:$0xff] }
 0x1da   :  { %8501 = vmatpush1.bf16.msra.mxu0 %v8500_v21  ;;  %8119 = vmatprep.subr.bf16.mxu1 %v8118_v22  ;;  %v8516_v21 = vpack.c.bf16 %v652_v11, %v646_v9  ;;  %v8134_v22 = vpack.c.bf16 %v663_v13, %v657_v12  ;;  %v698_v8 = vld [vmem:[#allocation5 + $0x460] sm:$0xff]  ;;  %v700_v11 = vld [vmem:[#allocation5 + $0x470] sm:$0xff]  ;;  %v705_v12 = vld [vmem:[#allocation5 + $0x498] sm:$0xff] }
 0x1db   :  { %2465 = vmatmul.mubr.f32.gmra.mrb[8].mxu1 %v106_v30  ;;  %8503 = vmatprep.subr.bf16.mxu0 %v8502_v26  ;;  %v8518_v26 = vpack.c.bf16 %v665_v16, %v659_v15  ;;  %v154_v30 = vld [vmem:[#allocation2 + $0x320] sm:$0xff]  ;;  %v711_v13 = vld [vmem:[#allocation5 + $0x4c8] sm:$0xff]  ;;  %v713_v16 = vld [vmem:[#allocation5 + $0x4d8] sm:$0xff] }
 0x1dc   :  { %3416 = vmatmul.mubr.f32.gmra.mrb[8].mxu0 %v112_v33  ;;  %2470 = vmatprep.mubr.f32.mxu1 %v119_v34  ;;  %v160_v33 = vld [vmem:[#allocation2 + $0x350] sm:$0xff]  ;;  %v167_v34 = vld [vmem:[#allocation2 + $0x388] sm:$0xff]  ;;  %v694_v9 = vld [vmem:[#allocation5 + $0x440] sm:$0xff] }
 0x1dd   :  { %3421 = vmatprep.mubr.f32.mxu0 %v125_v35  ;;  %8121 = vmatpush1.bf16.msra.mxu1 %v8120_v36  ;;  %v173_v35 = vld [vmem:[#allocation2 + $0x3b8] sm:$0xff]  ;;  %v8136_v36 = vpack.c.bf16 %v662_v24, %v656_v23  ;;  %v707_v15 = vld [vmem:[#allocation5 + $0x4a8] sm:$0xff]  ;;  %v704_v23 = vld [vmem:[#allocation5 + $0x490] sm:$0xff] }
 0x1de   :  { %8505 = vmatpush1.bf16.msra.mxu0 %v8504_v37  ;;  %8123 = vmatprep.subr.bf16.mxu1 %v8122_v38  ;;  %v8520_v37 = vpack.c.bf16 %v664_v27, %v658_v25  ;;  %v8138_v38 = vpack.c.bf16 %v675_v29, %v669_v28  ;;  %v710_v24 = vld [vmem:[#allocation5 + $0x4c0] sm:$0xff]  ;;  %v712_v27 = vld [vmem:[#allocation5 + $0x4d0] sm:$0xff]  ;;  %v717_v28 = vld [vmem:[#allocation5 + $0x4f8] sm:$0xff] }
 0x1df   :  { %2471 = vmatmul.mubr.f32.gmra.mrb[10].mxu1 %v118_v46  ;;  %8507 = vmatprep.subr.bf16.mxu0 %v8506_v42  ;;  %v8522_v42 = vpack.c.bf16 %v677_v32, %v671_v31  ;;  %v166_v46 = vld [vmem:[#allocation2 + $0x380] sm:$0xff]  ;;  %v723_v29 = vld [vmem:[#allocation5 + $0x528] sm:$0xff]  ;;  %v725_v32 = vld [vmem:[#allocation5 + $0x538] sm:$0xff] }
 0x1e0   :  { %3422 = vmatmul.mubr.f32.gmra.mrb[10].mxu0 %v124_v49  ;;  %2476 = vmatprep.mubr.f32.mxu1 %v131_v50  ;;  %v172_v49 = vld [vmem:[#allocation2 + $0x3b0] sm:$0xff]  ;;  %v179_v50 = vld [vmem:[#allocation2 + $0x3e8] sm:$0xff]  ;;  %v706_v25 = vld [vmem:[#allocation5 + $0x4a0] sm:$0xff] }
 0x1e1   :  { %3427 = vmatprep.mubr.f32.mxu0 %v137_v51  ;;  %8125 = vmatpush1.bf16.msra.mxu1 %v8124_v52  ;;  %v185_v51 = vld [vmem:[#allocation2 + $0x418] sm:$0xff]  ;;  %v8140_v52 = vpack.c.bf16 %v674_v40, %v668_v39  ;;  %v719_v31 = vld [vmem:[#allocation5 + $0x508] sm:$0xff]  ;;  %v716_v39 = vld [vmem:[#allocation5 + $0x4f0] sm:$0xff] }
 0x1e2   :  { %8509 = vmatpush1.bf16.msra.mxu0 %v8508_v53  ;;  %8127 = vmatprep.subr.bf16.mxu1 %v8126_v54  ;;  %v8524_v53 = vpack.c.bf16 %v676_v43, %v670_v41  ;;  %v8142_v54 = vpack.c.bf16 %v687_v45, %v681_v44  ;;  %v722_v40 = vld [vmem:[#allocation5 + $0x520] sm:$0xff]  ;;  %v724_v43 = vld [vmem:[#allocation5 + $0x530] sm:$0xff]  ;;  %v729_v44 = vld [vmem:[#allocation5 + $0x558] sm:$0xff] }
 0x1e3   :  { %2477 = vmatmul.mubr.f32.gmra.mrb[12].mxu1 %v130_v62  ;;  %8511 = vmatprep.subr.bf16.mxu0 %v8510_v58  ;;  %v8526_v58 = vpack.c.bf16 %v689_v48, %v683_v47  ;;  %v178_v62 = vld [vmem:[#allocation2 + $0x3e0] sm:$0xff]  ;;  %v735_v45 = vld [vmem:[#allocation5 + $0x588] sm:$0xff]  ;;  %v737_v48 = vld [vmem:[#allocation5 + $0x598] sm:$0xff] }
 0x1e4   :  { %3428 = vmatmul.mubr.f32.gmra.mrb[12].mxu0 %v136_v1  ;;  %2482 = vmatprep.mubr.f32.mxu1 %v143_v2  ;;  %v184_v1 = vld [vmem:[#allocation2 + $0x410] sm:$0xff]  ;;  %v191_v2 = vld [vmem:[#allocation2 + $0x448] sm:$0xff]  ;;  %v718_v41 = vld [vmem:[#allocation5 + $0x500] sm:$0xff] }
 0x1e5   :  { %3433 = vmatprep.mubr.f32.mxu0 %v149_v3  ;;  %8129 = vmatpush1.bf16.msra.mxu1 %v8128_v4  ;;  %v197_v3 = vld [vmem:[#allocation2 + $0x478] sm:$0xff]  ;;  %v8144_v4 = vpack.c.bf16 %v686_v56, %v680_v55  ;;  %v731_v47 = vld [vmem:[#allocation5 + $0x568] sm:$0xff]  ;;  %v728_v55 = vld [vmem:[#allocation5 + $0x550] sm:$0xff] }
 0x1e6   :  { %8513 = vmatpush1.bf16.msra.mxu0 %v8512_v5  ;;  %8131 = vmatprep.subr.bf16.mxu1 %v8130_v6  ;;  %v8528_v5 = vpack.c.bf16 %v688_v59, %v682_v57  ;;  %v8146_v6 = vpack.c.bf16 %v699_v61, %v693_v60  ;;  %v734_v56 = vld [vmem:[#allocation5 + $0x580] sm:$0xff]  ;;  %v736_v59 = vld [vmem:[#allocation5 + $0x590] sm:$0xff]  ;;  %v741_v60 = vld [vmem:[#allocation5 + $0x5b8] sm:$0xff] }
 0x1e7   :  { %2483 = vmatmul.mubr.f32.gmra.mrb[14].mxu1 %v142_v14  ;;  %8515 = vmatprep.subr.bf16.mxu0 %v8514_v10  ;;  %v8530_v10 = vpack.c.bf16 %v701_v0, %v695_v63  ;;  %v190_v14 = vld [vmem:[#allocation2 + $0x440] sm:$0xff]  ;;  %v747_v61 = vld [vmem:[#allocation5 + $0x5e8] sm:$0xff]  ;;  %v749_v0 = vld [vmem:[#allocation5 + $0x5f8] sm:$0xff] }
 0x1e8   :  { %3434 = vmatmul.mubr.f32.gmra.mrb[14].mxu0 %v148_v17  ;;  %2488 = vmatprep.mubr.f32.mxu1 %v155_v18  ;;  %v196_v17 = vld [vmem:[#allocation2 + $0x470] sm:$0xff]  ;;  %v203_v18 = vld [vmem:[#allocation2 + $0x4a8] sm:$0xff]  ;;  %v730_v57 = vld [vmem:[#allocation5 + $0x560] sm:$0xff] }
 0x1e9   :  { %3439 = vmatprep.mubr.f32.mxu0 %v161_v19  ;;  %8133 = vmatpush1.bf16.msra.mxu1 %v8132_v20  ;;  %v209_v19 = vld [vmem:[#allocation2 + $0x4d8] sm:$0xff]  ;;  %v8148_v20 = vpack.c.bf16 %v698_v8, %v692_v7  ;;  %v743_v63 = vld [vmem:[#allocation5 + $0x5c8] sm:$0xff]  ;;  %v740_v7 = vld [vmem:[#allocation5 + $0x5b0] sm:$0xff] }
 0x1ea   :  { %8517 = vmatpush1.bf16.msra.mxu0 %v8516_v21  ;;  %8135 = vmatprep.subr.bf16.mxu1 %v8134_v22  ;;  %v8532_v21 = vpack.c.bf16 %v700_v11, %v694_v9  ;;  %v8150_v22 = vpack.c.bf16 %v711_v13, %v705_v12  ;;  %v746_v8 = vld [vmem:[#allocation5 + $0x5e0] sm:$0xff]  ;;  %v748_v11 = vld [vmem:[#allocation5 + $0x5f0] sm:$0xff]  ;;  %v753_v12 = vld [vmem:[#allocation5 + $0x618] sm:$0xff] }
 0x1eb   :  { %2489 = vmatmul.mubr.f32.gmra.mrb[16].mxu1 %v154_v30  ;;  %8519 = vmatprep.subr.bf16.mxu0 %v8518_v26  ;;  %v8534_v26 = vpack.c.bf16 %v713_v16, %v707_v15  ;;  %v202_v30 = vld [vmem:[#allocation2 + $0x4a0] sm:$0xff]  ;;  %v759_v13 = vld [vmem:[#allocation5 + $0x648] sm:$0xff]  ;;  %v761_v16 = vld [vmem:[#allocation5 + $0x658] sm:$0xff] }
 0x1ec   :  { %3440 = vmatmul.mubr.f32.gmra.mrb[16].mxu0 %v160_v33  ;;  %2494 = vmatprep.mubr.f32.mxu1 %v167_v34  ;;  %v208_v33 = vld [vmem:[#allocation2 + $0x4d0] sm:$0xff]  ;;  %v215_v34 = vld [vmem:[#allocation2 + $0x508] sm:$0xff]  ;;  %v742_v9 = vld [vmem:[#allocation5 + $0x5c0] sm:$0xff] }
 0x1ed   :  { %3445 = vmatprep.mubr.f32.mxu0 %v173_v35  ;;  %8137 = vmatpush1.bf16.msra.mxu1 %v8136_v36  ;;  %v221_v35 = vld [vmem:[#allocation2 + $0x538] sm:$0xff]  ;;  %v8152_v36 = vpack.c.bf16 %v710_v24, %v704_v23  ;;  %v755_v15 = vld [vmem:[#allocation5 + $0x628] sm:$0xff]  ;;  %v250_v24 = vld [vmem:[#allocation2 + $0x620] sm:$0xff] }
 0x1ee   :  { %8521 = vmatpush1.bf16.msra.mxu0 %v8520_v37  ;;  %8139 = vmatprep.subr.bf16.mxu1 %v8138_v38  ;;  %v8536_v37 = vpack.c.bf16 %v712_v27, %v706_v25  ;;  %v8154_v38 = vpack.c.bf16 %v723_v29, %v717_v28  ;;  %v8550_v23 = vpack.c.bf16 %v761_v16, %v755_v15  ;;  %v256_v25 = vld [vmem:[#allocation2 + $0x650] sm:$0xff]  ;;  %v269_v27 = vld [vmem:[#allocation2 + $0x6b8] sm:$0xff]  ;;  %v262_v28 = vld [vmem:[#allocation2 + $0x680] sm:$0xff] }
 0x1ef   :  { %2495 = vmatmul.mubr.f32.gmra.mrb[18].mxu1 %v166_v46  ;;  %8523 = vmatprep.subr.bf16.mxu0 %v8522_v42  ;;  %v8538_v42 = vpack.c.bf16 %v725_v32, %v719_v31  ;;  %v214_v46 = vld [vmem:[#allocation2 + $0x500] sm:$0xff]  ;;  %v268_v29 = vld [vmem:[#allocation2 + $0x6b0] sm:$0xff]  ;;  %v281_v31 = vld [vmem:[#allocation2 + $0x718] sm:$0xff] }
 0x1f0   :  { %3446 = vmatmul.mubr.f32.gmra.mrb[18].mxu0 %v172_v49  ;;  %2500 = vmatprep.mubr.f32.mxu1 %v179_v50  ;;  %v220_v49 = vld [vmem:[#allocation2 + $0x530] sm:$0xff]  ;;  %v227_v50 = vld [vmem:[#allocation2 + $0x568] sm:$0xff]  ;;  %v274_v32 = vld [vmem:[#allocation2 + $0x6e0] sm:$0xff] }
 0x1f1   :  { %3451 = vmatprep.mubr.f32.mxu0 %v185_v51  ;;  %8141 = vmatpush1.bf16.msra.mxu1 %v8140_v52  ;;  %v233_v51 = vld [vmem:[#allocation2 + $0x598] sm:$0xff]  ;;  %v8156_v52 = vpack.c.bf16 %v722_v40, %v716_v39  ;;  %v298_v40 = vld [vmem:[#allocation2 + $0x7a0] sm:$0xff] }
 0x1f2   :  { %8525 = vmatpush1.bf16.msra.mxu0 %v8524_v53  ;;  %8143 = vmatprep.subr.bf16.mxu1 %v8142_v54  ;;  %v8540_v53 = vpack.c.bf16 %v724_v43, %v718_v41  ;;  %v8158_v54 = vpack.c.bf16 %v735_v45, %v729_v44  ;;  %v305_v39 = vld [vmem:[#allocation2 + $0x7d8] sm:$0xff]  ;;  %v304_v41 = vld [vmem:[#allocation2 + $0x7d0] sm:$0xff]  ;;  %v310_v44 = vld [vmem:[#allocation2 + $0x800] sm:$0xff] }
 0x1f3   :  { %2501 = vmatmul.mubr.f32.gmra.mrb[20].mxu1 %v178_v62  ;;  %8527 = vmatprep.subr.bf16.mxu0 %v8526_v58  ;;  %v8542_v58 = vpack.c.bf16 %v737_v48, %v731_v47  ;;  %v226_v62 = vld [vmem:[#allocation2 + $0x560] sm:$0xff]  ;;  %v317_v43 = vld [vmem:[#allocation2 + $0x838] sm:$0xff]  ;;  %v316_v45 = vld [vmem:[#allocation2 + $0x830] sm:$0xff] }
 0x1f4   :  { %3452 = vmatmul.mubr.f32.gmra.mrb[20].mxu0 %v184_v1  ;;  %2506 = vmatprep.mubr.f32.mxu1 %v191_v2  ;;  %v232_v1 = vld [vmem:[#allocation2 + $0x590] sm:$0xff]  ;;  %v239_v2 = vld [vmem:[#allocation2 + $0x5c8] sm:$0xff]  ;;  %v329_v47 = vld [vmem:[#allocation2 + $0x898] sm:$0xff] }
 0x1f5   :  { %3457 = vmatprep.mubr.f32.mxu0 %v197_v3  ;;  %8145 = vmatpush1.bf16.msra.mxu1 %v8144_v4  ;;  %v245_v3 = vld [vmem:[#allocation2 + $0x5f8] sm:$0xff]  ;;  %v8160_v4 = vpack.c.bf16 %v734_v56, %v728_v55  ;;  %v322_v48 = vld [vmem:[#allocation2 + $0x860] sm:$0xff] }
 0x1f6   :  { %8529 = vmatpush1.bf16.msra.mxu0 %v8528_v5  ;;  %8147 = vmatprep.subr.bf16.mxu1 %v8146_v6  ;;  %v8544_v5 = vpack.c.bf16 %v736_v59, %v730_v57  ;;  %v8162_v6 = vpack.c.bf16 %v747_v61, %v741_v60  ;;  %v353_v55 = vld [vmem:[#allocation2 + $0x958] sm:$0xff]  ;;  %v346_v56 = vld [vmem:[#allocation2 + $0x920] sm:$0xff]  ;;  %v352_v57 = vld [vmem:[#allocation2 + $0x950] sm:$0xff] }
 0x1f7   :  { %2507 = vmatmul.mubr.f32.gmra.mrb[22].mxu1 %v190_v14  ;;  %8531 = vmatprep.subr.bf16.mxu0 %v8530_v10  ;;  %v8546_v10 = vpack.c.bf16 %v749_v0, %v743_v63  ;;  %v238_v14 = vld [vmem:[#allocation2 + $0x5c0] sm:$0xff]  ;;  %v365_v59 = vld [vmem:[#allocation2 + $0x9b8] sm:$0xff]  ;;  %v364_v61 = vld [vmem:[#allocation2 + $0x9b0] sm:$0xff] }
 0x1f8   :  { %3458 = vmatmul.mubr.f32.gmra.mrb[22].mxu0 %v196_v17  ;;  %2512 = vmatprep.mubr.f32.mxu1 %v203_v18  ;;  %v244_v17 = vld [vmem:[#allocation2 + $0x5f0] sm:$0xff]  ;;  %v251_v18 = vld [vmem:[#allocation2 + $0x628] sm:$0xff]  ;;  %v358_v60 = vld [vmem:[#allocation2 + $0x980] sm:$0xff] }
 0x1f9   :  { %3463 = vmatprep.mubr.f32.mxu0 %v209_v19  ;;  %8149 = vmatpush1.bf16.msra.mxu1 %v8148_v20  ;;  %v8164_v19 = vpack.c.bf16 %v746_v8, %v740_v7  ;;  %v257_v20 = vld [vmem:[#allocation2 + $0x658] sm:$0xff]  ;;  %v370_v0 = vld [vmem:[#allocation2 + $0x9e0] sm:$0xff] }
 0x1fa   :  { %8533 = vmatpush1.bf16.msra.mxu0 %v8532_v21  ;;  %8151 = vmatprep.subr.bf16.mxu1 %v8150_v22  ;;  %v8548_v21 = vpack.c.bf16 %v748_v11, %v742_v9  ;;  %v8166_v22 = vpack.c.bf16 %v759_v13, %v753_v12  ;;  %v377_v63 = vld [vmem:[#allocation2 + $0xa18] sm:$0xff]  ;;  %v394_v8 = vld [vmem:[#allocation2 + $0xaa0] sm:$0xff]  ;;  %v400_v9 = vld [vmem:[#allocation2 + $0xad0] sm:$0xff] }
 0x1fb   :  { %2513 = vmatmul.mubr.f32.gmra.mrb[24].mxu1 %v202_v30  ;;  %8535 = vmatprep.subr.bf16.mxu0 %v8534_v26  ;;  %v263_v26 = vld [vmem:[#allocation2 + $0x688] sm:$0xff]  ;;  %v401_v7 = vld [vmem:[#allocation2 + $0xad8] sm:$0xff]  ;;  %v406_v12 = vld [vmem:[#allocation2 + $0xb00] sm:$0xff] }
 0x1fc   :  { %3464 = vmatmul.mubr.f32.gmra.mrb[24].mxu0 %v208_v33  ;;  %2518 = vmatprep.mubr.f32.mxu1 %v215_v34  ;;  %v275_v30 = vld [vmem:[#allocation2 + $0x6e8] sm:$0xff]  ;;  %v280_v33 = vld [vmem:[#allocation2 + $0x710] sm:$0xff]  ;;  %v413_v11 = vld [vmem:[#allocation2 + $0xb38] sm:$0xff] }
 0x1fd   :  { %3469 = vmatprep.mubr.f32.mxu0 %v221_v35  ;;  %8153 = vmatpush1.bf16.msra.mxu1 %v8152_v36  ;;  %v287_v34 = vld [vmem:[#allocation2 + $0x748] sm:$0xff]  ;;  %v293_v35 = vld [vmem:[#allocation2 + $0x778] sm:$0xff]  ;;  %v286_v36 = vld [vmem:[#allocation2 + $0x740] sm:$0xff] }
 0x1fe   :  { %8537 = vmatpush1.bf16.msra.mxu0 %v8536_v37  ;;  %8155 = vmatprep.subr.bf16.mxu1 %v8154_v38  ;;  %v292_v37 = vld [vmem:[#allocation2 + $0x770] sm:$0xff]  ;;  %v299_v38 = vld [vmem:[#allocation2 + $0x7a8] sm:$0xff]  ;;  %v425_v15 = vld [vmem:[#allocation2 + $0xb98] sm:$0xff] }
 0x1ff   :  { %2519 = vmatmul.mubr.f32.gmra.mrb[26].mxu1 %v214_v46  ;;  %8539 = vmatprep.subr.bf16.mxu0 %v8538_v42  ;;  %v311_v42 = vld [vmem:[#allocation2 + $0x808] sm:$0xff]  ;;  %v412_v13 = vld [vmem:[#allocation2 + $0xb30] sm:$0xff]  ;;  %v418_v16 = vld [vmem:[#allocation2 + $0xb60] sm:$0xff] }
 0x200   :  { %3470 = vmatmul.mubr.f32.gmra.mrb[26].mxu0 %v220_v49  ;;  %2524 = vmatprep.mubr.f32.mxu1 %v227_v50  ;;  %v323_v46 = vld [vmem:[#allocation2 + $0x868] sm:$0xff]  ;;  %v328_v49 = vld [vmem:[#allocation2 + $0x890] sm:$0xff] }
 0x201   :  { %3475 = vmatprep.mubr.f32.mxu0 %v233_v51  ;;  %8157 = vmatpush1.bf16.msra.mxu1 %v8156_v52  ;;  %v335_v50 = vld [vmem:[#allocation2 + $0x8c8] sm:$0xff]  ;;  %v341_v51 = vld [vmem:[#allocation2 + $0x8f8] sm:$0xff]  ;;  %v334_v52 = vld [vmem:[#allocation2 + $0x8c0] sm:$0xff] }
 0x202   :  { %8541 = vmatpush1.bf16.msra.mxu0 %v8540_v53  ;;  %8159 = vmatprep.subr.bf16.mxu1 %v8158_v54  ;;  %v340_v53 = vld [vmem:[#allocation2 + $0x8f0] sm:$0xff]  ;;  %v347_v54 = vld [vmem:[#allocation2 + $0x928] sm:$0xff] }
 0x203   :  { %2525 = vmatmul.mubr.f32.gmra.mrb[28].mxu1 %v226_v62  ;;  %8543 = vmatprep.subr.bf16.mxu0 %v8542_v58  ;;  %v359_v58 = vld [vmem:[#allocation2 + $0x988] sm:$0xff] }
 0x204   :  { %3476 = vmatmul.mubr.f32.gmra.mrb[28].mxu0 %v232_v1  ;;  %2530 = vmatprep.mubr.f32.mxu1 %v239_v2  ;;  %v371_v62 = vld [vmem:[#allocation2 + $0x9e8] sm:$0xff]  ;;  %v376_v1 = vld [vmem:[#allocation2 + $0xa10] sm:$0xff] }
 0x205   :  { %3481 = vmatprep.mubr.f32.mxu0 %v245_v3  ;;  %8161 = vmatpush1.bf16.msra.mxu1 %v8160_v4  ;;  %v383_v2 = vld [vmem:[#allocation2 + $0xa48] sm:$0xff]  ;;  %v389_v3 = vld [vmem:[#allocation2 + $0xa78] sm:$0xff]  ;;  %v382_v4 = vld [vmem:[#allocation2 + $0xa40] sm:$0xff] }
 0x206   :  { %8545 = vmatpush1.bf16.msra.mxu0 %v8544_v5  ;;  %8163 = vmatprep.subr.bf16.mxu1 %v8162_v6  ;;  %v388_v5 = vld [vmem:[#allocation2 + $0xa70] sm:$0xff]  ;;  %v395_v6 = vld [vmem:[#allocation2 + $0xaa8] sm:$0xff] }
 0x207   :  { %2531 = vmatmul.mubr.f32.gmra.mrb[30].mxu1 %v238_v14  ;;  %8547 = vmatprep.subr.bf16.mxu0 %v8546_v10  ;;  %v407_v10 = vld [vmem:[#allocation2 + $0xb08] sm:$0xff] }
 0x208   :  { %3482 = vmatmul.mubr.f32.gmra.mrb[30].mxu0 %v244_v17  ;;  %2536 = vmatprep.mubr.f32.mxu1 %v251_v18  ;;  %v419_v14 = vld [vmem:[#allocation2 + $0xb68] sm:$0xff]  ;;  %v424_v17 = vld [vmem:[#allocation2 + $0xb90] sm:$0xff] }
 0x209   :  { %3487 = vmatprep.mubr.f32.mxu0 %v257_v20  ;;  %8165 = vmatpush1.bf16.msra.mxu1 %v8164_v19  ;;  %v431_v18 = vld [vmem:[#allocation2 + $0xbc8] sm:$0xff]  ;;  %v437_v19 = vld [vmem:[#allocation2 + $0xbf8] sm:$0xff]  ;;  %v430_v20 = vld [vmem:[#allocation2 + $0xbc0] sm:$0xff] }
 0x20a   :  { %8549 = vmatpush1.bf16.msra.mxu0 %v8548_v21  ;;  %8167 = vmatprep.subr.bf16.mxu1 %v8166_v22  ;;  %v436_v21 = vld [vmem:[#allocation2 + $0xbf0] sm:$0xff]  ;;  %v443_v22 = vld [vmem:[#allocation2 + $0xc28] sm:$0xff] }
 0x20b   :  { %2537 = vmatmul.mubr.f32.gmra.mrb[32].mxu1 %v250_v24  ;;  %8551 = vmatprep.subr.bf16.mxu0 %v8550_v23  ;;  %v449_v23 = vld [vmem:[#allocation2 + $0xc58] sm:$0xff]  ;;  %v442_v24 = vld [vmem:[#allocation2 + $0xc20] sm:$0xff] }
 0x20c   :  { %3488 = vmatmul.mubr.f32.gmra.mrb[32].mxu0 %v256_v25  ;;  %2542 = vmatprep.mubr.f32.mxu1 %v263_v26  ;;  %v448_v25 = vld [vmem:[#allocation2 + $0xc50] sm:$0xff]  ;;  %v455_v26 = vld [vmem:[#allocation2 + $0xc88] sm:$0xff] }
 0x20d   :  { %3493 = vmatprep.mubr.f32.mxu0 %v269_v27  ;;  %v461_v27 = vld [vmem:[#allocation2 + $0xcb8] sm:$0xff] }
 0x20f   :  { %2543 = vmatmul.mubr.f32.gmra.mrb[34].mxu1 %v262_v28  ;;  %v454_v28 = vld [vmem:[#allocation2 + $0xc80] sm:$0xff] }
 0x210   :  { %3494 = vmatmul.mubr.f32.gmra.mrb[34].mxu0 %v268_v29  ;;  %2548 = vmatprep.mubr.f32.mxu1 %v275_v30  ;;  %v460_v29 = vld [vmem:[#allocation2 + $0xcb0] sm:$0xff]  ;;  %v467_v30 = vld [vmem:[#allocation2 + $0xce8] sm:$0xff] }
 0x211   :  { %3499 = vmatprep.mubr.f32.mxu0 %v281_v31  ;;  %v473_v31 = vld [vmem:[#allocation2 + $0xd18] sm:$0xff] }
 0x213   :  { %2549 = vmatmul.mubr.f32.gmra.mrb[36].mxu1 %v274_v32  ;;  %v466_v32 = vld [vmem:[#allocation2 + $0xce0] sm:$0xff] }
 0x214   :  { %3500 = vmatmul.mubr.f32.gmra.mrb[36].mxu0 %v280_v33  ;;  %2554 = vmatprep.mubr.f32.mxu1 %v287_v34  ;;  %v472_v33 = vld [vmem:[#allocation2 + $0xd10] sm:$0xff]  ;;  %v479_v34 = vld [vmem:[#allocation2 + $0xd48] sm:$0xff] }
 0x215   :  { %3505 = vmatprep.mubr.f32.mxu0 %v293_v35  ;;  %v485_v35 = vld [vmem:[#allocation2 + $0xd78] sm:$0xff] }
 0x217   :  { %2555 = vmatmul.mubr.f32.gmra.mrb[38].mxu1 %v286_v36  ;;  %v478_v36 = vld [vmem:[#allocation2 + $0xd40] sm:$0xff] }
 0x218   :  { %3506 = vmatmul.mubr.f32.gmra.mrb[38].mxu0 %v292_v37  ;;  %2560 = vmatprep.mubr.f32.mxu1 %v299_v38  ;;  %v484_v37 = vld [vmem:[#allocation2 + $0xd70] sm:$0xff]  ;;  %v491_v38 = vld [vmem:[#allocation2 + $0xda8] sm:$0xff] }
 0x219   :  { %3511 = vmatprep.mubr.f32.mxu0 %v305_v39  ;;  %v497_v39 = vld [vmem:[#allocation2 + $0xdd8] sm:$0xff] }
 0x21b   :  { %2561 = vmatmul.mubr.f32.gmra.mrb[40].mxu1 %v298_v40  ;;  %v490_v40 = vld [vmem:[#allocation2 + $0xda0] sm:$0xff] }
 0x21c   :  { %3512 = vmatmul.mubr.f32.gmra.mrb[40].mxu0 %v304_v41  ;;  %2566 = vmatprep.mubr.f32.mxu1 %v311_v42  ;;  %v496_v41 = vld [vmem:[#allocation2 + $0xdd0] sm:$0xff]  ;;  %v503_v42 = vld [vmem:[#allocation2 + $0xe08] sm:$0xff] }
 0x21d   :  { %3517 = vmatprep.mubr.f32.mxu0 %v317_v43  ;;  %v509_v43 = vld [vmem:[#allocation2 + $0xe38] sm:$0xff] }
 0x21f   :  { %2567 = vmatmul.mubr.f32.gmra.mrb[42].mxu1 %v310_v44  ;;  %v502_v44 = vld [vmem:[#allocation2 + $0xe00] sm:$0xff] }
 0x220   :  { %3518 = vmatmul.mubr.f32.gmra.mrb[42].mxu0 %v316_v45  ;;  %2572 = vmatprep.mubr.f32.mxu1 %v323_v46  ;;  %v508_v45 = vld [vmem:[#allocation2 + $0xe30] sm:$0xff]  ;;  %v515_v46 = vld [vmem:[#allocation2 + $0xe68] sm:$0xff] }
 0x221   :  { %3523 = vmatprep.mubr.f32.mxu0 %v329_v47  ;;  %v521_v47 = vld [vmem:[#allocation2 + $0xe98] sm:$0xff] }
 0x223   :  { %2573 = vmatmul.mubr.f32.gmra.mrb[44].mxu1 %v322_v48  ;;  %v514_v48 = vld [vmem:[#allocation2 + $0xe60] sm:$0xff] }
 0x224   :  { %3524 = vmatmul.mubr.f32.gmra.mrb[44].mxu0 %v328_v49  ;;  %2578 = vmatprep.mubr.f32.mxu1 %v335_v50  ;;  %v520_v49 = vld [vmem:[#allocation2 + $0xe90] sm:$0xff]  ;;  %v527_v50 = vld [vmem:[#allocation2 + $0xec8] sm:$0xff] }
 0x225   :  { %3529 = vmatprep.mubr.f32.mxu0 %v341_v51  ;;  %v533_v51 = vld [vmem:[#allocation2 + $0xef8] sm:$0xff] }
 0x227   :  { %2579 = vmatmul.mubr.f32.gmra.mrb[46].mxu1 %v334_v52  ;;  %v526_v52 = vld [vmem:[#allocation2 + $0xec0] sm:$0xff] }
 0x228   :  { %3530 = vmatmul.mubr.f32.gmra.mrb[46].mxu0 %v340_v53  ;;  %2584 = vmatprep.mubr.f32.mxu1 %v347_v54  ;;  %v532_v53 = vld [vmem:[#allocation2 + $0xef0] sm:$0xff]  ;;  %v539_v54 = vld [vmem:[#allocation2 + $0xf28] sm:$0xff] }
 0x229   :  { %3535 = vmatprep.mubr.f32.mxu0 %v353_v55  ;;  %v545_v55 = vld [vmem:[#allocation2 + $0xf58] sm:$0xff] }
 0x22b   :  { %2585 = vmatmul.mubr.f32.gmra.mrb[48].mxu1 %v346_v56  ;;  %v538_v56 = vld [vmem:[#allocation2 + $0xf20] sm:$0xff] }
 0x22c   :  { %3536 = vmatmul.mubr.f32.gmra.mrb[48].mxu0 %v352_v57  ;;  %2590 = vmatprep.mubr.f32.mxu1 %v359_v58  ;;  %v544_v57 = vld [vmem:[#allocation2 + $0xf50] sm:$0xff]  ;;  %v551_v58 = vld [vmem:[#allocation2 + $0xf88] sm:$0xff] }
 0x22d   :  { %3541 = vmatprep.mubr.f32.mxu0 %v365_v59  ;;  %v557_v59 = vld [vmem:[#allocation2 + $0xfb8] sm:$0xff] }
 0x22f   :  { %2591 = vmatmul.mubr.f32.gmra.mrb[50].mxu1 %v358_v60  ;;  %v550_v60 = vld [vmem:[#allocation2 + $0xf80] sm:$0xff] }
 0x230   :  { %3542 = vmatmul.mubr.f32.gmra.mrb[50].mxu0 %v364_v61  ;;  %2596 = vmatprep.mubr.f32.mxu1 %v371_v62  ;;  %v556_v61 = vld [vmem:[#allocation2 + $0xfb0] sm:$0xff] }
 0x231   :  { %3547 = vmatprep.mubr.f32.mxu0 %v377_v63  ;;  %v752_v62 = vld [vmem:[#allocation5 + $0x610] sm:$0xff]  ;;  %v758_v63 = vld [vmem:[#allocation5 + $0x640] sm:$0xff] }
 0x233   :  { %2597 = vmatmul.mubr.f32.gmra.mrb[52].mxu1 %v370_v0  ;;  %v754_v0 = vld [vmem:[#allocation5 + $0x620] sm:$0xff] }
 0x234   :  { %3548 = vmatmul.mubr.f32.gmra.mrb[52].mxu0 %v376_v1  ;;  %2602 = vmatprep.mubr.f32.mxu1 %v383_v2  ;;  %v760_v1 = vld [vmem:[#allocation5 + $0x650] sm:$0xff]  ;;  %v765_v2 = vld [vmem:[#allocation5 + $0x678] sm:$0xff] }
 0x235   :  { %3553 = vmatprep.mubr.f32.mxu0 %v389_v3  ;;  %v771_v3 = vld [vmem:[#allocation5 + $0x6a8] sm:$0xff] }
 0x237   :  { %2603 = vmatmul.mubr.f32.gmra.mrb[54].mxu1 %v382_v4  ;;  %v10390_v4 = vld [vmem:[#allocation2 + $0x8] sm:$0xff] }
 0x238   :  { %3554 = vmatmul.mubr.f32.gmra.mrb[54].mxu0 %v388_v5  ;;  %2608 = vmatprep.mubr.f32.mxu1 %v395_v6  ;;  %v8168_v5 = vpack.c.bf16 %v758_v63, %v752_v62  ;;  %v767_v6 = vld [vmem:[#allocation5 + $0x688] sm:$0xff]  ;;  %v821_v62 = vld [vmem:[#allocation5 + $0x838] sm:$0xff] }
 0x239   :  { %3559 = vmatprep.mubr.f32.mxu0 %v401_v7  ;;  %v773_v7 = vld [vmem:[#allocation5 + $0x6b8] sm:$0xff] }
 0x23b   :  { %2609 = vmatmul.mubr.f32.gmra.mrb[56].mxu1 %v394_v8  ;;  %v8552_v8 = vpack.c.bf16 %v760_v1, %v754_v0 }
 0x23c   :  { %3560 = vmatmul.mubr.f32.gmra.mrb[56].mxu0 %v400_v9  ;;  %2614 = vmatprep.mubr.f32.mxu1 %v407_v10  ;;  %v8170_v9 = vpack.c.bf16 %v771_v3, %v765_v2  ;;  %v764_v10 = vld [vmem:[#allocation5 + $0x670] sm:$0xff]  ;;  %v818_v3 = vld [vmem:[#allocation5 + $0x820] sm:$0xff] }
 0x23d   :  { %3565 = vmatprep.mubr.f32.mxu0 %v413_v11  ;;  %v770_v11 = vld [vmem:[#allocation5 + $0x6a0] sm:$0xff]  ;;  %v812_v2 = vld [vmem:[#allocation5 + $0x7f0] sm:$0xff] }
 0x23f   :  { %2615 = vmatmul.mubr.f32.gmra.mrb[58].mxu1 %v406_v12  ;;  %v766_v12 = vld [vmem:[#allocation5 + $0x680] sm:$0xff] }
 0x240   :  { %3566 = vmatmul.mubr.f32.gmra.mrb[58].mxu0 %v412_v13  ;;  %2620 = vmatprep.mubr.f32.mxu1 %v419_v14  ;;  %v10391_v13 = vld [vmem:[#allocation2] sm:$0xff]  ;;  %v8554_v14 = vpack.c.bf16 %v773_v7, %v767_v6  ;;  %v820_v7 = vld [vmem:[#allocation5 + $0x830] sm:$0xff] }
 0x241   :  { %3571 = vmatprep.mubr.f32.mxu0 %v425_v15  ;;  %v772_v15 = vld [vmem:[#allocation5 + $0x6b0] sm:$0xff] }
 0x243   :  { %2621 = vmatmul.mubr.f32.gmra.mrb[60].mxu1 %v418_v16  ;;  %v777_v16 = vld [vmem:[#allocation5 + $0x6d8] sm:$0xff] }
 0x244   :  { %3572 = vmatmul.mubr.f32.gmra.mrb[60].mxu0 %v424_v17  ;;  %2626 = vmatprep.mubr.f32.mxu1 %v431_v18  ;;  %v783_v17 = vld [vmem:[#allocation5 + $0x708] sm:$0xff] }
 0x245   :  { %3577 = vmatprep.mubr.f32.mxu0 %v437_v19  ;;  %v779_v18 = vld [vmem:[#allocation5 + $0x6e8] sm:$0xff]  ;;  %v785_v19 = vld [vmem:[#allocation5 + $0x718] sm:$0xff] }
 0x247   :  { %2627 = vmatmul.mubr.f32.gmra.mrb[62].mxu1 %v430_v20  ;;  %v10392_v20 = vld [vmem:[#allocation2 + $0x68] sm:$0xff] }
 0x248   :  { %3578 = vmatmul.mubr.f32.gmra.mrb[62].mxu0 %v436_v21  ;;  %2632 = vmatprep.mubr.f32.mxu1 %v443_v22  ;;  %v8172_v21 = vpack.c.bf16 %v770_v11, %v764_v10  ;;  %v8556_v22 = vpack.c.bf16 %v772_v15, %v766_v12  ;;  %v10400_v10 = vld [vmem:[#allocation2 + $0x1e8] sm:$0xff]  ;;  %v833_v12 = vld [vmem:[#allocation5 + $0x898] sm:$0xff] }
 0x249   :  { %3583 = vmatprep.mubr.f32.mxu0 %v449_v23  ;;  %v8174_v23 = vpack.c.bf16 %v783_v17, %v777_v16  ;;  %v827_v11 = vld [vmem:[#allocation5 + $0x868] sm:$0xff]  ;;  %v824_v16 = vld [vmem:[#allocation5 + $0x850] sm:$0xff]  ;;  %v830_v17 = vld [vmem:[#allocation5 + $0x880] sm:$0xff] }
 0x24b   :  { %2633 = vmatmul.mubr.f32.gmra.mrb[64].mxu1 %v442_v24  ;;  %v776_v24 = vld [vmem:[#allocation5 + $0x6d0] sm:$0xff] }
 0x24c   :  { %3584 = vmatmul.mubr.f32.gmra.mrb[64].mxu0 %v448_v25  ;;  %2638 = vmatprep.mubr.f32.mxu1 %v455_v26  ;;  %v782_v25 = vld [vmem:[#allocation5 + $0x700] sm:$0xff] }
 0x24d   :  { %3589 = vmatprep.mubr.f32.mxu0 %v461_v27  ;;  %v778_v26 = vld [vmem:[#allocation5 + $0x6e0] sm:$0xff] }
 0x24e   :  { %v10393_v27 = vld [vmem:[#allocation2 + $0x60] sm:$0xff] }
 0x24f   :  { %2639 = vmatmul.mubr.f32.gmra.mrb[66].mxu1 %v454_v28  ;;  %v8558_v28 = vpack.c.bf16 %v785_v19, %v779_v18  ;;  %v826_v18 = vld [vmem:[#allocation5 + $0x860] sm:$0xff] }
 0x250   :  { %3590 = vmatmul.mubr.f32.gmra.mrb[66].mxu0 %v460_v29  ;;  %2644 = vmatprep.mubr.f32.mxu1 %v467_v30  ;;  %v784_v29 = vld [vmem:[#allocation5 + $0x710] sm:$0xff]  ;;  %v789_v30 = vld [vmem:[#allocation5 + $0x738] sm:$0xff]  ;;  %v10401_v19 = vld [vmem:[#allocation2 + $0x1e0] sm:$0xff] }
 0x251   :  { %3595 = vmatprep.mubr.f32.mxu0 %v473_v31  ;;  %v795_v31 = vld [vmem:[#allocation5 + $0x768] sm:$0xff] }
 0x253   :  { %2645 = vmatmul.mubr.f32.gmra.mrb[68].mxu1 %v466_v32  ;;  %v10394_v32 = vld [vmem:[#allocation2 + $0xc8] sm:$0xff] }
 0x254   :  { %3596 = vmatmul.mubr.f32.gmra.mrb[68].mxu0 %v472_v33  ;;  %2650 = vmatprep.mubr.f32.mxu1 %v479_v34  ;;  %v791_v33 = vld [vmem:[#allocation5 + $0x748] sm:$0xff]  ;;  %v797_v34 = vld [vmem:[#allocation5 + $0x778] sm:$0xff] }
 0x255   :  { %3601 = vmatprep.mubr.f32.mxu0 %v485_v35  ;;  %v8176_v35 = vpack.c.bf16 %v782_v25, %v776_v24  ;;  %v10402_v24 = vld [vmem:[#allocation2 + $0x248] sm:$0xff] }
 0x256   :  { %v839_v25 = vld [vmem:[#allocation5 + $0x8c8] sm:$0xff] }
 0x257   :  { %2651 = vmatmul.mubr.f32.gmra.mrb[70].mxu1 %v478_v36  ;;  %v8560_v36 = vpack.c.bf16 %v784_v29, %v778_v26  ;;  %v845_v26 = vld [vmem:[#allocation5 + $0x8f8] sm:$0xff] }
 0x258   :  { %3602 = vmatmul.mubr.f32.gmra.mrb[70].mxu0 %v484_v37  ;;  %2656 = vmatprep.mubr.f32.mxu1 %v491_v38  ;;  %v8178_v37 = vpack.c.bf16 %v795_v31, %v789_v30  ;;  %v788_v38 = vld [vmem:[#allocation5 + $0x730] sm:$0xff]  ;;  %v842_v31 = vld [vmem:[#allocation5 + $0x8e0] sm:$0xff] }
 0x259   :  { %3607 = vmatprep.mubr.f32.mxu0 %v497_v39  ;;  %v794_v39 = vld [vmem:[#allocation5 + $0x760] sm:$0xff]  ;;  %v836_v30 = vld [vmem:[#allocation5 + $0x8b0] sm:$0xff] }
 0x25b   :  { %2657 = vmatmul.mubr.f32.gmra.mrb[72].mxu1 %v490_v40  ;;  %v790_v40 = vld [vmem:[#allocation5 + $0x740] sm:$0xff] }
 0x25c   :  { %3608 = vmatmul.mubr.f32.gmra.mrb[72].mxu0 %v496_v41  ;;  %2662 = vmatprep.mubr.f32.mxu1 %v503_v42  ;;  %v10395_v41 = vld [vmem:[#allocation2 + $0xc0] sm:$0xff]  ;;  %v8562_v42 = vpack.c.bf16 %v797_v34, %v791_v33  ;;  %v8578_v34 = vpack.c.bf16 %v845_v26, %v839_v25 }
 0x25d   :  { %3613 = vmatprep.mubr.f32.mxu0 %v509_v43  ;;  %v796_v43 = vld [vmem:[#allocation5 + $0x770] sm:$0xff]  ;;  %v10403_v33 = vld [vmem:[#allocation2 + $0x240] sm:$0xff] }
 0x25f   :  { %2663 = vmatmul.mubr.f32.gmra.mrb[74].mxu1 %v502_v44  ;;  %v801_v44 = vld [vmem:[#allocation5 + $0x798] sm:$0xff] }
 0x260   :  { %3614 = vmatmul.mubr.f32.gmra.mrb[74].mxu0 %v508_v45  ;;  %2668 = vmatprep.mubr.f32.mxu1 %v515_v46  ;;  %v807_v45 = vld [vmem:[#allocation5 + $0x7c8] sm:$0xff] }
 0x261   :  { %3619 = vmatprep.mubr.f32.mxu0 %v521_v47  ;;  %v10396_v46 = vld [vmem:[#allocation2 + $0x128] sm:$0xff] }
 0x262   :  { %v803_v47 = vld [vmem:[#allocation5 + $0x7a8] sm:$0xff] }
 0x263   :  { %2669 = vmatmul.mubr.f32.gmra.mrb[76].mxu1 %v514_v48  ;;  %v809_v48 = vld [vmem:[#allocation5 + $0x7d8] sm:$0xff] }
 0x264   :  { %3620 = vmatmul.mubr.f32.gmra.mrb[76].mxu0 %v520_v49  ;;  %2674 = vmatprep.mubr.f32.mxu1 %v527_v50  ;;  %v8180_v49 = vpack.c.bf16 %v794_v39, %v788_v38  ;;  %v8564_v50 = vpack.c.bf16 %v796_v43, %v790_v40  ;;  %v10404_v38 = vld [vmem:[#allocation2 + $0x2a8] sm:$0xff]  ;;  %v857_v40 = vld [vmem:[#allocation5 + $0x958] sm:$0xff] }
 0x265   :  { %3625 = vmatprep.mubr.f32.mxu0 %v533_v51  ;;  %v8182_v51 = vpack.c.bf16 %v807_v45, %v801_v44  ;;  %v851_v39 = vld [vmem:[#allocation5 + $0x928] sm:$0xff]  ;;  %v848_v44 = vld [vmem:[#allocation5 + $0x910] sm:$0xff]  ;;  %v854_v45 = vld [vmem:[#allocation5 + $0x940] sm:$0xff] }
 0x267   :  { %2675 = vmatmul.mubr.f32.gmra.mrb[78].mxu1 %v526_v52  ;;  %v800_v52 = vld [vmem:[#allocation5 + $0x790] sm:$0xff] }
 0x268   :  { %3626 = vmatmul.mubr.f32.gmra.mrb[78].mxu0 %v532_v53  ;;  %2680 = vmatprep.mubr.f32.mxu1 %v539_v54  ;;  %v806_v53 = vld [vmem:[#allocation5 + $0x7c0] sm:$0xff] }
 0x269   :  { %3631 = vmatprep.mubr.f32.mxu0 %v545_v55  ;;  %v802_v54 = vld [vmem:[#allocation5 + $0x7a0] sm:$0xff]  ;;  %v8184_v63 = vpack.c.bf16 %v806_v53, %v800_v52  ;;  %v867_v52 = vld [vmem:[#allocation5 + $0x9a8] sm:$0xff] }
 0x26a   :  { %v10397_v55 = vld [vmem:[#allocation2 + $0x120] sm:$0xff]  ;;  %v10406_v53 = vld [vmem:[#allocation2 + $0x308] sm:$0xff] }
 0x26b   :  { %2681 = vmatmul.mubr.f32.gmra.mrb[80].mxu1 %v538_v56  ;;  %v8566_v56 = vpack.c.bf16 %v809_v48, %v803_v47  ;;  %v10405_v47 = vld [vmem:[#allocation2 + $0x2a0] sm:$0xff]  ;;  %v1712_v48 = vlaneseq }
 0x26c   :  { %3632 = vmatmul.mubr.f32.gmra.mrb[80].mxu0 %v544_v57  ;;  %2686 = vmatprep.mubr.f32.mxu1 %v551_v58  ;;  %v808_v57 = vld [vmem:[#allocation5 + $0x7d0] sm:$0xff]  ;;  %v813_v58 = vld [vmem:[#allocation5 + $0x7f8] sm:$0xff] }
 0x26d   :  { %3637 = vmatprep.mubr.f32.mxu0 %v557_v59  ;;  %v819_v59 = vld [vmem:[#allocation5 + $0x828] sm:$0xff]  ;;  %v8568_v0 = vpack.c.bf16 %v808_v57, %v802_v54 }
 0x26e   :  { %v8186_v1 = vpack.c.bf16 %v819_v59, %v813_v58  ;;  %v863_v54 = vld [vmem:[#allocation5 + $0x988] sm:$0xff]  ;;  %v860_v59 = vld [vmem:[#allocation5 + $0x970] sm:$0xff] }
 0x26f   :  { %2687 = vmatmul.mubr.f32.gmra.mrb[82].mxu1 %v550_v60  ;;  %v10398_v60 = vld [vmem:[#allocation2 + $0x188] sm:$0xff] }
 0x270   :  { %3638 = vmatmul.mubr.f32.gmra.mrb[82].mxu0 %v556_v61  ;;  %3708 = vmatprep.mubr.f32.mxu1 %v10390_v4  ;;  %v815_v61 = vld [vmem:[#allocation5 + $0x808] sm:$0xff] }
 0x271   :  { %5610 = vmatprep.mubr.f32.mxu0 %v10390_v4  ;;  %v814_v4 = vld [vmem:[#allocation5 + $0x800] sm:$0xff]  ;;  %v8570_v6 = vpack.c.bf16 %v821_v62, %v815_v61 }
 0x272   :  { %v862_v61 = vld [vmem:[#allocation5 + $0x980] sm:$0xff] }
 0x273   :  { %3709 = vmatmul.mubr.f32.vlgmr.msra.gmra.mrb[84].mxu1 %v10391_v13  ;;  %v10407_v62 = vld [vmem:[#allocation2 + $0x300] sm:$0xff] }
 0x274   :  { %5611 = vmatmul.mubr.f32.vlgmr.msra.gmra.mrb[84].mxu0 %v10391_v13  ;;  %8169 = vmatpush1.bf16.msra.mxu1 %v8168_v5  ;;  %v10399_v5 = vld [vmem:[#allocation2 + $0x180] sm:$0xff]  ;;  %v8188_v13 = vpack.c.bf16 %v818_v3, %v812_v2  ;;  %v873_v2 = vld [vmem:[#allocation5 + $0x9d8] sm:$0xff]  ;;  %v879_v3 = vld [vmem:[#allocation5 + $0xa08] sm:$0xff] }
 0x275   :  { %8553 = vmatpush1.bf16.msra.mxu0 %v8552_v8  ;;  %3714 = vmatprep.mubr.f32.mxu1 %v10392_v20  ;;  %v825_v8 = vld [vmem:[#allocation5 + $0x858] sm:$0xff] }
 0x276   :  { %5616 = vmatprep.mubr.f32.mxu0 %v10392_v20  ;;  %8171 = vmatprep.subr.bf16.mxu1 %v8170_v9  ;;  %v831_v9 = vld [vmem:[#allocation5 + $0x888] sm:$0xff]  ;;  %v8574_v20 = vpack.c.bf16 %v833_v12, %v827_v11  ;;  %v878_v11 = vld [vmem:[#allocation5 + $0xa00] sm:$0xff] }
 0x277   :  { %3715 = vmatmul.mubr.f32.gmra.mrb[86].mxu1 %v10393_v27  ;;  %8555 = vmatprep.subr.bf16.mxu0 %v8554_v14  ;;  %v8572_v14 = vpack.c.bf16 %v820_v7, %v814_v4  ;;  %v8190_v15 = vpack.c.bf16 %v831_v9, %v825_v8  ;;  %v10408_v4 = vld [vmem:[#allocation2 + $0x368] sm:$0xff]  ;;  %v8206_v9 = vpack.c.bf16 %v879_v3, %v873_v2  ;;  %v874_v12 = vld [vmem:[#allocation5 + $0x9e0] sm:$0xff]  ;;  %v908_v3 = vld [vmem:[#allocation5 + $0xaf0] sm:$0xff] }
 0x278   :  { %5617 = vmatmul.mubr.f32.gmra.mrb[86].mxu0 %v10393_v27  ;;  %3720 = vmatprep.mubr.f32.mxu1 %v10394_v32  ;;  %v8192_v27 = vpack.c.bf16 %v830_v17, %v824_v16  ;;  %v880_v16 = vld [vmem:[#allocation5 + $0xa10] sm:$0xff]  ;;  %v885_v17 = vld [vmem:[#allocation5 + $0xa38] sm:$0xff] }
 0x279   :  { %5622 = vmatprep.mubr.f32.mxu0 %v10394_v32  ;;  %8173 = vmatpush1.bf16.msra.mxu1 %v8172_v21  ;;  %v832_v21 = vld [vmem:[#allocation5 + $0x890] sm:$0xff]  ;;  %v838_v32 = vld [vmem:[#allocation5 + $0x8c0] sm:$0xff]  ;;  %v8592_v25 = vpack.c.bf16 %v880_v16, %v874_v12  ;;  %v921_v12 = vld [vmem:[#allocation5 + $0xb58] sm:$0xff] }
 0x27a   :  { %8557 = vmatpush1.bf16.msra.mxu0 %v8556_v22  ;;  %8175 = vmatprep.subr.bf16.mxu1 %v8174_v23  ;;  %v837_v22 = vld [vmem:[#allocation5 + $0x8b8] sm:$0xff]  ;;  %v843_v23 = vld [vmem:[#allocation5 + $0x8e8] sm:$0xff] }
 0x27b   :  { %3721 = vmatmul.mubr.f32.gmra.mrb[88].mxu1 %v10395_v41  ;;  %8559 = vmatprep.subr.bf16.mxu0 %v8558_v28  ;;  %v8576_v28 = vpack.c.bf16 %v832_v21, %v826_v18  ;;  %v8194_v29 = vpack.c.bf16 %v843_v23, %v837_v22  ;;  %v891_v18 = vld [vmem:[#allocation5 + $0xa68] sm:$0xff]  ;;  %v893_v23 = vld [vmem:[#allocation5 + $0xa78] sm:$0xff] }
 0x27c   :  { %5623 = vmatmul.mubr.f32.gmra.mrb[88].mxu0 %v10395_v41  ;;  %3726 = vmatprep.mubr.f32.mxu1 %v10396_v46  ;;  %v8196_v41 = vpack.c.bf16 %v842_v31, %v836_v30  ;;  %v887_v22 = vld [vmem:[#allocation5 + $0xa48] sm:$0xff]  ;;  %v8210_v26 = vpack.c.bf16 %v891_v18, %v885_v17  ;;  %v10411_v30 = vld [vmem:[#allocation2 + $0x3c0] sm:$0xff]  ;;  %v929_v18 = vld [vmem:[#allocation5 + $0xb98] sm:$0xff] }
 0x27d   :  { %5628 = vmatprep.mubr.f32.mxu0 %v10396_v46  ;;  %8177 = vmatpush1.bf16.msra.mxu1 %v8176_v35  ;;  %v844_v35 = vld [vmem:[#allocation5 + $0x8f0] sm:$0xff]  ;;  %v850_v46 = vld [vmem:[#allocation5 + $0x920] sm:$0xff]  ;;  %v10416_v16 = vld [vmem:[#allocation2 + $0x4e8] sm:$0xff] }
 0x27e   :  { %8561 = vmatpush1.bf16.msra.mxu0 %v8560_v36  ;;  %8179 = vmatprep.subr.bf16.mxu1 %v8178_v37  ;;  %v849_v36 = vld [vmem:[#allocation5 + $0x918] sm:$0xff]  ;;  %v855_v37 = vld [vmem:[#allocation5 + $0x948] sm:$0xff] }
 0x27f   :  { %3727 = vmatmul.mubr.f32.gmra.mrb[90].mxu1 %v10397_v55  ;;  %8563 = vmatprep.subr.bf16.mxu0 %v8562_v42  ;;  %v8580_v42 = vpack.c.bf16 %v844_v35, %v838_v32  ;;  %v8198_v43 = vpack.c.bf16 %v855_v37, %v849_v36  ;;  %v8594_v32 = vpack.c.bf16 %v893_v23, %v887_v22  ;;  %v903_v35 = vld [vmem:[#allocation5 + $0xac8] sm:$0xff] }
 0x280   :  { %5629 = vmatmul.mubr.f32.gmra.mrb[90].mxu0 %v10397_v55  ;;  %3732 = vmatprep.mubr.f32.mxu1 %v10398_v60  ;;  %v869_v55 = vld [vmem:[#allocation5 + $0x9b8] sm:$0xff]  ;;  %v10412_v36 = vld [vmem:[#allocation2 + $0x428] sm:$0xff] }
 0x281   :  { %5634 = vmatprep.mubr.f32.mxu0 %v10398_v60  ;;  %8181 = vmatpush1.bf16.msra.mxu1 %v8180_v49  ;;  %v8582_v49 = vpack.c.bf16 %v857_v40, %v851_v39  ;;  %v866_v60 = vld [vmem:[#allocation5 + $0x9a0] sm:$0xff]  ;;  %v905_v39 = vld [vmem:[#allocation5 + $0xad8] sm:$0xff]  ;;  %v923_v17 = vld [vmem:[#allocation5 + $0xb68] sm:$0xff] }
 0x282   :  { %8565 = vmatpush1.bf16.msra.mxu0 %v8564_v50  ;;  %8183 = vmatprep.subr.bf16.mxu1 %v8182_v51  ;;  %v856_v50 = vld [vmem:[#allocation5 + $0x950] sm:$0xff]  ;;  %v861_v51 = vld [vmem:[#allocation5 + $0x978] sm:$0xff]  ;;  %v8204_v7 = vpack.c.bf16 %v866_v60, %v860_v59 }
 0x283   :  { %3733 = vmatmul.mubr.f32.gmra.mrb[92].mxu1 %v10399_v5  ;;  %8567 = vmatprep.subr.bf16.mxu0 %v8566_v56  ;;  %v8200_v56 = vpack.c.bf16 %v854_v45, %v848_v44  ;;  %v8584_v57 = vpack.c.bf16 %v856_v50, %v850_v46  ;;  %v8202_v58 = vpack.c.bf16 %v867_v52, %v861_v51  ;;  %v896_v44 = vld [vmem:[#allocation5 + $0xa90] sm:$0xff]  ;;  %v902_v45 = vld [vmem:[#allocation5 + $0xac0] sm:$0xff]  ;;  %v917_v59 = vld [vmem:[#allocation5 + $0xb38] sm:$0xff] }
 0x284   :  { %5635 = vmatmul.mubr.f32.gmra.mrb[92].mxu0 %v10399_v5  ;;  %3738 = vmatprep.mubr.f32.mxu1 %v10400_v10  ;;  %v875_v5 = vld [vmem:[#allocation5 + $0x9e8] sm:$0xff]  ;;  %v898_v46 = vld [vmem:[#allocation5 + $0xaa0] sm:$0xff]  ;;  %v904_v52 = vld [vmem:[#allocation5 + $0xad0] sm:$0xff] }
 0x285   :  { %5640 = vmatprep.mubr.f32.mxu0 %v10400_v10  ;;  %8185 = vmatpush1.bf16.msra.mxu1 %v8184_v63  ;;  %v11056_v63 = vshrl.u32 %v1712_v48, 7  ;;  %v872_v10 = vld [vmem:[#allocation5 + $0x9d0] sm:$0xff]  ;;  %v10413_v50 = vld [vmem:[#allocation2 + $0x420] sm:$0xff] }
 0x286   :  { %8569 = vmatpush1.bf16.msra.mxu0 %v8568_v0  ;;  %8187 = vmatprep.subr.bf16.mxu1 %v8186_v1  ;;  %v8586_v0 = vpack.c.bf16 %v869_v55, %v863_v54  ;;  %v868_v1 = vld [vmem:[#allocation5 + $0x9b0] sm:$0xff]  ;;  %v915_v54 = vld [vmem:[#allocation5 + $0xb28] sm:$0xff] }
 0x287   :  { %3739 = vmatmul.mubr.f32.gmra.mrb[94].mxu1 %v10401_v19  ;;  %8571 = vmatprep.subr.bf16.mxu0 %v8570_v6  ;;  %v881_v6 = vld [vmem:[#allocation5 + $0xa18] sm:$0xff]  ;;  %v8588_v8 = vpack.c.bf16 %v868_v1, %v862_v61  ;;  %v1718_v21 = vsub.s32 1, %v11056_v63  ;;  %v8216_v61 = vpack.c.bf16 %v902_v45, %v896_v44  ;;  %v8600_v1 = vpack.c.bf16 %v904_v52, %v898_v46 }
 0x288   :  { %5641 = vmatmul.mubr.f32.gmra.mrb[94].mxu0 %v10401_v19  ;;  %3744 = vmatprep.mubr.f32.mxu1 %v10402_v24  ;;  %v10410_v19 = vld [vmem:[#allocation2 + $0x3c8] sm:$0xff] }
 0x289   :  { %5646 = vmatprep.mubr.f32.mxu0 %v10402_v24  ;;  %8189 = vmatpush1.bf16.msra.mxu1 %v8188_v13  ;;  %v10409_v13 = vld [vmem:[#allocation2 + $0x360] sm:$0xff]  ;;  %v8208_v24 = vpack.c.bf16 %v878_v11, %v872_v10  ;;  %v916_v11 = vld [vmem:[#allocation5 + $0xb30] sm:$0xff] }
 0x28a   :  { %8573 = vmatpush1.bf16.msra.mxu0 %v8572_v14  ;;  %8191 = vmatprep.subr.bf16.mxu1 %v8190_v15  ;;  %v1714_v14 = vsub.s32 0, %v11056_v63  ;;  %v8590_v15 = vpack.c.bf16 %v881_v6, %v875_v5  ;;  %v910_v5 = vld [vmem:[#allocation5 + $0xb00] sm:$0xff] }
 0x28b   :  { %3745 = vmatmul.mubr.f32.gmra.mrb[96].mxu1 %v10403_v33  ;;  %8575 = vmatprep.subr.bf16.mxu0 %v8574_v20  ;;  %v1710_v20 = vld [vmem:[#allocation7] sm:$0x3f]  ;;  %v8604_v23 = vpack.c.bf16 %v916_v11, %v910_v5 }
 0x28c   :  { %5647 = vmatmul.mubr.f32.gmra.mrb[96].mxu0 %v10403_v33  ;;  %3750 = vmatprep.mubr.f32.mxu1 %v10404_v38  ;;  %v11060_v31 = vrot.slane %v1710_v20, %v1714_v14  ;;  %v892_v33 = vld [vmem:[#allocation5 + $0xa70] sm:$0xff]  ;;  %v11062_v37 = vrot.slane %v1710_v20, %v1718_v21  ;;  %v10421_v11 = vld [vmem:[#allocation2 + $0x5a0] sm:$0xff] }
 0x28d   :  { %5652 = vmatprep.mubr.f32.mxu0 %v10404_v38  ;;  %8193 = vmatpush1.bf16.msra.mxu1 %v8192_v27  ;;  %v884_v27 = vld [vmem:[#allocation5 + $0xa30] sm:$0xff]  ;;  %v899_v38 = vld [vmem:[#allocation5 + $0xaa8] sm:$0xff] }
 0x28e   :  { %8577 = vmatpush1.bf16.msra.mxu0 %v8576_v28  ;;  %8195 = vmatprep.subr.bf16.mxu1 %v8194_v29  ;;  %v890_v28 = vld [vmem:[#allocation5 + $0xa60] sm:$0xff]  ;;  %v8598_v51 = vpack.c.bf16 %v905_v39, %v899_v38 }
 0x28f   :  { %3751 = vmatmul.mubr.f32.gmra.mrb[98].mxu1 %v10405_v47  ;;  %8579 = vmatprep.subr.bf16.mxu0 %v8578_v34  ;;  %v886_v29 = vld [vmem:[#allocation5 + $0xa40] sm:$0xff]  ;;  %v897_v34 = vld [vmem:[#allocation5 + $0xa98] sm:$0xff]  ;;  %v8212_v40 = vpack.c.bf16 %v890_v28, %v884_v27 }
 0x290   :  { %5653 = vmatmul.mubr.f32.gmra.mrb[98].mxu0 %v10405_v47  ;;  %3756 = vmatprep.mubr.f32.mxu1 %v10406_v53  ;;  %v922_v27 = vld [vmem:[#allocation5 + $0xb60] sm:$0xff] }
 0x291   :  { %5658 = vmatprep.mubr.f32.mxu0 %v10406_v53  ;;  %8197 = vmatpush1.bf16.msra.mxu1 %v8196_v41  ;;  %v909_v53 = vld [vmem:[#allocation5 + $0xaf8] sm:$0xff] }
 0x292   :  { %8581 = vmatpush1.bf16.msra.mxu0 %v8580_v42  ;;  %8199 = vmatprep.subr.bf16.mxu1 %v8198_v43  ;;  %v8596_v42 = vpack.c.bf16 %v892_v33, %v886_v29  ;;  %v8214_v43 = vpack.c.bf16 %v903_v35, %v897_v34  ;;  %v8218_v2 = vpack.c.bf16 %v915_v54, %v909_v53  ;;  %v928_v34 = vld [vmem:[#allocation5 + $0xb90] sm:$0xff]  ;;  %v933_v35 = vld [vmem:[#allocation5 + $0xbb8] sm:$0xff] }
 0x293   :  { %3757 = vmatmul.mubr.f32.gmra.mrb[100].mxu1 %v10407_v62  ;;  %8583 = vmatprep.subr.bf16.mxu0 %v8582_v49  ;;  %v8606_v33 = vpack.c.bf16 %v929_v18, %v923_v17 }
 0x294   :  { %5659 = vmatmul.mubr.f32.gmra.mrb[100].mxu0 %v10407_v62  ;;  %3762 = vmatprep.mubr.f32.mxu1 %v10408_v4 }
 0x295   :  { %5664 = vmatprep.mubr.f32.mxu0 %v10408_v4  ;;  %8201 = vmatpush1.bf16.msra.mxu1 %v8200_v56  ;;  %v914_v4 = vld [vmem:[#allocation5 + $0xb20] sm:$0xff] }
 0x296   :  { %8585 = vmatpush1.bf16.msra.mxu0 %v8584_v57  ;;  %8203 = vmatprep.subr.bf16.mxu1 %v8202_v58  ;;  %v10414_v57 = vld [vmem:[#allocation2 + $0x488] sm:$0xff]  ;;  %v8220_v20 = vpack.c.bf16 %v914_v4, %v908_v3 }
 0x297   :  { %3763 = vmatmul.mubr.f32.gmra.mrb[102].mxu1 %v10409_v13  ;;  %8587 = vmatprep.subr.bf16.mxu0 %v8586_v0  ;;  %v911_v58 = vld [vmem:[#allocation5 + $0xb08] sm:$0xff] }
 0x298   :  { %5665 = vmatmul.mubr.f32.gmra.mrb[102].mxu0 %v10409_v13  ;;  %3768 = vmatprep.mubr.f32.mxu1 %v10410_v19  ;;  %v8602_v10 = vpack.c.bf16 %v917_v59, %v911_v58  ;;  %v927_v13 = vld [vmem:[#allocation5 + $0xb88] sm:$0xff]  ;;  %v945_v58 = vld [vmem:[#allocation5 + $0xc18] sm:$0xff] }
 0x299   :  { %5670 = vmatprep.mubr.f32.mxu0 %v10410_v19  ;;  %8205 = vmatpush1.bf16.msra.mxu1 %v8204_v7  ;;  %v951_v59 = vld [vmem:[#allocation5 + $0xc48] sm:$0xff] }
 0x29a   :  { %8589 = vmatpush1.bf16.msra.mxu0 %v8588_v8  ;;  %8207 = vmatprep.subr.bf16.mxu1 %v8206_v9  ;;  %v10415_v9 = vld [vmem:[#allocation2 + $0x480] sm:$0xff] }
 0x29b   :  { %3769 = vmatmul.mubr.f32.gmra.mrb[104].mxu1 %v10411_v30  ;;  %8591 = vmatprep.subr.bf16.mxu0 %v8590_v15 }
 0x29c   :  { %5671 = vmatmul.mubr.f32.gmra.mrb[104].mxu0 %v10411_v30  ;;  %3774 = vmatprep.mubr.f32.mxu1 %v10412_v36 }
 0x29d   :  { %5676 = vmatprep.mubr.f32.mxu0 %v10412_v36  ;;  %8209 = vmatpush1.bf16.msra.mxu1 %v8208_v24  ;;  %v8222_v24 = vpack.c.bf16 %v927_v13, %v921_v12  ;;  %v939_v36 = vld [vmem:[#allocation5 + $0xbe8] sm:$0xff] }
 0x29e   :  { %v2442_v41 = vpop.f32.mrb[0].mxu1  ;;  %8593 = vmatpush1.bf16.msra.mxu0 %v8592_v25  ;;  %8211 = vmatprep.subr.bf16.mxu1 %v8210_v26  ;;  %v920_v25 = vld [vmem:[#allocation5 + $0xb50] sm:$0xff]  ;;  %v926_v26 = vld [vmem:[#allocation5 + $0xb80] sm:$0xff] }
 0x29f   :  { %v8870_v47 = vadd.f32 %v2442_v41, %v11060_v31  ;;  %v3393_v48 = vpop.f32.mrb[0].mxu0  ;;  %v2444_v49 = vpop.f32.mrb[1].mxu1  ;;  %3775 = vmatmul.mubr.f32.gmra.mrb[106].mxu1 %v10413_v50  ;;  %8595 = vmatprep.subr.bf16.mxu0 %v8594_v32  ;;  %v10417_v32 = vld [vmem:[#allocation2 + $0x4e0] sm:$0xff]  ;;  %v935_v41 = vld [vmem:[#allocation5 + $0xbc8] sm:$0xff]  ;;  %v8224_v44 = vpack.c.bf16 %v926_v26, %v920_v25 }
 0x2a0   :  { %v8872_v55 = vadd.f32 %v2444_v49, %v11062_v37  ;;  %v3395_v56 = vpop.f32.mrb[1].mxu0  ;;  %5677 = vmatmul.mubr.f32.gmra.mrb[106].mxu0 %v10413_v50  ;;  %3780 = vmatprep.mubr.f32.mxu1 %v10414_v57  ;;  %v932_v49 = vld [vmem:[#allocation5 + $0xbb0] sm:$0xff]  ;;  %v938_v50 = vld [vmem:[#allocation5 + $0xbe0] sm:$0xff]  ;;  %v10424_v25 = vld [vmem:[#allocation2 + $0x668] sm:$0xff] }
 0x2a1   :  { %v8871_v60 = vadd.f32 %v8870_v47, %v3393_v48  ;;  %5682 = vmatprep.mubr.f32.mxu0 %v10414_v57  ;;  %8213 = vmatpush1.bf16.msra.mxu1 %v8212_v40  ;;  %v10418_v40 = vld [vmem:[#allocation2 + $0x548] sm:$0xff]  ;;  %v8608_v47 = vpack.c.bf16 %v928_v34, %v922_v27  ;;  %v8226_v48 = vpack.c.bf16 %v939_v36, %v933_v35  ;;  %v940_v57 = vld [vmem:[#allocation5 + $0xbf0] sm:$0xff] }
 0x2a2   :  { %v8873_v62 = vadd.f32 %v8872_v55, %v3395_v56  ;;  %v2448_v0 = vpop.f32.mrb[2].mxu1  ;;  %8597 = vmatpush1.bf16.msra.mxu0 %v8596_v42  ;;  %8215 = vmatprep.subr.bf16.mxu1 %v8214_v43  ;;  %v941_v42 = vld [vmem:[#allocation5 + $0xbf8] sm:$0xff]  ;;  %v10419_v55 = vld [vmem:[#allocation2 + $0x540] sm:$0xff]  ;;  %v8228_v3 = vpack.c.bf16 %v938_v50, %v932_v49  ;;  %v10426_v36 = vld [vmem:[#allocation2 + $0x6c8] sm:$0xff] }
 0x2a3   :  { %7448 = vst [vmem:[#allocation8] sm:$0xff] %v8871_v60  ;;  %v8874_v6 = vadd.f32 %v2448_v0, %v11060_v31  ;;  %v3399_v7 = vpop.f32.mrb[2].mxu0  ;;  %v2450_v8 = vpop.f32.mrb[3].mxu1  ;;  %3781 = vmatmul.mubr.f32.gmra.mrb[108].mxu1 %v10415_v9  ;;  %8599 = vmatprep.subr.bf16.mxu0 %v8598_v51  ;;  %v934_v51 = vld [vmem:[#allocation5 + $0xbc0] sm:$0xff]  ;;  %v8610_v56 = vpack.c.bf16 %v941_v42, %v935_v41  ;;  %v947_v0 = vld [vmem:[#allocation5 + $0xc28] sm:$0xff] }
 0x2a4   :  { %7449 = vst [vmem:[#allocation8 + $0x8] sm:$0xff] %v8873_v62  ;;  %v8876_v14 = vadd.f32 %v2450_v8, %v11062_v37  ;;  %v3401_v15 = vpop.f32.mrb[3].mxu0  ;;  %5683 = vmatmul.mubr.f32.gmra.mrb[108].mxu0 %v10415_v9  ;;  %3786 = vmatprep.mubr.f32.mxu1 %v10416_v16  ;;  %v10420_v62 = vld [vmem:[#allocation2 + $0x5a8] sm:$0xff] }
 0x2a5   :  { %v8875_v19 = vadd.f32 %v8874_v6, %v3399_v7  ;;  %5688 = vmatprep.mubr.f32.mxu0 %v10416_v16  ;;  %8217 = vmatpush1.bf16.msra.mxu1 %v8216_v61  ;;  %v8612_v6 = vpack.c.bf16 %v940_v57, %v934_v51  ;;  %v8230_v7 = vpack.c.bf16 %v951_v59, %v945_v58  ;;  %v10430_v57 = vld [vmem:[#allocation2 + $0x788] sm:$0xff] }
 0x2a6   :  { %v8877_v21 = vadd.f32 %v8876_v14, %v3401_v15  ;;  %v2454_v22 = vpop.f32.mrb[4].mxu1  ;;  %8601 = vmatpush1.bf16.msra.mxu0 %v8600_v1  ;;  %8219 = vmatprep.subr.bf16.mxu1 %v8218_v2  ;;  %v953_v1 = vld [vmem:[#allocation5 + $0xc58] sm:$0xff]  ;;  %v10422_v15 = vld [vmem:[#allocation2 + $0x608] sm:$0xff] }
 0x2a7   :  { %7454 = vst [vmem:[#allocation8 + $0x30] sm:$0xff] %v8875_v19  ;;  %v8878_v28 = vadd.f32 %v2454_v22, %v11060_v31  ;;  %v3405_v29 = vpop.f32.mrb[4].mxu0  ;;  %v2456_v30 = vpop.f32.mrb[5].mxu1  ;;  %3787 = vmatmul.mubr.f32.gmra.mrb[110].mxu1 %v10417_v32  ;;  %8603 = vmatprep.subr.bf16.mxu0 %v8602_v10  ;;  %v8614_v12 = vpack.c.bf16 %v953_v1, %v947_v0  ;;  %v10423_v22 = vld [vmem:[#allocation2 + $0x600] sm:$0xff] }
 0x2a8   :  { %7455 = vst [vmem:[#allocation8 + $0x38] sm:$0xff] %v8877_v21  ;;  %v8880_v38 = vadd.f32 %v2456_v30, %v11062_v37  ;;  %v3407_v39 = vpop.f32.mrb[5].mxu0  ;;  %5689 = vmatmul.mubr.f32.gmra.mrb[110].mxu0 %v10417_v32  ;;  %3792 = vmatprep.mubr.f32.mxu1 %v10418_v40  ;;  %v10431_v1 = vld [vmem:[#allocation2 + $0x780] sm:$0xff] }
 0x2a9   :  { %v8879_v43 = vadd.f32 %v8878_v28, %v3405_v29  ;;  %5694 = vmatprep.mubr.f32.mxu0 %v10418_v40  ;;  %8221 = vmatpush1.bf16.msra.mxu1 %v8220_v20 }
 0x2aa   :  { %v8881_v45 = vadd.f32 %v8880_v38, %v3407_v39  ;;  %v2460_v46 = vpop.f32.mrb[6].mxu1  ;;  %8605 = vmatpush1.bf16.msra.mxu0 %v8604_v23  ;;  %8223 = vmatprep.subr.bf16.mxu1 %v8222_v24 }
 0x2ab   :  { %7460 = vst [vmem:[#allocation8 + $0x60] sm:$0xff] %v8879_v43  ;;  %v8882_v52 = vadd.f32 %v2460_v46, %v11060_v31  ;;  %v3411_v53 = vpop.f32.mrb[6].mxu0  ;;  %v2462_v54 = vpop.f32.mrb[7].mxu1  ;;  %3793 = vmatmul.mubr.f32.gmra.mrb[112].mxu1 %v10419_v55  ;;  %8607 = vmatprep.subr.bf16.mxu0 %v8606_v33  ;;  %v10425_v33 = vld [vmem:[#allocation2 + $0x660] sm:$0xff] }
 0x2ac   :  { %7461 = vst [vmem:[#allocation8 + $0x68] sm:$0xff] %v8881_v45  ;;  %v8884_v60 = vadd.f32 %v2462_v54, %v11062_v37  ;;  %v3413_v61 = vpop.f32.mrb[7].mxu0  ;;  %5695 = vmatmul.mubr.f32.gmra.mrb[112].mxu0 %v10419_v55  ;;  %3798 = vmatprep.mubr.f32.mxu1 %v10420_v62  ;;  %v10429_v54 = vld [vmem:[#allocation2 + $0x720] sm:$0xff] }
 0x2ad   :  { %v8883_v2 = vadd.f32 %v8882_v52, %v3411_v53  ;;  %5700 = vmatprep.mubr.f32.mxu0 %v10420_v62  ;;  %8225 = vmatpush1.bf16.msra.mxu1 %v8224_v44  ;;  %v10427_v44 = vld [vmem:[#allocation2 + $0x6c0] sm:$0xff] }
 0x2ae   :  { %v8885_v4 = vadd.f32 %v8884_v60, %v3413_v61  ;;  %v2466_v5 = vpop.f32.mrb[8].mxu1  ;;  %8609 = vmatpush1.bf16.msra.mxu0 %v8608_v47  ;;  %8227 = vmatprep.subr.bf16.mxu1 %v8226_v48  ;;  %v10428_v47 = vld [vmem:[#allocation2 + $0x728] sm:$0xff] }
 0x2af   :  { %7466 = vst [vmem:[#allocation8 + $0x90] sm:$0xff] %v8883_v2  ;;  %v8886_v8 = vadd.f32 %v2466_v5, %v11060_v31  ;;  %v3417_v9 = vpop.f32.mrb[8].mxu0  ;;  %v2468_v10 = vpop.f32.mrb[9].mxu1  ;;  %3799 = vmatmul.mubr.f32.gmra.mrb[114].mxu1 %v10421_v11  ;;  %8611 = vmatprep.subr.bf16.mxu0 %v8610_v56 }
 0x2b0   :  { %7467 = vst [vmem:[#allocation8 + $0x98] sm:$0xff] %v8885_v4  ;;  %v8888_v13 = vadd.f32 %v2468_v10, %v11062_v37  ;;  %v3419_v14 = vpop.f32.mrb[9].mxu0  ;;  %5701 = vmatmul.mubr.f32.gmra.mrb[114].mxu0 %v10421_v11  ;;  %3804 = vmatprep.mubr.f32.mxu1 %v10422_v15  ;;  %v10432_v4 = vld [vmem:[#allocation2 + $0x7e8] sm:$0xff]  ;;  %v10433_v11 = vld [vmem:[#allocation2 + $0x7e0] sm:$0xff] }
 0x2b1   :  { %v8887_v16 = vadd.f32 %v8886_v8, %v3417_v9  ;;  %5706 = vmatprep.mubr.f32.mxu0 %v10422_v15  ;;  %8229 = vmatpush1.bf16.msra.mxu1 %v8228_v3 }
 0x2b2   :  { %v8889_v17 = vadd.f32 %v8888_v13, %v3419_v14  ;;  %v2472_v18 = vpop.f32.mrb[10].mxu1  ;;  %8613 = vmatpush1.bf16.msra.mxu0 %v8612_v6  ;;  %8231 = vmatprep.subr.bf16.mxu1 %v8230_v7  ;;  %v10434_v14 = vld [vmem:[#allocation2 + $0x848] sm:$0xff] }
 0x2b3   :  { %7472 = vst [vmem:[#allocation8 + $0xc0] sm:$0xff] %v8887_v16  ;;  %v8890_v19 = vadd.f32 %v2472_v18, %v11060_v31  ;;  %v3423_v20 = vpop.f32.mrb[10].mxu0  ;;  %v2474_v21 = vpop.f32.mrb[11].mxu1  ;;  %3805 = vmatmul.mubr.f32.gmra.mrb[116].mxu1 %v10423_v22  ;;  %8615 = vmatprep.subr.bf16.mxu0 %v8614_v12 }
 0x2b4   :  { %7473 = vst [vmem:[#allocation8 + $0xc8] sm:$0xff] %v8889_v17  ;;  %v8892_v23 = vadd.f32 %v2474_v21, %v11062_v37  ;;  %v3425_v24 = vpop.f32.mrb[11].mxu0  ;;  %5707 = vmatmul.mubr.f32.gmra.mrb[116].mxu0 %v10423_v22  ;;  %3810 = vmatprep.mubr.f32.mxu1 %v10424_v25  ;;  %v10435_v21 = vld [vmem:[#allocation2 + $0x840] sm:$0xff] }
 0x2b5   :  { %v8891_v26 = vadd.f32 %v8890_v19, %v3423_v20  ;;  %5712 = vmatprep.mubr.f32.mxu0 %v10424_v25 }
 0x2b6   :  { %v8893_v27 = vadd.f32 %v8892_v23, %v3425_v24  ;;  %v2478_v28 = vpop.f32.mrb[12].mxu1  ;;  %v10436_v24 = vld [vmem:[#allocation2 + $0x8a8] sm:$0xff] }
 0x2b7   :  { %7478 = vst [vmem:[#allocation8 + $0xf0] sm:$0xff] %v8891_v26  ;;  %v8894_v29 = vadd.f32 %v2478_v28, %v11060_v31  ;;  %v3429_v30 = vpop.f32.mrb[12].mxu0  ;;  %v2480_v32 = vpop.f32.mrb[13].mxu1  ;;  %3811 = vmatmul.mubr.f32.gmra.mrb[118].mxu1 %v10425_v33 }
 0x2b8   :  { %7479 = vst [vmem:[#allocation8 + $0xf8] sm:$0xff] %v8893_v27  ;;  %v8896_v34 = vadd.f32 %v2480_v32, %v11062_v37  ;;  %v3431_v35 = vpop.f32.mrb[13].mxu0  ;;  %5713 = vmatmul.mubr.f32.gmra.mrb[118].mxu0 %v10425_v33  ;;  %3816 = vmatprep.mubr.f32.mxu1 %v10426_v36  ;;  %v10437_v32 = vld [vmem:[#allocation2 + $0x8a0] sm:$0xff] }
 0x2b9   :  { %v8895_v38 = vadd.f32 %v8894_v29, %v3429_v30  ;;  %5718 = vmatprep.mubr.f32.mxu0 %v10426_v36 }
 0x2ba   :  { %v8897_v39 = vadd.f32 %v8896_v34, %v3431_v35  ;;  %v2484_v40 = vpop.f32.mrb[14].mxu1  ;;  %v10438_v35 = vld [vmem:[#allocation2 + $0x908] sm:$0xff] }
 0x2bb   :  { %7484 = vst [vmem:[#allocation8 + $0x120] sm:$0xff] %v8895_v38  ;;  %v8898_v41 = vadd.f32 %v2484_v40, %v11060_v31  ;;  %v3435_v42 = vpop.f32.mrb[14].mxu0  ;;  %v2486_v43 = vpop.f32.mrb[15].mxu1  ;;  %3817 = vmatmul.mubr.f32.gmra.mrb[120].mxu1 %v10427_v44 }
 0x2bc   :  { %7485 = vst [vmem:[#allocation8 + $0x128] sm:$0xff] %v8897_v39  ;;  %v8900_v45 = vadd.f32 %v2486_v43, %v11062_v37  ;;  %v3437_v46 = vpop.f32.mrb[15].mxu0  ;;  %5719 = vmatmul.mubr.f32.gmra.mrb[120].mxu0 %v10427_v44  ;;  %3822 = vmatprep.mubr.f32.mxu1 %v10428_v47  ;;  %v10439_v43 = vld [vmem:[#allocation2 + $0x900] sm:$0xff] }
 0x2bd   :  { %v8899_v48 = vadd.f32 %v8898_v41, %v3435_v42  ;;  %5724 = vmatprep.mubr.f32.mxu0 %v10428_v47 }
 0x2be   :  { %v8901_v49 = vadd.f32 %v8900_v45, %v3437_v46  ;;  %v2490_v50 = vpop.f32.mrb[16].mxu1  ;;  %v10440_v46 = vld [vmem:[#allocation2 + $0x968] sm:$0xff] }
 0x2bf   :  { %7490 = vst [vmem:[#allocation8 + $0x150] sm:$0xff] %v8899_v48  ;;  %v8902_v51 = vadd.f32 %v2490_v50, %v11060_v31  ;;  %v3441_v52 = vpop.f32.mrb[16].mxu0  ;;  %v2492_v53 = vpop.f32.mrb[17].mxu1  ;;  %3823 = vmatmul.mubr.f32.gmra.mrb[122].mxu1 %v10429_v54 }
 0x2c0   :  { %7491 = vst [vmem:[#allocation8 + $0x158] sm:$0xff] %v8901_v49  ;;  %v8904_v55 = vadd.f32 %v2492_v53, %v11062_v37  ;;  %v3443_v56 = vpop.f32.mrb[17].mxu0  ;;  %5725 = vmatmul.mubr.f32.gmra.mrb[122].mxu0 %v10429_v54  ;;  %3828 = vmatprep.mubr.f32.mxu1 %v10430_v57  ;;  %v10441_v53 = vld [vmem:[#allocation2 + $0x960] sm:$0xff] }
 0x2c1   :  { %v8903_v58 = vadd.f32 %v8902_v51, %v3441_v52  ;;  %5730 = vmatprep.mubr.f32.mxu0 %v10430_v57 }
 0x2c2   :  { %v8905_v59 = vadd.f32 %v8904_v55, %v3443_v56  ;;  %v2496_v60 = vpop.f32.mrb[18].mxu1  ;;  %v10442_v56 = vld [vmem:[#allocation2 + $0x9c8] sm:$0xff] }
 0x2c3   :  { %7496 = vst [vmem:[#allocation8 + $0x180] sm:$0xff] %v8903_v58  ;;  %v8906_v61 = vadd.f32 %v2496_v60, %v11060_v31  ;;  %v3447_v62 = vpop.f32.mrb[18].mxu0  ;;  %v2498_v0 = vpop.f32.mrb[19].mxu1  ;;  %3829 = vmatmul.mubr.f32.gmra.mrb[124].mxu1 %v10431_v1 }
 0x2c4   :  { %7497 = vst [vmem:[#allocation8 + $0x188] sm:$0xff] %v8905_v59  ;;  %v8908_v2 = vadd.f32 %v2498_v0, %v11062_v37  ;;  %v3449_v3 = vpop.f32.mrb[19].mxu0  ;;  %5731 = vmatmul.mubr.f32.gmra.mrb[124].mxu0 %v10431_v1  ;;  %3834 = vmatprep.mubr.f32.mxu1 %v10432_v4  ;;  %v10443_v0 = vld [vmem:[#allocation2 + $0x9c0] sm:$0xff] }
 0x2c5   :  { %v8907_v5 = vadd.f32 %v8906_v61, %v3447_v62  ;;  %5736 = vmatprep.mubr.f32.mxu0 %v10432_v4 }
 0x2c6   :  { %v8909_v6 = vadd.f32 %v8908_v2, %v3449_v3  ;;  %v2502_v7 = vpop.f32.mrb[20].mxu1  ;;  %v10444_v3 = vld [vmem:[#allocation2 + $0xa28] sm:$0xff] }
 0x2c7   :  { %7502 = vst [vmem:[#allocation8 + $0x1b0] sm:$0xff] %v8907_v5  ;;  %v8910_v8 = vadd.f32 %v2502_v7, %v11060_v31  ;;  %v3453_v9 = vpop.f32.mrb[20].mxu0  ;;  %v2504_v10 = vpop.f32.mrb[21].mxu1  ;;  %3835 = vmatmul.mubr.f32.gmra.mrb[126].mxu1 %v10433_v11 }
 0x2c8   :  { %7503 = vst [vmem:[#allocation8 + $0x1b8] sm:$0xff] %v8909_v6  ;;  %v8912_v12 = vadd.f32 %v2504_v10, %v11062_v37  ;;  %v3455_v13 = vpop.f32.mrb[21].mxu0  ;;  %5737 = vmatmul.mubr.f32.gmra.mrb[126].mxu0 %v10433_v11  ;;  %3840 = vmatprep.mubr.f32.mxu1 %v10434_v14  ;;  %v10445_v10 = vld [vmem:[#allocation2 + $0xa20] sm:$0xff] }
 0x2c9   :  { %v8911_v15 = vadd.f32 %v8910_v8, %v3453_v9  ;;  %5742 = vmatprep.mubr.f32.mxu0 %v10434_v14 }
 0x2ca   :  { %v8913_v16 = vadd.f32 %v8912_v12, %v3455_v13  ;;  %v2508_v17 = vpop.f32.mrb[22].mxu1  ;;  %v10446_v13 = vld [vmem:[#allocation2 + $0xa88] sm:$0xff] }
 0x2cb   :  { %7508 = vst [vmem:[#allocation8 + $0x1e0] sm:$0xff] %v8911_v15  ;;  %v8914_v18 = vadd.f32 %v2508_v17, %v11060_v31  ;;  %v3459_v19 = vpop.f32.mrb[22].mxu0  ;;  %v2510_v20 = vpop.f32.mrb[23].mxu1  ;;  %3841 = vmatmul.mubr.f32.gmra.mrb[128].mxu1 %v10435_v21 }
 0x2cc   :  { %7509 = vst [vmem:[#allocation8 + $0x1e8] sm:$0xff] %v8913_v16  ;;  %v8916_v22 = vadd.f32 %v2510_v20, %v11062_v37  ;;  %v3461_v23 = vpop.f32.mrb[23].mxu0  ;;  %5743 = vmatmul.mubr.f32.gmra.mrb[128].mxu0 %v10435_v21  ;;  %3846 = vmatprep.mubr.f32.mxu1 %v10436_v24  ;;  %v10447_v20 = vld [vmem:[#allocation2 + $0xa80] sm:$0xff] }
 0x2cd   :  { %v8915_v25 = vadd.f32 %v8914_v18, %v3459_v19  ;;  %5748 = vmatprep.mubr.f32.mxu0 %v10436_v24 }
 0x2ce   :  { %v8917_v26 = vadd.f32 %v8916_v22, %v3461_v23  ;;  %v2514_v27 = vpop.f32.mrb[24].mxu1  ;;  %v10448_v23 = vld [vmem:[#allocation2 + $0xae8] sm:$0xff] }
 0x2cf   :  { %7514 = vst [vmem:[#allocation8 + $0x210] sm:$0xff] %v8915_v25  ;;  %v8918_v28 = vadd.f32 %v2514_v27, %v11060_v31  ;;  %v3465_v29 = vpop.f32.mrb[24].mxu0  ;;  %v2516_v30 = vpop.f32.mrb[25].mxu1  ;;  %3847 = vmatmul.mubr.f32.gmra.mrb[130].mxu1 %v10437_v32 }
 0x2d0   :  { %7515 = vst [vmem:[#allocation8 + $0x218] sm:$0xff] %v8917_v26  ;;  %v8920_v33 = vadd.f32 %v2516_v30, %v11062_v37  ;;  %v3467_v34 = vpop.f32.mrb[25].mxu0  ;;  %5749 = vmatmul.mubr.f32.gmra.mrb[130].mxu0 %v10437_v32  ;;  %3852 = vmatprep.mubr.f32.mxu1 %v10438_v35  ;;  %v10449_v30 = vld [vmem:[#allocation2 + $0xae0] sm:$0xff] }
 0x2d1   :  { %v8919_v36 = vadd.f32 %v8918_v28, %v3465_v29  ;;  %5754 = vmatprep.mubr.f32.mxu0 %v10438_v35 }
 0x2d2   :  { %v8921_v38 = vadd.f32 %v8920_v33, %v3467_v34  ;;  %v2520_v39 = vpop.f32.mrb[26].mxu1  ;;  %v10450_v34 = vld [vmem:[#allocation2 + $0xb48] sm:$0xff] }
 0x2d3   :  { %7520 = vst [vmem:[#allocation8 + $0x240] sm:$0xff] %v8919_v36  ;;  %v8922_v40 = vadd.f32 %v2520_v39, %v11060_v31  ;;  %v3471_v41 = vpop.f32.mrb[26].mxu0  ;;  %v2522_v42 = vpop.f32.mrb[27].mxu1  ;;  %3853 = vmatmul.mubr.f32.gmra.mrb[132].mxu1 %v10439_v43 }
 0x2d4   :  { %7521 = vst [vmem:[#allocation8 + $0x248] sm:$0xff] %v8921_v38  ;;  %v8924_v44 = vadd.f32 %v2522_v42, %v11062_v37  ;;  %v3473_v45 = vpop.f32.mrb[27].mxu0  ;;  %5755 = vmatmul.mubr.f32.gmra.mrb[132].mxu0 %v10439_v43  ;;  %3858 = vmatprep.mubr.f32.mxu1 %v10440_v46  ;;  %v10451_v42 = vld [vmem:[#allocation2 + $0xb40] sm:$0xff] }
 0x2d5   :  { %v8923_v47 = vadd.f32 %v8922_v40, %v3471_v41  ;;  %5760 = vmatprep.mubr.f32.mxu0 %v10440_v46 }
 0x2d6   :  { %v8925_v48 = vadd.f32 %v8924_v44, %v3473_v45  ;;  %v2526_v49 = vpop.f32.mrb[28].mxu1  ;;  %v10452_v45 = vld [vmem:[#allocation2 + $0xba8] sm:$0xff] }
 0x2d7   :  { %7526 = vst [vmem:[#allocation8 + $0x270] sm:$0xff] %v8923_v47  ;;  %v8926_v50 = vadd.f32 %v2526_v49, %v11060_v31  ;;  %v3477_v51 = vpop.f32.mrb[28].mxu0  ;;  %v2528_v52 = vpop.f32.mrb[29].mxu1  ;;  %3859 = vmatmul.mubr.f32.gmra.mrb[134].mxu1 %v10441_v53 }
 0x2d8   :  { %7527 = vst [vmem:[#allocation8 + $0x278] sm:$0xff] %v8925_v48  ;;  %v8928_v54 = vadd.f32 %v2528_v52, %v11062_v37  ;;  %v3479_v55 = vpop.f32.mrb[29].mxu0  ;;  %5761 = vmatmul.mubr.f32.gmra.mrb[134].mxu0 %v10441_v53  ;;  %3864 = vmatprep.mubr.f32.mxu1 %v10442_v56  ;;  %v10453_v52 = vld [vmem:[#allocation2 + $0xba0] sm:$0xff] }
 0x2d9   :  { %v8927_v57 = vadd.f32 %v8926_v50, %v3477_v51  ;;  %5766 = vmatprep.mubr.f32.mxu0 %v10442_v56 }
 0x2da   :  { %v8929_v58 = vadd.f32 %v8928_v54, %v3479_v55  ;;  %v2532_v59 = vpop.f32.mrb[30].mxu1  ;;  %v10454_v55 = vld [vmem:[#allocation2 + $0xc08] sm:$0xff] }
 0x2db   :  { %7532 = vst [vmem:[#allocation8 + $0x2a0] sm:$0xff] %v8927_v57  ;;  %v8930_v60 = vadd.f32 %v2532_v59, %v11060_v31  ;;  %v3483_v61 = vpop.f32.mrb[30].mxu0  ;;  %v2534_v62 = vpop.f32.mrb[31].mxu1  ;;  %3865 = vmatmul.mubr.f32.gmra.mrb[136].mxu1 %v10443_v0 }
 0x2dc   :  { %7533 = vst [vmem:[#allocation8 + $0x2a8] sm:$0xff] %v8929_v58  ;;  %v8932_v1 = vadd.f32 %v2534_v62, %v11062_v37  ;;  %v3485_v2 = vpop.f32.mrb[31].mxu0  ;;  %5767 = vmatmul.mubr.f32.gmra.mrb[136].mxu0 %v10443_v0  ;;  %3870 = vmatprep.mubr.f32.mxu1 %v10444_v3  ;;  %v10455_v62 = vld [vmem:[#allocation2 + $0xc00] sm:$0xff] }
 0x2dd   :  { %v8931_v4 = vadd.f32 %v8930_v60, %v3483_v61  ;;  %5772 = vmatprep.mubr.f32.mxu0 %v10444_v3 }
 0x2de   :  { %v8933_v5 = vadd.f32 %v8932_v1, %v3485_v2  ;;  %v2538_v6 = vpop.f32.mrb[32].mxu1  ;;  %v10456_v2 = vld [vmem:[#allocation2 + $0xc68] sm:$0xff] }
 0x2df   :  { %7538 = vst [vmem:[#allocation8 + $0x2d0] sm:$0xff] %v8931_v4  ;;  %v8934_v7 = vadd.f32 %v2538_v6, %v11060_v31  ;;  %v3489_v8 = vpop.f32.mrb[32].mxu0  ;;  %v2540_v9 = vpop.f32.mrb[33].mxu1  ;;  %3871 = vmatmul.mubr.f32.gmra.mrb[138].mxu1 %v10445_v10 }
 0x2e0   :  { %7539 = vst [vmem:[#allocation8 + $0x2d8] sm:$0xff] %v8933_v5  ;;  %v8936_v11 = vadd.f32 %v2540_v9, %v11062_v37  ;;  %v3491_v12 = vpop.f32.mrb[33].mxu0  ;;  %5773 = vmatmul.mubr.f32.gmra.mrb[138].mxu0 %v10445_v10  ;;  %3876 = vmatprep.mubr.f32.mxu1 %v10446_v13  ;;  %v10457_v9 = vld [vmem:[#allocation2 + $0xc60] sm:$0xff] }
 0x2e1   :  { %v8935_v14 = vadd.f32 %v8934_v7, %v3489_v8  ;;  %5778 = vmatprep.mubr.f32.mxu0 %v10446_v13 }
 0x2e2   :  { %v8937_v15 = vadd.f32 %v8936_v11, %v3491_v12  ;;  %v2544_v16 = vpop.f32.mrb[34].mxu1  ;;  %v10458_v12 = vld [vmem:[#allocation2 + $0xcc8] sm:$0xff] }
 0x2e3   :  { %7544 = vst [vmem:[#allocation8 + $0x300] sm:$0xff] %v8935_v14  ;;  %v8938_v17 = vadd.f32 %v2544_v16, %v11060_v31  ;;  %v3495_v18 = vpop.f32.mrb[34].mxu0  ;;  %v2546_v19 = vpop.f32.mrb[35].mxu1  ;;  %3877 = vmatmul.mubr.f32.gmra.mrb[140].mxu1 %v10447_v20 }
 0x2e4   :  { %7545 = vst [vmem:[#allocation8 + $0x308] sm:$0xff] %v8937_v15  ;;  %v8940_v21 = vadd.f32 %v2546_v19, %v11062_v37  ;;  %v3497_v22 = vpop.f32.mrb[35].mxu0  ;;  %5779 = vmatmul.mubr.f32.gmra.mrb[140].mxu0 %v10447_v20  ;;  %3882 = vmatprep.mubr.f32.mxu1 %v10448_v23  ;;  %v10459_v19 = vld [vmem:[#allocation2 + $0xcc0] sm:$0xff] }
 0x2e5   :  { %v8939_v24 = vadd.f32 %v8938_v17, %v3495_v18  ;;  %5784 = vmatprep.mubr.f32.mxu0 %v10448_v23 }
 0x2e6   :  { %v8941_v25 = vadd.f32 %v8940_v21, %v3497_v22  ;;  %v2550_v26 = vpop.f32.mrb[36].mxu1  ;;  %v10460_v22 = vld [vmem:[#allocation2 + $0xd28] sm:$0xff] }
 0x2e7   :  { %7550 = vst [vmem:[#allocation8 + $0x330] sm:$0xff] %v8939_v24  ;;  %v8942_v27 = vadd.f32 %v2550_v26, %v11060_v31  ;;  %v3501_v28 = vpop.f32.mrb[36].mxu0  ;;  %v2552_v29 = vpop.f32.mrb[37].mxu1  ;;  %3883 = vmatmul.mubr.f32.gmra.mrb[142].mxu1 %v10449_v30 }
 0x2e8   :  { %7551 = vst [vmem:[#allocation8 + $0x338] sm:$0xff] %v8941_v25  ;;  %v8944_v32 = vadd.f32 %v2552_v29, %v11062_v37  ;;  %v3503_v33 = vpop.f32.mrb[37].mxu0  ;;  %5785 = vmatmul.mubr.f32.gmra.mrb[142].mxu0 %v10449_v30  ;;  %3888 = vmatprep.mubr.f32.mxu1 %v10450_v34  ;;  %v10461_v29 = vld [vmem:[#allocation2 + $0xd20] sm:$0xff] }
 0x2e9   :  { %v8943_v35 = vadd.f32 %v8942_v27, %v3501_v28  ;;  %5790 = vmatprep.mubr.f32.mxu0 %v10450_v34 }
 0x2ea   :  { %v8945_v36 = vadd.f32 %v8944_v32, %v3503_v33  ;;  %v2556_v38 = vpop.f32.mrb[38].mxu1  ;;  %v10462_v33 = vld [vmem:[#allocation2 + $0xd88] sm:$0xff] }
 0x2eb   :  { %7556 = vst [vmem:[#allocation8 + $0x360] sm:$0xff] %v8943_v35  ;;  %v8946_v39 = vadd.f32 %v2556_v38, %v11060_v31  ;;  %v3507_v40 = vpop.f32.mrb[38].mxu0  ;;  %v2558_v41 = vpop.f32.mrb[39].mxu1  ;;  %3889 = vmatmul.mubr.f32.gmra.mrb[144].mxu1 %v10451_v42 }
 0x2ec   :  { %7557 = vst [vmem:[#allocation8 + $0x368] sm:$0xff] %v8945_v36  ;;  %v8948_v43 = vadd.f32 %v2558_v41, %v11062_v37  ;;  %v3509_v44 = vpop.f32.mrb[39].mxu0  ;;  %5791 = vmatmul.mubr.f32.gmra.mrb[144].mxu0 %v10451_v42  ;;  %3894 = vmatprep.mubr.f32.mxu1 %v10452_v45  ;;  %v10463_v41 = vld [vmem:[#allocation2 + $0xd80] sm:$0xff] }
 0x2ed   :  { %v8947_v46 = vadd.f32 %v8946_v39, %v3507_v40  ;;  %5796 = vmatprep.mubr.f32.mxu0 %v10452_v45 }
 0x2ee   :  { %v8949_v47 = vadd.f32 %v8948_v43, %v3509_v44  ;;  %v2562_v48 = vpop.f32.mrb[40].mxu1  ;;  %v10464_v44 = vld [vmem:[#allocation2 + $0xde8] sm:$0xff] }
 0x2ef   :  { %7562 = vst [vmem:[#allocation8 + $0x390] sm:$0xff] %v8947_v46  ;;  %v8950_v49 = vadd.f32 %v2562_v48, %v11060_v31  ;;  %v3513_v50 = vpop.f32.mrb[40].mxu0  ;;  %v2564_v51 = vpop.f32.mrb[41].mxu1  ;;  %3895 = vmatmul.mubr.f32.gmra.mrb[146].mxu1 %v10453_v52 }
 0x2f0   :  { %7563 = vst [vmem:[#allocation8 + $0x398] sm:$0xff] %v8949_v47  ;;  %v8952_v53 = vadd.f32 %v2564_v51, %v11062_v37  ;;  %v3515_v54 = vpop.f32.mrb[41].mxu0  ;;  %5797 = vmatmul.mubr.f32.gmra.mrb[146].mxu0 %v10453_v52  ;;  %3900 = vmatprep.mubr.f32.mxu1 %v10454_v55  ;;  %v10465_v51 = vld [vmem:[#allocation2 + $0xde0] sm:$0xff] }
 0x2f1   :  { %v8951_v56 = vadd.f32 %v8950_v49, %v3513_v50  ;;  %5802 = vmatprep.mubr.f32.mxu0 %v10454_v55 }
 0x2f2   :  { %v8953_v57 = vadd.f32 %v8952_v53, %v3515_v54  ;;  %v2568_v58 = vpop.f32.mrb[42].mxu1  ;;  %v10466_v54 = vld [vmem:[#allocation2 + $0xe48] sm:$0xff] }
 0x2f3   :  { %7568 = vst [vmem:[#allocation8 + $0x3c0] sm:$0xff] %v8951_v56  ;;  %v8954_v59 = vadd.f32 %v2568_v58, %v11060_v31  ;;  %v3519_v60 = vpop.f32.mrb[42].mxu0  ;;  %v2570_v61 = vpop.f32.mrb[43].mxu1  ;;  %3901 = vmatmul.mubr.f32.gmra.mrb[148].mxu1 %v10455_v62 }
 0x2f4   :  { %7569 = vst [vmem:[#allocation8 + $0x3c8] sm:$0xff] %v8953_v57  ;;  %v8956_v0 = vadd.f32 %v2570_v61, %v11062_v37  ;;  %v3521_v1 = vpop.f32.mrb[43].mxu0  ;;  %5803 = vmatmul.mubr.f32.gmra.mrb[148].mxu0 %v10455_v62  ;;  %3906 = vmatprep.mubr.f32.mxu1 %v10456_v2  ;;  %v10467_v61 = vld [vmem:[#allocation2 + $0xe40] sm:$0xff] }
 0x2f5   :  { %v8955_v3 = vadd.f32 %v8954_v59, %v3519_v60  ;;  %5808 = vmatprep.mubr.f32.mxu0 %v10456_v2 }
 0x2f6   :  { %v8957_v4 = vadd.f32 %v8956_v0, %v3521_v1  ;;  %v2574_v5 = vpop.f32.mrb[44].mxu1  ;;  %v10468_v1 = vld [vmem:[#allocation2 + $0xea8] sm:$0xff] }
 0x2f7   :  { %7574 = vst [vmem:[#allocation8 + $0x3f0] sm:$0xff] %v8955_v3  ;;  %v8958_v6 = vadd.f32 %v2574_v5, %v11060_v31  ;;  %v3525_v7 = vpop.f32.mrb[44].mxu0  ;;  %v2576_v8 = vpop.f32.mrb[45].mxu1  ;;  %3907 = vmatmul.mubr.f32.gmra.mrb[150].mxu1 %v10457_v9 }
 0x2f8   :  { %7575 = vst [vmem:[#allocation8 + $0x3f8] sm:$0xff] %v8957_v4  ;;  %v8960_v10 = vadd.f32 %v2576_v8, %v11062_v37  ;;  %v3527_v11 = vpop.f32.mrb[45].mxu0  ;;  %5809 = vmatmul.mubr.f32.gmra.mrb[150].mxu0 %v10457_v9  ;;  %3912 = vmatprep.mubr.f32.mxu1 %v10458_v12  ;;  %v10469_v8 = vld [vmem:[#allocation2 + $0xea0] sm:$0xff] }
 0x2f9   :  { %v8959_v13 = vadd.f32 %v8958_v6, %v3525_v7  ;;  %5814 = vmatprep.mubr.f32.mxu0 %v10458_v12 }
 0x2fa   :  { %v8961_v14 = vadd.f32 %v8960_v10, %v3527_v11  ;;  %v2580_v15 = vpop.f32.mrb[46].mxu1  ;;  %v10470_v11 = vld [vmem:[#allocation2 + $0xf08] sm:$0xff] }
 0x2fb   :  { %7580 = vst [vmem:[#allocation8 + $0x420] sm:$0xff] %v8959_v13  ;;  %v8962_v16 = vadd.f32 %v2580_v15, %v11060_v31  ;;  %v3531_v17 = vpop.f32.mrb[46].mxu0  ;;  %v2582_v18 = vpop.f32.mrb[47].mxu1  ;;  %3913 = vmatmul.mubr.f32.gmra.mrb[152].mxu1 %v10459_v19 }
 0x2fc   :  { %7581 = vst [vmem:[#allocation8 + $0x428] sm:$0xff] %v8961_v14  ;;  %v8964_v20 = vadd.f32 %v2582_v18, %v11062_v37  ;;  %v3533_v21 = vpop.f32.mrb[47].mxu0  ;;  %5815 = vmatmul.mubr.f32.gmra.mrb[152].mxu0 %v10459_v19  ;;  %3918 = vmatprep.mubr.f32.mxu1 %v10460_v22  ;;  %v10471_v18 = vld [vmem:[#allocation2 + $0xf00] sm:$0xff] }
 0x2fd   :  { %v8963_v23 = vadd.f32 %v8962_v16, %v3531_v17  ;;  %5820 = vmatprep.mubr.f32.mxu0 %v10460_v22 }
 0x2fe   :  { %v8965_v24 = vadd.f32 %v8964_v20, %v3533_v21  ;;  %v2586_v25 = vpop.f32.mrb[48].mxu1  ;;  %v10472_v21 = vld [vmem:[#allocation2 + $0xf68] sm:$0xff] }
 0x2ff   :  { %7586 = vst [vmem:[#allocation8 + $0x450] sm:$0xff] %v8963_v23  ;;  %v8966_v26 = vadd.f32 %v2586_v25, %v11060_v31  ;;  %v3537_v27 = vpop.f32.mrb[48].mxu0  ;;  %v2588_v28 = vpop.f32.mrb[49].mxu1  ;;  %3919 = vmatmul.mubr.f32.gmra.mrb[154].mxu1 %v10461_v29  ;;  %v944_v23 = vld [vmem:[#allocation5 + $0xc10] sm:$0xff] }
 0x300   :  { %7587 = vst [vmem:[#allocation8 + $0x458] sm:$0xff] %v8965_v24  ;;  %v8968_v30 = vadd.f32 %v2588_v28, %v11062_v37  ;;  %v3539_v32 = vpop.f32.mrb[49].mxu0  ;;  %5821 = vmatmul.mubr.f32.gmra.mrb[154].mxu0 %v10461_v29  ;;  %3924 = vmatprep.mubr.f32.mxu1 %v10462_v33  ;;  %v950_v24 = vld [vmem:[#allocation5 + $0xc40] sm:$0xff]  ;;  %v952_v28 = vld [vmem:[#allocation5 + $0xc50] sm:$0xff] }
 0x301   :  { %v8967_v34 = vadd.f32 %v8966_v26, %v3537_v27  ;;  %5826 = vmatprep.mubr.f32.mxu0 %v10462_v33  ;;  %v946_v27 = vld [vmem:[#allocation5 + $0xc20] sm:$0xff] }
 0x302   :  { %v8969_v35 = vadd.f32 %v8968_v30, %v3539_v32  ;;  %v2592_v36 = vpop.f32.mrb[50].mxu1  ;;  %v10473_v33 = vld [vmem:[#allocation2 + $0xf60] sm:$0xff] }
 0x303   :  { %7592 = vst [vmem:[#allocation8 + $0x480] sm:$0xff] %v8967_v34  ;;  %v8970_v38 = vadd.f32 %v2592_v36, %v11060_v31  ;;  %v3543_v39 = vpop.f32.mrb[50].mxu0  ;;  %v2594_v40 = vpop.f32.mrb[51].mxu1  ;;  %3925 = vmatmul.mubr.f32.gmra.mrb[156].mxu1 %v10463_v41  ;;  %v957_v34 = vld [vmem:[#allocation5 + $0xc78] sm:$0xff] }
 0x304   :  { %7593 = vst [vmem:[#allocation8 + $0x488] sm:$0xff] %v8969_v35  ;;  %v8972_v42 = vadd.f32 %v2594_v40, %v11062_v37  ;;  %v3545_v43 = vpop.f32.mrb[51].mxu0  ;;  %5827 = vmatmul.mubr.f32.gmra.mrb[156].mxu0 %v10463_v41  ;;  %3930 = vmatprep.mubr.f32.mxu1 %v10464_v44  ;;  %v963_v35 = vld [vmem:[#allocation5 + $0xca8] sm:$0xff]  ;;  %v8232_v40 = vpack.c.bf16 %v950_v24, %v944_v23 }
 0x305   :  { %v8971_v45 = vadd.f32 %v8970_v38, %v3543_v39  ;;  %5832 = vmatprep.mubr.f32.mxu0 %v10464_v44  ;;  %v10474_v39 = vld [vmem:[#allocation2 + $0x18] sm:$0xff]  ;;  %v959_v41 = vld [vmem:[#allocation5 + $0xc88] sm:$0xff]  ;;  %v8616_v44 = vpack.c.bf16 %v952_v28, %v946_v27 }
 0x306   :  { %v8973_v46 = vadd.f32 %v8972_v42, %v3545_v43  ;;  %v2598_v47 = vpop.f32.mrb[52].mxu1  ;;  %v965_v42 = vld [vmem:[#allocation5 + $0xcb8] sm:$0xff] }
 0x307   :  { %7598 = vst [vmem:[#allocation8 + $0x4b0] sm:$0xff] %v8971_v45  ;;  %v8974_v48 = vadd.f32 %v2598_v47, %v11060_v31  ;;  %v3549_v49 = vpop.f32.mrb[52].mxu0  ;;  %v2600_v50 = vpop.f32.mrb[53].mxu1  ;;  %3931 = vmatmul.mubr.f32.gmra.mrb[158].mxu1 %v10465_v51  ;;  %v8234_v47 = vpack.c.bf16 %v963_v35, %v957_v34 }
 0x308   :  { %7599 = vst [vmem:[#allocation8 + $0x4b8] sm:$0xff] %v8973_v46  ;;  %v8976_v52 = vadd.f32 %v2600_v50, %v11062_v37  ;;  %v3551_v53 = vpop.f32.mrb[53].mxu0  ;;  %5833 = vmatmul.mubr.f32.gmra.mrb[158].mxu0 %v10465_v51  ;;  %3936 = vmatprep.mubr.f32.mxu1 %v10466_v54  ;;  %v958_v50 = vld [vmem:[#allocation5 + $0xc80] sm:$0xff] }
 0x309   :  { %v8975_v55 = vadd.f32 %v8974_v48, %v3549_v49  ;;  %5838 = vmatprep.mubr.f32.mxu0 %v10466_v54  ;;  %v956_v48 = vld [vmem:[#allocation5 + $0xc70] sm:$0xff]  ;;  %v962_v49 = vld [vmem:[#allocation5 + $0xca0] sm:$0xff] }
 0x30a   :  { %v8977_v56 = vadd.f32 %v8976_v52, %v3551_v53  ;;  %v2604_v57 = vpop.f32.mrb[54].mxu1  ;;  %v10475_v54 = vld [vmem:[#allocation2 + $0x10] sm:$0xff] }
 0x30b   :  { %7604 = vst [vmem:[#allocation8 + $0x4e0] sm:$0xff] %v8975_v55  ;;  %v8978_v58 = vadd.f32 %v2604_v57, %v11060_v31  ;;  %v3555_v59 = vpop.f32.mrb[54].mxu0  ;;  %v2606_v60 = vpop.f32.mrb[55].mxu1  ;;  %3937 = vmatmul.mubr.f32.gmra.mrb[160].mxu1 %v10467_v61  ;;  %v8618_v55 = vpack.c.bf16 %v965_v42, %v959_v41  ;;  %v969_v57 = vld [vmem:[#allocation5 + $0xcd8] sm:$0xff]  ;;  %v999_v41 = vld [vmem:[#allocation5 + $0xdc8] sm:$0xff] }
 0x30c   :  { %7605 = vst [vmem:[#allocation8 + $0x4e8] sm:$0xff] %v8977_v56  ;;  %v8980_v62 = vadd.f32 %v2606_v60, %v11062_v37  ;;  %v3557_v0 = vpop.f32.mrb[55].mxu0  ;;  %5839 = vmatmul.mubr.f32.gmra.mrb[160].mxu0 %v10467_v61  ;;  %3942 = vmatprep.mubr.f32.mxu1 %v10468_v1  ;;  %v964_v56 = vld [vmem:[#allocation5 + $0xcb0] sm:$0xff]  ;;  %v971_v61 = vld [vmem:[#allocation5 + $0xce8] sm:$0xff] }
 0x30d   :  { %v8979_v2 = vadd.f32 %v8978_v58, %v3555_v59  ;;  %5844 = vmatprep.mubr.f32.mxu0 %v10468_v1  ;;  %v975_v58 = vld [vmem:[#allocation5 + $0xd08] sm:$0xff]  ;;  %v10476_v1 = vld [vmem:[#allocation2 + $0x78] sm:$0xff] }
 0x30e   :  { %v8981_v3 = vadd.f32 %v8980_v62, %v3557_v0  ;;  %v2610_v4 = vpop.f32.mrb[56].mxu1  ;;  %v977_v62 = vld [vmem:[#allocation5 + $0xd18] sm:$0xff] }
 0x30f   :  { %7610 = vst [vmem:[#allocation8 + $0x510] sm:$0xff] %v8979_v2  ;;  %v8982_v5 = vadd.f32 %v2610_v4, %v11060_v31  ;;  %v3561_v6 = vpop.f32.mrb[56].mxu0  ;;  %v2612_v7 = vpop.f32.mrb[57].mxu1  ;;  %3943 = vmatmul.mubr.f32.gmra.mrb[162].mxu1 %v10469_v8  ;;  %v8236_v2 = vpack.c.bf16 %v962_v49, %v956_v48 }
 0x310   :  { %7611 = vst [vmem:[#allocation8 + $0x518] sm:$0xff] %v8981_v3  ;;  %v8984_v9 = vadd.f32 %v2612_v7, %v11062_v37  ;;  %v3563_v10 = vpop.f32.mrb[57].mxu0  ;;  %5845 = vmatmul.mubr.f32.gmra.mrb[162].mxu0 %v10469_v8  ;;  %3948 = vmatprep.mubr.f32.mxu1 %v10470_v11  ;;  %v968_v7 = vld [vmem:[#allocation5 + $0xcd0] sm:$0xff]  ;;  %v974_v8 = vld [vmem:[#allocation5 + $0xd00] sm:$0xff] }
 0x311   :  { %v8983_v12 = vadd.f32 %v8982_v5, %v3561_v6  ;;  %5850 = vmatprep.mubr.f32.mxu0 %v10470_v11  ;;  %v8620_v5 = vpack.c.bf16 %v964_v56, %v958_v50  ;;  %v8238_v6 = vpack.c.bf16 %v975_v58, %v969_v57  ;;  %v8240_v24 = vpack.c.bf16 %v974_v8, %v968_v7 }
 0x312   :  { %v8985_v13 = vadd.f32 %v8984_v9, %v3563_v10  ;;  %v2616_v14 = vpop.f32.mrb[58].mxu1  ;;  %v970_v9 = vld [vmem:[#allocation5 + $0xce0] sm:$0xff] }
 0x313   :  { %7616 = vst [vmem:[#allocation8 + $0x540] sm:$0xff] %v8983_v12  ;;  %v8986_v15 = vadd.f32 %v2616_v14, %v11060_v31  ;;  %v3567_v16 = vpop.f32.mrb[58].mxu0  ;;  %v2618_v17 = vpop.f32.mrb[59].mxu1  ;;  %3949 = vmatmul.mubr.f32.gmra.mrb[164].mxu1 %v10471_v18  ;;  %v8622_v14 = vpack.c.bf16 %v977_v62, %v971_v61  ;;  %v1000_v61 = vld [vmem:[#allocation5 + $0xdd0] sm:$0xff]  ;;  %v1005_v62 = vld [vmem:[#allocation5 + $0xdf8] sm:$0xff] }
 0x314   :  { %7617 = vst [vmem:[#allocation8 + $0x548] sm:$0xff] %v8985_v13  ;;  %v8988_v19 = vadd.f32 %v2618_v17, %v11062_v37  ;;  %v3569_v20 = vpop.f32.mrb[59].mxu0  ;;  %5851 = vmatmul.mubr.f32.gmra.mrb[164].mxu0 %v10471_v18  ;;  %3954 = vmatprep.mubr.f32.mxu1 %v10472_v21  ;;  %v10477_v13 = vld [vmem:[#allocation2 + $0x70] sm:$0xff]  ;;  %v987_v17 = vld [vmem:[#allocation5 + $0xd68] sm:$0xff] }
 0x315   :  { %v8987_v22 = vadd.f32 %v8986_v15, %v3567_v16  ;;  %5856 = vmatprep.mubr.f32.mxu0 %v10472_v21  ;;  %v976_v15 = vld [vmem:[#allocation5 + $0xd10] sm:$0xff]  ;;  %v981_v16 = vld [vmem:[#allocation5 + $0xd38] sm:$0xff]  ;;  %v983_v21 = vld [vmem:[#allocation5 + $0xd48] sm:$0xff] }
 0x316   :  { %v8989_v25 = vadd.f32 %v8988_v19, %v3569_v20  ;;  %v2622_v26 = vpop.f32.mrb[60].mxu1  ;;  %v10478_v20 = vld [vmem:[#allocation2 + $0xd8] sm:$0xff]  ;;  %v8624_v27 = vpack.c.bf16 %v976_v15, %v970_v9  ;;  %v8242_v28 = vpack.c.bf16 %v987_v17, %v981_v16 }
 0x317   :  { %7622 = vst [vmem:[#allocation8 + $0x570] sm:$0xff] %v8987_v22  ;;  %v8990_v29 = vadd.f32 %v2622_v26, %v11060_v31  ;;  %v3573_v30 = vpop.f32.mrb[60].mxu0  ;;  %v2624_v32 = vpop.f32.mrb[61].mxu1  ;;  %3955 = vmatmul.mubr.f32.gmra.mrb[166].mxu1 %v10473_v33  ;;  %v989_v22 = vld [vmem:[#allocation5 + $0xd78] sm:$0xff] }
 0x318   :  { %7623 = vst [vmem:[#allocation8 + $0x578] sm:$0xff] %v8989_v25  ;;  %v8992_v36 = vadd.f32 %v2624_v32, %v11062_v37  ;;  %v3575_v38 = vpop.f32.mrb[61].mxu0  ;;  %5857 = vmatmul.mubr.f32.gmra.mrb[166].mxu0 %v10473_v33  ;;  %4025 = vmatprep.mubr.f32.mxu1 %v10474_v39  ;;  %v982_v32 = vld [vmem:[#allocation5 + $0xd40] sm:$0xff] }
 0x319   :  { %v8991_v43 = vadd.f32 %v8990_v29, %v3573_v30  ;;  %5927 = vmatprep.mubr.f32.mxu0 %v10474_v39  ;;  %v980_v29 = vld [vmem:[#allocation5 + $0xd30] sm:$0xff]  ;;  %v986_v30 = vld [vmem:[#allocation5 + $0xd60] sm:$0xff] }
 0x31a   :  { %v8993_v45 = vadd.f32 %v8992_v36, %v3575_v38  ;;  %v2628_v46 = vpop.f32.mrb[62].mxu1  ;;  %v10479_v36 = vld [vmem:[#allocation2 + $0xd0] sm:$0xff]  ;;  %v8626_v38 = vpack.c.bf16 %v989_v22, %v983_v21  ;;  %v8244_v48 = vpack.c.bf16 %v986_v30, %v980_v29  ;;  %v1017_v21 = vld [vmem:[#allocation5 + $0xe58] sm:$0xff]  ;;  %v1023_v22 = vld [vmem:[#allocation5 + $0xe88] sm:$0xff] }
 0x31b   :  { %7628 = vst [vmem:[#allocation8 + $0x5a0] sm:$0xff] %v8991_v43  ;;  %v8994_v51 = vadd.f32 %v2628_v46, %v11060_v31  ;;  %v3579_v52 = vpop.f32.mrb[62].mxu0  ;;  %v2630_v53 = vpop.f32.mrb[63].mxu1  ;;  %4026 = vmatmul.mubr.f32.vlgmr.msra.gmra.mrb[84].mxu1 %v10475_v54  ;;  %v988_v39 = vld [vmem:[#allocation5 + $0xd70] sm:$0xff]  ;;  %v1001_v46 = vld [vmem:[#allocation5 + $0xdd8] sm:$0xff] }
 0x31c   :  { %7629 = vst [vmem:[#allocation8 + $0x5a8] sm:$0xff] %v8993_v45  ;;  %v8996_v59 = vadd.f32 %v2630_v53, %v11062_v37  ;;  %v3581_v60 = vpop.f32.mrb[63].mxu0  ;;  %5928 = vmatmul.mubr.f32.vlgmr.msra.gmra.mrb[84].mxu0 %v10475_v54  ;;  %8233 = vmatpush1.bf16.msra.mxu1 %v8232_v40  ;;  %v993_v40 = vld [vmem:[#allocation5 + $0xd98] sm:$0xff]  ;;  %v995_v45 = vld [vmem:[#allocation5 + $0xda8] sm:$0xff]  ;;  %v992_v53 = vld [vmem:[#allocation5 + $0xd90] sm:$0xff] }
 0x31d   :  { %v8995_v0 = vadd.f32 %v8994_v51, %v3579_v52  ;;  %8617 = vmatpush1.bf16.msra.mxu0 %v8616_v44  ;;  %4031 = vmatprep.mubr.f32.mxu1 %v10476_v1  ;;  %v10480_v44 = vld [vmem:[#allocation2 + $0x138] sm:$0xff]  ;;  %v8628_v51 = vpack.c.bf16 %v988_v39, %v982_v32  ;;  %v8246_v52 = vpack.c.bf16 %v999_v41, %v993_v40  ;;  %v998_v54 = vld [vmem:[#allocation5 + $0xdc0] sm:$0xff] }
 0x31e   :  { %v8997_v3 = vadd.f32 %v8996_v59, %v3581_v60  ;;  %v2634_v4 = vpop.f32.mrb[64].mxu1  ;;  %5933 = vmatprep.mubr.f32.mxu0 %v10476_v1  ;;  %8235 = vmatprep.subr.bf16.mxu1 %v8234_v47  ;;  %v10481_v59 = vld [vmem:[#allocation2 + $0x130] sm:$0xff]  ;;  %v8630_v60 = vpack.c.bf16 %v1001_v46, %v995_v45  ;;  %v8248_v7 = vpack.c.bf16 %v998_v54, %v992_v53  ;;  %v1029_v45 = vld [vmem:[#allocation5 + $0xeb8] sm:$0xff]  ;;  %v1035_v46 = vld [vmem:[#allocation5 + $0xee8] sm:$0xff] }
 0x31f   :  { %7634 = vst [vmem:[#allocation8 + $0x5d0] sm:$0xff] %v8995_v0  ;;  %v8998_v10 = vadd.f32 %v2634_v4, %v11060_v31  ;;  %v3585_v11 = vpop.f32.mrb[64].mxu0  ;;  %v2636_v12 = vpop.f32.mrb[65].mxu1  ;;  %4032 = vmatmul.mubr.f32.gmra.mrb[86].mxu1 %v10477_v13  ;;  %8619 = vmatprep.subr.bf16.mxu0 %v8618_v55  ;;  %v994_v55 = vld [vmem:[#allocation5 + $0xda0] sm:$0xff]  ;;  %v1011_v0 = vld [vmem:[#allocation5 + $0xe28] sm:$0xff] }
 0x320   :  { %7635 = vst [vmem:[#allocation8 + $0x5d8] sm:$0xff] %v8997_v3  ;;  %v9000_v18 = vadd.f32 %v2636_v12, %v11062_v37  ;;  %v3587_v19 = vpop.f32.mrb[65].mxu0  ;;  %5934 = vmatmul.mubr.f32.gmra.mrb[86].mxu0 %v10477_v13  ;;  %4037 = vmatprep.mubr.f32.mxu1 %v10478_v20  ;;  %v10482_v3 = vld [vmem:[#allocation2 + $0x198] sm:$0xff]  ;;  %v1007_v4 = vld [vmem:[#allocation5 + $0xe08] sm:$0xff]  ;;  %v1004_v12 = vld [vmem:[#allocation5 + $0xdf0] sm:$0xff] }
 0x321   :  { %v8999_v23 = vadd.f32 %v8998_v10, %v3585_v11  ;;  %5939 = vmatprep.mubr.f32.mxu0 %v10478_v20  ;;  %8237 = vmatpush1.bf16.msra.mxu1 %v8236_v2  ;;  %v8632_v10 = vpack.c.bf16 %v1000_v61, %v994_v55  ;;  %v8250_v11 = vpack.c.bf16 %v1011_v0, %v1005_v62  ;;  %v1010_v13 = vld [vmem:[#allocation5 + $0xe20] sm:$0xff]  ;;  %v1012_v20 = vld [vmem:[#allocation5 + $0xe30] sm:$0xff] }
 0x322   :  { %v9001_v25 = vadd.f32 %v9000_v18, %v3587_v19  ;;  %v2640_v26 = vpop.f32.mrb[66].mxu1  ;;  %8621 = vmatpush1.bf16.msra.mxu0 %v8620_v5  ;;  %8239 = vmatprep.subr.bf16.mxu1 %v8238_v6  ;;  %v1013_v5 = vld [vmem:[#allocation5 + $0xe38] sm:$0xff]  ;;  %v10483_v18 = vld [vmem:[#allocation2 + $0x190] sm:$0xff]  ;;  %v8252_v29 = vpack.c.bf16 %v1010_v13, %v1004_v12 }
 0x323   :  { %7640 = vst [vmem:[#allocation8 + $0x600] sm:$0xff] %v8999_v23  ;;  %v9002_v33 = vadd.f32 %v2640_v26, %v11060_v31  ;;  %v3591_v34 = vpop.f32.mrb[66].mxu0  ;;  %v2642_v35 = vpop.f32.mrb[67].mxu1  ;;  %4038 = vmatmul.mubr.f32.gmra.mrb[88].mxu1 %v10479_v36  ;;  %8623 = vmatprep.subr.bf16.mxu0 %v8622_v14  ;;  %v1006_v14 = vld [vmem:[#allocation5 + $0xe00] sm:$0xff]  ;;  %v8634_v19 = vpack.c.bf16 %v1013_v5, %v1007_v4  ;;  %v1019_v26 = vld [vmem:[#allocation5 + $0xe68] sm:$0xff]  ;;  %v1041_v4 = vld [vmem:[#allocation5 + $0xf18] sm:$0xff] }
 0x324   :  { %7641 = vst [vmem:[#allocation8 + $0x608] sm:$0xff] %v9001_v25  ;;  %v9004_v42 = vadd.f32 %v2642_v35, %v11062_v37  ;;  %v3593_v43 = vpop.f32.mrb[67].mxu0  ;;  %5940 = vmatmul.mubr.f32.gmra.mrb[88].mxu0 %v10479_v36  ;;  %4043 = vmatprep.mubr.f32.mxu1 %v10480_v44  ;;  %v10484_v25 = vld [vmem:[#allocation2 + $0x1f8] sm:$0xff]  ;;  %v1016_v35 = vld [vmem:[#allocation5 + $0xe50] sm:$0xff]  ;;  %v1022_v36 = vld [vmem:[#allocation5 + $0xe80] sm:$0xff] }
 0x325   :  { %v9003_v47 = vadd.f32 %v9002_v33, %v3591_v34  ;;  %5945 = vmatprep.mubr.f32.mxu0 %v10480_v44  ;;  %8241 = vmatpush1.bf16.msra.mxu1 %v8240_v24  ;;  %v8636_v33 = vpack.c.bf16 %v1012_v20, %v1006_v14  ;;  %v8254_v34 = vpack.c.bf16 %v1023_v22, %v1017_v21  ;;  %v1024_v44 = vld [vmem:[#allocation5 + $0xe90] sm:$0xff]  ;;  %v1047_v5 = vld [vmem:[#allocation5 + $0xf48] sm:$0xff] }
 0x326   :  { %v9005_v49 = vadd.f32 %v9004_v42, %v3593_v43  ;;  %v2646_v50 = vpop.f32.mrb[68].mxu1  ;;  %8625 = vmatpush1.bf16.msra.mxu0 %v8624_v27  ;;  %8243 = vmatprep.subr.bf16.mxu1 %v8242_v28  ;;  %v1025_v27 = vld [vmem:[#allocation5 + $0xe98] sm:$0xff]  ;;  %v10485_v42 = vld [vmem:[#allocation2 + $0x1f0] sm:$0xff]  ;;  %v8256_v53 = vpack.c.bf16 %v1022_v36, %v1016_v35 }
 0x327   :  { %7646 = vst [vmem:[#allocation8 + $0x630] sm:$0xff] %v9003_v47  ;;  %v9006_v56 = vadd.f32 %v2646_v50, %v11060_v31  ;;  %v3597_v57 = vpop.f32.mrb[68].mxu0  ;;  %v2648_v58 = vpop.f32.mrb[69].mxu1  ;;  %4044 = vmatmul.mubr.f32.gmra.mrb[90].mxu1 %v10481_v59  ;;  %8627 = vmatprep.subr.bf16.mxu0 %v8626_v38  ;;  %v1018_v38 = vld [vmem:[#allocation5 + $0xe60] sm:$0xff]  ;;  %v8638_v43 = vpack.c.bf16 %v1025_v27, %v1019_v26  ;;  %v1031_v50 = vld [vmem:[#allocation5 + $0xec8] sm:$0xff]  ;;  %v1053_v26 = vld [vmem:[#allocation5 + $0xf78] sm:$0xff] }
 0x328   :  { %7647 = vst [vmem:[#allocation8 + $0x638] sm:$0xff] %v9005_v49  ;;  %v9008_v1 = vadd.f32 %v2648_v58, %v11062_v37  ;;  %v3599_v2 = vpop.f32.mrb[69].mxu0  ;;  %5946 = vmatmul.mubr.f32.gmra.mrb[90].mxu0 %v10481_v59  ;;  %4049 = vmatprep.mubr.f32.mxu1 %v10482_v3  ;;  %v10486_v49 = vld [vmem:[#allocation2 + $0x258] sm:$0xff]  ;;  %v1028_v58 = vld [vmem:[#allocation5 + $0xeb0] sm:$0xff]  ;;  %v1034_v59 = vld [vmem:[#allocation5 + $0xee0] sm:$0xff] }
 0x329   :  { %v9007_v6 = vadd.f32 %v9006_v56, %v3597_v57  ;;  %5951 = vmatprep.mubr.f32.mxu0 %v10482_v3  ;;  %8245 = vmatpush1.bf16.msra.mxu1 %v8244_v48  ;;  %v8640_v56 = vpack.c.bf16 %v1024_v44, %v1018_v38  ;;  %v8258_v57 = vpack.c.bf16 %v1035_v46, %v1029_v45  ;;  %v1036_v3 = vld [vmem:[#allocation5 + $0xef0] sm:$0xff]  ;;  %v1059_v27 = vld [vmem:[#allocation5 + $0xfa8] sm:$0xff] }
 0x32a   :  { %v9009_v8 = vadd.f32 %v9008_v1, %v3599_v2  ;;  %v2652_v9 = vpop.f32.mrb[70].mxu1  ;;  %8629 = vmatpush1.bf16.msra.mxu0 %v8628_v51  ;;  %8247 = vmatprep.subr.bf16.mxu1 %v8246_v52  ;;  %v1037_v51 = vld [vmem:[#allocation5 + $0xef8] sm:$0xff]  ;;  %v10487_v1 = vld [vmem:[#allocation2 + $0x250] sm:$0xff]  ;;  %v8260_v12 = vpack.c.bf16 %v1034_v59, %v1028_v58 }
 0x32b   :  { %7652 = vst [vmem:[#allocation8 + $0x660] sm:$0xff] %v9007_v6  ;;  %v9010_v15 = vadd.f32 %v2652_v9, %v11060_v31  ;;  %v3603_v16 = vpop.f32.mrb[70].mxu0  ;;  %v2654_v17 = vpop.f32.mrb[71].mxu1  ;;  %4050 = vmatmul.mubr.f32.gmra.mrb[92].mxu1 %v10483_v18  ;;  %8631 = vmatprep.subr.bf16.mxu0 %v8630_v60  ;;  %v1030_v60 = vld [vmem:[#allocation5 + $0xec0] sm:$0xff]  ;;  %v8642_v2 = vpack.c.bf16 %v1037_v51, %v1031_v50  ;;  %v1043_v9 = vld [vmem:[#allocation5 + $0xf28] sm:$0xff]  ;;  %v1065_v50 = vld [vmem:[#allocation5 + $0xfd8] sm:$0xff] }
 0x32c   :  { %7653 = vst [vmem:[#allocation8 + $0x668] sm:$0xff] %v9009_v8  ;;  %v9012_v23 = vadd.f32 %v2654_v17, %v11062_v37  ;;  %v3605_v24 = vpop.f32.mrb[71].mxu0  ;;  %5952 = vmatmul.mubr.f32.gmra.mrb[92].mxu0 %v10483_v18  ;;  %4055 = vmatprep.mubr.f32.mxu1 %v10484_v25  ;;  %v10488_v8 = vld [vmem:[#allocation2 + $0x2b8] sm:$0xff]  ;;  %v1040_v17 = vld [vmem:[#allocation5 + $0xf10] sm:$0xff]  ;;  %v1046_v18 = vld [vmem:[#allocation5 + $0xf40] sm:$0xff] }
 0x32d   :  { %v9011_v28 = vadd.f32 %v9010_v15, %v3603_v16  ;;  %5957 = vmatprep.mubr.f32.mxu0 %v10484_v25  ;;  %8249 = vmatpush1.bf16.msra.mxu1 %v8248_v7  ;;  %v8644_v15 = vpack.c.bf16 %v1036_v3, %v1030_v60  ;;  %v8262_v16 = vpack.c.bf16 %v1047_v5, %v1041_v4  ;;  %v1048_v25 = vld [vmem:[#allocation5 + $0xf50] sm:$0xff]  ;;  %v1071_v51 = vld [vmem:[#allocation5 + $0x1008] sm:$0xff] }
 0x32e   :  { %v9013_v30 = vadd.f32 %v9012_v23, %v3605_v24  ;;  %v2658_v32 = vpop.f32.mrb[72].mxu1  ;;  %8633 = vmatpush1.bf16.msra.mxu0 %v8632_v10  ;;  %8251 = vmatprep.subr.bf16.mxu1 %v8250_v11  ;;  %v1049_v10 = vld [vmem:[#allocation5 + $0xf58] sm:$0xff]  ;;  %v10489_v23 = vld [vmem:[#allocation2 + $0x2b0] sm:$0xff]  ;;  %v8264_v35 = vpack.c.bf16 %v1046_v18, %v1040_v17 }
 0x32f   :  { %7658 = vst [vmem:[#allocation8 + $0x690] sm:$0xff] %v9011_v28  ;;  %v9014_v39 = vadd.f32 %v2658_v32, %v11060_v31  ;;  %v3609_v40 = vpop.f32.mrb[72].mxu0  ;;  %v2660_v41 = vpop.f32.mrb[73].mxu1  ;;  %4056 = vmatmul.mubr.f32.gmra.mrb[94].mxu1 %v10485_v42  ;;  %8635 = vmatprep.subr.bf16.mxu0 %v8634_v19  ;;  %v1042_v19 = vld [vmem:[#allocation5 + $0xf20] sm:$0xff]  ;;  %v8646_v24 = vpack.c.bf16 %v1049_v10, %v1043_v9  ;;  %v1055_v32 = vld [vmem:[#allocation5 + $0xf88] sm:$0xff]  ;;  %v1077_v9 = vld [vmem:[#allocation5 + $0x1038] sm:$0xff] }
 0x330   :  { %7659 = vst [vmem:[#allocation8 + $0x698] sm:$0xff] %v9013_v30  ;;  %v9016_v47 = vadd.f32 %v2660_v41, %v11062_v37  ;;  %v3611_v48 = vpop.f32.mrb[73].mxu0  ;;  %5958 = vmatmul.mubr.f32.gmra.mrb[94].mxu0 %v10485_v42  ;;  %4061 = vmatprep.mubr.f32.mxu1 %v10486_v49  ;;  %v10490_v30 = vld [vmem:[#allocation2 + $0x318] sm:$0xff]  ;;  %v1052_v41 = vld [vmem:[#allocation5 + $0xf70] sm:$0xff]  ;;  %v1058_v42 = vld [vmem:[#allocation5 + $0xfa0] sm:$0xff] }
 0x331   :  { %v9015_v52 = vadd.f32 %v9014_v39, %v3609_v40  ;;  %5963 = vmatprep.mubr.f32.mxu0 %v10486_v49  ;;  %8253 = vmatpush1.bf16.msra.mxu1 %v8252_v29  ;;  %v8648_v39 = vpack.c.bf16 %v1048_v25, %v1042_v19  ;;  %v8266_v40 = vpack.c.bf16 %v1059_v27, %v1053_v26  ;;  %v1060_v49 = vld [vmem:[#allocation5 + $0xfb0] sm:$0xff]  ;;  %v1083_v10 = vld [vmem:[#allocation5 + $0x1068] sm:$0xff] }
 0x332   :  { %v9017_v54 = vadd.f32 %v9016_v47, %v3611_v48  ;;  %v2664_v55 = vpop.f32.mrb[74].mxu1  ;;  %8637 = vmatpush1.bf16.msra.mxu0 %v8636_v33  ;;  %8255 = vmatprep.subr.bf16.mxu1 %v8254_v34  ;;  %v1061_v33 = vld [vmem:[#allocation5 + $0xfb8] sm:$0xff]  ;;  %v10491_v47 = vld [vmem:[#allocation2 + $0x310] sm:$0xff]  ;;  %v8268_v58 = vpack.c.bf16 %v1058_v42, %v1052_v41 }
 0x333   :  { %7664 = vst [vmem:[#allocation8 + $0x6c0] sm:$0xff] %v9015_v52  ;;  %v9018_v61 = vadd.f32 %v2664_v55, %v11060_v31  ;;  %v3615_v62 = vpop.f32.mrb[74].mxu0  ;;  %v2666_v0 = vpop.f32.mrb[75].mxu1  ;;  %4062 = vmatmul.mubr.f32.gmra.mrb[96].mxu1 %v10487_v1  ;;  %8639 = vmatprep.subr.bf16.mxu0 %v8638_v43  ;;  %v1054_v43 = vld [vmem:[#allocation5 + $0xf80] sm:$0xff]  ;;  %v8650_v48 = vpack.c.bf16 %v1061_v33, %v1055_v32  ;;  %v1067_v55 = vld [vmem:[#allocation5 + $0xfe8] sm:$0xff]  ;;  %v1089_v32 = vld [vmem:[#allocation5 + $0x1098] sm:$0xff] }
 0x334   :  { %7665 = vst [vmem:[#allocation8 + $0x6c8] sm:$0xff] %v9017_v54  ;;  %v9020_v6 = vadd.f32 %v2666_v0, %v11062_v37  ;;  %v3617_v7 = vpop.f32.mrb[75].mxu0  ;;  %5964 = vmatmul.mubr.f32.gmra.mrb[96].mxu0 %v10487_v1  ;;  %4067 = vmatprep.mubr.f32.mxu1 %v10488_v8  ;;  %v10492_v54 = vld [vmem:[#allocation2 + $0x378] sm:$0xff]  ;;  %v1064_v0 = vld [vmem:[#allocation5 + $0xfd0] sm:$0xff]  ;;  %v1070_v1 = vld [vmem:[#allocation5 + $0x1000] sm:$0xff] }
 0x335   :  { %v9019_v11 = vadd.f32 %v9018_v61, %v3615_v62  ;;  %5969 = vmatprep.mubr.f32.mxu0 %v10488_v8  ;;  %8257 = vmatpush1.bf16.msra.mxu1 %v8256_v53  ;;  %v8652_v61 = vpack.c.bf16 %v1060_v49, %v1054_v43  ;;  %v8270_v62 = vpack.c.bf16 %v1071_v51, %v1065_v50  ;;  %v1072_v8 = vld [vmem:[#allocation5 + $0x1010] sm:$0xff]  ;;  %v1095_v33 = vld [vmem:[#allocation5 + $0x10c8] sm:$0xff]  ;;  %v1101_v49 = vld [vmem:[#allocation5 + $0x10f8] sm:$0xff] }
 0x336   :  { %v9021_v13 = vadd.f32 %v9020_v6, %v3617_v7  ;;  %v2670_v14 = vpop.f32.mrb[76].mxu1  ;;  %8641 = vmatpush1.bf16.msra.mxu0 %v8640_v56  ;;  %8259 = vmatprep.subr.bf16.mxu1 %v8258_v57  ;;  %v1073_v56 = vld [vmem:[#allocation5 + $0x1018] sm:$0xff]  ;;  %v10493_v6 = vld [vmem:[#allocation2 + $0x370] sm:$0xff]  ;;  %v8272_v17 = vpack.c.bf16 %v1070_v1, %v1064_v0  ;;  %v8278_v43 = vpack.c.bf16 %v1095_v33, %v1089_v32  ;;  %v1107_v50 = vld [vmem:[#allocation5 + $0x1128] sm:$0xff] }
 0x337   :  { %7670 = vst [vmem:[#allocation8 + $0x6f0] sm:$0xff] %v9019_v11  ;;  %v9022_v20 = vadd.f32 %v2670_v14, %v11060_v31  ;;  %v3621_v21 = vpop.f32.mrb[76].mxu0  ;;  %v2672_v22 = vpop.f32.mrb[77].mxu1  ;;  %4068 = vmatmul.mubr.f32.gmra.mrb[98].mxu1 %v10489_v23  ;;  %8643 = vmatprep.subr.bf16.mxu0 %v8642_v2  ;;  %v1066_v2 = vld [vmem:[#allocation5 + $0xfe0] sm:$0xff]  ;;  %v8654_v7 = vpack.c.bf16 %v1073_v56, %v1067_v55  ;;  %v1079_v14 = vld [vmem:[#allocation5 + $0x1048] sm:$0xff]  ;;  %v10498_v51 = vld [vmem:[#allocation2 + $0x498] sm:$0xff] }
 0x338   :  { %7671 = vst [vmem:[#allocation8 + $0x6f8] sm:$0xff] %v9021_v13  ;;  %v9024_v28 = vadd.f32 %v2672_v22, %v11062_v37  ;;  %v3623_v29 = vpop.f32.mrb[77].mxu0  ;;  %5970 = vmatmul.mubr.f32.gmra.mrb[98].mxu0 %v10489_v23  ;;  %4073 = vmatprep.mubr.f32.mxu1 %v10490_v30  ;;  %v10494_v13 = vld [vmem:[#allocation2 + $0x3d8] sm:$0xff]  ;;  %v1076_v22 = vld [vmem:[#allocation5 + $0x1030] sm:$0xff]  ;;  %v1082_v23 = vld [vmem:[#allocation5 + $0x1060] sm:$0xff]  ;;  %v8282_v56 = vpack.c.bf16 %v1107_v50, %v1101_v49 }
 0x339   :  { %v9023_v34 = vadd.f32 %v9022_v20, %v3621_v21  ;;  %5975 = vmatprep.mubr.f32.mxu0 %v10490_v30  ;;  %8261 = vmatpush1.bf16.msra.mxu1 %v8260_v12  ;;  %v8656_v20 = vpack.c.bf16 %v1072_v8, %v1066_v2  ;;  %v8274_v21 = vpack.c.bf16 %v1083_v10, %v1077_v9  ;;  %v1084_v30 = vld [vmem:[#allocation5 + $0x1070] sm:$0xff]  ;;  %v1113_v0 = vld [vmem:[#allocation5 + $0x1158] sm:$0xff]  ;;  %v1119_v1 = vld [vmem:[#allocation5 + $0x1188] sm:$0xff] }
 0x33a   :  { %v9025_v36 = vadd.f32 %v9024_v28, %v3623_v29  ;;  %v2676_v38 = vpop.f32.mrb[78].mxu1  ;;  %8645 = vmatpush1.bf16.msra.mxu0 %v8644_v15  ;;  %8263 = vmatprep.subr.bf16.mxu1 %v8262_v16  ;;  %v1085_v15 = vld [vmem:[#allocation5 + $0x1078] sm:$0xff]  ;;  %v10495_v28 = vld [vmem:[#allocation2 + $0x3d0] sm:$0xff]  ;;  %v1118_v9 = vld [vmem:[#allocation5 + $0x1180] sm:$0xff] }
 0x33b   :  { %7676 = vst [vmem:[#allocation8 + $0x720] sm:$0xff] %v9023_v34  ;;  %v9026_v44 = vadd.f32 %v2676_v38, %v11060_v31  ;;  %v3627_v45 = vpop.f32.mrb[78].mxu0  ;;  %v2678_v46 = vpop.f32.mrb[79].mxu1  ;;  %4074 = vmatmul.mubr.f32.gmra.mrb[100].mxu1 %v10491_v47  ;;  %8647 = vmatprep.subr.bf16.mxu0 %v8646_v24  ;;  %v1078_v24 = vld [vmem:[#allocation5 + $0x1040] sm:$0xff]  ;;  %v8658_v29 = vpack.c.bf16 %v1085_v15, %v1079_v14  ;;  %v1091_v38 = vld [vmem:[#allocation5 + $0x10a8] sm:$0xff]  ;;  %v10500_v2 = vld [vmem:[#allocation2 + $0x4f8] sm:$0xff] }
 0x33c   :  { %7677 = vst [vmem:[#allocation8 + $0x728] sm:$0xff] %v9025_v36  ;;  %v9028_v52 = vadd.f32 %v2678_v46, %v11062_v37  ;;  %v3629_v53 = vpop.f32.mrb[79].mxu0  ;;  %5976 = vmatmul.mubr.f32.gmra.mrb[100].mxu0 %v10491_v47  ;;  %4079 = vmatprep.mubr.f32.mxu1 %v10492_v54  ;;  %v10496_v36 = vld [vmem:[#allocation2 + $0x438] sm:$0xff]  ;;  %v8660_v42 = vpack.c.bf16 %v1084_v30, %v1078_v24  ;;  %v1090_v46 = vld [vmem:[#allocation5 + $0x10a0] sm:$0xff]  ;;  %v1112_v8 = vld [vmem:[#allocation5 + $0x1150] sm:$0xff] }
 0x33d   :  { %v9027_v57 = vadd.f32 %v9026_v44, %v3627_v45  ;;  %5981 = vmatprep.mubr.f32.mxu0 %v10492_v54  ;;  %8265 = vmatpush1.bf16.msra.mxu1 %v8264_v35  ;;  %v1088_v44 = vld [vmem:[#allocation5 + $0x1090] sm:$0xff]  ;;  %v1094_v45 = vld [vmem:[#allocation5 + $0x10c0] sm:$0xff]  ;;  %v1125_v14 = vld [vmem:[#allocation5 + $0x11b8] sm:$0xff] }
 0x33e   :  { %v9029_v59 = vadd.f32 %v9028_v52, %v3629_v53  ;;  %v2682_v60 = vpop.f32.mrb[80].mxu1  ;;  %8649 = vmatpush1.bf16.msra.mxu0 %v8648_v39  ;;  %8267 = vmatprep.subr.bf16.mxu1 %v8266_v40  ;;  %v1097_v39 = vld [vmem:[#allocation5 + $0x10d8] sm:$0xff]  ;;  %v1103_v52 = vld [vmem:[#allocation5 + $0x1108] sm:$0xff]  ;;  %v8280_v54 = vpack.c.bf16 %v1094_v45, %v1088_v44  ;;  %v1114_v10 = vld [vmem:[#allocation5 + $0x1160] sm:$0xff] }
 0x33f   :  { %7682 = vst [vmem:[#allocation8 + $0x750] sm:$0xff] %v9027_v57  ;;  %v9030_v3 = vadd.f32 %v2682_v60, %v11060_v31  ;;  %v3633_v4 = vpop.f32.mrb[80].mxu0  ;;  %v2684_v5 = vpop.f32.mrb[81].mxu1  ;;  %4080 = vmatmul.mubr.f32.gmra.mrb[102].mxu1 %v10493_v6  ;;  %8651 = vmatprep.subr.bf16.mxu0 %v8650_v48  ;;  %v8662_v47 = vpack.c.bf16 %v1097_v39, %v1091_v38  ;;  %v1096_v48 = vld [vmem:[#allocation5 + $0x10d0] sm:$0xff]  ;;  %v1109_v53 = vld [vmem:[#allocation5 + $0x1138] sm:$0xff]  ;;  %v1131_v15 = vld [vmem:[#allocation5 + $0x11e8] sm:$0xff] }
 0x340   :  { %7683 = vst [vmem:[#allocation8 + $0x758] sm:$0xff] %v9029_v59  ;;  %v9032_v11 = vadd.f32 %v2684_v5, %v11062_v37  ;;  %v3635_v12 = vpop.f32.mrb[81].mxu0  ;;  %5982 = vmatmul.mubr.f32.gmra.mrb[102].mxu0 %v10493_v6  ;;  %4085 = vmatprep.mubr.f32.mxu1 %v10494_v13  ;;  %v8664_v55 = vpack.c.bf16 %v1096_v48, %v1090_v46  ;;  %v1100_v57 = vld [vmem:[#allocation5 + $0x10f0] sm:$0xff]  ;;  %v1102_v59 = vld [vmem:[#allocation5 + $0x1100] sm:$0xff]  ;;  %v10504_v30 = vld [vmem:[#allocation2 + $0x5b8] sm:$0xff] }
 0x341   :  { %v9031_v16 = vadd.f32 %v9030_v3, %v3633_v4  ;;  %5987 = vmatprep.mubr.f32.mxu0 %v10494_v13  ;;  %8269 = vmatpush1.bf16.msra.mxu1 %v8268_v58  ;;  %v1106_v58 = vld [vmem:[#allocation5 + $0x1120] sm:$0xff]  ;;  %v10499_v60 = vld [vmem:[#allocation2 + $0x490] sm:$0xff]  ;;  %v1115_v3 = vld [vmem:[#allocation5 + $0x1168] sm:$0xff] }
 0x342   :  { %v9033_v18 = vadd.f32 %v9032_v11, %v3635_v12  ;;  %v2688_v19 = vpop.f32.mrb[82].mxu1  ;;  %8653 = vmatpush1.bf16.msra.mxu0 %v8652_v61  ;;  %8271 = vmatprep.subr.bf16.mxu1 %v8270_v62  ;;  %v8666_v61 = vpack.c.bf16 %v1109_v53, %v1103_v52  ;;  %v1108_v62 = vld [vmem:[#allocation5 + $0x1130] sm:$0xff]  ;;  %v1121_v4 = vld [vmem:[#allocation5 + $0x1198] sm:$0xff]  ;;  %v8284_v5 = vpack.c.bf16 %v1106_v58, %v1100_v57  ;;  %v1126_v24 = vld [vmem:[#allocation5 + $0x11c0] sm:$0xff] }
 0x343   :  { %7688 = vst [vmem:[#allocation8 + $0x780] sm:$0xff] %v9031_v16  ;;  %v9034_v25 = vadd.f32 %v2688_v19, %v11060_v31  ;;  %v3639_v26 = vpop.f32.mrb[82].mxu0  ;;  %v2690_v27 = vpop.f32.mrb[83].mxu1  ;;  %4086 = vmatmul.mubr.f32.gmra.mrb[104].mxu1 %v10495_v28  ;;  %8655 = vmatprep.subr.bf16.mxu0 %v8654_v7  ;;  %v8276_v31 = vpack.c.bf16 %v1082_v23, %v1076_v22  ;;  %v10501_v11 = vld [vmem:[#allocation2 + $0x4f0] sm:$0xff]  ;;  %v10502_v16 = vld [vmem:[#allocation2 + $0x558] sm:$0xff]  ;;  %v1130_v23 = vld [vmem:[#allocation5 + $0x11e0] sm:$0xff] }
 0x344   :  { %7689 = vst [vmem:[#allocation8 + $0x788] sm:$0xff] %v9033_v18  ;;  %v9036_v34 = vadd.f32 %v2690_v27, %v11062_v37  ;;  %v3641_v35 = vpop.f32.mrb[83].mxu0  ;;  %5988 = vmatmul.mubr.f32.gmra.mrb[104].mxu0 %v10495_v28  ;;  %4091 = vmatprep.mubr.f32.mxu1 %v10496_v36  ;;  %v10497_v37 = vld [vmem:[#allocation2 + $0x430] sm:$0xff]  ;;  %v8668_v6 = vpack.c.bf16 %v1108_v62, %v1102_v59  ;;  %v1133_v18 = vld [vmem:[#allocation5 + $0x11f8] sm:$0xff]  ;;  %v1139_v32 = vld [vmem:[#allocation5 + $0x1228] sm:$0xff] }
 0x345   :  { %v9035_v40 = vadd.f32 %v9034_v25, %v3639_v26  ;;  %5993 = vmatprep.mubr.f32.mxu0 %v10496_v36  ;;  %8273 = vmatpush1.bf16.msra.mxu1 %v8272_v17  ;;  %v8286_v7 = vpack.c.bf16 %v1119_v1, %v1113_v0  ;;  %v8670_v12 = vpack.c.bf16 %v1121_v4, %v1115_v3  ;;  %v1120_v13 = vld [vmem:[#allocation5 + $0x1190] sm:$0xff]  ;;  %v1127_v17 = vld [vmem:[#allocation5 + $0x11c8] sm:$0xff]  ;;  %v1137_v28 = vld [vmem:[#allocation5 + $0x1218] sm:$0xff] }
 0x346   :  { %v9037_v41 = vadd.f32 %v9036_v34, %v3641_v35  ;;  %8657 = vmatpush1.bf16.msra.mxu0 %v8656_v20  ;;  %8275 = vmatprep.subr.bf16.mxu1 %v8274_v21  ;;  %v8288_v19 = vpack.c.bf16 %v1118_v9, %v1112_v8  ;;  %v8672_v20 = vpack.c.bf16 %v1120_v13, %v1114_v10  ;;  %v1124_v22 = vld [vmem:[#allocation5 + $0x11b0] sm:$0xff]  ;;  %v1145_v33 = vld [vmem:[#allocation5 + $0x1258] sm:$0xff] }
 0x347   :  { %7694 = vst [vmem:[#allocation8 + $0x7b0] sm:$0xff] %v9035_v40  ;;  %4092 = vmatmul.mubr.f32.gmra.mrb[106].mxu1 %v10497_v37  ;;  %8659 = vmatprep.subr.bf16.mxu0 %v8658_v29  ;;  %v8290_v21 = vpack.c.bf16 %v1131_v15, %v1125_v14  ;;  %v10503_v25 = vld [vmem:[#allocation2 + $0x550] sm:$0xff]  ;;  %v8674_v26 = vpack.c.bf16 %v1133_v18, %v1127_v17  ;;  %v1143_v29 = vld [vmem:[#allocation5 + $0x1248] sm:$0xff]  ;;  %v10506_v40 = vld [vmem:[#allocation2 + $0x618] sm:$0xff] }
 0x348   :  { %7695 = vst [vmem:[#allocation8 + $0x7b8] sm:$0xff] %v9037_v41  ;;  %5994 = vmatmul.mubr.f32.gmra.mrb[106].mxu0 %v10497_v37  ;;  %4097 = vmatprep.mubr.f32.mxu1 %v10498_v51  ;;  %v1132_v27 = vld [vmem:[#allocation5 + $0x11f0] sm:$0xff]  ;;  %v8292_v34 = vpack.c.bf16 %v1130_v23, %v1124_v22  ;;  %v8294_v36 = vpack.c.bf16 %v1143_v29, %v1137_v28  ;;  %v10508_v41 = vld [vmem:[#allocation2 + $0x678] sm:$0xff]  ;;  %v1138_v28 = vld [vmem:[#allocation5 + $0x1220] sm:$0xff] }
 0x349   :  { %5999 = vmatprep.mubr.f32.mxu0 %v10498_v51  ;;  %8277 = vmatpush1.bf16.msra.mxu1 %v8276_v31  ;;  %v8676_v35 = vpack.c.bf16 %v1132_v27, %v1126_v24  ;;  %v10505_v38 = vld [vmem:[#allocation2 + $0x5b0] sm:$0xff]  ;;  %v8678_v39 = vpack.c.bf16 %v1145_v33, %v1139_v32  ;;  %v10512_v45 = vld [vmem:[#allocation2 + $0x738] sm:$0xff]  ;;  %v1142_v27 = vld [vmem:[#allocation5 + $0x1240] sm:$0xff] }
 0x34a   :  { %8661 = vmatpush1.bf16.msra.mxu0 %v8660_v42  ;;  %8279 = vmatprep.subr.bf16.mxu1 %v8278_v43  ;;  %v10507_v31 = vld [vmem:[#allocation2 + $0x610] sm:$0xff]  ;;  %v10510_v43 = vld [vmem:[#allocation2 + $0x6d8] sm:$0xff]  ;;  %v1155_v33 = vld [vmem:[#allocation5 + $0x12a8] sm:$0xff] }
 0x34b   :  { %4098 = vmatmul.mubr.f32.gmra.mrb[108].mxu1 %v10499_v60  ;;  %8663 = vmatprep.subr.bf16.mxu0 %v8662_v47  ;;  %v10509_v42 = vld [vmem:[#allocation2 + $0x670] sm:$0xff]  ;;  %v10514_v37 = vld [vmem:[#allocation2 + $0x798] sm:$0xff] }
 0x34c   :  { %6000 = vmatmul.mubr.f32.gmra.mrb[108].mxu0 %v10499_v60  ;;  %4103 = vmatprep.mubr.f32.mxu1 %v10500_v2  ;;  %v10511_v44 = vld [vmem:[#allocation2 + $0x6d0] sm:$0xff]  ;;  %v10516_v48 = vld [vmem:[#allocation2 + $0x7f8] sm:$0xff] }
 0x34d   :  { %6005 = vmatprep.mubr.f32.mxu0 %v10500_v2  ;;  %8281 = vmatpush1.bf16.msra.mxu1 %v8280_v54  ;;  %v10513_v46 = vld [vmem:[#allocation2 + $0x730] sm:$0xff]  ;;  %v10518_v50 = vld [vmem:[#allocation2 + $0x858] sm:$0xff] }
 0x34e   :  { %8665 = vmatpush1.bf16.msra.mxu0 %v8664_v55  ;;  %8283 = vmatprep.subr.bf16.mxu1 %v8282_v56  ;;  %v10515_v47 = vld [vmem:[#allocation2 + $0x790] sm:$0xff]  ;;  %v10520_v52 = vld [vmem:[#allocation2 + $0x8b8] sm:$0xff] }
 0x34f   :  { %4104 = vmatmul.mubr.f32.gmra.mrb[110].mxu1 %v10501_v11  ;;  %8667 = vmatprep.subr.bf16.mxu0 %v8666_v61  ;;  %v10517_v49 = vld [vmem:[#allocation2 + $0x7f0] sm:$0xff]  ;;  %v10522_v54 = vld [vmem:[#allocation2 + $0x918] sm:$0xff] }
 0x350   :  { %6006 = vmatmul.mubr.f32.gmra.mrb[110].mxu0 %v10501_v11  ;;  %4109 = vmatprep.mubr.f32.mxu1 %v10502_v16  ;;  %v10519_v51 = vld [vmem:[#allocation2 + $0x850] sm:$0xff]  ;;  %v10524_v56 = vld [vmem:[#allocation2 + $0x978] sm:$0xff] }
 0x351   :  { %6011 = vmatprep.mubr.f32.mxu0 %v10502_v16  ;;  %8285 = vmatpush1.bf16.msra.mxu1 %v8284_v5  ;;  %v10521_v53 = vld [vmem:[#allocation2 + $0x8b0] sm:$0xff]  ;;  %v10526_v58 = vld [vmem:[#allocation2 + $0x9d8] sm:$0xff] }
 0x352   :  { %8669 = vmatpush1.bf16.msra.mxu0 %v8668_v6  ;;  %8287 = vmatprep.subr.bf16.mxu1 %v8286_v7  ;;  %v10523_v55 = vld [vmem:[#allocation2 + $0x910] sm:$0xff]  ;;  %v10528_v60 = vld [vmem:[#allocation2 + $0xa38] sm:$0xff] }
 0x353   :  { %4110 = vmatmul.mubr.f32.gmra.mrb[112].mxu1 %v10503_v25  ;;  %8671 = vmatprep.subr.bf16.mxu0 %v8670_v12  ;;  %v10525_v57 = vld [vmem:[#allocation2 + $0x970] sm:$0xff]  ;;  %v10530_v62 = vld [vmem:[#allocation2 + $0xa98] sm:$0xff] }
 0x354   :  { %6012 = vmatmul.mubr.f32.gmra.mrb[112].mxu0 %v10503_v25  ;;  %4115 = vmatprep.mubr.f32.mxu1 %v10504_v30  ;;  %v10527_v59 = vld [vmem:[#allocation2 + $0x9d0] sm:$0xff]  ;;  %v10532_v1 = vld [vmem:[#allocation2 + $0xaf8] sm:$0xff] }
 0x355   :  { %6017 = vmatprep.mubr.f32.mxu0 %v10504_v30  ;;  %8289 = vmatpush1.bf16.msra.mxu1 %v8288_v19  ;;  %v10529_v61 = vld [vmem:[#allocation2 + $0xa30] sm:$0xff]  ;;  %v10534_v3 = vld [vmem:[#allocation2 + $0xb58] sm:$0xff] }
 0x356   :  { %8673 = vmatpush1.bf16.msra.mxu0 %v8672_v20  ;;  %8291 = vmatprep.subr.bf16.mxu1 %v8290_v21  ;;  %v10531_v0 = vld [vmem:[#allocation2 + $0xa90] sm:$0xff]  ;;  %v10536_v5 = vld [vmem:[#allocation2 + $0xbb8] sm:$0xff] }
 0x357   :  { %4116 = vmatmul.mubr.f32.gmra.mrb[114].mxu1 %v10505_v38  ;;  %8675 = vmatprep.subr.bf16.mxu0 %v8674_v26  ;;  %v10533_v2 = vld [vmem:[#allocation2 + $0xaf0] sm:$0xff]  ;;  %v10538_v7 = vld [vmem:[#allocation2 + $0xc18] sm:$0xff] }
 0x358   :  { %6018 = vmatmul.mubr.f32.gmra.mrb[114].mxu0 %v10505_v38  ;;  %4121 = vmatprep.mubr.f32.mxu1 %v10506_v40  ;;  %v10535_v4 = vld [vmem:[#allocation2 + $0xb50] sm:$0xff]  ;;  %v10540_v9 = vld [vmem:[#allocation2 + $0xc78] sm:$0xff] }
 0x359   :  { %6023 = vmatprep.mubr.f32.mxu0 %v10506_v40  ;;  %8293 = vmatpush1.bf16.msra.mxu1 %v8292_v34  ;;  %v10537_v6 = vld [vmem:[#allocation2 + $0xbb0] sm:$0xff]  ;;  %v10542_v11 = vld [vmem:[#allocation2 + $0xcd8] sm:$0xff]  ;;  %v10558_v34 = vld [vmem:[#allocation2 + $0x28] sm:$0xff] }
 0x35a   :  { %8677 = vmatpush1.bf16.msra.mxu0 %v8676_v35  ;;  %8295 = vmatprep.subr.bf16.mxu1 %v8294_v36  ;;  %v10539_v8 = vld [vmem:[#allocation2 + $0xc10] sm:$0xff]  ;;  %v10544_v13 = vld [vmem:[#allocation2 + $0xd38] sm:$0xff]  ;;  %v1151_v36 = vld [vmem:[#allocation5 + $0x1288] sm:$0xff] }
 0x35b   :  { %4122 = vmatmul.mubr.f32.gmra.mrb[116].mxu1 %v10507_v31  ;;  %8679 = vmatprep.subr.bf16.mxu0 %v8678_v39  ;;  %v10541_v10 = vld [vmem:[#allocation2 + $0xc70] sm:$0xff]  ;;  %v10546_v15 = vld [vmem:[#allocation2 + $0xd98] sm:$0xff] }
 0x35c   :  { %6024 = vmatmul.mubr.f32.gmra.mrb[116].mxu0 %v10507_v31  ;;  %4127 = vmatprep.mubr.f32.mxu1 %v10508_v41  ;;  %v10543_v12 = vld [vmem:[#allocation2 + $0xcd0] sm:$0xff]  ;;  %v10548_v17 = vld [vmem:[#allocation2 + $0xdf8] sm:$0xff] }
 0x35d   :  { %6029 = vmatprep.mubr.f32.mxu0 %v10508_v41  ;;  %v10545_v14 = vld [vmem:[#allocation2 + $0xd30] sm:$0xff]  ;;  %v10550_v19 = vld [vmem:[#allocation2 + $0xe58] sm:$0xff]  ;;  %v1154_v41 = vld [vmem:[#allocation5 + $0x12a0] sm:$0xff] }
 0x35e   :  { %v10547_v16 = vld [vmem:[#allocation2 + $0xd90] sm:$0xff]  ;;  %v10552_v21 = vld [vmem:[#allocation2 + $0xeb8] sm:$0xff] }
 0x35f   :  { %4128 = vmatmul.mubr.f32.gmra.mrb[118].mxu1 %v10509_v42  ;;  %v10549_v18 = vld [vmem:[#allocation2 + $0xdf0] sm:$0xff]  ;;  %v10554_v23 = vld [vmem:[#allocation2 + $0xf18] sm:$0xff] }
 0x360   :  { %6030 = vmatmul.mubr.f32.gmra.mrb[118].mxu0 %v10509_v42  ;;  %4133 = vmatprep.mubr.f32.mxu1 %v10510_v43  ;;  %v10551_v20 = vld [vmem:[#allocation2 + $0xe50] sm:$0xff]  ;;  %v10556_v25 = vld [vmem:[#allocation2 + $0xf78] sm:$0xff]  ;;  %v1150_v42 = vld [vmem:[#allocation5 + $0x1280] sm:$0xff] }
 0x361   :  { %6035 = vmatprep.mubr.f32.mxu0 %v10510_v43  ;;  %v10553_v22 = vld [vmem:[#allocation2 + $0xeb0] sm:$0xff]  ;;  %v1149_v32 = vld [vmem:[#allocation5 + $0x1278] sm:$0xff]  ;;  %v10559_v43 = vld [vmem:[#allocation2 + $0x20] sm:$0xff] }
 0x362   :  { %v10555_v24 = vld [vmem:[#allocation2 + $0xf10] sm:$0xff]  ;;  %v1157_v38 = vld [vmem:[#allocation5 + $0x12b8] sm:$0xff]  ;;  %v8298_v40 = vpack.c.bf16 %v1155_v33, %v1149_v32 }
 0x363   :  { %4134 = vmatmul.mubr.f32.gmra.mrb[120].mxu1 %v10511_v44  ;;  %v1136_v26 = vld [vmem:[#allocation5 + $0x1210] sm:$0xff] }
 0x364   :  { %6036 = vmatmul.mubr.f32.gmra.mrb[120].mxu0 %v10511_v44  ;;  %4139 = vmatprep.mubr.f32.mxu1 %v10512_v45  ;;  %v1144_v29 = vld [vmem:[#allocation5 + $0x1250] sm:$0xff]  ;;  %v8296_v35 = vpack.c.bf16 %v1142_v27, %v1136_v26  ;;  %v8682_v44 = vpack.c.bf16 %v1157_v38, %v1151_v36  ;;  %v10566_v26 = vld [vmem:[#allocation2 + $0x1a8] sm:$0xff]  ;;  %v10567_v36 = vld [vmem:[#allocation2 + $0x1a0] sm:$0xff] }
 0x365   :  { %6041 = vmatprep.mubr.f32.mxu0 %v10512_v45  ;;  %v10557_v30 = vld [vmem:[#allocation2 + $0xf70] sm:$0xff]  ;;  %v8680_v39 = vpack.c.bf16 %v1144_v29, %v1138_v28  ;;  %v1199_v27 = vld [vmem:[#allocation5 + $0x1408] sm:$0xff]  ;;  %v1205_v28 = vld [vmem:[#allocation5 + $0x1438] sm:$0xff] }
 0x366   :  { %v1148_v31 = vld [vmem:[#allocation5 + $0x1270] sm:$0xff]  ;;  %v8698_v38 = vpack.c.bf16 %v1205_v28, %v1199_v27  ;;  %v1246_v27 = vld [vmem:[#allocation5 + $0x1580] sm:$0xff] }
 0x367   :  { %4140 = vmatmul.mubr.f32.gmra.mrb[122].mxu1 %v10513_v46  ;;  %v1156_v45 = vld [vmem:[#allocation5 + $0x12b0] sm:$0xff]  ;;  %v10575_v28 = vld [vmem:[#allocation2 + $0x320] sm:$0xff] }
 0x368   :  { %6042 = vmatmul.mubr.f32.gmra.mrb[122].mxu0 %v10513_v46  ;;  %4145 = vmatprep.mubr.f32.mxu1 %v10514_v37  ;;  %v1161_v46 = vld [vmem:[#allocation5 + $0x12d8] sm:$0xff]  ;;  %v1196_v33 = vld [vmem:[#allocation5 + $0x13f0] sm:$0xff] }
 0x369   :  { %6047 = vmatprep.mubr.f32.mxu0 %v10514_v37  ;;  %v1167_v37 = vld [vmem:[#allocation5 + $0x1308] sm:$0xff] }
 0x36b   :  { %4146 = vmatmul.mubr.f32.gmra.mrb[124].mxu1 %v10515_v47 }
 0x36c   :  { %6048 = vmatmul.mubr.f32.gmra.mrb[124].mxu0 %v10515_v47  ;;  %4151 = vmatprep.mubr.f32.mxu1 %v10516_v48  ;;  %v1163_v47 = vld [vmem:[#allocation5 + $0x12e8] sm:$0xff] }
 0x36d   :  { %6053 = vmatprep.mubr.f32.mxu0 %v10516_v48  ;;  %v1169_v48 = vld [vmem:[#allocation5 + $0x1318] sm:$0xff] }
 0x36f   :  { %4152 = vmatmul.mubr.f32.gmra.mrb[126].mxu1 %v10517_v49 }
 0x370   :  { %6054 = vmatmul.mubr.f32.gmra.mrb[126].mxu0 %v10517_v49  ;;  %4157 = vmatprep.mubr.f32.mxu1 %v10518_v50  ;;  %v10560_v49 = vld [vmem:[#allocation2 + $0x88] sm:$0xff] }
 0x371   :  { %6059 = vmatprep.mubr.f32.mxu0 %v10518_v50  ;;  %v8300_v50 = vpack.c.bf16 %v1154_v41, %v1148_v31  ;;  %v1215_v31 = vld [vmem:[#allocation5 + $0x1488] sm:$0xff] }
 0x372   :  { %v10568_v41 = vld [vmem:[#allocation2 + $0x208] sm:$0xff] }
 0x373   :  { %4158 = vmatmul.mubr.f32.gmra.mrb[128].mxu1 %v10519_v51 }
 0x374   :  { %6060 = vmatmul.mubr.f32.gmra.mrb[128].mxu0 %v10519_v51  ;;  %4163 = vmatprep.mubr.f32.mxu1 %v10520_v52  ;;  %v8684_v51 = vpack.c.bf16 %v1156_v45, %v1150_v42  ;;  %v1211_v42 = vld [vmem:[#allocation5 + $0x1468] sm:$0xff] }
 0x375   :  { %6065 = vmatprep.mubr.f32.mxu0 %v10520_v52  ;;  %v8302_v52 = vpack.c.bf16 %v1167_v37, %v1161_v46  ;;  %v1208_v37 = vld [vmem:[#allocation5 + $0x1450] sm:$0xff] }
 0x377   :  { %4164 = vmatmul.mubr.f32.gmra.mrb[130].mxu1 %v10521_v53 }
 0x378   :  { %6066 = vmatmul.mubr.f32.gmra.mrb[130].mxu0 %v10521_v53  ;;  %4169 = vmatprep.mubr.f32.mxu1 %v10522_v54  ;;  %v1160_v53 = vld [vmem:[#allocation5 + $0x12d0] sm:$0xff] }
 0x379   :  { %6071 = vmatprep.mubr.f32.mxu0 %v10522_v54  ;;  %v1166_v54 = vld [vmem:[#allocation5 + $0x1300] sm:$0xff] }
 0x37b   :  { %4170 = vmatmul.mubr.f32.gmra.mrb[132].mxu1 %v10523_v55 }
 0x37c   :  { %6072 = vmatmul.mubr.f32.gmra.mrb[132].mxu0 %v10523_v55  ;;  %4175 = vmatprep.mubr.f32.mxu1 %v10524_v56  ;;  %v1162_v55 = vld [vmem:[#allocation5 + $0x12e0] sm:$0xff] }
 0x37d   :  { %6077 = vmatprep.mubr.f32.mxu0 %v10524_v56  ;;  %v10561_v56 = vld [vmem:[#allocation2 + $0x80] sm:$0xff] }
 0x37f   :  { %4176 = vmatmul.mubr.f32.gmra.mrb[134].mxu1 %v10525_v57 }
 0x380   :  { %6078 = vmatmul.mubr.f32.gmra.mrb[134].mxu0 %v10525_v57  ;;  %4181 = vmatprep.mubr.f32.mxu1 %v10526_v58  ;;  %v8686_v57 = vpack.c.bf16 %v1169_v48, %v1163_v47  ;;  %v1214_v47 = vld [vmem:[#allocation5 + $0x1480] sm:$0xff] }
 0x381   :  { %6083 = vmatprep.mubr.f32.mxu0 %v10526_v58  ;;  %v1168_v58 = vld [vmem:[#allocation5 + $0x1310] sm:$0xff]  ;;  %v1210_v48 = vld [vmem:[#allocation5 + $0x1460] sm:$0xff] }
 0x383   :  { %4182 = vmatmul.mubr.f32.gmra.mrb[136].mxu1 %v10527_v59 }
 0x384   :  { %6084 = vmatmul.mubr.f32.gmra.mrb[136].mxu0 %v10527_v59  ;;  %4187 = vmatprep.mubr.f32.mxu1 %v10528_v60  ;;  %v1173_v59 = vld [vmem:[#allocation5 + $0x1338] sm:$0xff] }
 0x385   :  { %6089 = vmatprep.mubr.f32.mxu0 %v10528_v60  ;;  %v1179_v60 = vld [vmem:[#allocation5 + $0x1368] sm:$0xff] }
 0x387   :  { %4188 = vmatmul.mubr.f32.gmra.mrb[138].mxu1 %v10529_v61 }
 0x388   :  { %6090 = vmatmul.mubr.f32.gmra.mrb[138].mxu0 %v10529_v61  ;;  %4193 = vmatprep.mubr.f32.mxu1 %v10530_v62  ;;  %v10562_v61 = vld [vmem:[#allocation2 + $0xe8] sm:$0xff] }
 0x389   :  { %6095 = vmatprep.mubr.f32.mxu0 %v10530_v62  ;;  %v1175_v62 = vld [vmem:[#allocation5 + $0x1348] sm:$0xff] }
 0x38b   :  { %4194 = vmatmul.mubr.f32.gmra.mrb[140].mxu1 %v10531_v0 }
 0x38c   :  { %6096 = vmatmul.mubr.f32.gmra.mrb[140].mxu0 %v10531_v0  ;;  %4199 = vmatprep.mubr.f32.mxu1 %v10532_v1  ;;  %v1181_v0 = vld [vmem:[#allocation5 + $0x1378] sm:$0xff] }
 0x38d   :  { %6101 = vmatprep.mubr.f32.mxu0 %v10532_v1  ;;  %v8304_v1 = vpack.c.bf16 %v1166_v54, %v1160_v53  ;;  %v1227_v53 = vld [vmem:[#allocation5 + $0x14e8] sm:$0xff] }
 0x38e   :  { %v10570_v54 = vld [vmem:[#allocation2 + $0x268] sm:$0xff] }
 0x38f   :  { %4200 = vmatmul.mubr.f32.gmra.mrb[142].mxu1 %v10533_v2 }
 0x390   :  { %6102 = vmatmul.mubr.f32.gmra.mrb[142].mxu0 %v10533_v2  ;;  %4205 = vmatprep.mubr.f32.mxu1 %v10534_v3  ;;  %v8688_v2 = vpack.c.bf16 %v1168_v58, %v1162_v55  ;;  %v1223_v55 = vld [vmem:[#allocation5 + $0x14c8] sm:$0xff] }
 0x391   :  { %6107 = vmatprep.mubr.f32.mxu0 %v10534_v3  ;;  %v8306_v3 = vpack.c.bf16 %v1179_v60, %v1173_v59  ;;  %v1220_v60 = vld [vmem:[#allocation5 + $0x14b0] sm:$0xff] }
 0x393   :  { %4206 = vmatmul.mubr.f32.gmra.mrb[144].mxu1 %v10535_v4 }
 0x394   :  { %6108 = vmatmul.mubr.f32.gmra.mrb[144].mxu0 %v10535_v4  ;;  %4211 = vmatprep.mubr.f32.mxu1 %v10536_v5  ;;  %v1172_v4 = vld [vmem:[#allocation5 + $0x1330] sm:$0xff] }
 0x395   :  { %6113 = vmatprep.mubr.f32.mxu0 %v10536_v5  ;;  %v1178_v5 = vld [vmem:[#allocation5 + $0x1360] sm:$0xff] }
 0x397   :  { %4212 = vmatmul.mubr.f32.gmra.mrb[146].mxu1 %v10537_v6 }
 0x398   :  { %6114 = vmatmul.mubr.f32.gmra.mrb[146].mxu0 %v10537_v6  ;;  %4217 = vmatprep.mubr.f32.mxu1 %v10538_v7  ;;  %v1174_v6 = vld [vmem:[#allocation5 + $0x1340] sm:$0xff] }
 0x399   :  { %6119 = vmatprep.mubr.f32.mxu0 %v10538_v7  ;;  %v10563_v7 = vld [vmem:[#allocation2 + $0xe0] sm:$0xff] }
 0x39b   :  { %4218 = vmatmul.mubr.f32.gmra.mrb[148].mxu1 %v10539_v8 }
 0x39c   :  { %6120 = vmatmul.mubr.f32.gmra.mrb[148].mxu0 %v10539_v8  ;;  %4223 = vmatprep.mubr.f32.mxu1 %v10540_v9  ;;  %v8690_v8 = vpack.c.bf16 %v1181_v0, %v1175_v62  ;;  %v1222_v62 = vld [vmem:[#allocation5 + $0x14c0] sm:$0xff] }
 0x39d   :  { %6125 = vmatprep.mubr.f32.mxu0 %v10540_v9  ;;  %v1180_v9 = vld [vmem:[#allocation5 + $0x1370] sm:$0xff]  ;;  %v10571_v0 = vld [vmem:[#allocation2 + $0x260] sm:$0xff] }
 0x39f   :  { %4224 = vmatmul.mubr.f32.gmra.mrb[150].mxu1 %v10541_v10 }
 0x3a0   :  { %6126 = vmatmul.mubr.f32.gmra.mrb[150].mxu0 %v10541_v10  ;;  %4229 = vmatprep.mubr.f32.mxu1 %v10542_v11  ;;  %v1185_v10 = vld [vmem:[#allocation5 + $0x1398] sm:$0xff] }
 0x3a1   :  { %6131 = vmatprep.mubr.f32.mxu0 %v10542_v11  ;;  %v1191_v11 = vld [vmem:[#allocation5 + $0x13c8] sm:$0xff] }
 0x3a3   :  { %4230 = vmatmul.mubr.f32.gmra.mrb[152].mxu1 %v10543_v12 }
 0x3a4   :  { %6132 = vmatmul.mubr.f32.gmra.mrb[152].mxu0 %v10543_v12  ;;  %4235 = vmatprep.mubr.f32.mxu1 %v10544_v13  ;;  %v10564_v12 = vld [vmem:[#allocation2 + $0x148] sm:$0xff] }
 0x3a5   :  { %6137 = vmatprep.mubr.f32.mxu0 %v10544_v13  ;;  %v1187_v13 = vld [vmem:[#allocation5 + $0x13a8] sm:$0xff] }
 0x3a7   :  { %4236 = vmatmul.mubr.f32.gmra.mrb[154].mxu1 %v10545_v14 }
 0x3a8   :  { %6138 = vmatmul.mubr.f32.gmra.mrb[154].mxu0 %v10545_v14  ;;  %4241 = vmatprep.mubr.f32.mxu1 %v10546_v15  ;;  %v1193_v14 = vld [vmem:[#allocation5 + $0x13d8] sm:$0xff] }
 0x3a9   :  { %6143 = vmatprep.mubr.f32.mxu0 %v10546_v15  ;;  %v8308_v15 = vpack.c.bf16 %v1178_v5, %v1172_v4  ;;  %v1239_v4 = vld [vmem:[#allocation5 + $0x1548] sm:$0xff] }
 0x3aa   :  { %v10572_v5 = vld [vmem:[#allocation2 + $0x2c8] sm:$0xff] }
 0x3ab   :  { %4242 = vmatmul.mubr.f32.gmra.mrb[156].mxu1 %v10547_v16 }
 0x3ac   :  { %6144 = vmatmul.mubr.f32.gmra.mrb[156].mxu0 %v10547_v16  ;;  %4247 = vmatprep.mubr.f32.mxu1 %v10548_v17  ;;  %v8692_v16 = vpack.c.bf16 %v1180_v9, %v1174_v6  ;;  %v1235_v6 = vld [vmem:[#allocation5 + $0x1528] sm:$0xff] }
 0x3ad   :  { %6149 = vmatprep.mubr.f32.mxu0 %v10548_v17  ;;  %v8310_v17 = vpack.c.bf16 %v1191_v11, %v1185_v10  ;;  %v1232_v11 = vld [vmem:[#allocation5 + $0x1510] sm:$0xff] }
 0x3af   :  { %4248 = vmatmul.mubr.f32.gmra.mrb[158].mxu1 %v10549_v18 }
 0x3b0   :  { %6150 = vmatmul.mubr.f32.gmra.mrb[158].mxu0 %v10549_v18  ;;  %4253 = vmatprep.mubr.f32.mxu1 %v10550_v19  ;;  %v1184_v18 = vld [vmem:[#allocation5 + $0x1390] sm:$0xff] }
 0x3b1   :  { %6155 = vmatprep.mubr.f32.mxu0 %v10550_v19  ;;  %v1190_v19 = vld [vmem:[#allocation5 + $0x13c0] sm:$0xff] }
 0x3b2   :  { %v8312_v29 = vpack.c.bf16 %v1190_v19, %v1184_v18  ;;  %v1251_v18 = vld [vmem:[#allocation5 + $0x15a8] sm:$0xff] }
 0x3b3   :  { %4254 = vmatmul.mubr.f32.gmra.mrb[160].mxu1 %v10551_v20  ;;  %v10574_v19 = vld [vmem:[#allocation2 + $0x328] sm:$0xff] }
 0x3b4   :  { %6156 = vmatmul.mubr.f32.gmra.mrb[160].mxu0 %v10551_v20  ;;  %4259 = vmatprep.mubr.f32.mxu1 %v10552_v21  ;;  %v1186_v20 = vld [vmem:[#allocation5 + $0x13a0] sm:$0xff] }
 0x3b5   :  { %6161 = vmatprep.mubr.f32.mxu0 %v10552_v21  ;;  %v10565_v21 = vld [vmem:[#allocation2 + $0x140] sm:$0xff] }
 0x3b7   :  { %4260 = vmatmul.mubr.f32.gmra.mrb[162].mxu1 %v10553_v22 }
 0x3b8   :  { %6162 = vmatmul.mubr.f32.gmra.mrb[162].mxu0 %v10553_v22  ;;  %4265 = vmatprep.mubr.f32.mxu1 %v10554_v23  ;;  %v8694_v22 = vpack.c.bf16 %v1193_v14, %v1187_v13  ;;  %v1234_v13 = vld [vmem:[#allocation5 + $0x1520] sm:$0xff] }
 0x3b9   :  { %6167 = vmatprep.mubr.f32.mxu0 %v10554_v23  ;;  %v1192_v23 = vld [vmem:[#allocation5 + $0x13d0] sm:$0xff]  ;;  %v10573_v14 = vld [vmem:[#allocation2 + $0x2c0] sm:$0xff] }
 0x3bb   :  { %4266 = vmatmul.mubr.f32.gmra.mrb[164].mxu1 %v10555_v24 }
 0x3bc   :  { %6168 = vmatmul.mubr.f32.gmra.mrb[164].mxu0 %v10555_v24  ;;  %4271 = vmatprep.mubr.f32.mxu1 %v10556_v25  ;;  %v1197_v24 = vld [vmem:[#allocation5 + $0x13f8] sm:$0xff] }
 0x3bd   :  { %6173 = vmatprep.mubr.f32.mxu0 %v10556_v25  ;;  %v1203_v25 = vld [vmem:[#allocation5 + $0x1428] sm:$0xff] }
 0x3be   :  { %v8314_v32 = vpack.c.bf16 %v1203_v25, %v1197_v24  ;;  %v1244_v25 = vld [vmem:[#allocation5 + $0x1570] sm:$0xff] }
 0x3bf   :  { %4272 = vmatmul.mubr.f32.gmra.mrb[166].mxu1 %v10557_v30 }
 0x3c0   :  { %6174 = vmatmul.mubr.f32.gmra.mrb[166].mxu0 %v10557_v30  ;;  %4342 = vmatprep.mubr.f32.mxu1 %v10558_v34  ;;  %v8696_v30 = vpack.c.bf16 %v1192_v23, %v1186_v20  ;;  %v1247_v20 = vld [vmem:[#allocation5 + $0x1588] sm:$0xff] }
 0x3c1   :  { %6244 = vmatprep.mubr.f32.mxu0 %v10558_v34  ;;  %v1202_v34 = vld [vmem:[#allocation5 + $0x1420] sm:$0xff] }
 0x3c3   :  { %4343 = vmatmul.mubr.f32.vlgmr.msra.gmra.mrb[84].mxu1 %v10559_v43 }
 0x3c4   :  { %6245 = vmatmul.mubr.f32.vlgmr.msra.gmra.mrb[84].mxu0 %v10559_v43  ;;  %8297 = vmatpush1.bf16.msra.mxu1 %v8296_v35  ;;  %v1198_v35 = vld [vmem:[#allocation5 + $0x1400] sm:$0xff]  ;;  %v1217_v43 = vld [vmem:[#allocation5 + $0x1498] sm:$0xff] }
 0x3c5   :  { %8681 = vmatpush1.bf16.msra.mxu0 %v8680_v39  ;;  %4348 = vmatprep.mubr.f32.mxu1 %v10560_v49  ;;  %v1204_v39 = vld [vmem:[#allocation5 + $0x1430] sm:$0xff] }
 0x3c6   :  { %6250 = vmatprep.mubr.f32.mxu0 %v10560_v49  ;;  %8299 = vmatprep.subr.bf16.mxu1 %v8298_v40  ;;  %v1209_v40 = vld [vmem:[#allocation5 + $0x1458] sm:$0xff]  ;;  %v8700_v45 = vpack.c.bf16 %v1204_v39, %v1198_v35  ;;  %v10569_v49 = vld [vmem:[#allocation2 + $0x200] sm:$0xff]  ;;  %v1259_v35 = vld [vmem:[#allocation5 + $0x15e8] sm:$0xff] }
 0x3c7   :  { %4349 = vmatmul.mubr.f32.gmra.mrb[86].mxu1 %v10561_v56  ;;  %8683 = vmatprep.subr.bf16.mxu0 %v8682_v44  ;;  %v8316_v44 = vpack.c.bf16 %v1202_v34, %v1196_v33  ;;  %v8318_v46 = vpack.c.bf16 %v1215_v31, %v1209_v40  ;;  %v1263_v33 = vld [vmem:[#allocation5 + $0x1608] sm:$0xff]  ;;  %v1256_v31 = vld [vmem:[#allocation5 + $0x15d0] sm:$0xff] }
 0x3c8   :  { %6251 = vmatmul.mubr.f32.gmra.mrb[86].mxu0 %v10561_v56  ;;  %4354 = vmatprep.mubr.f32.mxu1 %v10562_v61  ;;  %v1229_v56 = vld [vmem:[#allocation5 + $0x14f8] sm:$0xff]  ;;  %v10576_v34 = vld [vmem:[#allocation2 + $0x388] sm:$0xff] }
 0x3c9   :  { %6256 = vmatprep.mubr.f32.mxu0 %v10562_v61  ;;  %8301 = vmatpush1.bf16.msra.mxu1 %v8300_v50  ;;  %v8702_v50 = vpack.c.bf16 %v1217_v43, %v1211_v42  ;;  %v1226_v61 = vld [vmem:[#allocation5 + $0x14e0] sm:$0xff] }
 0x3ca   :  { %8685 = vmatpush1.bf16.msra.mxu0 %v8684_v51  ;;  %8303 = vmatprep.subr.bf16.mxu1 %v8302_v52  ;;  %v1216_v51 = vld [vmem:[#allocation5 + $0x1490] sm:$0xff]  ;;  %v1221_v52 = vld [vmem:[#allocation5 + $0x14b8] sm:$0xff]  ;;  %v1258_v42 = vld [vmem:[#allocation5 + $0x15e0] sm:$0xff] }
 0x3cb   :  { %4355 = vmatmul.mubr.f32.gmra.mrb[88].mxu1 %v10563_v7  ;;  %8687 = vmatprep.subr.bf16.mxu0 %v8686_v57  ;;  %v8320_v57 = vpack.c.bf16 %v1214_v47, %v1208_v37  ;;  %v8704_v58 = vpack.c.bf16 %v1216_v51, %v1210_v48  ;;  %v8322_v59 = vpack.c.bf16 %v1227_v53, %v1221_v52  ;;  %v10577_v43 = vld [vmem:[#allocation2 + $0x380] sm:$0xff]  ;;  %v1275_v37 = vld [vmem:[#allocation5 + $0x1668] sm:$0xff]  ;;  %v1268_v53 = vld [vmem:[#allocation5 + $0x1630] sm:$0xff] }
 0x3cc   :  { %6257 = vmatmul.mubr.f32.gmra.mrb[88].mxu0 %v10563_v7  ;;  %4360 = vmatprep.mubr.f32.mxu1 %v10564_v12  ;;  %v1241_v7 = vld [vmem:[#allocation5 + $0x1558] sm:$0xff]  ;;  %v10578_v47 = vld [vmem:[#allocation2 + $0x3e8] sm:$0xff] }
 0x3cd   :  { %6262 = vmatprep.mubr.f32.mxu0 %v10564_v12  ;;  %8305 = vmatpush1.bf16.msra.mxu1 %v8304_v1  ;;  %v8706_v1 = vpack.c.bf16 %v1229_v56, %v1223_v55  ;;  %v1238_v12 = vld [vmem:[#allocation5 + $0x1540] sm:$0xff]  ;;  %v1271_v48 = vld [vmem:[#allocation5 + $0x1648] sm:$0xff] }
 0x3ce   :  { %8689 = vmatpush1.bf16.msra.mxu0 %v8688_v2  ;;  %8307 = vmatprep.subr.bf16.mxu1 %v8306_v3  ;;  %v1228_v2 = vld [vmem:[#allocation5 + $0x14f0] sm:$0xff]  ;;  %v1233_v3 = vld [vmem:[#allocation5 + $0x1518] sm:$0xff]  ;;  %v1270_v55 = vld [vmem:[#allocation5 + $0x1640] sm:$0xff] }
 0x3cf   :  { %4361 = vmatmul.mubr.f32.gmra.mrb[90].mxu1 %v10565_v21  ;;  %8691 = vmatprep.subr.bf16.mxu0 %v8690_v8  ;;  %v8324_v8 = vpack.c.bf16 %v1226_v61, %v1220_v60  ;;  %v8708_v9 = vpack.c.bf16 %v1228_v2, %v1222_v62  ;;  %v8326_v10 = vpack.c.bf16 %v1239_v4, %v1233_v3  ;;  %v10579_v56 = vld [vmem:[#allocation2 + $0x3e0] sm:$0xff]  ;;  %v1287_v60 = vld [vmem:[#allocation5 + $0x16c8] sm:$0xff]  ;;  %v1280_v4 = vld [vmem:[#allocation5 + $0x1690] sm:$0xff] }
 0x3d0   :  { %6263 = vmatmul.mubr.f32.gmra.mrb[90].mxu0 %v10565_v21  ;;  %4366 = vmatprep.mubr.f32.mxu1 %v10566_v26  ;;  %v1253_v21 = vld [vmem:[#allocation5 + $0x15b8] sm:$0xff]  ;;  %v10580_v61 = vld [vmem:[#allocation2 + $0x448] sm:$0xff] }
 0x3d1   :  { %6268 = vmatprep.mubr.f32.mxu0 %v10566_v26  ;;  %8309 = vmatpush1.bf16.msra.mxu1 %v8308_v15  ;;  %v8710_v15 = vpack.c.bf16 %v1241_v7, %v1235_v6  ;;  %v1250_v26 = vld [vmem:[#allocation5 + $0x15a0] sm:$0xff]  ;;  %v1283_v62 = vld [vmem:[#allocation5 + $0x16a8] sm:$0xff] }
 0x3d2   :  { %8693 = vmatpush1.bf16.msra.mxu0 %v8692_v16  ;;  %8311 = vmatprep.subr.bf16.mxu1 %v8310_v17  ;;  %v1240_v16 = vld [vmem:[#allocation5 + $0x1550] sm:$0xff]  ;;  %v1245_v17 = vld [vmem:[#allocation5 + $0x1578] sm:$0xff]  ;;  %v1282_v6 = vld [vmem:[#allocation5 + $0x16a0] sm:$0xff] }
 0x3d3   :  { %4367 = vmatmul.mubr.f32.gmra.mrb[92].mxu1 %v10567_v36  ;;  %8695 = vmatprep.subr.bf16.mxu0 %v8694_v22  ;;  %v8328_v22 = vpack.c.bf16 %v1238_v12, %v1232_v11  ;;  %v8712_v23 = vpack.c.bf16 %v1240_v16, %v1234_v13  ;;  %v8330_v24 = vpack.c.bf16 %v1251_v18, %v1245_v17  ;;  %v10581_v7 = vld [vmem:[#allocation2 + $0x440] sm:$0xff]  ;;  %v1299_v11 = vld [vmem:[#allocation5 + $0x1728] sm:$0xff]  ;;  %v1292_v18 = vld [vmem:[#allocation5 + $0x16f0] sm:$0xff] }
 0x3d4   :  { %6269 = vmatmul.mubr.f32.gmra.mrb[92].mxu0 %v10567_v36  ;;  %4372 = vmatprep.mubr.f32.mxu1 %v10568_v41  ;;  %v1265_v36 = vld [vmem:[#allocation5 + $0x1618] sm:$0xff]  ;;  %v10582_v12 = vld [vmem:[#allocation2 + $0x4a8] sm:$0xff] }
 0x3d5   :  { %6274 = vmatprep.mubr.f32.mxu0 %v10568_v41  ;;  %8313 = vmatpush1.bf16.msra.mxu1 %v8312_v29  ;;  %v8714_v29 = vpack.c.bf16 %v1253_v21, %v1247_v20  ;;  %v1262_v41 = vld [vmem:[#allocation5 + $0x1600] sm:$0xff]  ;;  %v1295_v13 = vld [vmem:[#allocation5 + $0x1708] sm:$0xff] }
 0x3d6   :  { %8697 = vmatpush1.bf16.msra.mxu0 %v8696_v30  ;;  %8315 = vmatprep.subr.bf16.mxu1 %v8314_v32  ;;  %v1252_v30 = vld [vmem:[#allocation5 + $0x15b0] sm:$0xff]  ;;  %v1257_v32 = vld [vmem:[#allocation5 + $0x15d8] sm:$0xff]  ;;  %v1294_v20 = vld [vmem:[#allocation5 + $0x1700] sm:$0xff] }
 0x3d7   :  { %4373 = vmatmul.mubr.f32.gmra.mrb[94].mxu1 %v10569_v49  ;;  %8699 = vmatprep.subr.bf16.mxu0 %v8698_v38  ;;  %v8332_v38 = vpack.c.bf16 %v1250_v26, %v1244_v25  ;;  %v8716_v39 = vpack.c.bf16 %v1252_v30, %v1246_v27  ;;  %v8334_v40 = vpack.c.bf16 %v1263_v33, %v1257_v32  ;;  %v10583_v21 = vld [vmem:[#allocation2 + $0x4a0] sm:$0xff]  ;;  %v1311_v25 = vld [vmem:[#allocation5 + $0x1788] sm:$0xff]  ;;  %v1304_v33 = vld [vmem:[#allocation5 + $0x1750] sm:$0xff] }
 0x3d8   :  { %6275 = vmatmul.mubr.f32.gmra.mrb[94].mxu0 %v10569_v49  ;;  %4378 = vmatprep.mubr.f32.mxu1 %v10570_v54  ;;  %v1277_v49 = vld [vmem:[#allocation5 + $0x1678] sm:$0xff]  ;;  %v10584_v26 = vld [vmem:[#allocation2 + $0x508] sm:$0xff] }
 0x3d9   :  { %6280 = vmatprep.mubr.f32.mxu0 %v10570_v54  ;;  %8317 = vmatpush1.bf16.msra.mxu1 %v8316_v44  ;;  %v8718_v44 = vpack.c.bf16 %v1265_v36, %v1259_v35  ;;  %v1274_v54 = vld [vmem:[#allocation5 + $0x1660] sm:$0xff]  ;;  %v1307_v27 = vld [vmem:[#allocation5 + $0x1768] sm:$0xff] }
 0x3da   :  { %8701 = vmatpush1.bf16.msra.mxu0 %v8700_v45  ;;  %8319 = vmatprep.subr.bf16.mxu1 %v8318_v46  ;;  %v1264_v45 = vld [vmem:[#allocation5 + $0x1610] sm:$0xff]  ;;  %v1269_v46 = vld [vmem:[#allocation5 + $0x1638] sm:$0xff]  ;;  %v1306_v35 = vld [vmem:[#allocation5 + $0x1760] sm:$0xff] }
 0x3db   :  { %4379 = vmatmul.mubr.f32.gmra.mrb[96].mxu1 %v10571_v0  ;;  %8703 = vmatprep.subr.bf16.mxu0 %v8702_v50  ;;  %v8336_v50 = vpack.c.bf16 %v1262_v41, %v1256_v31  ;;  %v8720_v51 = vpack.c.bf16 %v1264_v45, %v1258_v42  ;;  %v8338_v52 = vpack.c.bf16 %v1275_v37, %v1269_v46  ;;  %v10585_v36 = vld [vmem:[#allocation2 + $0x500] sm:$0xff]  ;;  %v1323_v31 = vld [vmem:[#allocation5 + $0x17e8] sm:$0xff]  ;;  %v1316_v37 = vld [vmem:[#allocation5 + $0x17b0] sm:$0xff] }
 0x3dc   :  { %6281 = vmatmul.mubr.f32.gmra.mrb[96].mxu0 %v10571_v0  ;;  %4384 = vmatprep.mubr.f32.mxu1 %v10572_v5  ;;  %v1289_v0 = vld [vmem:[#allocation5 + $0x16d8] sm:$0xff]  ;;  %v10586_v41 = vld [vmem:[#allocation2 + $0x568] sm:$0xff] }
 0x3dd   :  { %6286 = vmatprep.mubr.f32.mxu0 %v10572_v5  ;;  %8321 = vmatpush1.bf16.msra.mxu1 %v8320_v57  ;;  %v8722_v57 = vpack.c.bf16 %v1277_v49, %v1271_v48  ;;  %v1286_v5 = vld [vmem:[#allocation5 + $0x16c0] sm:$0xff]  ;;  %v1319_v42 = vld [vmem:[#allocation5 + $0x17c8] sm:$0xff] }
 0x3de   :  { %8705 = vmatpush1.bf16.msra.mxu0 %v8704_v58  ;;  %8323 = vmatprep.subr.bf16.mxu1 %v8322_v59  ;;  %v1276_v58 = vld [vmem:[#allocation5 + $0x1670] sm:$0xff]  ;;  %v1281_v59 = vld [vmem:[#allocation5 + $0x1698] sm:$0xff]  ;;  %v1318_v48 = vld [vmem:[#allocation5 + $0x17c0] sm:$0xff] }
 0x3df   :  { %4385 = vmatmul.mubr.f32.gmra.mrb[98].mxu1 %v10573_v14  ;;  %8707 = vmatprep.subr.bf16.mxu0 %v8706_v1  ;;  %v8340_v1 = vpack.c.bf16 %v1274_v54, %v1268_v53  ;;  %v8724_v2 = vpack.c.bf16 %v1276_v58, %v1270_v55  ;;  %v8342_v3 = vpack.c.bf16 %v1287_v60, %v1281_v59  ;;  %v10587_v49 = vld [vmem:[#allocation2 + $0x560] sm:$0xff]  ;;  %v1335_v53 = vld [vmem:[#allocation5 + $0x1848] sm:$0xff] }
 0x3e0   :  { %6287 = vmatmul.mubr.f32.gmra.mrb[98].mxu0 %v10573_v14  ;;  %4390 = vmatprep.mubr.f32.mxu1 %v10574_v19  ;;  %v1301_v14 = vld [vmem:[#allocation5 + $0x1738] sm:$0xff]  ;;  %v10588_v54 = vld [vmem:[#allocation2 + $0x5c8] sm:$0xff]  ;;  %v10589_v60 = vld [vmem:[#allocation2 + $0x5c0] sm:$0xff] }
 0x3e1   :  { %6292 = vmatprep.mubr.f32.mxu0 %v10574_v19  ;;  %8325 = vmatpush1.bf16.msra.mxu1 %v8324_v8  ;;  %v8726_v8 = vpack.c.bf16 %v1289_v0, %v1283_v62  ;;  %v1298_v19 = vld [vmem:[#allocation5 + $0x1720] sm:$0xff]  ;;  %v1331_v55 = vld [vmem:[#allocation5 + $0x1828] sm:$0xff] }
 0x3e2   :  { %8709 = vmatpush1.bf16.msra.mxu0 %v8708_v9  ;;  %8327 = vmatprep.subr.bf16.mxu1 %v8326_v10  ;;  %v1288_v9 = vld [vmem:[#allocation5 + $0x16d0] sm:$0xff]  ;;  %v1293_v10 = vld [vmem:[#allocation5 + $0x16f8] sm:$0xff]  ;;  %v10590_v62 = vld [vmem:[#allocation2 + $0x628] sm:$0xff] }
 0x3e3   :  { %4391 = vmatmul.mubr.f32.gmra.mrb[100].mxu1 %v10575_v28  ;;  %8711 = vmatprep.subr.bf16.mxu0 %v8710_v15  ;;  %v8344_v15 = vpack.c.bf16 %v1286_v5, %v1280_v4  ;;  %v8728_v16 = vpack.c.bf16 %v1288_v9, %v1282_v6  ;;  %v8346_v17 = vpack.c.bf16 %v1299_v11, %v1293_v10  ;;  %v10591_v0 = vld [vmem:[#allocation2 + $0x620] sm:$0xff]  ;;  %v10596_v5 = vld [vmem:[#allocation2 + $0x748] sm:$0xff] }
 0x3e4   :  { %6293 = vmatmul.mubr.f32.gmra.mrb[100].mxu0 %v10575_v28  ;;  %4396 = vmatprep.mubr.f32.mxu1 %v10576_v34  ;;  %v1313_v28 = vld [vmem:[#allocation5 + $0x1798] sm:$0xff]  ;;  %v10595_v4 = vld [vmem:[#allocation2 + $0x6e0] sm:$0xff]  ;;  %v10600_v9 = vld [vmem:[#allocation2 + $0x808] sm:$0xff] }
 0x3e5   :  { %6298 = vmatprep.mubr.f32.mxu0 %v10576_v34  ;;  %8329 = vmatpush1.bf16.msra.mxu1 %v8328_v22  ;;  %v8730_v22 = vpack.c.bf16 %v1301_v14, %v1295_v13  ;;  %v1310_v34 = vld [vmem:[#allocation5 + $0x1780] sm:$0xff]  ;;  %v10602_v11 = vld [vmem:[#allocation2 + $0x868] sm:$0xff] }
 0x3e6   :  { %8713 = vmatpush1.bf16.msra.mxu0 %v8712_v23  ;;  %8331 = vmatprep.subr.bf16.mxu1 %v8330_v24  ;;  %v1300_v23 = vld [vmem:[#allocation5 + $0x1730] sm:$0xff]  ;;  %v1305_v24 = vld [vmem:[#allocation5 + $0x1758] sm:$0xff]  ;;  %v10597_v6 = vld [vmem:[#allocation2 + $0x740] sm:$0xff] }
 0x3e7   :  { %4397 = vmatmul.mubr.f32.gmra.mrb[102].mxu1 %v10577_v43  ;;  %8715 = vmatprep.subr.bf16.mxu0 %v8714_v29  ;;  %v8348_v29 = vpack.c.bf16 %v1298_v19, %v1292_v18  ;;  %v8732_v30 = vpack.c.bf16 %v1300_v23, %v1294_v20  ;;  %v8350_v32 = vpack.c.bf16 %v1311_v25, %v1305_v24  ;;  %v10601_v10 = vld [vmem:[#allocation2 + $0x800] sm:$0xff]  ;;  %v10604_v13 = vld [vmem:[#allocation2 + $0x8c8] sm:$0xff] }
 0x3e8   :  { %6299 = vmatmul.mubr.f32.gmra.mrb[102].mxu0 %v10577_v43  ;;  %4402 = vmatprep.mubr.f32.mxu1 %v10578_v47  ;;  %v1325_v43 = vld [vmem:[#allocation5 + $0x17f8] sm:$0xff]  ;;  %v10605_v14 = vld [vmem:[#allocation2 + $0x8c0] sm:$0xff]  ;;  %v10610_v19 = vld [vmem:[#allocation2 + $0x9e8] sm:$0xff] }
 0x3e9   :  { %6304 = vmatprep.mubr.f32.mxu0 %v10578_v47  ;;  %8333 = vmatpush1.bf16.msra.mxu1 %v8332_v38  ;;  %v8734_v38 = vpack.c.bf16 %v1313_v28, %v1307_v27  ;;  %v1322_v47 = vld [vmem:[#allocation5 + $0x17e0] sm:$0xff]  ;;  %v10614_v23 = vld [vmem:[#allocation2 + $0xaa8] sm:$0xff] }
 0x3ea   :  { %8717 = vmatpush1.bf16.msra.mxu0 %v8716_v39  ;;  %8335 = vmatprep.subr.bf16.mxu1 %v8334_v40  ;;  %v1312_v39 = vld [vmem:[#allocation5 + $0x1790] sm:$0xff]  ;;  %v1317_v40 = vld [vmem:[#allocation5 + $0x17b8] sm:$0xff]  ;;  %v10609_v18 = vld [vmem:[#allocation2 + $0x980] sm:$0xff] }
 0x3eb   :  { %4403 = vmatmul.mubr.f32.gmra.mrb[104].mxu1 %v10579_v56  ;;  %8719 = vmatprep.subr.bf16.mxu0 %v8718_v44  ;;  %v8352_v44 = vpack.c.bf16 %v1310_v34, %v1304_v33  ;;  %v8736_v45 = vpack.c.bf16 %v1312_v39, %v1306_v35  ;;  %v8354_v46 = vpack.c.bf16 %v1323_v31, %v1317_v40  ;;  %v10611_v20 = vld [vmem:[#allocation2 + $0x9e0] sm:$0xff]  ;;  %v10616_v25 = vld [vmem:[#allocation2 + $0xb08] sm:$0xff] }
 0x3ec   :  { %6305 = vmatmul.mubr.f32.gmra.mrb[104].mxu0 %v10579_v56  ;;  %4408 = vmatprep.mubr.f32.mxu1 %v10580_v61  ;;  %v1337_v56 = vld [vmem:[#allocation5 + $0x1858] sm:$0xff]  ;;  %v10615_v24 = vld [vmem:[#allocation2 + $0xaa0] sm:$0xff]  ;;  %v10618_v27 = vld [vmem:[#allocation2 + $0xb68] sm:$0xff] }
 0x3ed   :  { %6310 = vmatprep.mubr.f32.mxu0 %v10580_v61  ;;  %8337 = vmatpush1.bf16.msra.mxu1 %v8336_v50  ;;  %v8738_v50 = vpack.c.bf16 %v1325_v43, %v1319_v42  ;;  %v8742_v61 = vpack.c.bf16 %v1337_v56, %v1331_v55  ;;  %v10619_v28 = vld [vmem:[#allocation2 + $0xb60] sm:$0xff]  ;;  %v10624_v34 = vld [vmem:[#allocation2 + $0xc88] sm:$0xff]  ;;  %v1341_v55 = vld [vmem:[#allocation5 + $0x1878] sm:$0xff] }
 0x3ee   :  { %8721 = vmatpush1.bf16.msra.mxu0 %v8720_v51  ;;  %8339 = vmatprep.subr.bf16.mxu1 %v8338_v52  ;;  %v1324_v51 = vld [vmem:[#allocation5 + $0x17f0] sm:$0xff]  ;;  %v1329_v52 = vld [vmem:[#allocation5 + $0x1818] sm:$0xff]  ;;  %v10623_v33 = vld [vmem:[#allocation2 + $0xc20] sm:$0xff] }
 0x3ef   :  { %4409 = vmatmul.mubr.f32.gmra.mrb[106].mxu1 %v10581_v7  ;;  %8723 = vmatprep.subr.bf16.mxu0 %v8722_v57  ;;  %v8356_v57 = vpack.c.bf16 %v1322_v47, %v1316_v37  ;;  %v8740_v58 = vpack.c.bf16 %v1324_v51, %v1318_v48  ;;  %v8358_v59 = vpack.c.bf16 %v1335_v53, %v1329_v52  ;;  %v10625_v35 = vld [vmem:[#allocation2 + $0xc80] sm:$0xff]  ;;  %v10628_v39 = vld [vmem:[#allocation2 + $0xd48] sm:$0xff]  ;;  %v1336_v53 = vld [vmem:[#allocation5 + $0x1850] sm:$0xff] }
 0x3f0   :  { %6311 = vmatmul.mubr.f32.gmra.mrb[106].mxu0 %v10581_v7  ;;  %4414 = vmatprep.mubr.f32.mxu1 %v10582_v12  ;;  %v10598_v7 = vld [vmem:[#allocation2 + $0x7a8] sm:$0xff]  ;;  %v10629_v40 = vld [vmem:[#allocation2 + $0xd40] sm:$0xff] }
 0x3f1   :  { %6316 = vmatprep.mubr.f32.mxu0 %v10582_v12  ;;  %8341 = vmatpush1.bf16.msra.mxu1 %v8340_v1  ;;  %v10592_v1 = vld [vmem:[#allocation2 + $0x688] sm:$0xff]  ;;  %v10603_v12 = vld [vmem:[#allocation2 + $0x860] sm:$0xff] }
 0x3f2   :  { %8725 = vmatpush1.bf16.msra.mxu0 %v8724_v2  ;;  %8343 = vmatprep.subr.bf16.mxu1 %v8342_v3  ;;  %v10593_v2 = vld [vmem:[#allocation2 + $0x680] sm:$0xff]  ;;  %v10594_v3 = vld [vmem:[#allocation2 + $0x6e8] sm:$0xff] }
 0x3f3   :  { %4415 = vmatmul.mubr.f32.gmra.mrb[108].mxu1 %v10583_v21  ;;  %8727 = vmatprep.subr.bf16.mxu0 %v8726_v8  ;;  %v10599_v8 = vld [vmem:[#allocation2 + $0x7a0] sm:$0xff]  ;;  %v10630_v31 = vld [vmem:[#allocation2 + $0xda8] sm:$0xff] }
 0x3f4   :  { %6317 = vmatmul.mubr.f32.gmra.mrb[108].mxu0 %v10583_v21  ;;  %4420 = vmatprep.mubr.f32.mxu1 %v10584_v26  ;;  %v10612_v21 = vld [vmem:[#allocation2 + $0xa48] sm:$0xff]  ;;  %v10633_v43 = vld [vmem:[#allocation2 + $0xe00] sm:$0xff] }
 0x3f5   :  { %6322 = vmatprep.mubr.f32.mxu0 %v10584_v26  ;;  %8345 = vmatpush1.bf16.msra.mxu1 %v8344_v15  ;;  %v10606_v15 = vld [vmem:[#allocation2 + $0x928] sm:$0xff]  ;;  %v10617_v26 = vld [vmem:[#allocation2 + $0xb00] sm:$0xff] }
 0x3f6   :  { %8729 = vmatpush1.bf16.msra.mxu0 %v8728_v16  ;;  %8347 = vmatprep.subr.bf16.mxu1 %v8346_v17  ;;  %v10607_v16 = vld [vmem:[#allocation2 + $0x920] sm:$0xff]  ;;  %v10608_v17 = vld [vmem:[#allocation2 + $0x988] sm:$0xff] }
 0x3f7   :  { %4421 = vmatmul.mubr.f32.gmra.mrb[110].mxu1 %v10585_v36  ;;  %8731 = vmatprep.subr.bf16.mxu0 %v8730_v22  ;;  %v10613_v22 = vld [vmem:[#allocation2 + $0xa40] sm:$0xff]  ;;  %v10632_v42 = vld [vmem:[#allocation2 + $0xe08] sm:$0xff] }
 0x3f8   :  { %6323 = vmatmul.mubr.f32.gmra.mrb[110].mxu0 %v10585_v36  ;;  %4426 = vmatprep.mubr.f32.mxu1 %v10586_v41  ;;  %v10626_v36 = vld [vmem:[#allocation2 + $0xce8] sm:$0xff]  ;;  %v10637_v37 = vld [vmem:[#allocation2 + $0xec0] sm:$0xff] }
 0x3f9   :  { %6328 = vmatprep.mubr.f32.mxu0 %v10586_v41  ;;  %8349 = vmatpush1.bf16.msra.mxu1 %v8348_v29  ;;  %v10620_v29 = vld [vmem:[#allocation2 + $0xbc8] sm:$0xff]  ;;  %v10631_v41 = vld [vmem:[#allocation2 + $0xda0] sm:$0xff] }
 0x3fa   :  { %8733 = vmatpush1.bf16.msra.mxu0 %v8732_v30  ;;  %8351 = vmatprep.subr.bf16.mxu1 %v8350_v32  ;;  %v10621_v30 = vld [vmem:[#allocation2 + $0xbc0] sm:$0xff]  ;;  %v10622_v32 = vld [vmem:[#allocation2 + $0xc28] sm:$0xff] }
 0x3fb   :  { %4427 = vmatmul.mubr.f32.gmra.mrb[112].mxu1 %v10587_v49  ;;  %8735 = vmatprep.subr.bf16.mxu0 %v8734_v38  ;;  %v10627_v38 = vld [vmem:[#allocation2 + $0xce0] sm:$0xff]  ;;  %v10638_v47 = vld [vmem:[#allocation2 + $0xf28] sm:$0xff] }
 0x3fc   :  { %6329 = vmatmul.mubr.f32.gmra.mrb[112].mxu0 %v10587_v49  ;;  %4432 = vmatprep.mubr.f32.mxu1 %v10588_v54  ;;  %v10639_v48 = vld [vmem:[#allocation2 + $0xf20] sm:$0xff]  ;;  %v10640_v49 = vld [vmem:[#allocation2 + $0xf88] sm:$0xff] }
 0x3fd   :  { %6334 = vmatprep.mubr.f32.mxu0 %v10588_v54  ;;  %8353 = vmatpush1.bf16.msra.mxu1 %v8352_v44  ;;  %v10634_v44 = vld [vmem:[#allocation2 + $0xe68] sm:$0xff]  ;;  %v1334_v51 = vld [vmem:[#allocation5 + $0x1840] sm:$0xff] }
 0x3fe   :  { %8737 = vmatpush1.bf16.msra.mxu0 %v8736_v45  ;;  %8355 = vmatprep.subr.bf16.mxu1 %v8354_v46  ;;  %v10635_v45 = vld [vmem:[#allocation2 + $0xe60] sm:$0xff]  ;;  %v10636_v46 = vld [vmem:[#allocation2 + $0xec8] sm:$0xff] }
 0x3ff   :  { %4433 = vmatmul.mubr.f32.gmra.mrb[114].mxu1 %v10589_v60  ;;  %8739 = vmatprep.subr.bf16.mxu0 %v8738_v50  ;;  %v1328_v50 = vld [vmem:[#allocation5 + $0x1810] sm:$0xff]  ;;  %v1330_v52 = vld [vmem:[#allocation5 + $0x1820] sm:$0xff]  ;;  %v1347_v56 = vld [vmem:[#allocation5 + $0x18a8] sm:$0xff] }
 0x400   :  { %6335 = vmatmul.mubr.f32.gmra.mrb[114].mxu0 %v10589_v60  ;;  %4438 = vmatprep.mubr.f32.mxu1 %v10590_v62  ;;  %v10641_v54 = vld [vmem:[#allocation2 + $0xf80] sm:$0xff]  ;;  %v1349_v60 = vld [vmem:[#allocation5 + $0x18b8] sm:$0xff] }
 0x401   :  { %6340 = vmatprep.mubr.f32.mxu0 %v10590_v62  ;;  %8357 = vmatpush1.bf16.msra.mxu1 %v8356_v57  ;;  %v10642_v57 = vld [vmem:[#allocation2 + $0x38] sm:$0xff]  ;;  %v8362_v62 = vpack.c.bf16 %v1347_v56, %v1341_v55  ;;  %v1388_v56 = vld [vmem:[#allocation5 + $0x19f0] sm:$0xff] }
 0x402   :  { %8741 = vmatpush1.bf16.msra.mxu0 %v8740_v58  ;;  %8359 = vmatprep.subr.bf16.mxu1 %v8358_v59  ;;  %v8360_v58 = vpack.c.bf16 %v1334_v51, %v1328_v50  ;;  %v1343_v59 = vld [vmem:[#allocation5 + $0x1888] sm:$0xff]  ;;  %v10650_v50 = vld [vmem:[#allocation2 + $0x1b8] sm:$0xff] }
 0x403   :  { %4439 = vmatmul.mubr.f32.gmra.mrb[116].mxu1 %v10591_v0  ;;  %8743 = vmatprep.subr.bf16.mxu0 %v8742_v61  ;;  %v8744_v61 = vpack.c.bf16 %v1336_v53, %v1330_v52  ;;  %v1391_v51 = vld [vmem:[#allocation5 + $0x1a08] sm:$0xff]  ;;  %v1397_v52 = vld [vmem:[#allocation5 + $0x1a38] sm:$0xff] }
 0x404   :  { %6341 = vmatmul.mubr.f32.gmra.mrb[116].mxu0 %v10591_v0  ;;  %4444 = vmatprep.mubr.f32.mxu1 %v10592_v1  ;;  %v1340_v0 = vld [vmem:[#allocation5 + $0x1870] sm:$0xff] }
 0x405   :  { %6346 = vmatprep.mubr.f32.mxu0 %v10592_v1  ;;  %v1346_v1 = vld [vmem:[#allocation5 + $0x18a0] sm:$0xff] }
 0x407   :  { %4445 = vmatmul.mubr.f32.gmra.mrb[118].mxu1 %v10593_v2 }
 0x408   :  { %6347 = vmatmul.mubr.f32.gmra.mrb[118].mxu0 %v10593_v2  ;;  %4450 = vmatprep.mubr.f32.mxu1 %v10594_v3  ;;  %v1342_v2 = vld [vmem:[#allocation5 + $0x1880] sm:$0xff] }
 0x409   :  { %6352 = vmatprep.mubr.f32.mxu0 %v10594_v3  ;;  %v10643_v3 = vld [vmem:[#allocation2 + $0x30] sm:$0xff] }
 0x40b   :  { %4451 = vmatmul.mubr.f32.gmra.mrb[120].mxu1 %v10595_v4 }
 0x40c   :  { %6353 = vmatmul.mubr.f32.gmra.mrb[120].mxu0 %v10595_v4  ;;  %4456 = vmatprep.mubr.f32.mxu1 %v10596_v5  ;;  %v8746_v4 = vpack.c.bf16 %v1349_v60, %v1343_v59  ;;  %v10651_v59 = vld [vmem:[#allocation2 + $0x1b0] sm:$0xff]  ;;  %v8762_v60 = vpack.c.bf16 %v1397_v52, %v1391_v51  ;;  %v1438_v51 = vld [vmem:[#allocation5 + $0x1b80] sm:$0xff] }
 0x40d   :  { %6358 = vmatprep.mubr.f32.mxu0 %v10596_v5  ;;  %v1348_v5 = vld [vmem:[#allocation5 + $0x18b0] sm:$0xff] }
 0x40e   :  { %v10659_v52 = vld [vmem:[#allocation2 + $0x330] sm:$0xff] }
 0x40f   :  { %4457 = vmatmul.mubr.f32.gmra.mrb[122].mxu1 %v10597_v6 }
 0x410   :  { %6359 = vmatmul.mubr.f32.gmra.mrb[122].mxu0 %v10597_v6  ;;  %4462 = vmatprep.mubr.f32.mxu1 %v10598_v7  ;;  %v1353_v6 = vld [vmem:[#allocation5 + $0x18d8] sm:$0xff] }
 0x411   :  { %6364 = vmatprep.mubr.f32.mxu0 %v10598_v7  ;;  %v1359_v7 = vld [vmem:[#allocation5 + $0x1908] sm:$0xff] }
 0x413   :  { %4463 = vmatmul.mubr.f32.gmra.mrb[124].mxu1 %v10599_v8 }
 0x414   :  { %6365 = vmatmul.mubr.f32.gmra.mrb[124].mxu0 %v10599_v8  ;;  %4468 = vmatprep.mubr.f32.mxu1 %v10600_v9  ;;  %v1355_v8 = vld [vmem:[#allocation5 + $0x18e8] sm:$0xff] }
 0x415   :  { %6370 = vmatprep.mubr.f32.mxu0 %v10600_v9  ;;  %v1361_v9 = vld [vmem:[#allocation5 + $0x1918] sm:$0xff] }
 0x417   :  { %4469 = vmatmul.mubr.f32.gmra.mrb[126].mxu1 %v10601_v10 }
 0x418   :  { %6371 = vmatmul.mubr.f32.gmra.mrb[126].mxu0 %v10601_v10  ;;  %4474 = vmatprep.mubr.f32.mxu1 %v10602_v11  ;;  %v10644_v10 = vld [vmem:[#allocation2 + $0x98] sm:$0xff] }
 0x419   :  { %6376 = vmatprep.mubr.f32.mxu0 %v10602_v11  ;;  %v8364_v11 = vpack.c.bf16 %v1346_v1, %v1340_v0  ;;  %v1407_v0 = vld [vmem:[#allocation5 + $0x1a88] sm:$0xff]  ;;  %v10652_v1 = vld [vmem:[#allocation2 + $0x218] sm:$0xff] }
 0x41b   :  { %4475 = vmatmul.mubr.f32.gmra.mrb[128].mxu1 %v10603_v12 }
 0x41c   :  { %6377 = vmatmul.mubr.f32.gmra.mrb[128].mxu0 %v10603_v12  ;;  %4480 = vmatprep.mubr.f32.mxu1 %v10604_v13  ;;  %v8748_v12 = vpack.c.bf16 %v1348_v5, %v1342_v2  ;;  %v1403_v2 = vld [vmem:[#allocation5 + $0x1a68] sm:$0xff] }
 0x41d   :  { %6382 = vmatprep.mubr.f32.mxu0 %v10604_v13  ;;  %v8366_v13 = vpack.c.bf16 %v1359_v7, %v1353_v6  ;;  %v1400_v7 = vld [vmem:[#allocation5 + $0x1a50] sm:$0xff] }
 0x41f   :  { %4481 = vmatmul.mubr.f32.gmra.mrb[130].mxu1 %v10605_v14 }
 0x420   :  { %6383 = vmatmul.mubr.f32.gmra.mrb[130].mxu0 %v10605_v14  ;;  %4486 = vmatprep.mubr.f32.mxu1 %v10606_v15  ;;  %v1352_v14 = vld [vmem:[#allocation5 + $0x18d0] sm:$0xff] }
 0x421   :  { %6388 = vmatprep.mubr.f32.mxu0 %v10606_v15  ;;  %v1358_v15 = vld [vmem:[#allocation5 + $0x1900] sm:$0xff] }
 0x423   :  { %4487 = vmatmul.mubr.f32.gmra.mrb[132].mxu1 %v10607_v16 }
 0x424   :  { %6389 = vmatmul.mubr.f32.gmra.mrb[132].mxu0 %v10607_v16  ;;  %4492 = vmatprep.mubr.f32.mxu1 %v10608_v17  ;;  %v1354_v16 = vld [vmem:[#allocation5 + $0x18e0] sm:$0xff] }
 0x425   :  { %6394 = vmatprep.mubr.f32.mxu0 %v10608_v17  ;;  %v10645_v17 = vld [vmem:[#allocation2 + $0x90] sm:$0xff] }
 0x427   :  { %4493 = vmatmul.mubr.f32.gmra.mrb[134].mxu1 %v10609_v18 }
 0x428   :  { %6395 = vmatmul.mubr.f32.gmra.mrb[134].mxu0 %v10609_v18  ;;  %4498 = vmatprep.mubr.f32.mxu1 %v10610_v19  ;;  %v8750_v18 = vpack.c.bf16 %v1361_v9, %v1355_v8  ;;  %v1406_v8 = vld [vmem:[#allocation5 + $0x1a80] sm:$0xff] }
 0x429   :  { %6400 = vmatprep.mubr.f32.mxu0 %v10610_v19  ;;  %v1360_v19 = vld [vmem:[#allocation5 + $0x1910] sm:$0xff]  ;;  %v1402_v9 = vld [vmem:[#allocation5 + $0x1a60] sm:$0xff] }
 0x42b   :  { %4499 = vmatmul.mubr.f32.gmra.mrb[136].mxu1 %v10611_v20 }
 0x42c   :  { %6401 = vmatmul.mubr.f32.gmra.mrb[136].mxu0 %v10611_v20  ;;  %4504 = vmatprep.mubr.f32.mxu1 %v10612_v21  ;;  %v1365_v20 = vld [vmem:[#allocation5 + $0x1938] sm:$0xff] }
 0x42d   :  { %6406 = vmatprep.mubr.f32.mxu0 %v10612_v21  ;;  %v1371_v21 = vld [vmem:[#allocation5 + $0x1968] sm:$0xff] }
 0x42f   :  { %4505 = vmatmul.mubr.f32.gmra.mrb[138].mxu1 %v10613_v22 }
 0x430   :  { %6407 = vmatmul.mubr.f32.gmra.mrb[138].mxu0 %v10613_v22  ;;  %4510 = vmatprep.mubr.f32.mxu1 %v10614_v23  ;;  %v10646_v22 = vld [vmem:[#allocation2 + $0xf8] sm:$0xff] }
 0x431   :  { %6412 = vmatprep.mubr.f32.mxu0 %v10614_v23  ;;  %v1367_v23 = vld [vmem:[#allocation5 + $0x1948] sm:$0xff] }
 0x433   :  { %4511 = vmatmul.mubr.f32.gmra.mrb[140].mxu1 %v10615_v24 }
 0x434   :  { %6413 = vmatmul.mubr.f32.gmra.mrb[140].mxu0 %v10615_v24  ;;  %4516 = vmatprep.mubr.f32.mxu1 %v10616_v25  ;;  %v1373_v24 = vld [vmem:[#allocation5 + $0x1978] sm:$0xff] }
 0x435   :  { %6418 = vmatprep.mubr.f32.mxu0 %v10616_v25  ;;  %v8368_v25 = vpack.c.bf16 %v1358_v15, %v1352_v14  ;;  %v1419_v14 = vld [vmem:[#allocation5 + $0x1ae8] sm:$0xff]  ;;  %v10654_v15 = vld [vmem:[#allocation2 + $0x278] sm:$0xff] }
 0x437   :  { %4517 = vmatmul.mubr.f32.gmra.mrb[142].mxu1 %v10617_v26 }
 0x438   :  { %6419 = vmatmul.mubr.f32.gmra.mrb[142].mxu0 %v10617_v26  ;;  %4522 = vmatprep.mubr.f32.mxu1 %v10618_v27  ;;  %v8752_v26 = vpack.c.bf16 %v1360_v19, %v1354_v16  ;;  %v1415_v16 = vld [vmem:[#allocation5 + $0x1ac8] sm:$0xff] }
 0x439   :  { %6424 = vmatprep.mubr.f32.mxu0 %v10618_v27  ;;  %v8370_v27 = vpack.c.bf16 %v1371_v21, %v1365_v20  ;;  %v1412_v21 = vld [vmem:[#allocation5 + $0x1ab0] sm:$0xff] }
 0x43b   :  { %4523 = vmatmul.mubr.f32.gmra.mrb[144].mxu1 %v10619_v28 }
 0x43c   :  { %6425 = vmatmul.mubr.f32.gmra.mrb[144].mxu0 %v10619_v28  ;;  %4528 = vmatprep.mubr.f32.mxu1 %v10620_v29  ;;  %v1364_v28 = vld [vmem:[#allocation5 + $0x1930] sm:$0xff] }
 0x43d   :  { %6430 = vmatprep.mubr.f32.mxu0 %v10620_v29  ;;  %v1370_v29 = vld [vmem:[#allocation5 + $0x1960] sm:$0xff] }
 0x43f   :  { %4529 = vmatmul.mubr.f32.gmra.mrb[146].mxu1 %v10621_v30 }
 0x440   :  { %6431 = vmatmul.mubr.f32.gmra.mrb[146].mxu0 %v10621_v30  ;;  %4534 = vmatprep.mubr.f32.mxu1 %v10622_v32  ;;  %v1366_v30 = vld [vmem:[#allocation5 + $0x1940] sm:$0xff] }
 0x441   :  { %6436 = vmatprep.mubr.f32.mxu0 %v10622_v32  ;;  %v10647_v32 = vld [vmem:[#allocation2 + $0xf0] sm:$0xff] }
 0x443   :  { %4535 = vmatmul.mubr.f32.gmra.mrb[148].mxu1 %v10623_v33 }
 0x444   :  { %6437 = vmatmul.mubr.f32.gmra.mrb[148].mxu0 %v10623_v33  ;;  %4540 = vmatprep.mubr.f32.mxu1 %v10624_v34  ;;  %v8754_v33 = vpack.c.bf16 %v1373_v24, %v1367_v23  ;;  %v1414_v23 = vld [vmem:[#allocation5 + $0x1ac0] sm:$0xff]  ;;  %v10655_v24 = vld [vmem:[#allocation2 + $0x270] sm:$0xff] }
 0x445   :  { %6442 = vmatprep.mubr.f32.mxu0 %v10624_v34  ;;  %v1372_v34 = vld [vmem:[#allocation5 + $0x1970] sm:$0xff] }
 0x447   :  { %4541 = vmatmul.mubr.f32.gmra.mrb[150].mxu1 %v10625_v35 }
 0x448   :  { %6443 = vmatmul.mubr.f32.gmra.mrb[150].mxu0 %v10625_v35  ;;  %4546 = vmatprep.mubr.f32.mxu1 %v10626_v36  ;;  %v1377_v35 = vld [vmem:[#allocation5 + $0x1998] sm:$0xff] }
 0x449   :  { %6448 = vmatprep.mubr.f32.mxu0 %v10626_v36  ;;  %v1383_v36 = vld [vmem:[#allocation5 + $0x19c8] sm:$0xff] }
 0x44b   :  { %4547 = vmatmul.mubr.f32.gmra.mrb[152].mxu1 %v10627_v38 }
 0x44c   :  { %6449 = vmatmul.mubr.f32.gmra.mrb[152].mxu0 %v10627_v38  ;;  %4552 = vmatprep.mubr.f32.mxu1 %v10628_v39  ;;  %v10648_v38 = vld [vmem:[#allocation2 + $0x158] sm:$0xff] }
 0x44d   :  { %6454 = vmatprep.mubr.f32.mxu0 %v10628_v39  ;;  %v1379_v39 = vld [vmem:[#allocation5 + $0x19a8] sm:$0xff] }
 0x44f   :  { %4553 = vmatmul.mubr.f32.gmra.mrb[154].mxu1 %v10629_v40 }
 0x450   :  { %6455 = vmatmul.mubr.f32.gmra.mrb[154].mxu0 %v10629_v40  ;;  %4558 = vmatprep.mubr.f32.mxu1 %v10630_v31  ;;  %v1385_v40 = vld [vmem:[#allocation5 + $0x19d8] sm:$0xff] }
 0x451   :  { %6460 = vmatprep.mubr.f32.mxu0 %v10630_v31  ;;  %v8372_v31 = vpack.c.bf16 %v1370_v29, %v1364_v28  ;;  %v1431_v28 = vld [vmem:[#allocation5 + $0x1b48] sm:$0xff]  ;;  %v10656_v29 = vld [vmem:[#allocation2 + $0x2d8] sm:$0xff] }
 0x453   :  { %4559 = vmatmul.mubr.f32.gmra.mrb[156].mxu1 %v10631_v41 }
 0x454   :  { %6461 = vmatmul.mubr.f32.gmra.mrb[156].mxu0 %v10631_v41  ;;  %4564 = vmatprep.mubr.f32.mxu1 %v10632_v42  ;;  %v8756_v41 = vpack.c.bf16 %v1372_v34, %v1366_v30  ;;  %v1427_v30 = vld [vmem:[#allocation5 + $0x1b28] sm:$0xff] }
 0x455   :  { %6466 = vmatprep.mubr.f32.mxu0 %v10632_v42  ;;  %v8374_v42 = vpack.c.bf16 %v1383_v36, %v1377_v35  ;;  %v1424_v36 = vld [vmem:[#allocation5 + $0x1b10] sm:$0xff] }
 0x457   :  { %4565 = vmatmul.mubr.f32.gmra.mrb[158].mxu1 %v10633_v43 }
 0x458   :  { %6467 = vmatmul.mubr.f32.gmra.mrb[158].mxu0 %v10633_v43  ;;  %4570 = vmatprep.mubr.f32.mxu1 %v10634_v44  ;;  %v1376_v43 = vld [vmem:[#allocation5 + $0x1990] sm:$0xff] }
 0x459   :  { %6472 = vmatprep.mubr.f32.mxu0 %v10634_v44  ;;  %v1382_v44 = vld [vmem:[#allocation5 + $0x19c0] sm:$0xff] }
 0x45a   :  { %v8376_v53 = vpack.c.bf16 %v1382_v44, %v1376_v43  ;;  %v1443_v43 = vld [vmem:[#allocation5 + $0x1ba8] sm:$0xff]  ;;  %v10658_v44 = vld [vmem:[#allocation2 + $0x338] sm:$0xff] }
 0x45b   :  { %4571 = vmatmul.mubr.f32.gmra.mrb[160].mxu1 %v10635_v45 }
 0x45c   :  { %6473 = vmatmul.mubr.f32.gmra.mrb[160].mxu0 %v10635_v45  ;;  %4576 = vmatprep.mubr.f32.mxu1 %v10636_v46  ;;  %v1378_v45 = vld [vmem:[#allocation5 + $0x19a0] sm:$0xff] }
 0x45d   :  { %6478 = vmatprep.mubr.f32.mxu0 %v10636_v46  ;;  %v10649_v46 = vld [vmem:[#allocation2 + $0x150] sm:$0xff] }
 0x45f   :  { %4577 = vmatmul.mubr.f32.gmra.mrb[162].mxu1 %v10637_v37 }
 0x460   :  { %6479 = vmatmul.mubr.f32.gmra.mrb[162].mxu0 %v10637_v37  ;;  %4582 = vmatprep.mubr.f32.mxu1 %v10638_v47  ;;  %v8758_v37 = vpack.c.bf16 %v1385_v40, %v1379_v39  ;;  %v1426_v39 = vld [vmem:[#allocation5 + $0x1b20] sm:$0xff]  ;;  %v10657_v40 = vld [vmem:[#allocation2 + $0x2d0] sm:$0xff] }
 0x461   :  { %6484 = vmatprep.mubr.f32.mxu0 %v10638_v47  ;;  %v1384_v47 = vld [vmem:[#allocation5 + $0x19d0] sm:$0xff] }
 0x463   :  { %4583 = vmatmul.mubr.f32.gmra.mrb[164].mxu1 %v10639_v48 }
 0x464   :  { %6485 = vmatmul.mubr.f32.gmra.mrb[164].mxu0 %v10639_v48  ;;  %4588 = vmatprep.mubr.f32.mxu1 %v10640_v49  ;;  %v1389_v48 = vld [vmem:[#allocation5 + $0x19f8] sm:$0xff] }
 0x465   :  { %6490 = vmatprep.mubr.f32.mxu0 %v10640_v49  ;;  %v1395_v49 = vld [vmem:[#allocation5 + $0x1a28] sm:$0xff] }
 0x466   :  { %v8378_v55 = vpack.c.bf16 %v1395_v49, %v1389_v48  ;;  %v1436_v49 = vld [vmem:[#allocation5 + $0x1b70] sm:$0xff] }
 0x467   :  { %4589 = vmatmul.mubr.f32.gmra.mrb[166].mxu1 %v10641_v54 }
 0x468   :  { %6491 = vmatmul.mubr.f32.gmra.mrb[166].mxu0 %v10641_v54  ;;  %4659 = vmatprep.mubr.f32.mxu1 %v10642_v57  ;;  %v8760_v54 = vpack.c.bf16 %v1384_v47, %v1378_v45  ;;  %v1439_v45 = vld [vmem:[#allocation5 + $0x1b88] sm:$0xff] }
 0x469   :  { %6561 = vmatprep.mubr.f32.mxu0 %v10642_v57  ;;  %v1394_v57 = vld [vmem:[#allocation5 + $0x1a20] sm:$0xff] }
 0x46b   :  { %4660 = vmatmul.mubr.f32.vlgmr.msra.gmra.mrb[84].mxu1 %v10643_v3 }
 0x46c   :  { %6562 = vmatmul.mubr.f32.vlgmr.msra.gmra.mrb[84].mxu0 %v10643_v3  ;;  %8361 = vmatpush1.bf16.msra.mxu1 %v8360_v58  ;;  %v1390_v58 = vld [vmem:[#allocation5 + $0x1a00] sm:$0xff]  ;;  %v1409_v3 = vld [vmem:[#allocation5 + $0x1a98] sm:$0xff] }
 0x46d   :  { %8745 = vmatpush1.bf16.msra.mxu0 %v8744_v61  ;;  %4665 = vmatprep.mubr.f32.mxu1 %v10644_v10  ;;  %v1396_v61 = vld [vmem:[#allocation5 + $0x1a30] sm:$0xff] }
 0x46e   :  { %6567 = vmatprep.mubr.f32.mxu0 %v10644_v10  ;;  %8363 = vmatprep.subr.bf16.mxu1 %v8362_v62  ;;  %v1401_v62 = vld [vmem:[#allocation5 + $0x1a58] sm:$0xff]  ;;  %v8764_v5 = vpack.c.bf16 %v1396_v61, %v1390_v58  ;;  %v10653_v10 = vld [vmem:[#allocation2 + $0x210] sm:$0xff]  ;;  %v1451_v58 = vld [vmem:[#allocation5 + $0x1be8] sm:$0xff] }
 0x46f   :  { %4666 = vmatmul.mubr.f32.gmra.mrb[86].mxu1 %v10645_v17  ;;  %8747 = vmatprep.subr.bf16.mxu0 %v8746_v4  ;;  %v8380_v4 = vpack.c.bf16 %v1394_v57, %v1388_v56  ;;  %v8382_v6 = vpack.c.bf16 %v1407_v0, %v1401_v62  ;;  %v1455_v56 = vld [vmem:[#allocation5 + $0x1c08] sm:$0xff]  ;;  %v10660_v57 = vld [vmem:[#allocation2 + $0x398] sm:$0xff]  ;;  %v1448_v0 = vld [vmem:[#allocation5 + $0x1bd0] sm:$0xff] }
 0x470   :  { %6568 = vmatmul.mubr.f32.gmra.mrb[86].mxu0 %v10645_v17  ;;  %4671 = vmatprep.mubr.f32.mxu1 %v10646_v22  ;;  %v1421_v17 = vld [vmem:[#allocation5 + $0x1af8] sm:$0xff] }
 0x471   :  { %6573 = vmatprep.mubr.f32.mxu0 %v10646_v22  ;;  %8365 = vmatpush1.bf16.msra.mxu1 %v8364_v11  ;;  %v8766_v11 = vpack.c.bf16 %v1409_v3, %v1403_v2  ;;  %v1418_v22 = vld [vmem:[#allocation5 + $0x1ae0] sm:$0xff]  ;;  %v10661_v3 = vld [vmem:[#allocation2 + $0x390] sm:$0xff] }
 0x472   :  { %8749 = vmatpush1.bf16.msra.mxu0 %v8748_v12  ;;  %8367 = vmatprep.subr.bf16.mxu1 %v8366_v13  ;;  %v1408_v12 = vld [vmem:[#allocation5 + $0x1a90] sm:$0xff]  ;;  %v1413_v13 = vld [vmem:[#allocation5 + $0x1ab8] sm:$0xff]  ;;  %v1450_v2 = vld [vmem:[#allocation5 + $0x1be0] sm:$0xff] }
 0x473   :  { %4672 = vmatmul.mubr.f32.gmra.mrb[88].mxu1 %v10647_v32  ;;  %8751 = vmatprep.subr.bf16.mxu0 %v8750_v18  ;;  %v8384_v18 = vpack.c.bf16 %v1406_v8, %v1400_v7  ;;  %v8768_v19 = vpack.c.bf16 %v1408_v12, %v1402_v9  ;;  %v8386_v20 = vpack.c.bf16 %v1419_v14, %v1413_v13  ;;  %v1467_v7 = vld [vmem:[#allocation5 + $0x1c68] sm:$0xff]  ;;  %v10662_v8 = vld [vmem:[#allocation2 + $0x3f8] sm:$0xff]  ;;  %v1460_v14 = vld [vmem:[#allocation5 + $0x1c30] sm:$0xff] }
 0x474   :  { %6574 = vmatmul.mubr.f32.gmra.mrb[88].mxu0 %v10647_v32  ;;  %4677 = vmatprep.mubr.f32.mxu1 %v10648_v38  ;;  %v1433_v32 = vld [vmem:[#allocation5 + $0x1b58] sm:$0xff]  ;;  %v1463_v9 = vld [vmem:[#allocation5 + $0x1c48] sm:$0xff] }
 0x475   :  { %6579 = vmatprep.mubr.f32.mxu0 %v10648_v38  ;;  %8369 = vmatpush1.bf16.msra.mxu1 %v8368_v25  ;;  %v8770_v25 = vpack.c.bf16 %v1421_v17, %v1415_v16  ;;  %v1430_v38 = vld [vmem:[#allocation5 + $0x1b40] sm:$0xff]  ;;  %v10663_v17 = vld [vmem:[#allocation2 + $0x3f0] sm:$0xff] }
 0x476   :  { %8753 = vmatpush1.bf16.msra.mxu0 %v8752_v26  ;;  %8371 = vmatprep.subr.bf16.mxu1 %v8370_v27  ;;  %v1420_v26 = vld [vmem:[#allocation5 + $0x1af0] sm:$0xff]  ;;  %v1425_v27 = vld [vmem:[#allocation5 + $0x1b18] sm:$0xff]  ;;  %v1462_v16 = vld [vmem:[#allocation5 + $0x1c40] sm:$0xff] }
 0x477   :  { %4678 = vmatmul.mubr.f32.gmra.mrb[90].mxu1 %v10649_v46  ;;  %8755 = vmatprep.subr.bf16.mxu0 %v8754_v33  ;;  %v8388_v33 = vpack.c.bf16 %v1418_v22, %v1412_v21  ;;  %v8772_v34 = vpack.c.bf16 %v1420_v26, %v1414_v23  ;;  %v8390_v35 = vpack.c.bf16 %v1431_v28, %v1425_v27  ;;  %v1479_v21 = vld [vmem:[#allocation5 + $0x1cc8] sm:$0xff]  ;;  %v10664_v22 = vld [vmem:[#allocation2 + $0x458] sm:$0xff]  ;;  %v1472_v28 = vld [vmem:[#allocation5 + $0x1c90] sm:$0xff] }
 0x478   :  { %6580 = vmatmul.mubr.f32.gmra.mrb[90].mxu0 %v10649_v46  ;;  %4683 = vmatprep.mubr.f32.mxu1 %v10650_v50  ;;  %v1445_v46 = vld [vmem:[#allocation5 + $0x1bb8] sm:$0xff]  ;;  %v1475_v23 = vld [vmem:[#allocation5 + $0x1ca8] sm:$0xff] }
 0x479   :  { %6585 = vmatprep.mubr.f32.mxu0 %v10650_v50  ;;  %8373 = vmatpush1.bf16.msra.mxu1 %v8372_v31  ;;  %v8774_v31 = vpack.c.bf16 %v1433_v32, %v1427_v30  ;;  %v1442_v50 = vld [vmem:[#allocation5 + $0x1ba0] sm:$0xff]  ;;  %v10665_v32 = vld [vmem:[#allocation2 + $0x450] sm:$0xff] }
 0x47a   :  { %8757 = vmatpush1.bf16.msra.mxu0 %v8756_v41  ;;  %8375 = vmatprep.subr.bf16.mxu1 %v8374_v42  ;;  %v1432_v41 = vld [vmem:[#allocation5 + $0x1b50] sm:$0xff]  ;;  %v1437_v42 = vld [vmem:[#allocation5 + $0x1b78] sm:$0xff]  ;;  %v1474_v30 = vld [vmem:[#allocation5 + $0x1ca0] sm:$0xff] }
 0x47b   :  { %4684 = vmatmul.mubr.f32.gmra.mrb[92].mxu1 %v10651_v59  ;;  %8759 = vmatprep.subr.bf16.mxu0 %v8758_v37  ;;  %v8392_v37 = vpack.c.bf16 %v1430_v38, %v1424_v36  ;;  %v8776_v47 = vpack.c.bf16 %v1432_v41, %v1426_v39  ;;  %v8394_v48 = vpack.c.bf16 %v1443_v43, %v1437_v42  ;;  %v1491_v36 = vld [vmem:[#allocation5 + $0x1d28] sm:$0xff]  ;;  %v10666_v38 = vld [vmem:[#allocation2 + $0x4b8] sm:$0xff]  ;;  %v1484_v43 = vld [vmem:[#allocation5 + $0x1cf0] sm:$0xff] }
 0x47c   :  { %6586 = vmatmul.mubr.f32.gmra.mrb[92].mxu0 %v10651_v59  ;;  %4689 = vmatprep.mubr.f32.mxu1 %v10652_v1  ;;  %v1457_v59 = vld [vmem:[#allocation5 + $0x1c18] sm:$0xff]  ;;  %v1487_v39 = vld [vmem:[#allocation5 + $0x1d08] sm:$0xff] }
 0x47d   :  { %6591 = vmatprep.mubr.f32.mxu0 %v10652_v1  ;;  %8377 = vmatpush1.bf16.msra.mxu1 %v8376_v53  ;;  %v8778_v53 = vpack.c.bf16 %v1445_v46, %v1439_v45  ;;  %v1454_v1 = vld [vmem:[#allocation5 + $0x1c00] sm:$0xff]  ;;  %v10667_v46 = vld [vmem:[#allocation2 + $0x4b0] sm:$0xff] }
 0x47e   :  { %8761 = vmatpush1.bf16.msra.mxu0 %v8760_v54  ;;  %8379 = vmatprep.subr.bf16.mxu1 %v8378_v55  ;;  %v1444_v54 = vld [vmem:[#allocation5 + $0x1bb0] sm:$0xff]  ;;  %v1449_v55 = vld [vmem:[#allocation5 + $0x1bd8] sm:$0xff]  ;;  %v1486_v45 = vld [vmem:[#allocation5 + $0x1d00] sm:$0xff] }
 0x47f   :  { %4690 = vmatmul.mubr.f32.gmra.mrb[94].mxu1 %v10653_v10  ;;  %8763 = vmatprep.subr.bf16.mxu0 %v8762_v60  ;;  %v8396_v60 = vpack.c.bf16 %v1442_v50, %v1436_v49  ;;  %v8780_v61 = vpack.c.bf16 %v1444_v54, %v1438_v51  ;;  %v8398_v62 = vpack.c.bf16 %v1455_v56, %v1449_v55  ;;  %v1503_v49 = vld [vmem:[#allocation5 + $0x1d88] sm:$0xff]  ;;  %v10668_v50 = vld [vmem:[#allocation2 + $0x518] sm:$0xff]  ;;  %v1496_v56 = vld [vmem:[#allocation5 + $0x1d50] sm:$0xff] }
 0x480   :  { %6592 = vmatmul.mubr.f32.gmra.mrb[94].mxu0 %v10653_v10  ;;  %4695 = vmatprep.mubr.f32.mxu1 %v10654_v15  ;;  %v1469_v10 = vld [vmem:[#allocation5 + $0x1c78] sm:$0xff]  ;;  %v1499_v51 = vld [vmem:[#allocation5 + $0x1d68] sm:$0xff] }
 0x481   :  { %6597 = vmatprep.mubr.f32.mxu0 %v10654_v15  ;;  %8381 = vmatpush1.bf16.msra.mxu1 %v8380_v4  ;;  %v8782_v4 = vpack.c.bf16 %v1457_v59, %v1451_v58  ;;  %v1466_v15 = vld [vmem:[#allocation5 + $0x1c60] sm:$0xff]  ;;  %v10669_v59 = vld [vmem:[#allocation2 + $0x510] sm:$0xff] }
 0x482   :  { %8765 = vmatpush1.bf16.msra.mxu0 %v8764_v5  ;;  %8383 = vmatprep.subr.bf16.mxu1 %v8382_v6  ;;  %v1456_v5 = vld [vmem:[#allocation5 + $0x1c10] sm:$0xff]  ;;  %v1461_v6 = vld [vmem:[#allocation5 + $0x1c38] sm:$0xff]  ;;  %v1498_v58 = vld [vmem:[#allocation5 + $0x1d60] sm:$0xff] }
 0x483   :  { %4696 = vmatmul.mubr.f32.gmra.mrb[96].mxu1 %v10655_v24  ;;  %8767 = vmatprep.subr.bf16.mxu0 %v8766_v11  ;;  %v8400_v11 = vpack.c.bf16 %v1454_v1, %v1448_v0  ;;  %v8784_v12 = vpack.c.bf16 %v1456_v5, %v1450_v2  ;;  %v8402_v13 = vpack.c.bf16 %v1467_v7, %v1461_v6  ;;  %v1515_v0 = vld [vmem:[#allocation5 + $0x1de8] sm:$0xff]  ;;  %v10670_v1 = vld [vmem:[#allocation2 + $0x578] sm:$0xff]  ;;  %v1508_v7 = vld [vmem:[#allocation5 + $0x1db0] sm:$0xff] }
 0x484   :  { %6598 = vmatmul.mubr.f32.gmra.mrb[96].mxu0 %v10655_v24  ;;  %4701 = vmatprep.mubr.f32.mxu1 %v10656_v29  ;;  %v1481_v24 = vld [vmem:[#allocation5 + $0x1cd8] sm:$0xff]  ;;  %v1511_v2 = vld [vmem:[#allocation5 + $0x1dc8] sm:$0xff] }
 0x485   :  { %6603 = vmatprep.mubr.f32.mxu0 %v10656_v29  ;;  %8385 = vmatpush1.bf16.msra.mxu1 %v8384_v18  ;;  %v8786_v18 = vpack.c.bf16 %v1469_v10, %v1463_v9  ;;  %v1478_v29 = vld [vmem:[#allocation5 + $0x1cc0] sm:$0xff]  ;;  %v10671_v10 = vld [vmem:[#allocation2 + $0x570] sm:$0xff] }
 0x486   :  { %8769 = vmatpush1.bf16.msra.mxu0 %v8768_v19  ;;  %8387 = vmatprep.subr.bf16.mxu1 %v8386_v20  ;;  %v1468_v19 = vld [vmem:[#allocation5 + $0x1c70] sm:$0xff]  ;;  %v1473_v20 = vld [vmem:[#allocation5 + $0x1c98] sm:$0xff]  ;;  %v1510_v9 = vld [vmem:[#allocation5 + $0x1dc0] sm:$0xff] }
 0x487   :  { %4702 = vmatmul.mubr.f32.gmra.mrb[98].mxu1 %v10657_v40  ;;  %8771 = vmatprep.subr.bf16.mxu0 %v8770_v25  ;;  %v8404_v25 = vpack.c.bf16 %v1466_v15, %v1460_v14  ;;  %v8788_v26 = vpack.c.bf16 %v1468_v19, %v1462_v16  ;;  %v8406_v27 = vpack.c.bf16 %v1479_v21, %v1473_v20  ;;  %v1527_v14 = vld [vmem:[#allocation5 + $0x1e48] sm:$0xff]  ;;  %v10672_v15 = vld [vmem:[#allocation2 + $0x5d8] sm:$0xff]  ;;  %v10673_v21 = vld [vmem:[#allocation2 + $0x5d0] sm:$0xff] }
 0x488   :  { %6604 = vmatmul.mubr.f32.gmra.mrb[98].mxu0 %v10657_v40  ;;  %4707 = vmatprep.mubr.f32.mxu1 %v10658_v44  ;;  %v1493_v40 = vld [vmem:[#allocation5 + $0x1d38] sm:$0xff]  ;;  %v1523_v16 = vld [vmem:[#allocation5 + $0x1e28] sm:$0xff] }
 0x489   :  { %6609 = vmatprep.mubr.f32.mxu0 %v10658_v44  ;;  %8389 = vmatpush1.bf16.msra.mxu1 %v8388_v33  ;;  %v8790_v33 = vpack.c.bf16 %v1481_v24, %v1475_v23  ;;  %v1490_v44 = vld [vmem:[#allocation5 + $0x1d20] sm:$0xff]  ;;  %v10674_v23 = vld [vmem:[#allocation2 + $0x638] sm:$0xff]  ;;  %v10675_v24 = vld [vmem:[#allocation2 + $0x630] sm:$0xff] }
 0x48a   :  { %8773 = vmatpush1.bf16.msra.mxu0 %v8772_v34  ;;  %8391 = vmatprep.subr.bf16.mxu1 %v8390_v35  ;;  %v1480_v34 = vld [vmem:[#allocation5 + $0x1cd0] sm:$0xff]  ;;  %v1485_v35 = vld [vmem:[#allocation5 + $0x1cf8] sm:$0xff] }
 0x48b   :  { %4708 = vmatmul.mubr.f32.gmra.mrb[100].mxu1 %v10659_v52  ;;  %8775 = vmatprep.subr.bf16.mxu0 %v8774_v31  ;;  %v8408_v31 = vpack.c.bf16 %v1478_v29, %v1472_v28  ;;  %v8792_v41 = vpack.c.bf16 %v1480_v34, %v1474_v30  ;;  %v8410_v42 = vpack.c.bf16 %v1491_v36, %v1485_v35  ;;  %v10679_v28 = vld [vmem:[#allocation2 + $0x6f0] sm:$0xff]  ;;  %v10680_v29 = vld [vmem:[#allocation2 + $0x758] sm:$0xff] }
 0x48c   :  { %6610 = vmatmul.mubr.f32.gmra.mrb[100].mxu0 %v10659_v52  ;;  %4713 = vmatprep.mubr.f32.mxu1 %v10660_v57  ;;  %v1505_v52 = vld [vmem:[#allocation5 + $0x1d98] sm:$0xff]  ;;  %v10681_v30 = vld [vmem:[#allocation2 + $0x750] sm:$0xff] }
 0x48d   :  { %6615 = vmatprep.mubr.f32.mxu0 %v10660_v57  ;;  %8393 = vmatpush1.bf16.msra.mxu1 %v8392_v37  ;;  %v8794_v37 = vpack.c.bf16 %v1493_v40, %v1487_v39  ;;  %v1502_v57 = vld [vmem:[#allocation5 + $0x1d80] sm:$0xff]  ;;  %v10684_v34 = vld [vmem:[#allocation2 + $0x818] sm:$0xff]  ;;  %v10685_v35 = vld [vmem:[#allocation2 + $0x810] sm:$0xff] }
 0x48e   :  { %8777 = vmatpush1.bf16.msra.mxu0 %v8776_v47  ;;  %8395 = vmatprep.subr.bf16.mxu1 %v8394_v48  ;;  %v1492_v47 = vld [vmem:[#allocation5 + $0x1d30] sm:$0xff]  ;;  %v1497_v48 = vld [vmem:[#allocation5 + $0x1d58] sm:$0xff] }
 0x48f   :  { %4714 = vmatmul.mubr.f32.gmra.mrb[102].mxu1 %v10661_v3  ;;  %8779 = vmatprep.subr.bf16.mxu0 %v8778_v53  ;;  %v8412_v53 = vpack.c.bf16 %v1490_v44, %v1484_v43  ;;  %v8796_v54 = vpack.c.bf16 %v1492_v47, %v1486_v45  ;;  %v8414_v55 = vpack.c.bf16 %v1503_v49, %v1497_v48  ;;  %v10686_v36 = vld [vmem:[#allocation2 + $0x878] sm:$0xff]  ;;  %v10689_v40 = vld [vmem:[#allocation2 + $0x8d0] sm:$0xff] }
 0x490   :  { %6616 = vmatmul.mubr.f32.gmra.mrb[102].mxu0 %v10661_v3  ;;  %4719 = vmatprep.mubr.f32.mxu1 %v10662_v8  ;;  %v1517_v3 = vld [vmem:[#allocation5 + $0x1df8] sm:$0xff]  ;;  %v10693_v43 = vld [vmem:[#allocation2 + $0x990] sm:$0xff] }
 0x491   :  { %6621 = vmatprep.mubr.f32.mxu0 %v10662_v8  ;;  %8397 = vmatpush1.bf16.msra.mxu1 %v8396_v60  ;;  %v8798_v60 = vpack.c.bf16 %v1505_v52, %v1499_v51  ;;  %v1514_v8 = vld [vmem:[#allocation5 + $0x1de0] sm:$0xff]  ;;  %v10688_v39 = vld [vmem:[#allocation2 + $0x8d8] sm:$0xff]  ;;  %v10695_v45 = vld [vmem:[#allocation2 + $0x9f0] sm:$0xff] }
 0x492   :  { %8781 = vmatpush1.bf16.msra.mxu0 %v8780_v61  ;;  %8399 = vmatprep.subr.bf16.mxu1 %v8398_v62  ;;  %v1504_v61 = vld [vmem:[#allocation5 + $0x1d90] sm:$0xff]  ;;  %v1509_v62 = vld [vmem:[#allocation5 + $0x1db8] sm:$0xff] }
 0x493   :  { %4720 = vmatmul.mubr.f32.gmra.mrb[104].mxu1 %v10663_v17  ;;  %8783 = vmatprep.subr.bf16.mxu0 %v8782_v4  ;;  %v8416_v4 = vpack.c.bf16 %v1502_v57, %v1496_v56  ;;  %v8800_v5 = vpack.c.bf16 %v1504_v61, %v1498_v58  ;;  %v8418_v6 = vpack.c.bf16 %v1515_v0, %v1509_v62  ;;  %v10694_v44 = vld [vmem:[#allocation2 + $0x9f8] sm:$0xff]  ;;  %v10699_v48 = vld [vmem:[#allocation2 + $0xab0] sm:$0xff] }
 0x494   :  { %6622 = vmatmul.mubr.f32.gmra.mrb[104].mxu0 %v10663_v17  ;;  %4725 = vmatprep.mubr.f32.mxu1 %v10664_v22  ;;  %v1529_v17 = vld [vmem:[#allocation5 + $0x1e58] sm:$0xff]  ;;  %v10703_v52 = vld [vmem:[#allocation2 + $0xb70] sm:$0xff] }
 0x495   :  { %6627 = vmatprep.mubr.f32.mxu0 %v10664_v22  ;;  %8401 = vmatpush1.bf16.msra.mxu1 %v8400_v11  ;;  %v8802_v11 = vpack.c.bf16 %v1517_v3, %v1511_v2  ;;  %v8806_v22 = vpack.c.bf16 %v1529_v17, %v1523_v16  ;;  %v10698_v47 = vld [vmem:[#allocation2 + $0xab8] sm:$0xff]  ;;  %v10707_v56 = vld [vmem:[#allocation2 + $0xc30] sm:$0xff]  ;;  %v1539_v17 = vld [vmem:[#allocation5 + $0x1ea8] sm:$0xff] }
 0x496   :  { %8785 = vmatpush1.bf16.msra.mxu0 %v8784_v12  ;;  %8403 = vmatprep.subr.bf16.mxu1 %v8402_v13  ;;  %v1516_v12 = vld [vmem:[#allocation5 + $0x1df0] sm:$0xff]  ;;  %v1521_v13 = vld [vmem:[#allocation5 + $0x1e18] sm:$0xff] }
 0x497   :  { %4726 = vmatmul.mubr.f32.gmra.mrb[106].mxu1 %v10665_v32  ;;  %8787 = vmatprep.subr.bf16.mxu0 %v8786_v18  ;;  %v8420_v18 = vpack.c.bf16 %v1514_v8, %v1508_v7  ;;  %v8804_v19 = vpack.c.bf16 %v1516_v12, %v1510_v9  ;;  %v8422_v20 = vpack.c.bf16 %v1527_v14, %v1521_v13  ;;  %v10700_v49 = vld [vmem:[#allocation2 + $0xb18] sm:$0xff]  ;;  %v10709_v58 = vld [vmem:[#allocation2 + $0xc90] sm:$0xff]  ;;  %v1526_v12 = vld [vmem:[#allocation5 + $0x1e40] sm:$0xff] }
 0x498   :  { %6628 = vmatmul.mubr.f32.gmra.mrb[106].mxu0 %v10665_v32  ;;  %4731 = vmatprep.mubr.f32.mxu1 %v10666_v38  ;;  %v10682_v32 = vld [vmem:[#allocation2 + $0x7b8] sm:$0xff]  ;;  %v10713_v62 = vld [vmem:[#allocation2 + $0xd50] sm:$0xff]  ;;  %v1522_v13 = vld [vmem:[#allocation5 + $0x1e20] sm:$0xff] }
 0x499   :  { %6633 = vmatprep.mubr.f32.mxu0 %v10666_v38  ;;  %8405 = vmatpush1.bf16.msra.mxu1 %v8404_v25  ;;  %v10676_v25 = vld [vmem:[#allocation2 + $0x698] sm:$0xff]  ;;  %v10687_v38 = vld [vmem:[#allocation2 + $0x870] sm:$0xff] }
 0x49a   :  { %8789 = vmatpush1.bf16.msra.mxu0 %v8788_v26  ;;  %8407 = vmatprep.subr.bf16.mxu1 %v8406_v27  ;;  %v10677_v26 = vld [vmem:[#allocation2 + $0x690] sm:$0xff]  ;;  %v10678_v27 = vld [vmem:[#allocation2 + $0x6f8] sm:$0xff] }
 0x49b   :  { %4732 = vmatmul.mubr.f32.gmra.mrb[108].mxu1 %v10667_v46  ;;  %8791 = vmatprep.subr.bf16.mxu0 %v8790_v33  ;;  %v10683_v33 = vld [vmem:[#allocation2 + $0x7b0] sm:$0xff]  ;;  %v10702_v51 = vld [vmem:[#allocation2 + $0xb78] sm:$0xff] }
 0x49c   :  { %6634 = vmatmul.mubr.f32.gmra.mrb[108].mxu0 %v10667_v46  ;;  %4737 = vmatprep.mubr.f32.mxu1 %v10668_v50  ;;  %v10696_v46 = vld [vmem:[#allocation2 + $0xa58] sm:$0xff]  ;;  %v10717_v3 = vld [vmem:[#allocation2 + $0xe10] sm:$0xff] }
 0x49d   :  { %6639 = vmatprep.mubr.f32.mxu0 %v10668_v50  ;;  %8409 = vmatpush1.bf16.msra.mxu1 %v8408_v31  ;;  %v10690_v31 = vld [vmem:[#allocation2 + $0x938] sm:$0xff]  ;;  %v10701_v50 = vld [vmem:[#allocation2 + $0xb10] sm:$0xff] }
 0x49e   :  { %8793 = vmatpush1.bf16.msra.mxu0 %v8792_v41  ;;  %8411 = vmatprep.subr.bf16.mxu1 %v8410_v42  ;;  %v10691_v41 = vld [vmem:[#allocation2 + $0x930] sm:$0xff]  ;;  %v10692_v42 = vld [vmem:[#allocation2 + $0x998] sm:$0xff] }
 0x49f   :  { %4738 = vmatmul.mubr.f32.gmra.mrb[110].mxu1 %v10669_v59  ;;  %8795 = vmatprep.subr.bf16.mxu0 %v8794_v37  ;;  %v10697_v37 = vld [vmem:[#allocation2 + $0xa50] sm:$0xff]  ;;  %v10708_v57 = vld [vmem:[#allocation2 + $0xc98] sm:$0xff] }
 0x4a0   :  { %6640 = vmatmul.mubr.f32.gmra.mrb[110].mxu0 %v10669_v59  ;;  %4743 = vmatprep.mubr.f32.mxu1 %v10670_v1  ;;  %v10710_v59 = vld [vmem:[#allocation2 + $0xcf8] sm:$0xff]  ;;  %v10721_v7 = vld [vmem:[#allocation2 + $0xed0] sm:$0xff] }
 0x4a1   :  { %6645 = vmatprep.mubr.f32.mxu0 %v10670_v1  ;;  %8413 = vmatpush1.bf16.msra.mxu1 %v8412_v53  ;;  %v10704_v53 = vld [vmem:[#allocation2 + $0xbd8] sm:$0xff]  ;;  %v10715_v1 = vld [vmem:[#allocation2 + $0xdb0] sm:$0xff] }
 0x4a2   :  { %8797 = vmatpush1.bf16.msra.mxu0 %v8796_v54  ;;  %8415 = vmatprep.subr.bf16.mxu1 %v8414_v55  ;;  %v10705_v54 = vld [vmem:[#allocation2 + $0xbd0] sm:$0xff]  ;;  %v10706_v55 = vld [vmem:[#allocation2 + $0xc38] sm:$0xff] }
 0x4a3   :  { %4744 = vmatmul.mubr.f32.gmra.mrb[112].mxu1 %v10671_v10  ;;  %8799 = vmatprep.subr.bf16.mxu0 %v8798_v60  ;;  %v10711_v60 = vld [vmem:[#allocation2 + $0xcf0] sm:$0xff]  ;;  %v10712_v61 = vld [vmem:[#allocation2 + $0xd58] sm:$0xff] }
 0x4a4   :  { %6646 = vmatmul.mubr.f32.gmra.mrb[112].mxu0 %v10671_v10  ;;  %4749 = vmatprep.mubr.f32.mxu1 %v10672_v15  ;;  %v10714_v0 = vld [vmem:[#allocation2 + $0xdb8] sm:$0xff]  ;;  %v10723_v9 = vld [vmem:[#allocation2 + $0xf30] sm:$0xff] }
 0x4a5   :  { %6651 = vmatprep.mubr.f32.mxu0 %v10672_v15  ;;  %8417 = vmatpush1.bf16.msra.mxu1 %v8416_v4  ;;  %v10716_v2 = vld [vmem:[#allocation2 + $0xe18] sm:$0xff]  ;;  %v1528_v14 = vld [vmem:[#allocation5 + $0x1e50] sm:$0xff] }
 0x4a6   :  { %8801 = vmatpush1.bf16.msra.mxu0 %v8800_v5  ;;  %8419 = vmatprep.subr.bf16.mxu1 %v8418_v6  ;;  %v10718_v4 = vld [vmem:[#allocation2 + $0xe78] sm:$0xff]  ;;  %v10719_v5 = vld [vmem:[#allocation2 + $0xe70] sm:$0xff] }
 0x4a7   :  { %4750 = vmatmul.mubr.f32.gmra.mrb[114].mxu1 %v10673_v21  ;;  %8803 = vmatprep.subr.bf16.mxu0 %v8802_v11  ;;  %v10720_v6 = vld [vmem:[#allocation2 + $0xed8] sm:$0xff]  ;;  %v1520_v11 = vld [vmem:[#allocation5 + $0x1e10] sm:$0xff] }
 0x4a8   :  { %6652 = vmatmul.mubr.f32.gmra.mrb[114].mxu0 %v10673_v21  ;;  %4755 = vmatprep.mubr.f32.mxu1 %v10674_v23  ;;  %v10722_v8 = vld [vmem:[#allocation2 + $0xf38] sm:$0xff]  ;;  %v10725_v15 = vld [vmem:[#allocation2 + $0xf90] sm:$0xff] }
 0x4a9   :  { %6657 = vmatprep.mubr.f32.mxu0 %v10674_v23  ;;  %8421 = vmatpush1.bf16.msra.mxu1 %v8420_v18  ;;  %v10724_v10 = vld [vmem:[#allocation2 + $0xf98] sm:$0xff]  ;;  %v10726_v18 = vld [vmem:[#allocation2 + $0x48] sm:$0xff] }
 0x4aa   :  { %8805 = vmatpush1.bf16.msra.mxu0 %v8804_v19  ;;  %8423 = vmatprep.subr.bf16.mxu1 %v8422_v20  ;;  %v1533_v16 = vld [vmem:[#allocation5 + $0x1e78] sm:$0xff]  ;;  %v8424_v19 = vpack.c.bf16 %v1526_v12, %v1520_v11  ;;  %v1535_v20 = vld [vmem:[#allocation5 + $0x1e88] sm:$0xff] }
 0x4ab   :  { %4756 = vmatmul.mubr.f32.gmra.mrb[116].mxu1 %v10675_v24  ;;  %8807 = vmatprep.subr.bf16.mxu0 %v8806_v22  ;;  %v1541_v21 = vld [vmem:[#allocation5 + $0x1eb8] sm:$0xff]  ;;  %v8808_v22 = vpack.c.bf16 %v1528_v14, %v1522_v13  ;;  %v8426_v23 = vpack.c.bf16 %v1539_v17, %v1533_v16  ;;  %v10734_v11 = vld [vmem:[#allocation2 + $0x1c8] sm:$0xff]  ;;  %v1580_v17 = vld [vmem:[#allocation5 + $0x1ff0] sm:$0xff] }
 0x4ac   :  { %6658 = vmatmul.mubr.f32.gmra.mrb[116].mxu0 %v10675_v24  ;;  %4761 = vmatprep.mubr.f32.mxu1 %v10676_v25  ;;  %v1532_v24 = vld [vmem:[#allocation5 + $0x1e70] sm:$0xff]  ;;  %v1583_v12 = vld [vmem:[#allocation5 + $0x2008] sm:$0xff]  ;;  %v1589_v13 = vld [vmem:[#allocation5 + $0x2038] sm:$0xff] }
 0x4ad   :  { %6663 = vmatprep.mubr.f32.mxu0 %v10676_v25  ;;  %v1538_v25 = vld [vmem:[#allocation5 + $0x1ea0] sm:$0xff] }
 0x4af   :  { %4762 = vmatmul.mubr.f32.gmra.mrb[118].mxu1 %v10677_v26 }
 0x4b0   :  { %6664 = vmatmul.mubr.f32.gmra.mrb[118].mxu0 %v10677_v26  ;;  %4767 = vmatprep.mubr.f32.mxu1 %v10678_v27  ;;  %v1534_v26 = vld [vmem:[#allocation5 + $0x1e80] sm:$0xff] }
 0x4b1   :  { %6669 = vmatprep.mubr.f32.mxu0 %v10678_v27  ;;  %v10727_v27 = vld [vmem:[#allocation2 + $0x40] sm:$0xff] }
 0x4b3   :  { %4768 = vmatmul.mubr.f32.gmra.mrb[120].mxu1 %v10679_v28 }
 0x4b4   :  { %6670 = vmatmul.mubr.f32.gmra.mrb[120].mxu0 %v10679_v28  ;;  %4773 = vmatprep.mubr.f32.mxu1 %v10680_v29  ;;  %v8810_v28 = vpack.c.bf16 %v1541_v21, %v1535_v20  ;;  %v10735_v20 = vld [vmem:[#allocation2 + $0x1c0] sm:$0xff]  ;;  %v8826_v21 = vpack.c.bf16 %v1589_v13, %v1583_v12 }
 0x4b5   :  { %6675 = vmatprep.mubr.f32.mxu0 %v10680_v29  ;;  %v1540_v29 = vld [vmem:[#allocation5 + $0x1eb0] sm:$0xff]  ;;  %v1630_v12 = vld [vmem:[#allocation5 + $0x2180] sm:$0xff] }
 0x4b6   :  { %v10743_v13 = vld [vmem:[#allocation2 + $0x340] sm:$0xff] }
 0x4b7   :  { %4774 = vmatmul.mubr.f32.gmra.mrb[122].mxu1 %v10681_v30 }
 0x4b8   :  { %6676 = vmatmul.mubr.f32.gmra.mrb[122].mxu0 %v10681_v30  ;;  %4779 = vmatprep.mubr.f32.mxu1 %v10682_v32  ;;  %v1545_v30 = vld [vmem:[#allocation5 + $0x1ed8] sm:$0xff] }
 0x4b9   :  { %6681 = vmatprep.mubr.f32.mxu0 %v10682_v32  ;;  %v1551_v32 = vld [vmem:[#allocation5 + $0x1f08] sm:$0xff] }
 0x4bb   :  { %4780 = vmatmul.mubr.f32.gmra.mrb[124].mxu1 %v10683_v33 }
 0x4bc   :  { %6682 = vmatmul.mubr.f32.gmra.mrb[124].mxu0 %v10683_v33  ;;  %4785 = vmatprep.mubr.f32.mxu1 %v10684_v34  ;;  %v1547_v33 = vld [vmem:[#allocation5 + $0x1ee8] sm:$0xff] }
 0x4bd   :  { %6687 = vmatprep.mubr.f32.mxu0 %v10684_v34  ;;  %v1553_v34 = vld [vmem:[#allocation5 + $0x1f18] sm:$0xff] }
 0x4bf   :  { %4786 = vmatmul.mubr.f32.gmra.mrb[126].mxu1 %v10685_v35 }
 0x4c0   :  { %6688 = vmatmul.mubr.f32.gmra.mrb[126].mxu0 %v10685_v35  ;;  %4791 = vmatprep.mubr.f32.mxu1 %v10686_v36  ;;  %v10728_v35 = vld [vmem:[#allocation2 + $0xa8] sm:$0xff] }
 0x4c1   :  { %6693 = vmatprep.mubr.f32.mxu0 %v10686_v36  ;;  %v8428_v36 = vpack.c.bf16 %v1538_v25, %v1532_v24  ;;  %v1599_v24 = vld [vmem:[#allocation5 + $0x2088] sm:$0xff] }
 0x4c2   :  { %v10736_v25 = vld [vmem:[#allocation2 + $0x228] sm:$0xff] }
 0x4c3   :  { %4792 = vmatmul.mubr.f32.gmra.mrb[128].mxu1 %v10687_v38 }
 0x4c4   :  { %6694 = vmatmul.mubr.f32.gmra.mrb[128].mxu0 %v10687_v38  ;;  %4797 = vmatprep.mubr.f32.mxu1 %v10688_v39  ;;  %v8812_v38 = vpack.c.bf16 %v1540_v29, %v1534_v26  ;;  %v1595_v26 = vld [vmem:[#allocation5 + $0x2068] sm:$0xff] }
 0x4c5   :  { %6699 = vmatprep.mubr.f32.mxu0 %v10688_v39  ;;  %v8430_v39 = vpack.c.bf16 %v1551_v32, %v1545_v30  ;;  %v1592_v32 = vld [vmem:[#allocation5 + $0x2050] sm:$0xff] }
 0x4c7   :  { %4798 = vmatmul.mubr.f32.gmra.mrb[130].mxu1 %v10689_v40 }
 0x4c8   :  { %6700 = vmatmul.mubr.f32.gmra.mrb[130].mxu0 %v10689_v40  ;;  %4803 = vmatprep.mubr.f32.mxu1 %v10690_v31  ;;  %v1544_v40 = vld [vmem:[#allocation5 + $0x1ed0] sm:$0xff] }
 0x4c9   :  { %6705 = vmatprep.mubr.f32.mxu0 %v10690_v31  ;;  %v1550_v31 = vld [vmem:[#allocation5 + $0x1f00] sm:$0xff] }
 0x4cb   :  { %4804 = vmatmul.mubr.f32.gmra.mrb[132].mxu1 %v10691_v41 }
 0x4cc   :  { %6706 = vmatmul.mubr.f32.gmra.mrb[132].mxu0 %v10691_v41  ;;  %4809 = vmatprep.mubr.f32.mxu1 %v10692_v42  ;;  %v1546_v41 = vld [vmem:[#allocation5 + $0x1ee0] sm:$0xff] }
 0x4cd   :  { %6711 = vmatprep.mubr.f32.mxu0 %v10692_v42  ;;  %v10729_v42 = vld [vmem:[#allocation2 + $0xa0] sm:$0xff] }
 0x4cf   :  { %4810 = vmatmul.mubr.f32.gmra.mrb[134].mxu1 %v10693_v43 }
 0x4d0   :  { %6712 = vmatmul.mubr.f32.gmra.mrb[134].mxu0 %v10693_v43  ;;  %4815 = vmatprep.mubr.f32.mxu1 %v10694_v44  ;;  %v8814_v43 = vpack.c.bf16 %v1553_v34, %v1547_v33  ;;  %v1598_v33 = vld [vmem:[#allocation5 + $0x2080] sm:$0xff] }
 0x4d1   :  { %6717 = vmatprep.mubr.f32.mxu0 %v10694_v44  ;;  %v1552_v44 = vld [vmem:[#allocation5 + $0x1f10] sm:$0xff]  ;;  %v1594_v34 = vld [vmem:[#allocation5 + $0x2060] sm:$0xff] }
 0x4d3   :  { %4816 = vmatmul.mubr.f32.gmra.mrb[136].mxu1 %v10695_v45 }
 0x4d4   :  { %6718 = vmatmul.mubr.f32.gmra.mrb[136].mxu0 %v10695_v45  ;;  %4821 = vmatprep.mubr.f32.mxu1 %v10696_v46  ;;  %v1557_v45 = vld [vmem:[#allocation5 + $0x1f38] sm:$0xff] }
 0x4d5   :  { %6723 = vmatprep.mubr.f32.mxu0 %v10696_v46  ;;  %v1563_v46 = vld [vmem:[#allocation5 + $0x1f68] sm:$0xff] }
 0x4d7   :  { %4822 = vmatmul.mubr.f32.gmra.mrb[138].mxu1 %v10697_v37 }
 0x4d8   :  { %6724 = vmatmul.mubr.f32.gmra.mrb[138].mxu0 %v10697_v37  ;;  %4827 = vmatprep.mubr.f32.mxu1 %v10698_v47  ;;  %v10730_v37 = vld [vmem:[#allocation2 + $0x108] sm:$0xff] }
 0x4d9   :  { %6729 = vmatprep.mubr.f32.mxu0 %v10698_v47  ;;  %v1559_v47 = vld [vmem:[#allocation5 + $0x1f48] sm:$0xff] }
 0x4db   :  { %4828 = vmatmul.mubr.f32.gmra.mrb[140].mxu1 %v10699_v48 }
 0x4dc   :  { %6730 = vmatmul.mubr.f32.gmra.mrb[140].mxu0 %v10699_v48  ;;  %4833 = vmatprep.mubr.f32.mxu1 %v10700_v49  ;;  %v1565_v48 = vld [vmem:[#allocation5 + $0x1f78] sm:$0xff] }
 0x4dd   :  { %6735 = vmatprep.mubr.f32.mxu0 %v10700_v49  ;;  %v8432_v49 = vpack.c.bf16 %v1550_v31, %v1544_v40  ;;  %v1611_v40 = vld [vmem:[#allocation5 + $0x20e8] sm:$0xff] }
 0x4de   :  { %v10738_v31 = vld [vmem:[#allocation2 + $0x288] sm:$0xff] }
 0x4df   :  { %4834 = vmatmul.mubr.f32.gmra.mrb[142].mxu1 %v10701_v50 }
 0x4e0   :  { %6736 = vmatmul.mubr.f32.gmra.mrb[142].mxu0 %v10701_v50  ;;  %4839 = vmatprep.mubr.f32.mxu1 %v10702_v51  ;;  %v8816_v50 = vpack.c.bf16 %v1552_v44, %v1546_v41  ;;  %v1607_v41 = vld [vmem:[#allocation5 + $0x20c8] sm:$0xff] }
 0x4e1   :  { %6741 = vmatprep.mubr.f32.mxu0 %v10702_v51  ;;  %v8434_v51 = vpack.c.bf16 %v1563_v46, %v1557_v45  ;;  %v1604_v46 = vld [vmem:[#allocation5 + $0x20b0] sm:$0xff] }
 0x4e3   :  { %4840 = vmatmul.mubr.f32.gmra.mrb[144].mxu1 %v10703_v52 }
 0x4e4   :  { %6742 = vmatmul.mubr.f32.gmra.mrb[144].mxu0 %v10703_v52  ;;  %4845 = vmatprep.mubr.f32.mxu1 %v10704_v53  ;;  %v1556_v52 = vld [vmem:[#allocation5 + $0x1f30] sm:$0xff] }
 0x4e5   :  { %6747 = vmatprep.mubr.f32.mxu0 %v10704_v53  ;;  %v1562_v53 = vld [vmem:[#allocation5 + $0x1f60] sm:$0xff] }
 0x4e7   :  { %4846 = vmatmul.mubr.f32.gmra.mrb[146].mxu1 %v10705_v54 }
 0x4e8   :  { %6748 = vmatmul.mubr.f32.gmra.mrb[146].mxu0 %v10705_v54  ;;  %4851 = vmatprep.mubr.f32.mxu1 %v10706_v55  ;;  %v1558_v54 = vld [vmem:[#allocation5 + $0x1f40] sm:$0xff] }
 0x4e9   :  { %6753 = vmatprep.mubr.f32.mxu0 %v10706_v55  ;;  %v10731_v55 = vld [vmem:[#allocation2 + $0x100] sm:$0xff] }
 0x4eb   :  { %4852 = vmatmul.mubr.f32.gmra.mrb[148].mxu1 %v10707_v56 }
 0x4ec   :  { %6754 = vmatmul.mubr.f32.gmra.mrb[148].mxu0 %v10707_v56  ;;  %4857 = vmatprep.mubr.f32.mxu1 %v10708_v57  ;;  %v8818_v56 = vpack.c.bf16 %v1565_v48, %v1559_v47  ;;  %v1606_v47 = vld [vmem:[#allocation5 + $0x20c0] sm:$0xff] }
 0x4ed   :  { %6759 = vmatprep.mubr.f32.mxu0 %v10708_v57  ;;  %v1564_v57 = vld [vmem:[#allocation5 + $0x1f70] sm:$0xff]  ;;  %v10739_v48 = vld [vmem:[#allocation2 + $0x280] sm:$0xff] }
 0x4ef   :  { %4858 = vmatmul.mubr.f32.gmra.mrb[150].mxu1 %v10709_v58 }
 0x4f0   :  { %6760 = vmatmul.mubr.f32.gmra.mrb[150].mxu0 %v10709_v58  ;;  %4863 = vmatprep.mubr.f32.mxu1 %v10710_v59  ;;  %v1569_v58 = vld [vmem:[#allocation5 + $0x1f98] sm:$0xff] }
 0x4f1   :  { %6765 = vmatprep.mubr.f32.mxu0 %v10710_v59  ;;  %v1575_v59 = vld [vmem:[#allocation5 + $0x1fc8] sm:$0xff] }
 0x4f3   :  { %4864 = vmatmul.mubr.f32.gmra.mrb[152].mxu1 %v10711_v60 }
 0x4f4   :  { %6766 = vmatmul.mubr.f32.gmra.mrb[152].mxu0 %v10711_v60  ;;  %4869 = vmatprep.mubr.f32.mxu1 %v10712_v61  ;;  %v10732_v60 = vld [vmem:[#allocation2 + $0x168] sm:$0xff] }
 0x4f5   :  { %6771 = vmatprep.mubr.f32.mxu0 %v10712_v61  ;;  %v1571_v61 = vld [vmem:[#allocation5 + $0x1fa8] sm:$0xff] }
 0x4f7   :  { %4870 = vmatmul.mubr.f32.gmra.mrb[154].mxu1 %v10713_v62 }
 0x4f8   :  { %6772 = vmatmul.mubr.f32.gmra.mrb[154].mxu0 %v10713_v62  ;;  %4875 = vmatprep.mubr.f32.mxu1 %v10714_v0  ;;  %v1577_v62 = vld [vmem:[#allocation5 + $0x1fd8] sm:$0xff] }
 0x4f9   :  { %6777 = vmatprep.mubr.f32.mxu0 %v10714_v0  ;;  %v8436_v0 = vpack.c.bf16 %v1562_v53, %v1556_v52  ;;  %v1623_v52 = vld [vmem:[#allocation5 + $0x2148] sm:$0xff] }
 0x4fa   :  { %v10740_v53 = vld [vmem:[#allocation2 + $0x2e8] sm:$0xff] }
 0x4fb   :  { %4876 = vmatmul.mubr.f32.gmra.mrb[156].mxu1 %v10715_v1 }
 0x4fc   :  { %6778 = vmatmul.mubr.f32.gmra.mrb[156].mxu0 %v10715_v1  ;;  %4881 = vmatprep.mubr.f32.mxu1 %v10716_v2  ;;  %v8820_v1 = vpack.c.bf16 %v1564_v57, %v1558_v54  ;;  %v1619_v54 = vld [vmem:[#allocation5 + $0x2128] sm:$0xff] }
 0x4fd   :  { %6783 = vmatprep.mubr.f32.mxu0 %v10716_v2  ;;  %v8438_v2 = vpack.c.bf16 %v1575_v59, %v1569_v58  ;;  %v1616_v59 = vld [vmem:[#allocation5 + $0x2110] sm:$0xff] }
 0x4ff   :  { %4882 = vmatmul.mubr.f32.gmra.mrb[158].mxu1 %v10717_v3 }
 0x500   :  { %6784 = vmatmul.mubr.f32.gmra.mrb[158].mxu0 %v10717_v3  ;;  %4887 = vmatprep.mubr.f32.mxu1 %v10718_v4  ;;  %v1568_v3 = vld [vmem:[#allocation5 + $0x1f90] sm:$0xff] }
 0x501   :  { %6789 = vmatprep.mubr.f32.mxu0 %v10718_v4  ;;  %v1574_v4 = vld [vmem:[#allocation5 + $0x1fc0] sm:$0xff] }
 0x502   :  { %v8440_v14 = vpack.c.bf16 %v1574_v4, %v1568_v3  ;;  %v1635_v3 = vld [vmem:[#allocation5 + $0x21a8] sm:$0xff] }
 0x503   :  { %4888 = vmatmul.mubr.f32.gmra.mrb[160].mxu1 %v10719_v5  ;;  %v10742_v4 = vld [vmem:[#allocation2 + $0x348] sm:$0xff] }
 0x504   :  { %6790 = vmatmul.mubr.f32.gmra.mrb[160].mxu0 %v10719_v5  ;;  %4893 = vmatprep.mubr.f32.mxu1 %v10720_v6  ;;  %v1570_v5 = vld [vmem:[#allocation5 + $0x1fa0] sm:$0xff] }
 0x505   :  { %6795 = vmatprep.mubr.f32.mxu0 %v10720_v6  ;;  %v10733_v6 = vld [vmem:[#allocation2 + $0x160] sm:$0xff] }
 0x507   :  { %4894 = vmatmul.mubr.f32.gmra.mrb[162].mxu1 %v10721_v7 }
 0x508   :  { %6796 = vmatmul.mubr.f32.gmra.mrb[162].mxu0 %v10721_v7  ;;  %4899 = vmatprep.mubr.f32.mxu1 %v10722_v8  ;;  %v8822_v7 = vpack.c.bf16 %v1577_v62, %v1571_v61  ;;  %v1618_v61 = vld [vmem:[#allocation5 + $0x2120] sm:$0xff] }
 0x509   :  { %6801 = vmatprep.mubr.f32.mxu0 %v10722_v8  ;;  %v1576_v8 = vld [vmem:[#allocation5 + $0x1fd0] sm:$0xff]  ;;  %v10741_v62 = vld [vmem:[#allocation2 + $0x2e0] sm:$0xff] }
 0x50b   :  { %4900 = vmatmul.mubr.f32.gmra.mrb[164].mxu1 %v10723_v9 }
 0x50c   :  { %6802 = vmatmul.mubr.f32.gmra.mrb[164].mxu0 %v10723_v9  ;;  %4905 = vmatprep.mubr.f32.mxu1 %v10724_v10  ;;  %v1581_v9 = vld [vmem:[#allocation5 + $0x1ff8] sm:$0xff] }
 0x50d   :  { %6807 = vmatprep.mubr.f32.mxu0 %v10724_v10  ;;  %v1587_v10 = vld [vmem:[#allocation5 + $0x2028] sm:$0xff] }
 0x50e   :  { %v8442_v16 = vpack.c.bf16 %v1587_v10, %v1581_v9  ;;  %v1628_v10 = vld [vmem:[#allocation5 + $0x2170] sm:$0xff] }
 0x50f   :  { %4906 = vmatmul.mubr.f32.gmra.mrb[166].mxu1 %v10725_v15 }
 0x510   :  { %6808 = vmatmul.mubr.f32.gmra.mrb[166].mxu0 %v10725_v15  ;;  %4976 = vmatprep.mubr.f32.mxu1 %v10726_v18  ;;  %v8824_v15 = vpack.c.bf16 %v1576_v8, %v1570_v5  ;;  %v1631_v5 = vld [vmem:[#allocation5 + $0x2188] sm:$0xff] }
 0x511   :  { %6878 = vmatprep.mubr.f32.mxu0 %v10726_v18  ;;  %v1586_v18 = vld [vmem:[#allocation5 + $0x2020] sm:$0xff] }
 0x513   :  { %4977 = vmatmul.mubr.f32.vlgmr.msra.gmra.mrb[84].mxu1 %v10727_v27 }
 0x514   :  { %6879 = vmatmul.mubr.f32.vlgmr.msra.gmra.mrb[84].mxu0 %v10727_v27  ;;  %8425 = vmatpush1.bf16.msra.mxu1 %v8424_v19  ;;  %v1582_v19 = vld [vmem:[#allocation5 + $0x2000] sm:$0xff]  ;;  %v1601_v27 = vld [vmem:[#allocation5 + $0x2098] sm:$0xff] }
 0x515   :  { %8809 = vmatpush1.bf16.msra.mxu0 %v8808_v22  ;;  %4982 = vmatprep.mubr.f32.mxu1 %v10728_v35  ;;  %v1588_v22 = vld [vmem:[#allocation5 + $0x2030] sm:$0xff] }
 0x516   :  { %6884 = vmatprep.mubr.f32.mxu0 %v10728_v35  ;;  %8427 = vmatprep.subr.bf16.mxu1 %v8426_v23  ;;  %v1593_v23 = vld [vmem:[#allocation5 + $0x2058] sm:$0xff]  ;;  %v8828_v29 = vpack.c.bf16 %v1588_v22, %v1582_v19  ;;  %v10737_v35 = vld [vmem:[#allocation2 + $0x220] sm:$0xff]  ;;  %v1643_v19 = vld [vmem:[#allocation5 + $0x21e8] sm:$0xff] }
 0x517   :  { %4983 = vmatmul.mubr.f32.gmra.mrb[86].mxu1 %v10729_v42  ;;  %8811 = vmatprep.subr.bf16.mxu0 %v8810_v28  ;;  %v8444_v28 = vpack.c.bf16 %v1586_v18, %v1580_v17  ;;  %v8446_v30 = vpack.c.bf16 %v1599_v24, %v1593_v23  ;;  %v1647_v17 = vld [vmem:[#allocation5 + $0x2208] sm:$0xff]  ;;  %v1640_v24 = vld [vmem:[#allocation5 + $0x21d0] sm:$0xff] }
 0x518   :  { %6885 = vmatmul.mubr.f32.gmra.mrb[86].mxu0 %v10729_v42  ;;  %4988 = vmatprep.mubr.f32.mxu1 %v10730_v37  ;;  %v1613_v42 = vld [vmem:[#allocation5 + $0x20f8] sm:$0xff]  ;;  %v10744_v18 = vld [vmem:[#allocation2 + $0x3a8] sm:$0xff] }
 0x519   :  { %6890 = vmatprep.mubr.f32.mxu0 %v10730_v37  ;;  %8429 = vmatpush1.bf16.msra.mxu1 %v8428_v36  ;;  %v8830_v36 = vpack.c.bf16 %v1601_v27, %v1595_v26  ;;  %v1610_v37 = vld [vmem:[#allocation5 + $0x20e0] sm:$0xff] }
 0x51a   :  { %8813 = vmatpush1.bf16.msra.mxu0 %v8812_v38  ;;  %8431 = vmatprep.subr.bf16.mxu1 %v8430_v39  ;;  %v1600_v38 = vld [vmem:[#allocation5 + $0x2090] sm:$0xff]  ;;  %v1605_v39 = vld [vmem:[#allocation5 + $0x20b8] sm:$0xff]  ;;  %v1642_v26 = vld [vmem:[#allocation5 + $0x21e0] sm:$0xff] }
 0x51b   :  { %4989 = vmatmul.mubr.f32.gmra.mrb[88].mxu1 %v10731_v55  ;;  %8815 = vmatprep.subr.bf16.mxu0 %v8814_v43  ;;  %v8448_v43 = vpack.c.bf16 %v1598_v33, %v1592_v32  ;;  %v8832_v44 = vpack.c.bf16 %v1600_v38, %v1594_v34  ;;  %v8450_v45 = vpack.c.bf16 %v1611_v40, %v1605_v39  ;;  %v10745_v27 = vld [vmem:[#allocation2 + $0x3a0] sm:$0xff]  ;;  %v1659_v32 = vld [vmem:[#allocation5 + $0x2268] sm:$0xff]  ;;  %v1652_v40 = vld [vmem:[#allocation5 + $0x2230] sm:$0xff] }
 0x51c   :  { %6891 = vmatmul.mubr.f32.gmra.mrb[88].mxu0 %v10731_v55  ;;  %4994 = vmatprep.mubr.f32.mxu1 %v10732_v60  ;;  %v1625_v55 = vld [vmem:[#allocation5 + $0x2158] sm:$0xff]  ;;  %v10746_v33 = vld [vmem:[#allocation2 + $0x408] sm:$0xff] }
 0x51d   :  { %6896 = vmatprep.mubr.f32.mxu0 %v10732_v60  ;;  %8433 = vmatpush1.bf16.msra.mxu1 %v8432_v49  ;;  %v8834_v49 = vpack.c.bf16 %v1613_v42, %v1607_v41  ;;  %v1622_v60 = vld [vmem:[#allocation5 + $0x2140] sm:$0xff]  ;;  %v1655_v34 = vld [vmem:[#allocation5 + $0x2248] sm:$0xff] }
 0x51e   :  { %8817 = vmatpush1.bf16.msra.mxu0 %v8816_v50  ;;  %8435 = vmatprep.subr.bf16.mxu1 %v8434_v51  ;;  %v1612_v50 = vld [vmem:[#allocation5 + $0x20f0] sm:$0xff]  ;;  %v1617_v51 = vld [vmem:[#allocation5 + $0x2118] sm:$0xff]  ;;  %v1654_v41 = vld [vmem:[#allocation5 + $0x2240] sm:$0xff] }
 0x51f   :  { %4995 = vmatmul.mubr.f32.gmra.mrb[90].mxu1 %v10733_v6  ;;  %8819 = vmatprep.subr.bf16.mxu0 %v8818_v56  ;;  %v8452_v56 = vpack.c.bf16 %v1610_v37, %v1604_v46  ;;  %v8836_v57 = vpack.c.bf16 %v1612_v50, %v1606_v47  ;;  %v8454_v58 = vpack.c.bf16 %v1623_v52, %v1617_v51  ;;  %v10747_v42 = vld [vmem:[#allocation2 + $0x400] sm:$0xff]  ;;  %v1671_v46 = vld [vmem:[#allocation5 + $0x22c8] sm:$0xff]  ;;  %v1664_v52 = vld [vmem:[#allocation5 + $0x2290] sm:$0xff] }
 0x520   :  { %6897 = vmatmul.mubr.f32.gmra.mrb[90].mxu0 %v10733_v6  ;;  %5000 = vmatprep.mubr.f32.mxu1 %v10734_v11  ;;  %v1637_v6 = vld [vmem:[#allocation5 + $0x21b8] sm:$0xff]  ;;  %v10748_v37 = vld [vmem:[#allocation2 + $0x468] sm:$0xff] }
 0x521   :  { %6902 = vmatprep.mubr.f32.mxu0 %v10734_v11  ;;  %8437 = vmatpush1.bf16.msra.mxu1 %v8436_v0  ;;  %v8838_v0 = vpack.c.bf16 %v1625_v55, %v1619_v54  ;;  %v1634_v11 = vld [vmem:[#allocation5 + $0x21a0] sm:$0xff]  ;;  %v1667_v47 = vld [vmem:[#allocation5 + $0x22a8] sm:$0xff] }
 0x522   :  { %8821 = vmatpush1.bf16.msra.mxu0 %v8820_v1  ;;  %8439 = vmatprep.subr.bf16.mxu1 %v8438_v2  ;;  %v1624_v1 = vld [vmem:[#allocation5 + $0x2150] sm:$0xff]  ;;  %v1629_v2 = vld [vmem:[#allocation5 + $0x2178] sm:$0xff]  ;;  %v1666_v54 = vld [vmem:[#allocation5 + $0x22a0] sm:$0xff] }
 0x523   :  { %5001 = vmatmul.mubr.f32.gmra.mrb[92].mxu1 %v10735_v20  ;;  %8823 = vmatprep.subr.bf16.mxu0 %v8822_v7  ;;  %v8456_v7 = vpack.c.bf16 %v1622_v60, %v1616_v59  ;;  %v8840_v8 = vpack.c.bf16 %v1624_v1, %v1618_v61  ;;  %v8458_v9 = vpack.c.bf16 %v1635_v3, %v1629_v2  ;;  %v10749_v55 = vld [vmem:[#allocation2 + $0x460] sm:$0xff]  ;;  %v1683_v59 = vld [vmem:[#allocation5 + $0x2328] sm:$0xff]  ;;  %v1676_v3 = vld [vmem:[#allocation5 + $0x22f0] sm:$0xff] }
 0x524   :  { %6903 = vmatmul.mubr.f32.gmra.mrb[92].mxu0 %v10735_v20  ;;  %5006 = vmatprep.mubr.f32.mxu1 %v10736_v25  ;;  %v1649_v20 = vld [vmem:[#allocation5 + $0x2218] sm:$0xff]  ;;  %v10750_v60 = vld [vmem:[#allocation2 + $0x4c8] sm:$0xff] }
 0x525   :  { %6908 = vmatprep.mubr.f32.mxu0 %v10736_v25  ;;  %8441 = vmatpush1.bf16.msra.mxu1 %v8440_v14  ;;  %v8842_v14 = vpack.c.bf16 %v1637_v6, %v1631_v5  ;;  %v1646_v25 = vld [vmem:[#allocation5 + $0x2200] sm:$0xff]  ;;  %v1679_v61 = vld [vmem:[#allocation5 + $0x2308] sm:$0xff] }
 0x526   :  { %8825 = vmatpush1.bf16.msra.mxu0 %v8824_v15  ;;  %8443 = vmatprep.subr.bf16.mxu1 %v8442_v16  ;;  %v1636_v15 = vld [vmem:[#allocation5 + $0x21b0] sm:$0xff]  ;;  %v1641_v16 = vld [vmem:[#allocation5 + $0x21d8] sm:$0xff]  ;;  %v1678_v5 = vld [vmem:[#allocation5 + $0x2300] sm:$0xff] }
 0x527   :  { %5007 = vmatmul.mubr.f32.gmra.mrb[94].mxu1 %v10737_v35  ;;  %8827 = vmatprep.subr.bf16.mxu0 %v8826_v21  ;;  %v8460_v21 = vpack.c.bf16 %v1634_v11, %v1628_v10  ;;  %v8844_v22 = vpack.c.bf16 %v1636_v15, %v1630_v12  ;;  %v8462_v23 = vpack.c.bf16 %v1647_v17, %v1641_v16  ;;  %v10751_v6 = vld [vmem:[#allocation2 + $0x4c0] sm:$0xff]  ;;  %v1695_v10 = vld [vmem:[#allocation5 + $0x2388] sm:$0xff]  ;;  %v1688_v17 = vld [vmem:[#allocation5 + $0x2350] sm:$0xff] }
 0x528   :  { %6909 = vmatmul.mubr.f32.gmra.mrb[94].mxu0 %v10737_v35  ;;  %5012 = vmatprep.mubr.f32.mxu1 %v10738_v31  ;;  %v1661_v35 = vld [vmem:[#allocation5 + $0x2278] sm:$0xff]  ;;  %v10752_v11 = vld [vmem:[#allocation2 + $0x528] sm:$0xff] }
 0x529   :  { %6914 = vmatprep.mubr.f32.mxu0 %v10738_v31  ;;  %8445 = vmatpush1.bf16.msra.mxu1 %v8444_v28  ;;  %v8846_v28 = vpack.c.bf16 %v1649_v20, %v1643_v19  ;;  %v1658_v31 = vld [vmem:[#allocation5 + $0x2260] sm:$0xff]  ;;  %v1691_v12 = vld [vmem:[#allocation5 + $0x2368] sm:$0xff] }
 0x52a   :  { %8829 = vmatpush1.bf16.msra.mxu0 %v8828_v29  ;;  %8447 = vmatprep.subr.bf16.mxu1 %v8446_v30  ;;  %v1648_v29 = vld [vmem:[#allocation5 + $0x2210] sm:$0xff]  ;;  %v1653_v30 = vld [vmem:[#allocation5 + $0x2238] sm:$0xff]  ;;  %v1690_v19 = vld [vmem:[#allocation5 + $0x2360] sm:$0xff] }
 0x52b   :  { %5013 = vmatmul.mubr.f32.gmra.mrb[96].mxu1 %v10739_v48  ;;  %8831 = vmatprep.subr.bf16.mxu0 %v8830_v36  ;;  %v8464_v36 = vpack.c.bf16 %v1646_v25, %v1640_v24  ;;  %v8848_v38 = vpack.c.bf16 %v1648_v29, %v1642_v26  ;;  %v8466_v39 = vpack.c.bf16 %v1659_v32, %v1653_v30  ;;  %v10753_v20 = vld [vmem:[#allocation2 + $0x520] sm:$0xff]  ;;  %v1707_v24 = vld [vmem:[#allocation5 + $0x23e8] sm:$0xff]  ;;  %v1700_v32 = vld [vmem:[#allocation5 + $0x23b0] sm:$0xff] }
 0x52c   :  { %6915 = vmatmul.mubr.f32.gmra.mrb[96].mxu0 %v10739_v48  ;;  %5018 = vmatprep.mubr.f32.mxu1 %v10740_v53  ;;  %v1673_v48 = vld [vmem:[#allocation5 + $0x22d8] sm:$0xff]  ;;  %v10754_v25 = vld [vmem:[#allocation2 + $0x588] sm:$0xff] }
 0x52d   :  { %6920 = vmatprep.mubr.f32.mxu0 %v10740_v53  ;;  %8449 = vmatpush1.bf16.msra.mxu1 %v8448_v43  ;;  %v8850_v43 = vpack.c.bf16 %v1661_v35, %v1655_v34  ;;  %v1670_v53 = vld [vmem:[#allocation5 + $0x22c0] sm:$0xff]  ;;  %v1703_v26 = vld [vmem:[#allocation5 + $0x23c8] sm:$0xff] }
 0x52e   :  { %8833 = vmatpush1.bf16.msra.mxu0 %v8832_v44  ;;  %8451 = vmatprep.subr.bf16.mxu1 %v8450_v45  ;;  %v1660_v44 = vld [vmem:[#allocation5 + $0x2270] sm:$0xff]  ;;  %v1665_v45 = vld [vmem:[#allocation5 + $0x2298] sm:$0xff]  ;;  %v10755_v34 = vld [vmem:[#allocation2 + $0x580] sm:$0xff] }
 0x52f   :  { %5019 = vmatmul.mubr.f32.gmra.mrb[98].mxu1 %v10741_v62  ;;  %8835 = vmatprep.subr.bf16.mxu0 %v8834_v49  ;;  %v8468_v49 = vpack.c.bf16 %v1658_v31, %v1652_v40  ;;  %v8852_v50 = vpack.c.bf16 %v1660_v44, %v1654_v41  ;;  %v8470_v51 = vpack.c.bf16 %v1671_v46, %v1665_v45  ;;  %v10757_v41 = vld [vmem:[#allocation2 + $0x5e0] sm:$0xff]  ;;  %v10760_v44 = vld [vmem:[#allocation2 + $0x6a8] sm:$0xff] }
 0x530   :  { %6921 = vmatmul.mubr.f32.gmra.mrb[98].mxu0 %v10741_v62  ;;  %5024 = vmatprep.mubr.f32.mxu1 %v10742_v4  ;;  %v1685_v62 = vld [vmem:[#allocation5 + $0x2338] sm:$0xff]  ;;  %v10761_v45 = vld [vmem:[#allocation2 + $0x6a0] sm:$0xff]  ;;  %v10762_v46 = vld [vmem:[#allocation2 + $0x708] sm:$0xff] }
 0x531   :  { %6926 = vmatprep.mubr.f32.mxu0 %v10742_v4  ;;  %8453 = vmatpush1.bf16.msra.mxu1 %v8452_v56  ;;  %v8854_v56 = vpack.c.bf16 %v1673_v48, %v1667_v47  ;;  %v1682_v4 = vld [vmem:[#allocation5 + $0x2320] sm:$0xff]  ;;  %v10764_v47 = vld [vmem:[#allocation2 + $0x768] sm:$0xff] }
 0x532   :  { %8837 = vmatpush1.bf16.msra.mxu0 %v8836_v57  ;;  %8455 = vmatprep.subr.bf16.mxu1 %v8454_v58  ;;  %v1672_v57 = vld [vmem:[#allocation5 + $0x22d0] sm:$0xff]  ;;  %v1677_v58 = vld [vmem:[#allocation5 + $0x22f8] sm:$0xff]  ;;  %v10765_v48 = vld [vmem:[#allocation2 + $0x760] sm:$0xff] }
 0x533   :  { %5025 = vmatmul.mubr.f32.gmra.mrb[100].mxu1 %v10743_v13  ;;  %8839 = vmatprep.subr.bf16.mxu0 %v8838_v0  ;;  %v8472_v0 = vpack.c.bf16 %v1670_v53, %v1664_v52  ;;  %v8856_v1 = vpack.c.bf16 %v1672_v57, %v1666_v54  ;;  %v8474_v2 = vpack.c.bf16 %v1683_v59, %v1677_v58  ;;  %v10769_v52 = vld [vmem:[#allocation2 + $0x820] sm:$0xff]  ;;  %v10770_v53 = vld [vmem:[#allocation2 + $0x888] sm:$0xff] }
 0x534   :  { %6927 = vmatmul.mubr.f32.gmra.mrb[100].mxu0 %v10743_v13  ;;  %5030 = vmatprep.mubr.f32.mxu1 %v10744_v18  ;;  %v1697_v13 = vld [vmem:[#allocation5 + $0x2398] sm:$0xff]  ;;  %v10771_v54 = vld [vmem:[#allocation2 + $0x880] sm:$0xff]  ;;  %v10774_v57 = vld [vmem:[#allocation2 + $0x948] sm:$0xff] }
 0x535   :  { %6932 = vmatprep.mubr.f32.mxu0 %v10744_v18  ;;  %8457 = vmatpush1.bf16.msra.mxu1 %v8456_v7  ;;  %v8858_v7 = vpack.c.bf16 %v1685_v62, %v1679_v61  ;;  %v1694_v18 = vld [vmem:[#allocation5 + $0x2380] sm:$0xff]  ;;  %v10776_v59 = vld [vmem:[#allocation2 + $0x9a8] sm:$0xff] }
 0x536   :  { %8841 = vmatpush1.bf16.msra.mxu0 %v8840_v8  ;;  %8459 = vmatprep.subr.bf16.mxu1 %v8458_v9  ;;  %v1684_v8 = vld [vmem:[#allocation5 + $0x2330] sm:$0xff]  ;;  %v1689_v9 = vld [vmem:[#allocation5 + $0x2358] sm:$0xff]  ;;  %v10775_v58 = vld [vmem:[#allocation2 + $0x940] sm:$0xff] }
 0x537   :  { %5031 = vmatmul.mubr.f32.gmra.mrb[102].mxu1 %v10745_v27  ;;  %8843 = vmatprep.subr.bf16.mxu0 %v8842_v14  ;;  %v8476_v14 = vpack.c.bf16 %v1682_v4, %v1676_v3  ;;  %v8860_v15 = vpack.c.bf16 %v1684_v8, %v1678_v5  ;;  %v8478_v16 = vpack.c.bf16 %v1695_v10, %v1689_v9  ;;  %v10778_v61 = vld [vmem:[#allocation2 + $0xa08] sm:$0xff]  ;;  %v10779_v62 = vld [vmem:[#allocation2 + $0xa00] sm:$0xff] }
 0x538   :  { %6933 = vmatmul.mubr.f32.gmra.mrb[102].mxu0 %v10745_v27  ;;  %5036 = vmatprep.mubr.f32.mxu1 %v10746_v33  ;;  %v1709_v27 = vld [vmem:[#allocation5 + $0x23f8] sm:$0xff]  ;;  %v10783_v3 = vld [vmem:[#allocation2 + $0xac0] sm:$0xff]  ;;  %v10784_v4 = vld [vmem:[#allocation2 + $0xb28] sm:$0xff] }
 0x539   :  { %6938 = vmatprep.mubr.f32.mxu0 %v10746_v33  ;;  %8461 = vmatpush1.bf16.msra.mxu1 %v8460_v21  ;;  %v8862_v21 = vpack.c.bf16 %v1697_v13, %v1691_v12  ;;  %v1706_v33 = vld [vmem:[#allocation5 + $0x23e0] sm:$0xff]  ;;  %v8866_v35 = vpack.c.bf16 %v1709_v27, %v1703_v26  ;;  %v10788_v8 = vld [vmem:[#allocation2 + $0xbe8] sm:$0xff] }
 0x53a   :  { %8845 = vmatpush1.bf16.msra.mxu0 %v8844_v22  ;;  %8463 = vmatprep.subr.bf16.mxu1 %v8462_v23  ;;  %v1696_v22 = vld [vmem:[#allocation5 + $0x2390] sm:$0xff]  ;;  %v1701_v23 = vld [vmem:[#allocation5 + $0x23b8] sm:$0xff]  ;;  %v8484_v40 = vpack.c.bf16 %v1706_v33, %v1700_v32  ;;  %v10785_v5 = vld [vmem:[#allocation2 + $0xb20] sm:$0xff] }
 0x53b   :  { %5037 = vmatmul.mubr.f32.gmra.mrb[104].mxu1 %v10747_v42  ;;  %8847 = vmatprep.subr.bf16.mxu0 %v8846_v28  ;;  %v8480_v28 = vpack.c.bf16 %v1694_v18, %v1688_v17  ;;  %v8864_v29 = vpack.c.bf16 %v1696_v22, %v1690_v19  ;;  %v8482_v30 = vpack.c.bf16 %v1707_v24, %v1701_v23  ;;  %v10789_v9 = vld [vmem:[#allocation2 + $0xbe0] sm:$0xff]  ;;  %v10790_v10 = vld [vmem:[#allocation2 + $0xc48] sm:$0xff]  ;;  %v10811_v32 = vld [vmem:[#allocation2 + $0x50] sm:$0xff] }
 0x53c   :  { %6939 = vmatmul.mubr.f32.gmra.mrb[104].mxu0 %v10747_v42  ;;  %5042 = vmatprep.mubr.f32.mxu1 %v10748_v37  ;;  %v10758_v42 = vld [vmem:[#allocation2 + $0x648] sm:$0xff]  ;;  %v10793_v13 = vld [vmem:[#allocation2 + $0xca0] sm:$0xff]  ;;  %v10812_v33 = vld [vmem:[#allocation2 + $0xb8] sm:$0xff] }
 0x53d   :  { %6944 = vmatprep.mubr.f32.mxu0 %v10748_v37  ;;  %8465 = vmatpush1.bf16.msra.mxu1 %v8464_v36  ;;  %v1702_v36 = vld [vmem:[#allocation5 + $0x23c0] sm:$0xff]  ;;  %v10792_v12 = vld [vmem:[#allocation2 + $0xca8] sm:$0xff] }
 0x53e   :  { %8849 = vmatpush1.bf16.msra.mxu0 %v8848_v38  ;;  %8467 = vmatprep.subr.bf16.mxu1 %v8466_v39  ;;  %v1708_v38 = vld [vmem:[#allocation5 + $0x23f0] sm:$0xff]  ;;  %v10756_v39 = vld [vmem:[#allocation2 + $0x5e8] sm:$0xff]  ;;  %v10763_v37 = vld [vmem:[#allocation2 + $0x700] sm:$0xff] }
 0x53f   :  { %5043 = vmatmul.mubr.f32.gmra.mrb[106].mxu1 %v10749_v55  ;;  %8851 = vmatprep.subr.bf16.mxu0 %v8850_v43  ;;  %v8868_v31 = vpack.c.bf16 %v1708_v38, %v1702_v36  ;;  %v10759_v43 = vld [vmem:[#allocation2 + $0x640] sm:$0xff]  ;;  %v10798_v18 = vld [vmem:[#allocation2 + $0xdc8] sm:$0xff]  ;;  %v10815_v36 = vld [vmem:[#allocation2 + $0x110] sm:$0xff] }
 0x540   :  { %6945 = vmatmul.mubr.f32.gmra.mrb[106].mxu0 %v10749_v55  ;;  %5048 = vmatprep.mubr.f32.mxu1 %v10750_v60  ;;  %v10772_v55 = vld [vmem:[#allocation2 + $0x8e8] sm:$0xff]  ;;  %v10797_v17 = vld [vmem:[#allocation2 + $0xd60] sm:$0xff]  ;;  %v10816_v38 = vld [vmem:[#allocation2 + $0x178] sm:$0xff] }
 0x541   :  { %6950 = vmatprep.mubr.f32.mxu0 %v10750_v60  ;;  %8469 = vmatpush1.bf16.msra.mxu1 %v8468_v49  ;;  %v10766_v49 = vld [vmem:[#allocation2 + $0x7c8] sm:$0xff]  ;;  %v10777_v60 = vld [vmem:[#allocation2 + $0x9a0] sm:$0xff] }
 0x542   :  { %8853 = vmatpush1.bf16.msra.mxu0 %v8852_v50  ;;  %8471 = vmatprep.subr.bf16.mxu1 %v8470_v51  ;;  %v10767_v50 = vld [vmem:[#allocation2 + $0x7c0] sm:$0xff]  ;;  %v10768_v51 = vld [vmem:[#allocation2 + $0x828] sm:$0xff] }
 0x543   :  { %5049 = vmatmul.mubr.f32.gmra.mrb[108].mxu1 %v10751_v6  ;;  %8855 = vmatprep.subr.bf16.mxu0 %v8854_v56  ;;  %v10773_v56 = vld [vmem:[#allocation2 + $0x8e0] sm:$0xff]  ;;  %v10802_v22 = vld [vmem:[#allocation2 + $0xe88] sm:$0xff] }
 0x544   :  { %6951 = vmatmul.mubr.f32.gmra.mrb[108].mxu0 %v10751_v6  ;;  %5054 = vmatprep.mubr.f32.mxu1 %v10752_v11  ;;  %v10786_v6 = vld [vmem:[#allocation2 + $0xb88] sm:$0xff]  ;;  %v10799_v19 = vld [vmem:[#allocation2 + $0xdc0] sm:$0xff] }
 0x545   :  { %6956 = vmatprep.mubr.f32.mxu0 %v10752_v11  ;;  %8473 = vmatpush1.bf16.msra.mxu1 %v8472_v0  ;;  %v10780_v0 = vld [vmem:[#allocation2 + $0xa68] sm:$0xff]  ;;  %v10791_v11 = vld [vmem:[#allocation2 + $0xc40] sm:$0xff] }
 0x546   :  { %8857 = vmatpush1.bf16.msra.mxu0 %v8856_v1  ;;  %8475 = vmatprep.subr.bf16.mxu1 %v8474_v2  ;;  %v10781_v1 = vld [vmem:[#allocation2 + $0xa60] sm:$0xff]  ;;  %v10782_v2 = vld [vmem:[#allocation2 + $0xac8] sm:$0xff] }
 0x547   :  { %5055 = vmatmul.mubr.f32.gmra.mrb[110].mxu1 %v10753_v20  ;;  %8859 = vmatprep.subr.bf16.mxu0 %v8858_v7  ;;  %v10787_v7 = vld [vmem:[#allocation2 + $0xb80] sm:$0xff]  ;;  %v10804_v24 = vld [vmem:[#allocation2 + $0xee8] sm:$0xff] }
 0x548   :  { %6957 = vmatmul.mubr.f32.gmra.mrb[110].mxu0 %v10753_v20  ;;  %5060 = vmatprep.mubr.f32.mxu1 %v10754_v25  ;;  %v10800_v20 = vld [vmem:[#allocation2 + $0xe28] sm:$0xff]  ;;  %v10803_v23 = vld [vmem:[#allocation2 + $0xe80] sm:$0xff] }
 0x549   :  { %6962 = vmatprep.mubr.f32.mxu0 %v10754_v25  ;;  %8477 = vmatpush1.bf16.msra.mxu1 %v8476_v14  ;;  %v10794_v14 = vld [vmem:[#allocation2 + $0xd08] sm:$0xff]  ;;  %v10805_v25 = vld [vmem:[#allocation2 + $0xee0] sm:$0xff] }
 0x54a   :  { %8861 = vmatpush1.bf16.msra.mxu0 %v8860_v15  ;;  %8479 = vmatprep.subr.bf16.mxu1 %v8478_v16  ;;  %v10795_v15 = vld [vmem:[#allocation2 + $0xd00] sm:$0xff]  ;;  %v10796_v16 = vld [vmem:[#allocation2 + $0xd68] sm:$0xff] }
 0x54b   :  { %5061 = vmatmul.mubr.f32.gmra.mrb[112].mxu1 %v10755_v34  ;;  %8863 = vmatprep.subr.bf16.mxu0 %v8862_v21  ;;  %v10801_v21 = vld [vmem:[#allocation2 + $0xe20] sm:$0xff]  ;;  %v10806_v26 = vld [vmem:[#allocation2 + $0xf48] sm:$0xff] }
 0x54c   :  { %6963 = vmatmul.mubr.f32.gmra.mrb[112].mxu0 %v10755_v34  ;;  %5066 = vmatprep.mubr.f32.mxu1 %v10756_v39  ;;  %v10807_v27 = vld [vmem:[#allocation2 + $0xf40] sm:$0xff]  ;;  %v10813_v34 = vld [vmem:[#allocation2 + $0xb0] sm:$0xff] }
 0x54d   :  { %6968 = vmatprep.mubr.f32.mxu0 %v10756_v39  ;;  %8481 = vmatpush1.bf16.msra.mxu1 %v8480_v28  ;;  %v10808_v28 = vld [vmem:[#allocation2 + $0xfa8] sm:$0xff]  ;;  %v10817_v39 = vld [vmem:[#allocation2 + $0x170] sm:$0xff] }
 0x54e   :  { %8865 = vmatpush1.bf16.msra.mxu0 %v8864_v29  ;;  %8483 = vmatprep.subr.bf16.mxu1 %v8482_v30  ;;  %v10809_v29 = vld [vmem:[#allocation2 + $0xfa0] sm:$0xff]  ;;  %v10810_v30 = vld [vmem:[#allocation2 + $0x58] sm:$0xff] }
 0x54f   :  { %5067 = vmatmul.mubr.f32.gmra.mrb[114].mxu1 %v10757_v41  ;;  %8867 = vmatprep.subr.bf16.mxu0 %v8866_v35  ;;  %v10814_v35 = vld [vmem:[#allocation2 + $0x118] sm:$0xff] }
 0x550   :  { %6969 = vmatmul.mubr.f32.gmra.mrb[114].mxu0 %v10757_v41  ;;  %5072 = vmatprep.mubr.f32.mxu1 %v10758_v42  ;;  %v10820_v41 = vld [vmem:[#allocation2 + $0x238] sm:$0xff] }
 0x551   :  { %6974 = vmatprep.mubr.f32.mxu0 %v10758_v42  ;;  %8485 = vmatpush1.bf16.msra.mxu1 %v8484_v40  ;;  %v10818_v40 = vld [vmem:[#allocation2 + $0x1d8] sm:$0xff]  ;;  %v10821_v42 = vld [vmem:[#allocation2 + $0x230] sm:$0xff] }
 0x552   :  { %8869 = vmatpush1.bf16.msra.mxu0 %v8868_v31  ;;  %v10819_v31 = vld [vmem:[#allocation2 + $0x1d0] sm:$0xff] }
 0x553   :  { %5073 = vmatmul.mubr.f32.gmra.mrb[116].mxu1 %v10759_v43 }
 0x554   :  { %6975 = vmatmul.mubr.f32.gmra.mrb[116].mxu0 %v10759_v43  ;;  %5078 = vmatprep.mubr.f32.mxu1 %v10760_v44  ;;  %v10822_v43 = vld [vmem:[#allocation2 + $0x298] sm:$0xff] }
 0x555   :  { %6980 = vmatprep.mubr.f32.mxu0 %v10760_v44  ;;  %v10823_v44 = vld [vmem:[#allocation2 + $0x290] sm:$0xff] }
 0x557   :  { %5079 = vmatmul.mubr.f32.gmra.mrb[118].mxu1 %v10761_v45 }
 0x558   :  { %6981 = vmatmul.mubr.f32.gmra.mrb[118].mxu0 %v10761_v45  ;;  %5084 = vmatprep.mubr.f32.mxu1 %v10762_v46  ;;  %v10824_v45 = vld [vmem:[#allocation2 + $0x2f8] sm:$0xff] }
 0x559   :  { %6986 = vmatprep.mubr.f32.mxu0 %v10762_v46  ;;  %v10825_v46 = vld [vmem:[#allocation2 + $0x2f0] sm:$0xff] }
 0x55b   :  { %5085 = vmatmul.mubr.f32.gmra.mrb[120].mxu1 %v10763_v37 }
 0x55c   :  { %6987 = vmatmul.mubr.f32.gmra.mrb[120].mxu0 %v10763_v37  ;;  %5090 = vmatprep.mubr.f32.mxu1 %v10764_v47  ;;  %v10826_v37 = vld [vmem:[#allocation2 + $0x358] sm:$0xff] }
 0x55d   :  { %6992 = vmatprep.mubr.f32.mxu0 %v10764_v47  ;;  %v10827_v47 = vld [vmem:[#allocation2 + $0x350] sm:$0xff] }
 0x55f   :  { %5091 = vmatmul.mubr.f32.gmra.mrb[122].mxu1 %v10765_v48 }
 0x560   :  { %6993 = vmatmul.mubr.f32.gmra.mrb[122].mxu0 %v10765_v48  ;;  %5096 = vmatprep.mubr.f32.mxu1 %v10766_v49  ;;  %v10828_v48 = vld [vmem:[#allocation2 + $0x3b8] sm:$0xff] }
 0x561   :  { %6998 = vmatprep.mubr.f32.mxu0 %v10766_v49  ;;  %v10829_v49 = vld [vmem:[#allocation2 + $0x3b0] sm:$0xff] }
 0x563   :  { %5097 = vmatmul.mubr.f32.gmra.mrb[124].mxu1 %v10767_v50 }
 0x564   :  { %6999 = vmatmul.mubr.f32.gmra.mrb[124].mxu0 %v10767_v50  ;;  %5102 = vmatprep.mubr.f32.mxu1 %v10768_v51  ;;  %v10830_v50 = vld [vmem:[#allocation2 + $0x418] sm:$0xff] }
 0x565   :  { %7004 = vmatprep.mubr.f32.mxu0 %v10768_v51  ;;  %v10831_v51 = vld [vmem:[#allocation2 + $0x410] sm:$0xff] }
 0x567   :  { %5103 = vmatmul.mubr.f32.gmra.mrb[126].mxu1 %v10769_v52 }
 0x568   :  { %7005 = vmatmul.mubr.f32.gmra.mrb[126].mxu0 %v10769_v52  ;;  %5108 = vmatprep.mubr.f32.mxu1 %v10770_v53  ;;  %v10832_v52 = vld [vmem:[#allocation2 + $0x478] sm:$0xff] }
 0x569   :  { %7010 = vmatprep.mubr.f32.mxu0 %v10770_v53  ;;  %v10833_v53 = vld [vmem:[#allocation2 + $0x470] sm:$0xff] }
 0x56b   :  { %5109 = vmatmul.mubr.f32.gmra.mrb[128].mxu1 %v10771_v54 }
 0x56c   :  { %7011 = vmatmul.mubr.f32.gmra.mrb[128].mxu0 %v10771_v54  ;;  %5114 = vmatprep.mubr.f32.mxu1 %v10772_v55  ;;  %v10834_v54 = vld [vmem:[#allocation2 + $0x4d8] sm:$0xff] }
 0x56d   :  { %7016 = vmatprep.mubr.f32.mxu0 %v10772_v55  ;;  %v10835_v55 = vld [vmem:[#allocation2 + $0x4d0] sm:$0xff] }
 0x56f   :  { %5115 = vmatmul.mubr.f32.gmra.mrb[130].mxu1 %v10773_v56 }
 0x570   :  { %7017 = vmatmul.mubr.f32.gmra.mrb[130].mxu0 %v10773_v56  ;;  %5120 = vmatprep.mubr.f32.mxu1 %v10774_v57  ;;  %v10836_v56 = vld [vmem:[#allocation2 + $0x538] sm:$0xff] }
 0x571   :  { %7022 = vmatprep.mubr.f32.mxu0 %v10774_v57  ;;  %v10837_v57 = vld [vmem:[#allocation2 + $0x530] sm:$0xff] }
 0x573   :  { %5121 = vmatmul.mubr.f32.gmra.mrb[132].mxu1 %v10775_v58 }
 0x574   :  { %7023 = vmatmul.mubr.f32.gmra.mrb[132].mxu0 %v10775_v58  ;;  %5126 = vmatprep.mubr.f32.mxu1 %v10776_v59  ;;  %v10838_v58 = vld [vmem:[#allocation2 + $0x598] sm:$0xff] }
 0x575   :  { %7028 = vmatprep.mubr.f32.mxu0 %v10776_v59  ;;  %v10839_v59 = vld [vmem:[#allocation2 + $0x590] sm:$0xff] }
 0x577   :  { %5127 = vmatmul.mubr.f32.gmra.mrb[134].mxu1 %v10777_v60 }
 0x578   :  { %7029 = vmatmul.mubr.f32.gmra.mrb[134].mxu0 %v10777_v60  ;;  %5132 = vmatprep.mubr.f32.mxu1 %v10778_v61  ;;  %v10840_v60 = vld [vmem:[#allocation2 + $0x5f8] sm:$0xff] }
 0x579   :  { %7034 = vmatprep.mubr.f32.mxu0 %v10778_v61  ;;  %v10841_v61 = vld [vmem:[#allocation2 + $0x5f0] sm:$0xff] }
 0x57b   :  { %5133 = vmatmul.mubr.f32.gmra.mrb[136].mxu1 %v10779_v62 }
 0x57c   :  { %7035 = vmatmul.mubr.f32.gmra.mrb[136].mxu0 %v10779_v62  ;;  %5138 = vmatprep.mubr.f32.mxu1 %v10780_v0  ;;  %v10842_v62 = vld [vmem:[#allocation2 + $0x658] sm:$0xff] }
 0x57d   :  { %7040 = vmatprep.mubr.f32.mxu0 %v10780_v0  ;;  %v10843_v0 = vld [vmem:[#allocation2 + $0x650] sm:$0xff] }
 0x57f   :  { %5139 = vmatmul.mubr.f32.gmra.mrb[138].mxu1 %v10781_v1 }
 0x580   :  { %7041 = vmatmul.mubr.f32.gmra.mrb[138].mxu0 %v10781_v1  ;;  %5144 = vmatprep.mubr.f32.mxu1 %v10782_v2  ;;  %v10844_v1 = vld [vmem:[#allocation2 + $0x6b8] sm:$0xff] }
 0x581   :  { %7046 = vmatprep.mubr.f32.mxu0 %v10782_v2  ;;  %v10845_v2 = vld [vmem:[#allocation2 + $0x6b0] sm:$0xff] }
 0x583   :  { %5145 = vmatmul.mubr.f32.gmra.mrb[140].mxu1 %v10783_v3 }
 0x584   :  { %7047 = vmatmul.mubr.f32.gmra.mrb[140].mxu0 %v10783_v3  ;;  %5150 = vmatprep.mubr.f32.mxu1 %v10784_v4  ;;  %v10846_v3 = vld [vmem:[#allocation2 + $0x718] sm:$0xff] }
 0x585   :  { %7052 = vmatprep.mubr.f32.mxu0 %v10784_v4  ;;  %v10847_v4 = vld [vmem:[#allocation2 + $0x710] sm:$0xff] }
 0x587   :  { %5151 = vmatmul.mubr.f32.gmra.mrb[142].mxu1 %v10785_v5 }
 0x588   :  { %7053 = vmatmul.mubr.f32.gmra.mrb[142].mxu0 %v10785_v5  ;;  %5156 = vmatprep.mubr.f32.mxu1 %v10786_v6  ;;  %v10848_v5 = vld [vmem:[#allocation2 + $0x778] sm:$0xff] }
 0x589   :  { %7058 = vmatprep.mubr.f32.mxu0 %v10786_v6  ;;  %v10849_v6 = vld [vmem:[#allocation2 + $0x770] sm:$0xff] }
 0x58b   :  { %5157 = vmatmul.mubr.f32.gmra.mrb[144].mxu1 %v10787_v7 }
 0x58c   :  { %7059 = vmatmul.mubr.f32.gmra.mrb[144].mxu0 %v10787_v7  ;;  %5162 = vmatprep.mubr.f32.mxu1 %v10788_v8  ;;  %v10850_v7 = vld [vmem:[#allocation2 + $0x7d8] sm:$0xff] }
 0x58d   :  { %7064 = vmatprep.mubr.f32.mxu0 %v10788_v8  ;;  %v10851_v8 = vld [vmem:[#allocation2 + $0x7d0] sm:$0xff] }
 0x58f   :  { %5163 = vmatmul.mubr.f32.gmra.mrb[146].mxu1 %v10789_v9 }
 0x590   :  { %7065 = vmatmul.mubr.f32.gmra.mrb[146].mxu0 %v10789_v9  ;;  %5168 = vmatprep.mubr.f32.mxu1 %v10790_v10  ;;  %v10852_v9 = vld [vmem:[#allocation2 + $0x838] sm:$0xff] }
 0x591   :  { %7070 = vmatprep.mubr.f32.mxu0 %v10790_v10  ;;  %v10853_v10 = vld [vmem:[#allocation2 + $0x830] sm:$0xff] }
 0x593   :  { %5169 = vmatmul.mubr.f32.gmra.mrb[148].mxu1 %v10791_v11 }
 0x594   :  { %7071 = vmatmul.mubr.f32.gmra.mrb[148].mxu0 %v10791_v11  ;;  %5174 = vmatprep.mubr.f32.mxu1 %v10792_v12  ;;  %v10854_v11 = vld [vmem:[#allocation2 + $0x898] sm:$0xff] }
 0x595   :  { %7076 = vmatprep.mubr.f32.mxu0 %v10792_v12  ;;  %v10855_v12 = vld [vmem:[#allocation2 + $0x890] sm:$0xff] }
 0x597   :  { %5175 = vmatmul.mubr.f32.gmra.mrb[150].mxu1 %v10793_v13 }
 0x598   :  { %7077 = vmatmul.mubr.f32.gmra.mrb[150].mxu0 %v10793_v13  ;;  %5180 = vmatprep.mubr.f32.mxu1 %v10794_v14  ;;  %v10856_v13 = vld [vmem:[#allocation2 + $0x8f8] sm:$0xff] }
 0x599   :  { %7082 = vmatprep.mubr.f32.mxu0 %v10794_v14  ;;  %v10857_v14 = vld [vmem:[#allocation2 + $0x8f0] sm:$0xff] }
 0x59b   :  { %5181 = vmatmul.mubr.f32.gmra.mrb[152].mxu1 %v10795_v15 }
 0x59c   :  { %7083 = vmatmul.mubr.f32.gmra.mrb[152].mxu0 %v10795_v15  ;;  %5186 = vmatprep.mubr.f32.mxu1 %v10796_v16  ;;  %v10858_v15 = vld [vmem:[#allocation2 + $0x958] sm:$0xff] }
 0x59d   :  { %7088 = vmatprep.mubr.f32.mxu0 %v10796_v16  ;;  %v10859_v16 = vld [vmem:[#allocation2 + $0x950] sm:$0xff] }
 0x59f   :  { %5187 = vmatmul.mubr.f32.gmra.mrb[154].mxu1 %v10797_v17 }
 0x5a0   :  { %7089 = vmatmul.mubr.f32.gmra.mrb[154].mxu0 %v10797_v17  ;;  %5192 = vmatprep.mubr.f32.mxu1 %v10798_v18  ;;  %v10860_v17 = vld [vmem:[#allocation2 + $0x9b8] sm:$0xff] }
 0x5a1   :  { %7094 = vmatprep.mubr.f32.mxu0 %v10798_v18  ;;  %v10861_v18 = vld [vmem:[#allocation2 + $0x9b0] sm:$0xff] }
 0x5a3   :  { %5193 = vmatmul.mubr.f32.gmra.mrb[156].mxu1 %v10799_v19 }
 0x5a4   :  { %7095 = vmatmul.mubr.f32.gmra.mrb[156].mxu0 %v10799_v19  ;;  %5198 = vmatprep.mubr.f32.mxu1 %v10800_v20  ;;  %v10862_v19 = vld [vmem:[#allocation2 + $0xa18] sm:$0xff] }
 0x5a5   :  { %7100 = vmatprep.mubr.f32.mxu0 %v10800_v20  ;;  %v10863_v20 = vld [vmem:[#allocation2 + $0xa10] sm:$0xff] }
 0x5a7   :  { %5199 = vmatmul.mubr.f32.gmra.mrb[158].mxu1 %v10801_v21 }
 0x5a8   :  { %7101 = vmatmul.mubr.f32.gmra.mrb[158].mxu0 %v10801_v21  ;;  %5204 = vmatprep.mubr.f32.mxu1 %v10802_v22  ;;  %v10864_v21 = vld [vmem:[#allocation2 + $0xa78] sm:$0xff] }
 0x5a9   :  { %7106 = vmatprep.mubr.f32.mxu0 %v10802_v22  ;;  %v10865_v22 = vld [vmem:[#allocation2 + $0xa70] sm:$0xff] }
 0x5ab   :  { %5205 = vmatmul.mubr.f32.gmra.mrb[160].mxu1 %v10803_v23 }
 0x5ac   :  { %7107 = vmatmul.mubr.f32.gmra.mrb[160].mxu0 %v10803_v23  ;;  %5210 = vmatprep.mubr.f32.mxu1 %v10804_v24  ;;  %v10866_v23 = vld [vmem:[#allocation2 + $0xad8] sm:$0xff] }
 0x5ad   :  { %7112 = vmatprep.mubr.f32.mxu0 %v10804_v24  ;;  %v10867_v24 = vld [vmem:[#allocation2 + $0xad0] sm:$0xff] }
 0x5af   :  { %5211 = vmatmul.mubr.f32.gmra.mrb[162].mxu1 %v10805_v25 }
 0x5b0   :  { %7113 = vmatmul.mubr.f32.gmra.mrb[162].mxu0 %v10805_v25  ;;  %5216 = vmatprep.mubr.f32.mxu1 %v10806_v26  ;;  %v10868_v25 = vld [vmem:[#allocation2 + $0xb38] sm:$0xff] }
 0x5b1   :  { %7118 = vmatprep.mubr.f32.mxu0 %v10806_v26  ;;  %v10869_v26 = vld [vmem:[#allocation2 + $0xb30] sm:$0xff] }
 0x5b3   :  { %5217 = vmatmul.mubr.f32.gmra.mrb[164].mxu1 %v10807_v27 }
 0x5b4   :  { %7119 = vmatmul.mubr.f32.gmra.mrb[164].mxu0 %v10807_v27  ;;  %5222 = vmatprep.mubr.f32.mxu1 %v10808_v28  ;;  %v10870_v27 = vld [vmem:[#allocation2 + $0xb98] sm:$0xff] }
 0x5b5   :  { %7124 = vmatprep.mubr.f32.mxu0 %v10808_v28  ;;  %v10871_v28 = vld [vmem:[#allocation2 + $0xb90] sm:$0xff] }
 0x5b7   :  { %5223 = vmatmul.mubr.f32.gmra.mrb[166].mxu1 %v10809_v29 }
 0x5b8   :  { %7125 = vmatmul.mubr.f32.gmra.mrb[166].mxu0 %v10809_v29  ;;  %5293 = vmatprep.mubr.f32.mxu1 %v10810_v30  ;;  %v10872_v29 = vld [vmem:[#allocation2 + $0xbf8] sm:$0xff] }
 0x5b9   :  { %7195 = vmatprep.mubr.f32.mxu0 %v10810_v30  ;;  %v10873_v30 = vld [vmem:[#allocation2 + $0xbf0] sm:$0xff] }
 0x5bb   :  { %5294 = vmatmul.mubr.f32.vlgmr.msra.gmra.mrb[84].mxu1 %v10811_v32 }
 0x5bc   :  { %7196 = vmatmul.mubr.f32.vlgmr.msra.gmra.mrb[84].mxu0 %v10811_v32  ;;  %5299 = vmatprep.mubr.f32.mxu1 %v10812_v33  ;;  %v10874_v32 = vld [vmem:[#allocation2 + $0xc58] sm:$0xff] }
 0x5bd   :  { %7201 = vmatprep.mubr.f32.mxu0 %v10812_v33  ;;  %v10875_v33 = vld [vmem:[#allocation2 + $0xc50] sm:$0xff] }
 0x5bf   :  { %5300 = vmatmul.mubr.f32.gmra.mrb[86].mxu1 %v10813_v34 }
 0x5c0   :  { %7202 = vmatmul.mubr.f32.gmra.mrb[86].mxu0 %v10813_v34  ;;  %5305 = vmatprep.mubr.f32.mxu1 %v10814_v35  ;;  %v10876_v34 = vld [vmem:[#allocation2 + $0xcb8] sm:$0xff] }
 0x5c1   :  { %7207 = vmatprep.mubr.f32.mxu0 %v10814_v35  ;;  %v10877_v35 = vld [vmem:[#allocation2 + $0xcb0] sm:$0xff] }
 0x5c3   :  { %5306 = vmatmul.mubr.f32.gmra.mrb[88].mxu1 %v10815_v36 }
 0x5c4   :  { %7208 = vmatmul.mubr.f32.gmra.mrb[88].mxu0 %v10815_v36  ;;  %5311 = vmatprep.mubr.f32.mxu1 %v10816_v38  ;;  %v10878_v36 = vld [vmem:[#allocation2 + $0xd18] sm:$0xff] }
 0x5c5   :  { %7213 = vmatprep.mubr.f32.mxu0 %v10816_v38  ;;  %v10879_v38 = vld [vmem:[#allocation2 + $0xd10] sm:$0xff] }
 0x5c7   :  { %5312 = vmatmul.mubr.f32.gmra.mrb[90].mxu1 %v10817_v39 }
 0x5c8   :  { %7214 = vmatmul.mubr.f32.gmra.mrb[90].mxu0 %v10817_v39  ;;  %5317 = vmatprep.mubr.f32.mxu1 %v10818_v40  ;;  %v10880_v39 = vld [vmem:[#allocation2 + $0xd78] sm:$0xff] }
 0x5c9   :  { %7219 = vmatprep.mubr.f32.mxu0 %v10818_v40  ;;  %v10881_v40 = vld [vmem:[#allocation2 + $0xd70] sm:$0xff] }
 0x5cb   :  { %5318 = vmatmul.mubr.f32.gmra.mrb[92].mxu1 %v10819_v31 }
 0x5cc   :  { %7220 = vmatmul.mubr.f32.gmra.mrb[92].mxu0 %v10819_v31  ;;  %5323 = vmatprep.mubr.f32.mxu1 %v10820_v41  ;;  %v10882_v31 = vld [vmem:[#allocation2 + $0xdd8] sm:$0xff] }
 0x5cd   :  { %7225 = vmatprep.mubr.f32.mxu0 %v10820_v41  ;;  %v10883_v41 = vld [vmem:[#allocation2 + $0xdd0] sm:$0xff] }
 0x5cf   :  { %5324 = vmatmul.mubr.f32.gmra.mrb[94].mxu1 %v10821_v42 }
 0x5d0   :  { %7226 = vmatmul.mubr.f32.gmra.mrb[94].mxu0 %v10821_v42  ;;  %5329 = vmatprep.mubr.f32.mxu1 %v10822_v43  ;;  %v10884_v42 = vld [vmem:[#allocation2 + $0xe38] sm:$0xff] }
 0x5d1   :  { %7231 = vmatprep.mubr.f32.mxu0 %v10822_v43  ;;  %v10885_v43 = vld [vmem:[#allocation2 + $0xe30] sm:$0xff] }
 0x5d3   :  { %5330 = vmatmul.mubr.f32.gmra.mrb[96].mxu1 %v10823_v44 }
 0x5d4   :  { %7232 = vmatmul.mubr.f32.gmra.mrb[96].mxu0 %v10823_v44  ;;  %5335 = vmatprep.mubr.f32.mxu1 %v10824_v45  ;;  %v10886_v44 = vld [vmem:[#allocation2 + $0xe98] sm:$0xff] }
 0x5d5   :  { %7237 = vmatprep.mubr.f32.mxu0 %v10824_v45  ;;  %v10887_v45 = vld [vmem:[#allocation2 + $0xe90] sm:$0xff] }
 0x5d7   :  { %5336 = vmatmul.mubr.f32.gmra.mrb[98].mxu1 %v10825_v46 }
 0x5d8   :  { %7238 = vmatmul.mubr.f32.gmra.mrb[98].mxu0 %v10825_v46  ;;  %5341 = vmatprep.mubr.f32.mxu1 %v10826_v37  ;;  %v10888_v46 = vld [vmem:[#allocation2 + $0xef8] sm:$0xff] }
 0x5d9   :  { %7243 = vmatprep.mubr.f32.mxu0 %v10826_v37  ;;  %v10889_v37 = vld [vmem:[#allocation2 + $0xef0] sm:$0xff] }
 0x5db   :  { %5342 = vmatmul.mubr.f32.gmra.mrb[100].mxu1 %v10827_v47 }
 0x5dc   :  { %7244 = vmatmul.mubr.f32.gmra.mrb[100].mxu0 %v10827_v47  ;;  %5347 = vmatprep.mubr.f32.mxu1 %v10828_v48  ;;  %v10890_v47 = vld [vmem:[#allocation2 + $0xf58] sm:$0xff] }
 0x5dd   :  { %7249 = vmatprep.mubr.f32.mxu0 %v10828_v48  ;;  %v10891_v48 = vld [vmem:[#allocation2 + $0xf50] sm:$0xff] }
 0x5df   :  { %5348 = vmatmul.mubr.f32.gmra.mrb[102].mxu1 %v10829_v49 }
 0x5e0   :  { %7250 = vmatmul.mubr.f32.gmra.mrb[102].mxu0 %v10829_v49  ;;  %5353 = vmatprep.mubr.f32.mxu1 %v10830_v50  ;;  %v10892_v49 = vld [vmem:[#allocation2 + $0xfb8] sm:$0xff] }
 0x5e1   :  { %7255 = vmatprep.mubr.f32.mxu0 %v10830_v50  ;;  %v10893_v50 = vld [vmem:[#allocation2 + $0xfb0] sm:$0xff] }
 0x5e3   :  { %5354 = vmatmul.mubr.f32.gmra.mrb[104].mxu1 %v10831_v51 }
 0x5e4   :  { %7256 = vmatmul.mubr.f32.gmra.mrb[104].mxu0 %v10831_v51  ;;  %5359 = vmatprep.mubr.f32.mxu1 %v10832_v52  ;;  %v1722_v51 = vsub.s32 2, %v11056_v63 }
 0x5e5   :  { %7261 = vmatprep.mubr.f32.mxu0 %v10832_v52  ;;  %v1730_v52 = vsub.s32 4, %v11056_v63 }
 0x5e7   :  { %5360 = vmatmul.mubr.f32.gmra.mrb[106].mxu1 %v10833_v53 }
 0x5e8   :  { %7262 = vmatmul.mubr.f32.gmra.mrb[106].mxu0 %v10833_v53  ;;  %5365 = vmatprep.mubr.f32.mxu1 %v10834_v54  ;;  %v1726_v53 = vsub.s32 3, %v11056_v63 }
 0x5e9   :  { %7267 = vmatprep.mubr.f32.mxu0 %v10834_v54  ;;  %v1734_v54 = vsub.s32 5, %v11056_v63 }
 0x5eb   :  { %5366 = vmatmul.mubr.f32.gmra.mrb[108].mxu1 %v10835_v55 }
 0x5ec   :  { %7268 = vmatmul.mubr.f32.gmra.mrb[108].mxu0 %v10835_v55  ;;  %5371 = vmatprep.mubr.f32.mxu1 %v10836_v56  ;;  %v10894_v55 = vld [vmem:[#allocation7] sm:$0x3f] }
 0x5ed   :  { %7273 = vmatprep.mubr.f32.mxu0 %v10836_v56  ;;  %v11152_v56 = vrot.slane %v10894_v55, %v1722_v51 }
 0x5ef   :  { %5372 = vmatmul.mubr.f32.gmra.mrb[110].mxu1 %v10837_v57 }
 0x5f0   :  { %7274 = vmatmul.mubr.f32.gmra.mrb[110].mxu0 %v10837_v57  ;;  %5377 = vmatprep.mubr.f32.mxu1 %v10838_v58  ;;  %v11154_v57 = vrot.slane %v10894_v55, %v1730_v52 }
 0x5f1   :  { %7279 = vmatprep.mubr.f32.mxu0 %v10838_v58  ;;  %v11156_v58 = vrot.slane %v10894_v55, %v1726_v53 }
 0x5f3   :  { %5378 = vmatmul.mubr.f32.gmra.mrb[112].mxu1 %v10839_v59 }
 0x5f4   :  { %7280 = vmatmul.mubr.f32.gmra.mrb[112].mxu0 %v10839_v59  ;;  %5383 = vmatprep.mubr.f32.mxu1 %v10840_v60  ;;  %v11158_v59 = vrot.slane %v10894_v55, %v1734_v54 }
 0x5f5   :  { %7285 = vmatprep.mubr.f32.mxu0 %v10840_v60 }
 0x5f7   :  { %5384 = vmatmul.mubr.f32.gmra.mrb[114].mxu1 %v10841_v61 }
 0x5f8   :  { %7286 = vmatmul.mubr.f32.gmra.mrb[114].mxu0 %v10841_v61  ;;  %5389 = vmatprep.mubr.f32.mxu1 %v10842_v62 }
 0x5f9   :  { %7291 = vmatprep.mubr.f32.mxu0 %v10842_v62 }
 0x5fb   :  { %5390 = vmatmul.mubr.f32.gmra.mrb[116].mxu1 %v10843_v0 }
 0x5fc   :  { %7292 = vmatmul.mubr.f32.gmra.mrb[116].mxu0 %v10843_v0  ;;  %5395 = vmatprep.mubr.f32.mxu1 %v10844_v1 }
 0x5fd   :  { %7297 = vmatprep.mubr.f32.mxu0 %v10844_v1 }
 0x5ff   :  { %5396 = vmatmul.mubr.f32.gmra.mrb[118].mxu1 %v10845_v2 }
 0x600   :  { %7298 = vmatmul.mubr.f32.gmra.mrb[118].mxu0 %v10845_v2  ;;  %5401 = vmatprep.mubr.f32.mxu1 %v10846_v3 }
 0x601   :  { %7303 = vmatprep.mubr.f32.mxu0 %v10846_v3 }
 0x603   :  { %5402 = vmatmul.mubr.f32.gmra.mrb[120].mxu1 %v10847_v4 }
 0x604   :  { %7304 = vmatmul.mubr.f32.gmra.mrb[120].mxu0 %v10847_v4  ;;  %5407 = vmatprep.mubr.f32.mxu1 %v10848_v5 }
 0x605   :  { %7309 = vmatprep.mubr.f32.mxu0 %v10848_v5 }
 0x607   :  { %5408 = vmatmul.mubr.f32.gmra.mrb[122].mxu1 %v10849_v6 }
 0x608   :  { %7310 = vmatmul.mubr.f32.gmra.mrb[122].mxu0 %v10849_v6  ;;  %5413 = vmatprep.mubr.f32.mxu1 %v10850_v7 }
 0x609   :  { %7315 = vmatprep.mubr.f32.mxu0 %v10850_v7 }
 0x60b   :  { %5414 = vmatmul.mubr.f32.gmra.mrb[124].mxu1 %v10851_v8 }
 0x60c   :  { %7316 = vmatmul.mubr.f32.gmra.mrb[124].mxu0 %v10851_v8  ;;  %5419 = vmatprep.mubr.f32.mxu1 %v10852_v9 }
 0x60d   :  { %7321 = vmatprep.mubr.f32.mxu0 %v10852_v9 }
 0x60f   :  { %5420 = vmatmul.mubr.f32.gmra.mrb[126].mxu1 %v10853_v10 }
 0x610   :  { %7322 = vmatmul.mubr.f32.gmra.mrb[126].mxu0 %v10853_v10  ;;  %5425 = vmatprep.mubr.f32.mxu1 %v10854_v11 }
 0x611   :  { %7327 = vmatprep.mubr.f32.mxu0 %v10854_v11 }
 0x613   :  { %5426 = vmatmul.mubr.f32.gmra.mrb[128].mxu1 %v10855_v12 }
 0x614   :  { %7328 = vmatmul.mubr.f32.gmra.mrb[128].mxu0 %v10855_v12  ;;  %5431 = vmatprep.mubr.f32.mxu1 %v10856_v13 }
 0x615   :  { %7333 = vmatprep.mubr.f32.mxu0 %v10856_v13 }
 0x617   :  { %5432 = vmatmul.mubr.f32.gmra.mrb[130].mxu1 %v10857_v14 }
 0x618   :  { %7334 = vmatmul.mubr.f32.gmra.mrb[130].mxu0 %v10857_v14  ;;  %5437 = vmatprep.mubr.f32.mxu1 %v10858_v15 }
 0x619   :  { %7339 = vmatprep.mubr.f32.mxu0 %v10858_v15 }
 0x61b   :  { %5438 = vmatmul.mubr.f32.gmra.mrb[132].mxu1 %v10859_v16 }
 0x61c   :  { %7340 = vmatmul.mubr.f32.gmra.mrb[132].mxu0 %v10859_v16  ;;  %5443 = vmatprep.mubr.f32.mxu1 %v10860_v17 }
 0x61d   :  { %7345 = vmatprep.mubr.f32.mxu0 %v10860_v17 }
 0x61f   :  { %5444 = vmatmul.mubr.f32.gmra.mrb[134].mxu1 %v10861_v18 }
 0x620   :  { %7346 = vmatmul.mubr.f32.gmra.mrb[134].mxu0 %v10861_v18  ;;  %5449 = vmatprep.mubr.f32.mxu1 %v10862_v19 }
 0x621   :  { %7351 = vmatprep.mubr.f32.mxu0 %v10862_v19 }
 0x623   :  { %5450 = vmatmul.mubr.f32.gmra.mrb[136].mxu1 %v10863_v20 }
 0x624   :  { %7352 = vmatmul.mubr.f32.gmra.mrb[136].mxu0 %v10863_v20  ;;  %5455 = vmatprep.mubr.f32.mxu1 %v10864_v21 }
 0x625   :  { %7357 = vmatprep.mubr.f32.mxu0 %v10864_v21 }
 0x627   :  { %5456 = vmatmul.mubr.f32.gmra.mrb[138].mxu1 %v10865_v22 }
 0x628   :  { %7358 = vmatmul.mubr.f32.gmra.mrb[138].mxu0 %v10865_v22  ;;  %5461 = vmatprep.mubr.f32.mxu1 %v10866_v23 }
 0x629   :  { %7363 = vmatprep.mubr.f32.mxu0 %v10866_v23 }
 0x62b   :  { %5462 = vmatmul.mubr.f32.gmra.mrb[140].mxu1 %v10867_v24 }
 0x62c   :  { %7364 = vmatmul.mubr.f32.gmra.mrb[140].mxu0 %v10867_v24  ;;  %5467 = vmatprep.mubr.f32.mxu1 %v10868_v25 }
 0x62d   :  { %7369 = vmatprep.mubr.f32.mxu0 %v10868_v25 }
 0x62f   :  { %5468 = vmatmul.mubr.f32.gmra.mrb[142].mxu1 %v10869_v26 }
 0x630   :  { %7370 = vmatmul.mubr.f32.gmra.mrb[142].mxu0 %v10869_v26  ;;  %5473 = vmatprep.mubr.f32.mxu1 %v10870_v27 }
 0x631   :  { %7375 = vmatprep.mubr.f32.mxu0 %v10870_v27 }
 0x633   :  { %5474 = vmatmul.mubr.f32.gmra.mrb[144].mxu1 %v10871_v28 }
 0x634   :  { %7376 = vmatmul.mubr.f32.gmra.mrb[144].mxu0 %v10871_v28  ;;  %5479 = vmatprep.mubr.f32.mxu1 %v10872_v29 }
 0x635   :  { %7381 = vmatprep.mubr.f32.mxu0 %v10872_v29 }
 0x637   :  { %5480 = vmatmul.mubr.f32.gmra.mrb[146].mxu1 %v10873_v30 }
 0x638   :  { %7382 = vmatmul.mubr.f32.gmra.mrb[146].mxu0 %v10873_v30  ;;  %5485 = vmatprep.mubr.f32.mxu1 %v10874_v32 }
 0x639   :  { %7387 = vmatprep.mubr.f32.mxu0 %v10874_v32 }
 0x63b   :  { %5486 = vmatmul.mubr.f32.gmra.mrb[148].mxu1 %v10875_v33 }
 0x63c   :  { %7388 = vmatmul.mubr.f32.gmra.mrb[148].mxu0 %v10875_v33  ;;  %5491 = vmatprep.mubr.f32.mxu1 %v10876_v34 }
 0x63d   :  { %7393 = vmatprep.mubr.f32.mxu0 %v10876_v34 }
 0x63f   :  { %5492 = vmatmul.mubr.f32.gmra.mrb[150].mxu1 %v10877_v35 }
 0x640   :  { %7394 = vmatmul.mubr.f32.gmra.mrb[150].mxu0 %v10877_v35  ;;  %5497 = vmatprep.mubr.f32.mxu1 %v10878_v36 }
 0x641   :  { %7399 = vmatprep.mubr.f32.mxu0 %v10878_v36 }
 0x643   :  { %5498 = vmatmul.mubr.f32.gmra.mrb[152].mxu1 %v10879_v38 }
 0x644   :  { %7400 = vmatmul.mubr.f32.gmra.mrb[152].mxu0 %v10879_v38  ;;  %5503 = vmatprep.mubr.f32.mxu1 %v10880_v39 }
 0x645   :  { %7405 = vmatprep.mubr.f32.mxu0 %v10880_v39 }
 0x647   :  { %5504 = vmatmul.mubr.f32.gmra.mrb[154].mxu1 %v10881_v40 }
 0x648   :  { %7406 = vmatmul.mubr.f32.gmra.mrb[154].mxu0 %v10881_v40  ;;  %5509 = vmatprep.mubr.f32.mxu1 %v10882_v31 }
 0x649   :  { %7411 = vmatprep.mubr.f32.mxu0 %v10882_v31 }
 0x64b   :  { %5510 = vmatmul.mubr.f32.gmra.mrb[156].mxu1 %v10883_v41 }
 0x64c   :  { %7412 = vmatmul.mubr.f32.gmra.mrb[156].mxu0 %v10883_v41  ;;  %5515 = vmatprep.mubr.f32.mxu1 %v10884_v42 }
 0x64d   :  { %7417 = vmatprep.mubr.f32.mxu0 %v10884_v42 }
 0x64f   :  { %5516 = vmatmul.mubr.f32.gmra.mrb[158].mxu1 %v10885_v43 }
 0x650   :  { %7418 = vmatmul.mubr.f32.gmra.mrb[158].mxu0 %v10885_v43  ;;  %5521 = vmatprep.mubr.f32.mxu1 %v10886_v44 }
 0x651   :  { %7423 = vmatprep.mubr.f32.mxu0 %v10886_v44 }
 0x653   :  { %5522 = vmatmul.mubr.f32.gmra.mrb[160].mxu1 %v10887_v45 }
 0x654   :  { %7424 = vmatmul.mubr.f32.gmra.mrb[160].mxu0 %v10887_v45  ;;  %5527 = vmatprep.mubr.f32.mxu1 %v10888_v46 }
 0x655   :  { %7429 = vmatprep.mubr.f32.mxu0 %v10888_v46 }
 0x657   :  { %5528 = vmatmul.mubr.f32.gmra.mrb[162].mxu1 %v10889_v37 }
 0x658   :  { %7430 = vmatmul.mubr.f32.gmra.mrb[162].mxu0 %v10889_v37  ;;  %5533 = vmatprep.mubr.f32.mxu1 %v10890_v47 }
 0x659   :  { %7435 = vmatprep.mubr.f32.mxu0 %v10890_v47 }
 0x65b   :  { %5534 = vmatmul.mubr.f32.gmra.mrb[164].mxu1 %v10891_v48 }
 0x65c   :  { %7436 = vmatmul.mubr.f32.gmra.mrb[164].mxu0 %v10891_v48  ;;  %5539 = vmatprep.mubr.f32.mxu1 %v10892_v49 }
 0x65d   :  { %7441 = vmatprep.mubr.f32.mxu0 %v10892_v49 }
 0x65f   :  { %5540 = vmatmul.mubr.f32.gmra.mrb[166].mxu1 %v10893_v50 }
 0x660   :  { %7442 = vmatmul.mubr.f32.gmra.mrb[166].mxu0 %v10893_v50 }
 0x68e   :  { %v5295_v60 = vpop.f32.mrb[84].mxu1 }
 0x68f   :  { %v9038_v61 = vadd.f32 %v5295_v60, %v11152_v56  ;;  %v7197_v62 = vpop.f32.mrb[84].mxu0  ;;  %v5297_v0 = vpop.f32.mrb[85].mxu1 }
 0x690   :  { %v9122_v1 = vadd.f32 %v7197_v62, %v11154_v57  ;;  %v9039_v2 = vadd.f32 %v5297_v0, %v11156_v58  ;;  %v7199_v3 = vpop.f32.mrb[85].mxu0 }
 0x691   :  { %7450 = vst [vmem:[#allocation8 + $0x10] sm:$0xff] %v9038_v61  ;;  %v9123_v63 = vadd.f32 %v7199_v3, %v11158_v59 }
 0x692   :  { %7452 = vst [vmem:[#allocation8 + $0x20] sm:$0xff] %v9122_v1  ;;  %7451 = vst [vmem:[#allocation8 + $0x18] sm:$0xff] %v9039_v2  ;;  %v5301_v4 = vpop.f32.mrb[86].mxu1 }
 0x693   :  { %7453 = vst [vmem:[#allocation8 + $0x28] sm:$0xff] %v9123_v63  ;;  %v9040_v5 = vadd.f32 %v5301_v4, %v11152_v56  ;;  %v7203_v6 = vpop.f32.mrb[86].mxu0  ;;  %v5303_v7 = vpop.f32.mrb[87].mxu1 }
 0x694   :  { %v9124_v8 = vadd.f32 %v7203_v6, %v11154_v57  ;;  %v9041_v9 = vadd.f32 %v5303_v7, %v11156_v58  ;;  %v7205_v10 = vpop.f32.mrb[87].mxu0 }
 0x695   :  { %7456 = vst [vmem:[#allocation8 + $0x40] sm:$0xff] %v9040_v5  ;;  %v9125_v11 = vadd.f32 %v7205_v10, %v11158_v59 }
 0x696   :  { %7458 = vst [vmem:[#allocation8 + $0x50] sm:$0xff] %v9124_v8  ;;  %7457 = vst [vmem:[#allocation8 + $0x48] sm:$0xff] %v9041_v9  ;;  %v5307_v12 = vpop.f32.mrb[88].mxu1 }
 0x697   :  { %7459 = vst [vmem:[#allocation8 + $0x58] sm:$0xff] %v9125_v11  ;;  %v9042_v13 = vadd.f32 %v5307_v12, %v11152_v56  ;;  %v7209_v14 = vpop.f32.mrb[88].mxu0  ;;  %v5309_v15 = vpop.f32.mrb[89].mxu1 }
 0x698   :  { %v9126_v16 = vadd.f32 %v7209_v14, %v11154_v57  ;;  %v9043_v17 = vadd.f32 %v5309_v15, %v11156_v58  ;;  %v7211_v18 = vpop.f32.mrb[89].mxu0 }
 0x699   :  { %7462 = vst [vmem:[#allocation8 + $0x70] sm:$0xff] %v9042_v13  ;;  %v9127_v19 = vadd.f32 %v7211_v18, %v11158_v59 }
 0x69a   :  { %7464 = vst [vmem:[#allocation8 + $0x80] sm:$0xff] %v9126_v16  ;;  %7463 = vst [vmem:[#allocation8 + $0x78] sm:$0xff] %v9043_v17  ;;  %v5313_v20 = vpop.f32.mrb[90].mxu1 }
 0x69b   :  { %7465 = vst [vmem:[#allocation8 + $0x88] sm:$0xff] %v9127_v19  ;;  %v9044_v21 = vadd.f32 %v5313_v20, %v11152_v56  ;;  %v7215_v22 = vpop.f32.mrb[90].mxu0  ;;  %v5315_v23 = vpop.f32.mrb[91].mxu1 }
 0x69c   :  { %v9128_v24 = vadd.f32 %v7215_v22, %v11154_v57  ;;  %v9045_v25 = vadd.f32 %v5315_v23, %v11156_v58  ;;  %v7217_v26 = vpop.f32.mrb[91].mxu0 }
 0x69d   :  { %7468 = vst [vmem:[#allocation8 + $0xa0] sm:$0xff] %v9044_v21  ;;  %v9129_v27 = vadd.f32 %v7217_v26, %v11158_v59 }
 0x69e   :  { %7470 = vst [vmem:[#allocation8 + $0xb0] sm:$0xff] %v9128_v24  ;;  %7469 = vst [vmem:[#allocation8 + $0xa8] sm:$0xff] %v9045_v25  ;;  %v5319_v28 = vpop.f32.mrb[92].mxu1 }
 0x69f   :  { %7471 = vst [vmem:[#allocation8 + $0xb8] sm:$0xff] %v9129_v27  ;;  %v9046_v29 = vadd.f32 %v5319_v28, %v11152_v56  ;;  %v7221_v30 = vpop.f32.mrb[92].mxu0  ;;  %v5321_v32 = vpop.f32.mrb[93].mxu1 }
 0x6a0   :  { %v9130_v33 = vadd.f32 %v7221_v30, %v11154_v57  ;;  %v9047_v34 = vadd.f32 %v5321_v32, %v11156_v58  ;;  %v7223_v35 = vpop.f32.mrb[93].mxu0 }
 0x6a1   :  { %7474 = vst [vmem:[#allocation8 + $0xd0] sm:$0xff] %v9046_v29  ;;  %v9131_v36 = vadd.f32 %v7223_v35, %v11158_v59 }
 0x6a2   :  { %7476 = vst [vmem:[#allocation8 + $0xe0] sm:$0xff] %v9130_v33  ;;  %7475 = vst [vmem:[#allocation8 + $0xd8] sm:$0xff] %v9047_v34  ;;  %v5325_v38 = vpop.f32.mrb[94].mxu1 }
 0x6a3   :  { %7477 = vst [vmem:[#allocation8 + $0xe8] sm:$0xff] %v9131_v36  ;;  %v9048_v39 = vadd.f32 %v5325_v38, %v11152_v56  ;;  %v7227_v40 = vpop.f32.mrb[94].mxu0  ;;  %v5327_v31 = vpop.f32.mrb[95].mxu1 }
 0x6a4   :  { %v9132_v41 = vadd.f32 %v7227_v40, %v11154_v57  ;;  %v9049_v42 = vadd.f32 %v5327_v31, %v11156_v58  ;;  %v7229_v43 = vpop.f32.mrb[95].mxu0 }
 0x6a5   :  { %7480 = vst [vmem:[#allocation8 + $0x100] sm:$0xff] %v9048_v39  ;;  %v9133_v44 = vadd.f32 %v7229_v43, %v11158_v59 }
 0x6a6   :  { %7482 = vst [vmem:[#allocation8 + $0x110] sm:$0xff] %v9132_v41  ;;  %7481 = vst [vmem:[#allocation8 + $0x108] sm:$0xff] %v9049_v42  ;;  %v5331_v45 = vpop.f32.mrb[96].mxu1 }
 0x6a7   :  { %7483 = vst [vmem:[#allocation8 + $0x118] sm:$0xff] %v9133_v44  ;;  %v9050_v46 = vadd.f32 %v5331_v45, %v11152_v56  ;;  %v7233_v37 = vpop.f32.mrb[96].mxu0  ;;  %v5333_v47 = vpop.f32.mrb[97].mxu1 }
 0x6a8   :  { %v9134_v48 = vadd.f32 %v7233_v37, %v11154_v57  ;;  %v9051_v49 = vadd.f32 %v5333_v47, %v11156_v58  ;;  %v7235_v50 = vpop.f32.mrb[97].mxu0 }
 0x6a9   :  { %7486 = vst [vmem:[#allocation8 + $0x130] sm:$0xff] %v9050_v46  ;;  %v9135_v51 = vadd.f32 %v7235_v50, %v11158_v59 }
 0x6aa   :  { %7488 = vst [vmem:[#allocation8 + $0x140] sm:$0xff] %v9134_v48  ;;  %7487 = vst [vmem:[#allocation8 + $0x138] sm:$0xff] %v9051_v49  ;;  %v5337_v52 = vpop.f32.mrb[98].mxu1 }
 0x6ab   :  { %7489 = vst [vmem:[#allocation8 + $0x148] sm:$0xff] %v9135_v51  ;;  %v9052_v53 = vadd.f32 %v5337_v52, %v11152_v56  ;;  %v7239_v54 = vpop.f32.mrb[98].mxu0  ;;  %v5339_v55 = vpop.f32.mrb[99].mxu1 }
 0x6ac   :  { %v9136_v60 = vadd.f32 %v7239_v54, %v11154_v57  ;;  %v9053_v61 = vadd.f32 %v5339_v55, %v11156_v58  ;;  %v7241_v62 = vpop.f32.mrb[99].mxu0 }
 0x6ad   :  { %7492 = vst [vmem:[#allocation8 + $0x160] sm:$0xff] %v9052_v53  ;;  %v9137_v0 = vadd.f32 %v7241_v62, %v11158_v59 }
 0x6ae   :  { %7494 = vst [vmem:[#allocation8 + $0x170] sm:$0xff] %v9136_v60  ;;  %7493 = vst [vmem:[#allocation8 + $0x168] sm:$0xff] %v9053_v61  ;;  %v5343_v1 = vpop.f32.mrb[100].mxu1 }
 0x6af   :  { %7495 = vst [vmem:[#allocation8 + $0x178] sm:$0xff] %v9137_v0  ;;  %v9054_v2 = vadd.f32 %v5343_v1, %v11152_v56  ;;  %v7245_v3 = vpop.f32.mrb[100].mxu0  ;;  %v5345_v63 = vpop.f32.mrb[101].mxu1 }
 0x6b0   :  { %v9138_v4 = vadd.f32 %v7245_v3, %v11154_v57  ;;  %v9055_v5 = vadd.f32 %v5345_v63, %v11156_v58  ;;  %v7247_v6 = vpop.f32.mrb[101].mxu0 }
 0x6b1   :  { %7498 = vst [vmem:[#allocation8 + $0x190] sm:$0xff] %v9054_v2  ;;  %v9139_v7 = vadd.f32 %v7247_v6, %v11158_v59 }
 0x6b2   :  { %7500 = vst [vmem:[#allocation8 + $0x1a0] sm:$0xff] %v9138_v4  ;;  %7499 = vst [vmem:[#allocation8 + $0x198] sm:$0xff] %v9055_v5  ;;  %v5349_v8 = vpop.f32.mrb[102].mxu1 }
 0x6b3   :  { %7501 = vst [vmem:[#allocation8 + $0x1a8] sm:$0xff] %v9139_v7  ;;  %v9056_v9 = vadd.f32 %v5349_v8, %v11152_v56  ;;  %v7251_v10 = vpop.f32.mrb[102].mxu0  ;;  %v5351_v11 = vpop.f32.mrb[103].mxu1 }
 0x6b4   :  { %v9140_v12 = vadd.f32 %v7251_v10, %v11154_v57  ;;  %v9057_v13 = vadd.f32 %v5351_v11, %v11156_v58  ;;  %v7253_v14 = vpop.f32.mrb[103].mxu0 }
 0x6b5   :  { %7504 = vst [vmem:[#allocation8 + $0x1c0] sm:$0xff] %v9056_v9  ;;  %v9141_v15 = vadd.f32 %v7253_v14, %v11158_v59 }
 0x6b6   :  { %7506 = vst [vmem:[#allocation8 + $0x1d0] sm:$0xff] %v9140_v12  ;;  %7505 = vst [vmem:[#allocation8 + $0x1c8] sm:$0xff] %v9057_v13  ;;  %v5355_v16 = vpop.f32.mrb[104].mxu1 }
 0x6b7   :  { %7507 = vst [vmem:[#allocation8 + $0x1d8] sm:$0xff] %v9141_v15  ;;  %v9058_v17 = vadd.f32 %v5355_v16, %v11152_v56  ;;  %v7257_v18 = vpop.f32.mrb[104].mxu0  ;;  %v5357_v19 = vpop.f32.mrb[105].mxu1 }
 0x6b8   :  { %v9142_v20 = vadd.f32 %v7257_v18, %v11154_v57  ;;  %v9059_v21 = vadd.f32 %v5357_v19, %v11156_v58  ;;  %v7259_v22 = vpop.f32.mrb[105].mxu0 }
 0x6b9   :  { %7510 = vst [vmem:[#allocation8 + $0x1f0] sm:$0xff] %v9058_v17  ;;  %v9143_v23 = vadd.f32 %v7259_v22, %v11158_v59 }
 0x6ba   :  { %7512 = vst [vmem:[#allocation8 + $0x200] sm:$0xff] %v9142_v20  ;;  %7511 = vst [vmem:[#allocation8 + $0x1f8] sm:$0xff] %v9059_v21  ;;  %v5361_v24 = vpop.f32.mrb[106].mxu1 }
 0x6bb   :  { %7513 = vst [vmem:[#allocation8 + $0x208] sm:$0xff] %v9143_v23  ;;  %v9060_v25 = vadd.f32 %v5361_v24, %v11152_v56  ;;  %v7263_v26 = vpop.f32.mrb[106].mxu0  ;;  %v5363_v27 = vpop.f32.mrb[107].mxu1 }
 0x6bc   :  { %v9144_v28 = vadd.f32 %v7263_v26, %v11154_v57  ;;  %v9061_v29 = vadd.f32 %v5363_v27, %v11156_v58  ;;  %v7265_v30 = vpop.f32.mrb[107].mxu0 }
 0x6bd   :  { %7516 = vst [vmem:[#allocation8 + $0x220] sm:$0xff] %v9060_v25  ;;  %v9145_v32 = vadd.f32 %v7265_v30, %v11158_v59 }
 0x6be   :  { %7518 = vst [vmem:[#allocation8 + $0x230] sm:$0xff] %v9144_v28  ;;  %7517 = vst [vmem:[#allocation8 + $0x228] sm:$0xff] %v9061_v29  ;;  %v5367_v33 = vpop.f32.mrb[108].mxu1 }
 0x6bf   :  { %7519 = vst [vmem:[#allocation8 + $0x238] sm:$0xff] %v9145_v32  ;;  %v9062_v34 = vadd.f32 %v5367_v33, %v11152_v56  ;;  %v7269_v35 = vpop.f32.mrb[108].mxu0  ;;  %v5369_v36 = vpop.f32.mrb[109].mxu1 }
 0x6c0   :  { %v9146_v38 = vadd.f32 %v7269_v35, %v11154_v57  ;;  %v9063_v39 = vadd.f32 %v5369_v36, %v11156_v58  ;;  %v7271_v40 = vpop.f32.mrb[109].mxu0 }
 0x6c1   :  { %7522 = vst [vmem:[#allocation8 + $0x250] sm:$0xff] %v9062_v34  ;;  %v9147_v31 = vadd.f32 %v7271_v40, %v11158_v59 }
 0x6c2   :  { %7524 = vst [vmem:[#allocation8 + $0x260] sm:$0xff] %v9146_v38  ;;  %7523 = vst [vmem:[#allocation8 + $0x258] sm:$0xff] %v9063_v39  ;;  %v5373_v41 = vpop.f32.mrb[110].mxu1 }
 0x6c3   :  { %7525 = vst [vmem:[#allocation8 + $0x268] sm:$0xff] %v9147_v31  ;;  %v9064_v42 = vadd.f32 %v5373_v41, %v11152_v56  ;;  %v7275_v43 = vpop.f32.mrb[110].mxu0  ;;  %v5375_v44 = vpop.f32.mrb[111].mxu1 }
 0x6c4   :  { %v9148_v45 = vadd.f32 %v7275_v43, %v11154_v57  ;;  %v9065_v46 = vadd.f32 %v5375_v44, %v11156_v58  ;;  %v7277_v37 = vpop.f32.mrb[111].mxu0 }
 0x6c5   :  { %7528 = vst [vmem:[#allocation8 + $0x280] sm:$0xff] %v9064_v42  ;;  %v9149_v47 = vadd.f32 %v7277_v37, %v11158_v59 }
 0x6c6   :  { %7530 = vst [vmem:[#allocation8 + $0x290] sm:$0xff] %v9148_v45  ;;  %7529 = vst [vmem:[#allocation8 + $0x288] sm:$0xff] %v9065_v46  ;;  %v5379_v48 = vpop.f32.mrb[112].mxu1 }
 0x6c7   :  { %7531 = vst [vmem:[#allocation8 + $0x298] sm:$0xff] %v9149_v47  ;;  %v9066_v49 = vadd.f32 %v5379_v48, %v11152_v56  ;;  %v7281_v50 = vpop.f32.mrb[112].mxu0  ;;  %v5381_v51 = vpop.f32.mrb[113].mxu1 }
 0x6c8   :  { %v9150_v52 = vadd.f32 %v7281_v50, %v11154_v57  ;;  %v9067_v53 = vadd.f32 %v5381_v51, %v11156_v58  ;;  %v7283_v54 = vpop.f32.mrb[113].mxu0 }
 0x6c9   :  { %7534 = vst [vmem:[#allocation8 + $0x2b0] sm:$0xff] %v9066_v49  ;;  %v9151_v55 = vadd.f32 %v7283_v54, %v11158_v59 }
 0x6ca   :  { %7536 = vst [vmem:[#allocation8 + $0x2c0] sm:$0xff] %v9150_v52  ;;  %7535 = vst [vmem:[#allocation8 + $0x2b8] sm:$0xff] %v9067_v53  ;;  %v5385_v60 = vpop.f32.mrb[114].mxu1 }
 0x6cb   :  { %7537 = vst [vmem:[#allocation8 + $0x2c8] sm:$0xff] %v9151_v55  ;;  %v9068_v61 = vadd.f32 %v5385_v60, %v11152_v56  ;;  %v7287_v62 = vpop.f32.mrb[114].mxu0  ;;  %v5387_v0 = vpop.f32.mrb[115].mxu1 }
 0x6cc   :  { %v9152_v1 = vadd.f32 %v7287_v62, %v11154_v57  ;;  %v9069_v2 = vadd.f32 %v5387_v0, %v11156_v58  ;;  %v7289_v3 = vpop.f32.mrb[115].mxu0 }
 0x6cd   :  { %7540 = vst [vmem:[#allocation8 + $0x2e0] sm:$0xff] %v9068_v61  ;;  %v9153_v63 = vadd.f32 %v7289_v3, %v11158_v59 }
 0x6ce   :  { %7542 = vst [vmem:[#allocation8 + $0x2f0] sm:$0xff] %v9152_v1  ;;  %7541 = vst [vmem:[#allocation8 + $0x2e8] sm:$0xff] %v9069_v2  ;;  %v5391_v4 = vpop.f32.mrb[116].mxu1 }
 0x6cf   :  { %7543 = vst [vmem:[#allocation8 + $0x2f8] sm:$0xff] %v9153_v63  ;;  %v9070_v5 = vadd.f32 %v5391_v4, %v11152_v56  ;;  %v7293_v6 = vpop.f32.mrb[116].mxu0  ;;  %v5393_v7 = vpop.f32.mrb[117].mxu1 }
 0x6d0   :  { %v9154_v8 = vadd.f32 %v7293_v6, %v11154_v57  ;;  %v9071_v9 = vadd.f32 %v5393_v7, %v11156_v58  ;;  %v7295_v10 = vpop.f32.mrb[117].mxu0 }
 0x6d1   :  { %7546 = vst [vmem:[#allocation8 + $0x310] sm:$0xff] %v9070_v5  ;;  %v9155_v11 = vadd.f32 %v7295_v10, %v11158_v59 }
 0x6d2   :  { %7548 = vst [vmem:[#allocation8 + $0x320] sm:$0xff] %v9154_v8  ;;  %7547 = vst [vmem:[#allocation8 + $0x318] sm:$0xff] %v9071_v9  ;;  %v5397_v12 = vpop.f32.mrb[118].mxu1 }
 0x6d3   :  { %7549 = vst [vmem:[#allocation8 + $0x328] sm:$0xff] %v9155_v11  ;;  %v9072_v13 = vadd.f32 %v5397_v12, %v11152_v56  ;;  %v7299_v14 = vpop.f32.mrb[118].mxu0  ;;  %v5399_v15 = vpop.f32.mrb[119].mxu1 }
 0x6d4   :  { %v9156_v16 = vadd.f32 %v7299_v14, %v11154_v57  ;;  %v9073_v17 = vadd.f32 %v5399_v15, %v11156_v58  ;;  %v7301_v18 = vpop.f32.mrb[119].mxu0 }
 0x6d5   :  { %7552 = vst [vmem:[#allocation8 + $0x340] sm:$0xff] %v9072_v13  ;;  %v9157_v19 = vadd.f32 %v7301_v18, %v11158_v59 }
 0x6d6   :  { %7554 = vst [vmem:[#allocation8 + $0x350] sm:$0xff] %v9156_v16  ;;  %7553 = vst [vmem:[#allocation8 + $0x348] sm:$0xff] %v9073_v17  ;;  %v5403_v20 = vpop.f32.mrb[120].mxu1 }
 0x6d7   :  { %7555 = vst [vmem:[#allocation8 + $0x358] sm:$0xff] %v9157_v19  ;;  %v9074_v21 = vadd.f32 %v5403_v20, %v11152_v56  ;;  %v7305_v22 = vpop.f32.mrb[120].mxu0  ;;  %v5405_v23 = vpop.f32.mrb[121].mxu1 }
 0x6d8   :  { %v9158_v24 = vadd.f32 %v7305_v22, %v11154_v57  ;;  %v9075_v25 = vadd.f32 %v5405_v23, %v11156_v58  ;;  %v7307_v26 = vpop.f32.mrb[121].mxu0 }
 0x6d9   :  { %7558 = vst [vmem:[#allocation8 + $0x370] sm:$0xff] %v9074_v21  ;;  %v9159_v27 = vadd.f32 %v7307_v26, %v11158_v59 }
 0x6da   :  { %7560 = vst [vmem:[#allocation8 + $0x380] sm:$0xff] %v9158_v24  ;;  %7559 = vst [vmem:[#allocation8 + $0x378] sm:$0xff] %v9075_v25  ;;  %v5409_v28 = vpop.f32.mrb[122].mxu1 }
 0x6db   :  { %7561 = vst [vmem:[#allocation8 + $0x388] sm:$0xff] %v9159_v27  ;;  %v9076_v29 = vadd.f32 %v5409_v28, %v11152_v56  ;;  %v7311_v30 = vpop.f32.mrb[122].mxu0  ;;  %v5411_v32 = vpop.f32.mrb[123].mxu1 }
 0x6dc   :  { %v9160_v33 = vadd.f32 %v7311_v30, %v11154_v57  ;;  %v9077_v34 = vadd.f32 %v5411_v32, %v11156_v58  ;;  %v7313_v35 = vpop.f32.mrb[123].mxu0 }
 0x6dd   :  { %7564 = vst [vmem:[#allocation8 + $0x3a0] sm:$0xff] %v9076_v29  ;;  %v9161_v36 = vadd.f32 %v7313_v35, %v11158_v59 }
 0x6de   :  { %7566 = vst [vmem:[#allocation8 + $0x3b0] sm:$0xff] %v9160_v33  ;;  %7565 = vst [vmem:[#allocation8 + $0x3a8] sm:$0xff] %v9077_v34  ;;  %v5415_v38 = vpop.f32.mrb[124].mxu1 }
 0x6df   :  { %7567 = vst [vmem:[#allocation8 + $0x3b8] sm:$0xff] %v9161_v36  ;;  %v9078_v39 = vadd.f32 %v5415_v38, %v11152_v56  ;;  %v7317_v40 = vpop.f32.mrb[124].mxu0  ;;  %v5417_v31 = vpop.f32.mrb[125].mxu1 }
 0x6e0   :  { %v9162_v41 = vadd.f32 %v7317_v40, %v11154_v57  ;;  %v9079_v42 = vadd.f32 %v5417_v31, %v11156_v58  ;;  %v7319_v43 = vpop.f32.mrb[125].mxu0 }
 0x6e1   :  { %7570 = vst [vmem:[#allocation8 + $0x3d0] sm:$0xff] %v9078_v39  ;;  %v9163_v44 = vadd.f32 %v7319_v43, %v11158_v59 }
 0x6e2   :  { %7572 = vst [vmem:[#allocation8 + $0x3e0] sm:$0xff] %v9162_v41  ;;  %7571 = vst [vmem:[#allocation8 + $0x3d8] sm:$0xff] %v9079_v42  ;;  %v5421_v45 = vpop.f32.mrb[126].mxu1 }
 0x6e3   :  { %7573 = vst [vmem:[#allocation8 + $0x3e8] sm:$0xff] %v9163_v44  ;;  %v9080_v46 = vadd.f32 %v5421_v45, %v11152_v56  ;;  %v7323_v37 = vpop.f32.mrb[126].mxu0  ;;  %v5423_v47 = vpop.f32.mrb[127].mxu1 }
 0x6e4   :  { %v9164_v48 = vadd.f32 %v7323_v37, %v11154_v57  ;;  %v9081_v49 = vadd.f32 %v5423_v47, %v11156_v58  ;;  %v7325_v50 = vpop.f32.mrb[127].mxu0 }
 0x6e5   :  { %7576 = vst [vmem:[#allocation8 + $0x400] sm:$0xff] %v9080_v46  ;;  %v9165_v51 = vadd.f32 %v7325_v50, %v11158_v59 }
 0x6e6   :  { %7578 = vst [vmem:[#allocation8 + $0x410] sm:$0xff] %v9164_v48  ;;  %7577 = vst [vmem:[#allocation8 + $0x408] sm:$0xff] %v9081_v49  ;;  %v5427_v52 = vpop.f32.mrb[128].mxu1 }
 0x6e7   :  { %7579 = vst [vmem:[#allocation8 + $0x418] sm:$0xff] %v9165_v51  ;;  %v9082_v53 = vadd.f32 %v5427_v52, %v11152_v56  ;;  %v7329_v54 = vpop.f32.mrb[128].mxu0  ;;  %v5429_v55 = vpop.f32.mrb[129].mxu1 }
 0x6e8   :  { %v9166_v60 = vadd.f32 %v7329_v54, %v11154_v57  ;;  %v9083_v61 = vadd.f32 %v5429_v55, %v11156_v58  ;;  %v7331_v62 = vpop.f32.mrb[129].mxu0 }
 0x6e9   :  { %7582 = vst [vmem:[#allocation8 + $0x430] sm:$0xff] %v9082_v53  ;;  %v9167_v0 = vadd.f32 %v7331_v62, %v11158_v59 }
 0x6ea   :  { %7584 = vst [vmem:[#allocation8 + $0x440] sm:$0xff] %v9166_v60  ;;  %7583 = vst [vmem:[#allocation8 + $0x438] sm:$0xff] %v9083_v61  ;;  %v5433_v1 = vpop.f32.mrb[130].mxu1 }
 0x6eb   :  { %7585 = vst [vmem:[#allocation8 + $0x448] sm:$0xff] %v9167_v0  ;;  %v9084_v2 = vadd.f32 %v5433_v1, %v11152_v56  ;;  %v7335_v3 = vpop.f32.mrb[130].mxu0  ;;  %v5435_v63 = vpop.f32.mrb[131].mxu1 }
 0x6ec   :  { %v9168_v4 = vadd.f32 %v7335_v3, %v11154_v57  ;;  %v9085_v5 = vadd.f32 %v5435_v63, %v11156_v58  ;;  %v7337_v6 = vpop.f32.mrb[131].mxu0 }
 0x6ed   :  { %7588 = vst [vmem:[#allocation8 + $0x460] sm:$0xff] %v9084_v2  ;;  %v9169_v7 = vadd.f32 %v7337_v6, %v11158_v59 }
 0x6ee   :  { %7590 = vst [vmem:[#allocation8 + $0x470] sm:$0xff] %v9168_v4  ;;  %7589 = vst [vmem:[#allocation8 + $0x468] sm:$0xff] %v9085_v5  ;;  %v5439_v8 = vpop.f32.mrb[132].mxu1 }
 0x6ef   :  { %7591 = vst [vmem:[#allocation8 + $0x478] sm:$0xff] %v9169_v7  ;;  %v9086_v9 = vadd.f32 %v5439_v8, %v11152_v56  ;;  %v7341_v10 = vpop.f32.mrb[132].mxu0  ;;  %v5441_v11 = vpop.f32.mrb[133].mxu1 }
 0x6f0   :  { %v9170_v12 = vadd.f32 %v7341_v10, %v11154_v57  ;;  %v9087_v13 = vadd.f32 %v5441_v11, %v11156_v58  ;;  %v7343_v14 = vpop.f32.mrb[133].mxu0 }
 0x6f1   :  { %7594 = vst [vmem:[#allocation8 + $0x490] sm:$0xff] %v9086_v9  ;;  %v9171_v15 = vadd.f32 %v7343_v14, %v11158_v59 }
 0x6f2   :  { %7596 = vst [vmem:[#allocation8 + $0x4a0] sm:$0xff] %v9170_v12  ;;  %7595 = vst [vmem:[#allocation8 + $0x498] sm:$0xff] %v9087_v13  ;;  %v5445_v16 = vpop.f32.mrb[134].mxu1 }
 0x6f3   :  { %7597 = vst [vmem:[#allocation8 + $0x4a8] sm:$0xff] %v9171_v15  ;;  %v9088_v17 = vadd.f32 %v5445_v16, %v11152_v56  ;;  %v7347_v18 = vpop.f32.mrb[134].mxu0  ;;  %v5447_v19 = vpop.f32.mrb[135].mxu1 }
 0x6f4   :  { %v9172_v20 = vadd.f32 %v7347_v18, %v11154_v57  ;;  %v9089_v21 = vadd.f32 %v5447_v19, %v11156_v58  ;;  %v7349_v22 = vpop.f32.mrb[135].mxu0 }
 0x6f5   :  { %7600 = vst [vmem:[#allocation8 + $0x4c0] sm:$0xff] %v9088_v17  ;;  %v9173_v23 = vadd.f32 %v7349_v22, %v11158_v59 }
 0x6f6   :  { %7602 = vst [vmem:[#allocation8 + $0x4d0] sm:$0xff] %v9172_v20  ;;  %7601 = vst [vmem:[#allocation8 + $0x4c8] sm:$0xff] %v9089_v21  ;;  %v5451_v24 = vpop.f32.mrb[136].mxu1 }
 0x6f7   :  { %7603 = vst [vmem:[#allocation8 + $0x4d8] sm:$0xff] %v9173_v23  ;;  %v9090_v25 = vadd.f32 %v5451_v24, %v11152_v56  ;;  %v7353_v26 = vpop.f32.mrb[136].mxu0  ;;  %v5453_v27 = vpop.f32.mrb[137].mxu1 }
 0x6f8   :  { %v9174_v28 = vadd.f32 %v7353_v26, %v11154_v57  ;;  %v9091_v29 = vadd.f32 %v5453_v27, %v11156_v58  ;;  %v7355_v30 = vpop.f32.mrb[137].mxu0 }
 0x6f9   :  { %7606 = vst [vmem:[#allocation8 + $0x4f0] sm:$0xff] %v9090_v25  ;;  %v9175_v32 = vadd.f32 %v7355_v30, %v11158_v59 }
 0x6fa   :  { %7608 = vst [vmem:[#allocation8 + $0x500] sm:$0xff] %v9174_v28  ;;  %7607 = vst [vmem:[#allocation8 + $0x4f8] sm:$0xff] %v9091_v29  ;;  %v5457_v33 = vpop.f32.mrb[138].mxu1 }
 0x6fb   :  { %7609 = vst [vmem:[#allocation8 + $0x508] sm:$0xff] %v9175_v32  ;;  %v9092_v34 = vadd.f32 %v5457_v33, %v11152_v56  ;;  %v7359_v35 = vpop.f32.mrb[138].mxu0  ;;  %v5459_v36 = vpop.f32.mrb[139].mxu1 }
 0x6fc   :  { %v9176_v38 = vadd.f32 %v7359_v35, %v11154_v57  ;;  %v9093_v39 = vadd.f32 %v5459_v36, %v11156_v58  ;;  %v7361_v40 = vpop.f32.mrb[139].mxu0 }
 0x6fd   :  { %7612 = vst [vmem:[#allocation8 + $0x520] sm:$0xff] %v9092_v34  ;;  %v9177_v31 = vadd.f32 %v7361_v40, %v11158_v59 }
 0x6fe   :  { %7614 = vst [vmem:[#allocation8 + $0x530] sm:$0xff] %v9176_v38  ;;  %7613 = vst [vmem:[#allocation8 + $0x528] sm:$0xff] %v9093_v39  ;;  %v5463_v41 = vpop.f32.mrb[140].mxu1 }
 0x6ff   :  { %7615 = vst [vmem:[#allocation8 + $0x538] sm:$0xff] %v9177_v31  ;;  %v9094_v42 = vadd.f32 %v5463_v41, %v11152_v56  ;;  %v7365_v43 = vpop.f32.mrb[140].mxu0  ;;  %v5465_v44 = vpop.f32.mrb[141].mxu1 }
 0x700   :  { %v9178_v45 = vadd.f32 %v7365_v43, %v11154_v57  ;;  %v9095_v46 = vadd.f32 %v5465_v44, %v11156_v58  ;;  %v7367_v37 = vpop.f32.mrb[141].mxu0 }
 0x701   :  { %7618 = vst [vmem:[#allocation8 + $0x550] sm:$0xff] %v9094_v42  ;;  %v9179_v47 = vadd.f32 %v7367_v37, %v11158_v59 }
 0x702   :  { %7620 = vst [vmem:[#allocation8 + $0x560] sm:$0xff] %v9178_v45  ;;  %7619 = vst [vmem:[#allocation8 + $0x558] sm:$0xff] %v9095_v46  ;;  %v5469_v48 = vpop.f32.mrb[142].mxu1 }
 0x703   :  { %7621 = vst [vmem:[#allocation8 + $0x568] sm:$0xff] %v9179_v47  ;;  %v9096_v49 = vadd.f32 %v5469_v48, %v11152_v56  ;;  %v7371_v50 = vpop.f32.mrb[142].mxu0  ;;  %v5471_v51 = vpop.f32.mrb[143].mxu1 }
 0x704   :  { %v9180_v52 = vadd.f32 %v7371_v50, %v11154_v57  ;;  %v9097_v53 = vadd.f32 %v5471_v51, %v11156_v58  ;;  %v7373_v54 = vpop.f32.mrb[143].mxu0 }
 0x705   :  { %7624 = vst [vmem:[#allocation8 + $0x580] sm:$0xff] %v9096_v49  ;;  %v9181_v55 = vadd.f32 %v7373_v54, %v11158_v59 }
 0x706   :  { %7626 = vst [vmem:[#allocation8 + $0x590] sm:$0xff] %v9180_v52  ;;  %7625 = vst [vmem:[#allocation8 + $0x588] sm:$0xff] %v9097_v53  ;;  %v5475_v60 = vpop.f32.mrb[144].mxu1 }
 0x707   :  { %7627 = vst [vmem:[#allocation8 + $0x598] sm:$0xff] %v9181_v55  ;;  %v9098_v61 = vadd.f32 %v5475_v60, %v11152_v56  ;;  %v7377_v62 = vpop.f32.mrb[144].mxu0  ;;  %v5477_v0 = vpop.f32.mrb[145].mxu1 }
 0x708   :  { %v9182_v1 = vadd.f32 %v7377_v62, %v11154_v57  ;;  %v9099_v2 = vadd.f32 %v5477_v0, %v11156_v58  ;;  %v7379_v3 = vpop.f32.mrb[145].mxu0 }
 0x709   :  { %7630 = vst [vmem:[#allocation8 + $0x5b0] sm:$0xff] %v9098_v61  ;;  %v9183_v63 = vadd.f32 %v7379_v3, %v11158_v59 }
 0x70a   :  { %7632 = vst [vmem:[#allocation8 + $0x5c0] sm:$0xff] %v9182_v1  ;;  %7631 = vst [vmem:[#allocation8 + $0x5b8] sm:$0xff] %v9099_v2  ;;  %v5481_v4 = vpop.f32.mrb[146].mxu1 }
 0x70b   :  { %7633 = vst [vmem:[#allocation8 + $0x5c8] sm:$0xff] %v9183_v63  ;;  %v9100_v5 = vadd.f32 %v5481_v4, %v11152_v56  ;;  %v7383_v6 = vpop.f32.mrb[146].mxu0  ;;  %v5483_v7 = vpop.f32.mrb[147].mxu1 }
 0x70c   :  { %v9184_v8 = vadd.f32 %v7383_v6, %v11154_v57  ;;  %v9101_v9 = vadd.f32 %v5483_v7, %v11156_v58  ;;  %v7385_v10 = vpop.f32.mrb[147].mxu0 }
 0x70d   :  { %7636 = vst [vmem:[#allocation8 + $0x5e0] sm:$0xff] %v9100_v5  ;;  %v9185_v11 = vadd.f32 %v7385_v10, %v11158_v59 }
 0x70e   :  { %7638 = vst [vmem:[#allocation8 + $0x5f0] sm:$0xff] %v9184_v8  ;;  %7637 = vst [vmem:[#allocation8 + $0x5e8] sm:$0xff] %v9101_v9  ;;  %v5487_v12 = vpop.f32.mrb[148].mxu1 }
 0x70f   :  { %7639 = vst [vmem:[#allocation8 + $0x5f8] sm:$0xff] %v9185_v11  ;;  %v9102_v13 = vadd.f32 %v5487_v12, %v11152_v56  ;;  %v7389_v14 = vpop.f32.mrb[148].mxu0  ;;  %v5489_v15 = vpop.f32.mrb[149].mxu1 }
 0x710   :  { %v9186_v16 = vadd.f32 %v7389_v14, %v11154_v57  ;;  %v9103_v17 = vadd.f32 %v5489_v15, %v11156_v58  ;;  %v7391_v18 = vpop.f32.mrb[149].mxu0 }
 0x711   :  { %7642 = vst [vmem:[#allocation8 + $0x610] sm:$0xff] %v9102_v13  ;;  %v9187_v19 = vadd.f32 %v7391_v18, %v11158_v59 }
 0x712   :  { %7644 = vst [vmem:[#allocation8 + $0x620] sm:$0xff] %v9186_v16  ;;  %7643 = vst [vmem:[#allocation8 + $0x618] sm:$0xff] %v9103_v17  ;;  %v5493_v20 = vpop.f32.mrb[150].mxu1 }
 0x713   :  { %7645 = vst [vmem:[#allocation8 + $0x628] sm:$0xff] %v9187_v19  ;;  %v9104_v21 = vadd.f32 %v5493_v20, %v11152_v56  ;;  %v7395_v22 = vpop.f32.mrb[150].mxu0  ;;  %v5495_v23 = vpop.f32.mrb[151].mxu1 }
 0x714   :  { %v9188_v24 = vadd.f32 %v7395_v22, %v11154_v57  ;;  %v9105_v25 = vadd.f32 %v5495_v23, %v11156_v58  ;;  %v7397_v26 = vpop.f32.mrb[151].mxu0 }
 0x715   :  { %7648 = vst [vmem:[#allocation8 + $0x640] sm:$0xff] %v9104_v21  ;;  %v9189_v27 = vadd.f32 %v7397_v26, %v11158_v59 }
 0x716   :  { %7650 = vst [vmem:[#allocation8 + $0x650] sm:$0xff] %v9188_v24  ;;  %7649 = vst [vmem:[#allocation8 + $0x648] sm:$0xff] %v9105_v25  ;;  %v5499_v28 = vpop.f32.mrb[152].mxu1 }
 0x717   :  { %7651 = vst [vmem:[#allocation8 + $0x658] sm:$0xff] %v9189_v27  ;;  %v9106_v29 = vadd.f32 %v5499_v28, %v11152_v56  ;;  %v7401_v30 = vpop.f32.mrb[152].mxu0  ;;  %v5501_v32 = vpop.f32.mrb[153].mxu1 }
 0x718   :  { %v9190_v33 = vadd.f32 %v7401_v30, %v11154_v57  ;;  %v9107_v34 = vadd.f32 %v5501_v32, %v11156_v58  ;;  %v7403_v35 = vpop.f32.mrb[153].mxu0 }
 0x719   :  { %7654 = vst [vmem:[#allocation8 + $0x670] sm:$0xff] %v9106_v29  ;;  %v9191_v36 = vadd.f32 %v7403_v35, %v11158_v59 }
 0x71a   :  { %7656 = vst [vmem:[#allocation8 + $0x680] sm:$0xff] %v9190_v33  ;;  %7655 = vst [vmem:[#allocation8 + $0x678] sm:$0xff] %v9107_v34  ;;  %v5505_v38 = vpop.f32.mrb[154].mxu1 }
 0x71b   :  { %7657 = vst [vmem:[#allocation8 + $0x688] sm:$0xff] %v9191_v36  ;;  %v9108_v39 = vadd.f32 %v5505_v38, %v11152_v56  ;;  %v7407_v40 = vpop.f32.mrb[154].mxu0  ;;  %v5507_v31 = vpop.f32.mrb[155].mxu1 }
 0x71c   :  { %v9192_v41 = vadd.f32 %v7407_v40, %v11154_v57  ;;  %v9109_v42 = vadd.f32 %v5507_v31, %v11156_v58  ;;  %v7409_v43 = vpop.f32.mrb[155].mxu0 }
 0x71d   :  { %7660 = vst [vmem:[#allocation8 + $0x6a0] sm:$0xff] %v9108_v39  ;;  %v9193_v44 = vadd.f32 %v7409_v43, %v11158_v59 }
 0x71e   :  { %7662 = vst [vmem:[#allocation8 + $0x6b0] sm:$0xff] %v9192_v41  ;;  %7661 = vst [vmem:[#allocation8 + $0x6a8] sm:$0xff] %v9109_v42  ;;  %v5511_v45 = vpop.f32.mrb[156].mxu1 }
 0x71f   :  { %7663 = vst [vmem:[#allocation8 + $0x6b8] sm:$0xff] %v9193_v44  ;;  %v9110_v46 = vadd.f32 %v5511_v45, %v11152_v56  ;;  %v7413_v37 = vpop.f32.mrb[156].mxu0  ;;  %v5513_v47 = vpop.f32.mrb[157].mxu1 }
 0x720   :  { %v9194_v48 = vadd.f32 %v7413_v37, %v11154_v57  ;;  %v9111_v49 = vadd.f32 %v5513_v47, %v11156_v58  ;;  %v7415_v50 = vpop.f32.mrb[157].mxu0 }
 0x721   :  { %7666 = vst [vmem:[#allocation8 + $0x6d0] sm:$0xff] %v9110_v46  ;;  %v9195_v51 = vadd.f32 %v7415_v50, %v11158_v59 }
 0x722   :  { %7668 = vst [vmem:[#allocation8 + $0x6e0] sm:$0xff] %v9194_v48  ;;  %7667 = vst [vmem:[#allocation8 + $0x6d8] sm:$0xff] %v9111_v49  ;;  %v5517_v52 = vpop.f32.mrb[158].mxu1 }
 0x723   :  { %7669 = vst [vmem:[#allocation8 + $0x6e8] sm:$0xff] %v9195_v51  ;;  %v9112_v53 = vadd.f32 %v5517_v52, %v11152_v56  ;;  %v7419_v54 = vpop.f32.mrb[158].mxu0  ;;  %v5519_v55 = vpop.f32.mrb[159].mxu1 }
 0x724   :  { %v9196_v60 = vadd.f32 %v7419_v54, %v11154_v57  ;;  %v9113_v61 = vadd.f32 %v5519_v55, %v11156_v58  ;;  %v7421_v62 = vpop.f32.mrb[159].mxu0 }
 0x725   :  { %7672 = vst [vmem:[#allocation8 + $0x700] sm:$0xff] %v9112_v53  ;;  %v9197_v0 = vadd.f32 %v7421_v62, %v11158_v59 }
 0x726   :  { %7674 = vst [vmem:[#allocation8 + $0x710] sm:$0xff] %v9196_v60  ;;  %7673 = vst [vmem:[#allocation8 + $0x708] sm:$0xff] %v9113_v61  ;;  %v5523_v1 = vpop.f32.mrb[160].mxu1 }
 0x727   :  { %7675 = vst [vmem:[#allocation8 + $0x718] sm:$0xff] %v9197_v0  ;;  %v9114_v2 = vadd.f32 %v5523_v1, %v11152_v56  ;;  %v7425_v3 = vpop.f32.mrb[160].mxu0  ;;  %v5525_v63 = vpop.f32.mrb[161].mxu1 }
 0x728   :  { %v9198_v4 = vadd.f32 %v7425_v3, %v11154_v57  ;;  %v9115_v5 = vadd.f32 %v5525_v63, %v11156_v58  ;;  %v7427_v6 = vpop.f32.mrb[161].mxu0 }
 0x729   :  { %7678 = vst [vmem:[#allocation8 + $0x730] sm:$0xff] %v9114_v2  ;;  %v9199_v7 = vadd.f32 %v7427_v6, %v11158_v59 }
 0x72a   :  { %7680 = vst [vmem:[#allocation8 + $0x740] sm:$0xff] %v9198_v4  ;;  %7679 = vst [vmem:[#allocation8 + $0x738] sm:$0xff] %v9115_v5  ;;  %v5529_v8 = vpop.f32.mrb[162].mxu1 }
 0x72b   :  { %7681 = vst [vmem:[#allocation8 + $0x748] sm:$0xff] %v9199_v7  ;;  %v9116_v9 = vadd.f32 %v5529_v8, %v11152_v56  ;;  %v7431_v10 = vpop.f32.mrb[162].mxu0  ;;  %v5531_v11 = vpop.f32.mrb[163].mxu1 }
 0x72c   :  { %v9200_v12 = vadd.f32 %v7431_v10, %v11154_v57  ;;  %v9117_v13 = vadd.f32 %v5531_v11, %v11156_v58  ;;  %v7433_v14 = vpop.f32.mrb[163].mxu0 }
 0x72d   :  { %7684 = vst [vmem:[#allocation8 + $0x760] sm:$0xff] %v9116_v9  ;;  %v9201_v15 = vadd.f32 %v7433_v14, %v11158_v59 }
 0x72e   :  { %7686 = vst [vmem:[#allocation8 + $0x770] sm:$0xff] %v9200_v12  ;;  %7685 = vst [vmem:[#allocation8 + $0x768] sm:$0xff] %v9117_v13  ;;  %v5535_v16 = vpop.f32.mrb[164].mxu1 }
 0x72f   :  { %7687 = vst [vmem:[#allocation8 + $0x778] sm:$0xff] %v9201_v15  ;;  %v9118_v17 = vadd.f32 %v5535_v16, %v11152_v56  ;;  %v7437_v18 = vpop.f32.mrb[164].mxu0  ;;  %v5537_v19 = vpop.f32.mrb[165].mxu1 }
 0x730   :  { %v9202_v20 = vadd.f32 %v7437_v18, %v11154_v57  ;;  %v9119_v21 = vadd.f32 %v5537_v19, %v11156_v58  ;;  %v7439_v22 = vpop.f32.mrb[165].mxu0 }
 0x731   :  { %7690 = vst [vmem:[#allocation8 + $0x790] sm:$0xff] %v9118_v17  ;;  %v9203_v23 = vadd.f32 %v7439_v22, %v11158_v59 }
 0x732   :  { %7692 = vst [vmem:[#allocation8 + $0x7a0] sm:$0xff] %v9202_v20  ;;  %7691 = vst [vmem:[#allocation8 + $0x798] sm:$0xff] %v9119_v21  ;;  %v5541_v24 = vpop.f32.mrb[166].mxu1 }
 0x733   :  { %7693 = vst [vmem:[#allocation8 + $0x7a8] sm:$0xff] %v9203_v23  ;;  %v9120_v25 = vadd.f32 %v5541_v24, %v11152_v56  ;;  %v7443_v26 = vpop.f32.mrb[166].mxu0  ;;  %v5543_v27 = vpop.f32.mrb[167].mxu1 }
 0x734   :  { %v9204_v28 = vadd.f32 %v7443_v26, %v11154_v57  ;;  %v9121_v29 = vadd.f32 %v5543_v27, %v11156_v58  ;;  %v7445_v30 = vpop.f32.mrb[167].mxu0 }
 0x735   :  { %7696 = vst [vmem:[#allocation8 + $0x7c0] sm:$0xff] %v9120_v25  ;;  %v9205_v32 = vadd.f32 %v7445_v30, %v11158_v59 }
 0x736   :  { %7698 = vst [vmem:[#allocation8 + $0x7d0] sm:$0xff] %v9204_v28  ;;  %7697 = vst [vmem:[#allocation8 + $0x7c8] sm:$0xff] %v9121_v29 }
 0x737   :  { %7699 = vst [vmem:[#allocation8 + $0x7d8] sm:$0xff] %v9205_v32 }
 0x738   :  { %10972 = shalt.err (!%p10969_p0)
}
 0x739   :  { %s10973_s29 = scalar_lea.hbm %s11346_s3, 32256 }
 0x73a   :  { %p10974_p1 = scmp.ne.s32.totalorder %s11346_s3, %s10973_s29  ;;  %p10977_p2 = scmp.lt.u32.totalorder %s10973_s29, %s11346_s3 }
 0x73c   :  { %p10979_p3 = pnand %p10977_p2, %p10974_p1 }
 0x73e   :  { %10982 = shalt.err (!%p10979_p3)
}
 0x73f   :  { %7711 = dma.vmem_to_hbm [thread:$0]  %s7706_s25, 32256, %s11346_s3, [#allocation4], %s10990_s22, %s10990_s22, %s10991_s23  }
 0x740   :  { %10987 = dma.done.wait [#allocation4], 32256  }
 0x741   :  { %10988 = vsyncadd [#allocation4], 4294935040 }
 0x742   :  { %7715 = vsyncpa [#allocation3], 1 }
 0x743   :  { %7716 = vsyncpa [#allocation6], 1 }
 0x744   :  { %7717 = vsyncpa [#allocation4], 1 }

</bundles_post_ra>
